<compile_context>
chip_gen: v6e
topology: v6e:2x2x1
jax: 0.10.0
libtpu: 0.0.40
codegen_flags: <defaults>
</compile_context>

<pallas_src>
import functools

import jax
import jax.numpy as jnp
from jax.experimental import pallas as pl
from jax.experimental.pallas import tpu as pltpu


_VMEM = pl.BlockSpec(memory_space=pltpu.MemorySpace.VMEM)


# -----------------------------------------------------------------------------
# Fused Pallas kernel: full encode + decode recurrence in one invocation
# -----------------------------------------------------------------------------
def make_graphrnn_kernel(*, seq_len, num_layers, in_feats, out_feats, n_nodes):
    f2 = 2 * out_feats
    f3 = 3 * out_feats

    def kernel(*refs):
        it = iter(refs)
        a_ref = next(it)
        xseq_ref = next(it)
        enc_refs = [tuple(next(it) for _ in range(4)) for _ in range(num_layers)]
        dec_refs = [tuple(next(it) for _ in range(4)) for _ in range(num_layers)]
        wout_ref = next(it)
        bout_ref = next(it)
        out_ref = next(it)          # output: (seq_len, N, in_feats)

        A = a_ref[...]              # (N, N) row-normalized adjacency, loaded once

        def cell(ax, h, ah, w_refs):
            """One GraphGRUCell step (5 MXU matmuls):
                 ax = A @ x   (passed in: reused from previous layer / precomputed)
                 ah = A @ h   (passed in: cached from this layer's previous step)
                 r|u = sigmoid(ax@[Wrx|Wux] + ah@[Wrh|Wuh] + b_ru)   (one sigmoid)
                 c   = sigmoid(ax@Wcx + (A@(r*h))@Wch + b_c)          (sigmoid as in ref)
                 h'  = u*h + (1-u)*c ;  ah' = A @ h'  (feeds next layer & next step)
               A is distributed over the concat-sum; gate weights are concatenated."""
            wx_ref, whru_ref, wch_ref, b_ref = w_refs
            mx = jnp.dot(ax, wx_ref[...],
                         preferred_element_type=jnp.float32) + b_ref[...]   # (N, 3*out)
            mh = jnp.dot(ah, whru_ref[...],
                         preferred_element_type=jnp.float32)                # (N, 2*out)
            ru = jax.nn.sigmoid(mx[:, :f2] + mh)                            # r | u fused
            r = ru[:, :out_feats]
            u = ru[:, out_feats:f2]
            arh = jnp.dot(A, r * h, preferred_element_type=jnp.float32)     # (N, out)
            c = jax.nn.sigmoid(
                mx[:, f2:f3]
                + jnp.dot(arh, wch_ref[...], preferred_element_type=jnp.float32))
            h_new = u * h + (1.0 - u) * c
            ah_new = jnp.dot(A, h_new, preferred_element_type=jnp.float32)  # (N, out)
            return h_new, ah_new

        # Recurrent state lives in registers (loops are fully unrolled).
        h = [jnp.zeros((n_nodes, out_feats), jnp.float32) for _ in range(num_layers)]
        # Cached A @ h (A @ 0 == 0 initially).
        ah = [jnp.zeros((n_nodes, out_feats), jnp.float32) for _ in range(num_layers)]

        # ------------------------------ encode ------------------------------
        for t in range(seq_len):
            ax = jnp.dot(A, xseq_ref[t], preferred_element_type=jnp.float32)
            for l in range(num_layers):
                h[l], ah[l] = cell(ax, h[l], ah[l], enc_refs[l])
                ax = ah[l]                       # next layer's A @ x

        # ------------- decode (inference: feed back own prediction) ----------
        w_out = wout_ref[...]
        b_out = bout_ref[...]
        ax = jnp.zeros((n_nodes, in_feats), jnp.float32)   # A @ 0 feedback at t=0
        for t in range(seq_len):
            for l in range(num_layers):
                h[l], ah[l] = cell(ax, h[l], ah[l], dec_refs[l])
                ax = ah[l]
            y = jnp.dot(h[num_layers - 1], w_out,
                        preferred_element_type=jnp.float32) + b_out
            out_ref[t] = y
            if t + 1 < seq_len:
                ax = jnp.dot(A, y, preferred_element_type=jnp.float32)

    return kernel


# -----------------------------------------------------------------------------
# Forward wrapper: single pallas_call for the whole forward pass
# -----------------------------------------------------------------------------
@functools.partial(jax.jit,
                   static_argnames=("in_feats", "out_feats", "seq_len", "num_layers"))
def graphrnn_forward(A, inputs, teacher_states, params, *,
                     in_feats, out_feats, seq_len, num_layers):
    del teacher_states  # inference mode (training=False): never used
    n_nodes = A.shape[0]
    f3 = 3 * out_feats

    flat = [A, inputs]
    for side in ("enc", "dec"):
        for l in range(num_layers):
            p = params[side][l]
            # Pre-broadcast biases host-side -> no broadcast ops inside the kernel.
            flat += [p["Wx"], p["Whru"], p["Wch"],
                     jnp.broadcast_to(p["b"], (n_nodes, f3))]
    flat += [params["W_out"],
             jnp.broadcast_to(params["b_out"], (n_nodes, in_feats))]

    kernel = make_graphrnn_kernel(seq_len=seq_len, num_layers=num_layers,
                                  in_feats=in_feats, out_feats=out_feats,
                                  n_nodes=n_nodes)
    return pl.pallas_call(
        kernel,
        out_shape=jax.ShapeDtypeStruct((seq_len, n_nodes, in_feats), jnp.float32),
        in_specs=[_VMEM] * len(flat),
        out_specs=_VMEM,
    )(*flat)


# -----------------------------------------------------------------------------
# Pure-JAX reference (same math, no Pallas) for correctness checking
# -----------------------------------------------------------------------------
def graphrnn_forward_ref(A, inputs, params, *, in_feats, out_feats, seq_len, num_layers):
    n_nodes = A.shape[0]

    def cell(x, h, p):
        ax, ah = A @ x, A @ h
        mx, mh = ax @ p["Wx"], ah @ p["Whru"]
        b = p["b"]
        r = jax.nn.sigmoid(mx[:, :out_feats] + mh[:, :out_feats] + b[:, :out_feats])
        u = jax.nn.sigmoid(mx[:, out_feats:2 * out_feats]
                           + mh[:, out_feats:2 * out_feats]
                           + b[:, out_feats:2 * out_feats])
        c = jax.nn.sigmoid(mx[:, 2 * out_feats:] + (A @ (r * h)) @ p["Wch"]
                           + b[:, 2 * out_feats:])
        return u * h + (1.0 - u) * c

    hidden = [jnp.zeros((n_nodes, out_feats), jnp.float32) for _ in range(num_layers)]
    for t in range(seq_len):
        x = inputs[t]
        for l in range(num_layers):
            hidden[l] = cell(x, hidden[l], params["enc"][l])
            x = hidden[l]
    outs = []
    x = jnp.zeros((n_nodes, in_feats), jnp.float32)
    for t in range(seq_len):
        for l in range(num_layers):
            hidden[l] = cell(x, hidden[l], params["dec"][l])
            x = hidden[l]
        x = x @ params["W_out"] + params["b_out"]
        outs.append(x)
    return jnp.stack(outs)


# -----------------------------------------------------------------------------
# Parameter construction (deterministic, shapes follow the PyTorch __init__;
# gate weights pre-concatenated for the fused kernel)
# -----------------------------------------------------------------------------
def _make_gru_cell_params(key, in_feats, out_feats):
    ks = jax.random.split(key, 9)
    scale = 1.0 / jnp.sqrt(jnp.float32(in_feats + out_feats))

    def w(k, rows):
        return jax.random.uniform(k, (rows, out_feats), jnp.float32,
                                  minval=-scale, maxval=scale)

    Wrx, Wux, Wcx = w(ks[0], in_feats), w(ks[1], in_feats), w(ks[2], in_feats)
    Wrh, Wuh, Wch = w(ks[3], out_feats), w(ks[4], out_feats), w(ks[5], out_feats)

    def bias(k):
        net_bias = jax.random.uniform(k, (out_feats,), jnp.float32,
                                      minval=-scale, maxval=scale)
        gate_bias = jax.random.uniform(jax.random.fold_in(k, 1),
                                       (out_feats,), jnp.float32)  # torch.rand(out)
        # NOTE: folding net bias + gate bias AFTER the A@ aggregation is exact only
        # because A is row-normalized (rows sum to 1), as constructed in __main__.
        return net_bias + gate_bias

    br, bu, bc = bias(ks[6]), bias(ks[7]), bias(ks[8])
    return {
        "Wx": jnp.concatenate([Wrx, Wux, Wcx], axis=1),        # (in, 3*out)
        "Whru": jnp.concatenate([Wrh, Wuh], axis=1),           # (out, 2*out)
        "Wch": Wch,                                            # (out, out)
        "b": jnp.concatenate([br, bu, bc]).reshape(1, 3 * out_feats),
    }


def make_graphrnn_params(key, in_feats, out_feats, num_layers):
    keys = jax.random.split(key, 2 * num_layers + 1)
    enc, dec = [], []
    for l in range(num_layers):
        cin = in_feats if l == 0 else out_feats
        enc.append(_make_gru_cell_params(keys[l], cin, out_feats))
        dec.append(_make_gru_cell_params(keys[num_layers + l], cin, out_feats))
    # Decoder out_layer: nn.Linear(out_feats, in_feats); W stored (out_feats, in_feats).
    k_w, k_b = jax.random.split(keys[-1])
    lim = 1.0 / jnp.sqrt(jnp.float32(out_feats))
    W_out = jax.random.uniform(k_w, (out_feats, in_feats), jnp.float32,
                               minval=-lim, maxval=lim)
    b_out = jax.random.uniform(k_b, (1, in_feats), jnp.float32,
                               minval=-lim, maxval=lim)
    return {"enc": enc, "dec": dec, "W_out": W_out, "b_out": b_out}


# -----------------------------------------------------------------------------
# Main
# -----------------------------------------------------------------------------
if __name__ == "__main__":
    in_feats = 4
    out_feats = 32
    seq_len = 8
    num_layers = 2
    num_nodes = 16

    key = jax.random.PRNGKey(0)
    k_adj, k_in, k_teach, k_par = jax.random.split(key, 4)

    # Dense row-normalized adjacency (with self-loops) standing in for `g`.
    adj = (jax.random.uniform(k_adj, (num_nodes, num_nodes)) < 0.3).astype(jnp.float32)
    adj = adj + jnp.eye(num_nodes, dtype=jnp.float32)
    A = adj / jnp.sum(adj, axis=1, keepdims=True)

    inputs = jax.random.normal(k_in, (seq_len, num_nodes, in_feats), jnp.float32)
    teacher_states = jax.random.normal(k_teach, (seq_len, num_nodes, in_feats),
                                       jnp.float32)

    params = make_graphrnn_params(k_par, in_feats, out_feats, num_layers)

    out = graphrnn_forward(A, inputs, teacher_states, params,
                           in_feats=in_feats, out_feats=out_feats,
                           seq_len=seq_len, num_layers=num_layers)
    out = jax.block_until_ready(out)

    ref = graphrnn_forward_ref(A, inputs, params,
                               in_feats=in_feats, out_feats=out_feats,
                               seq_len=seq_len, num_layers=num_layers)

    assert out.shape == (seq_len, num_nodes, in_feats)
    assert jnp.all(jnp.isfinite(out))
    assert jnp.allclose(out, ref, rtol=1e-5, atol=1e-5)
    print("KERNEL_OK")
</pallas_src>

<mosaic_0001>
module attributes {stable_mosaic.version = 11 : i64} {
  func.func @kernel(%arg0: memref<16x16xf32, #tpu.memory_space<vmem>>, %arg1: memref<8x16x4xf32, #tpu.memory_space<vmem>>, %arg2: memref<4x96xf32, #tpu.memory_space<vmem>>, %arg3: memref<32x64xf32, #tpu.memory_space<vmem>>, %arg4: memref<32x32xf32, #tpu.memory_space<vmem>>, %arg5: memref<16x96xf32, #tpu.memory_space<vmem>>, %arg6: memref<32x96xf32, #tpu.memory_space<vmem>>, %arg7: memref<32x64xf32, #tpu.memory_space<vmem>>, %arg8: memref<32x32xf32, #tpu.memory_space<vmem>>, %arg9: memref<16x96xf32, #tpu.memory_space<vmem>>, %arg10: memref<4x96xf32, #tpu.memory_space<vmem>>, %arg11: memref<32x64xf32, #tpu.memory_space<vmem>>, %arg12: memref<32x32xf32, #tpu.memory_space<vmem>>, %arg13: memref<16x96xf32, #tpu.memory_space<vmem>>, %arg14: memref<32x96xf32, #tpu.memory_space<vmem>>, %arg15: memref<32x64xf32, #tpu.memory_space<vmem>>, %arg16: memref<32x32xf32, #tpu.memory_space<vmem>>, %arg17: memref<16x96xf32, #tpu.memory_space<vmem>>, %arg18: memref<32x4xf32, #tpu.memory_space<vmem>>, %arg19: memref<16x4xf32, #tpu.memory_space<vmem>>, %arg20: memref<8x16x4xf32, #tpu.memory_space<vmem>>) attributes {dimension_semantics = [], scalar_prefetch = 0 : i64, scratch_operands = 0 : i64, tpu.core_type = #tpu.core_type<tc>} {
    %c0 = arith.constant 0 : index
    %c0_0 = arith.constant 0 : index
    %0 = vector.load %arg0[%c0, %c0_0] : memref<16x16xf32, #tpu.memory_space<vmem>>, vector<16x16xf32>
    %cst = arith.constant 0.000000e+00 : f32
    %1 = vector.broadcast %cst : f32 to vector<16x32xf32>
    %cst_1 = arith.constant 0.000000e+00 : f32
    %2 = vector.broadcast %cst_1 : f32 to vector<16x32xf32>
    %cst_2 = arith.constant 0.000000e+00 : f32
    %3 = vector.broadcast %cst_2 : f32 to vector<16x32xf32>
    %cst_3 = arith.constant 0.000000e+00 : f32
    %4 = vector.broadcast %cst_3 : f32 to vector<16x32xf32>
    %c0_4 = arith.constant 0 : index
    %c0_5 = arith.constant 0 : index
    %c0_6 = arith.constant 0 : index
    %5 = vector.load %arg1[%c0_4, %c0_5, %c0_6] : memref<8x16x4xf32, #tpu.memory_space<vmem>>, vector<1x16x4xf32>
    %6 = vector.shape_cast %5 : vector<1x16x4xf32> to vector<16x4xf32>
    %cst_7 = arith.constant dense<0.000000e+00> : vector<16x4xf32>
    %7 = tpu.matmul %0, %6, %cst_7 {dimension_numbers = #tpu.dot_dimension_numbers<[1], [0], [0], [1], [0, 0, 1, 1], [], []>} : vector<16x16xf32>, vector<16x4xf32>, vector<16x4xf32> -> vector<16x4xf32>
    %c0_8 = arith.constant 0 : index
    %c0_9 = arith.constant 0 : index
    %8 = vector.load %arg2[%c0_8, %c0_9] : memref<4x96xf32, #tpu.memory_space<vmem>>, vector<4x96xf32>
    %cst_10 = arith.constant dense<0.000000e+00> : vector<16x96xf32>
    %9 = tpu.matmul %7, %8, %cst_10 {dimension_numbers = #tpu.dot_dimension_numbers<[1], [0], [0], [1], [0, 0, 1, 1], [], []>} : vector<16x4xf32>, vector<4x96xf32>, vector<16x96xf32> -> vector<16x96xf32>
    %c0_11 = arith.constant 0 : index
    %c0_12 = arith.constant 0 : index
    %10 = vector.load %arg5[%c0_11, %c0_12] : memref<16x96xf32, #tpu.memory_space<vmem>>, vector<16x96xf32>
    %11 = arith.addf %9, %10 : vector<16x96xf32>
    %c0_13 = arith.constant 0 : index
    %c0_14 = arith.constant 0 : index
    %12 = vector.load %arg3[%c0_13, %c0_14] : memref<32x64xf32, #tpu.memory_space<vmem>>, vector<32x64xf32>
    %cst_15 = arith.constant dense<0.000000e+00> : vector<16x64xf32>
    %13 = tpu.matmul %3, %12, %cst_15 {dimension_numbers = #tpu.dot_dimension_numbers<[1], [0], [0], [1], [0, 0, 1, 1], [], []>} : vector<16x32xf32>, vector<32x64xf32>, vector<16x64xf32> -> vector<16x64xf32>
    %14 = vector.extract_strided_slice %11 {offsets = [0, 0], sizes = [16, 64], strides = [1, 1]} : vector<16x96xf32> to vector<16x64xf32>
    %15 = arith.addf %14, %13 : vector<16x64xf32>
    %16 = arith.negf %15 : vector<16x64xf32>
    %17 = math.exp %16 : vector<16x64xf32>
    %cst_16 = arith.constant 1.000000e+00 : f32
    %18 = vector.broadcast %cst_16 : f32 to vector<16x64xf32>
    %19 = arith.addf %18, %17 : vector<16x64xf32>
    %20 = arith.divf %18, %19 : vector<16x64xf32>
    %21 = vector.extract_strided_slice %20 {offsets = [0, 0], sizes = [16, 32], strides = [1, 1]} : vector<16x64xf32> to vector<16x32xf32>
    %22 = vector.extract_strided_slice %20 {offsets = [0, 32], sizes = [16, 32], strides = [1, 1]} : vector<16x64xf32> to vector<16x32xf32>
    %23 = arith.mulf %21, %1 : vector<16x32xf32>
    %cst_17 = arith.constant dense<0.000000e+00> : vector<16x32xf32>
    %24 = tpu.matmul %0, %23, %cst_17 {dimension_numbers = #tpu.dot_dimension_numbers<[1], [0], [0], [1], [0, 0, 1, 1], [], []>} : vector<16x16xf32>, vector<16x32xf32>, vector<16x32xf32> -> vector<16x32xf32>
    %25 = vector.extract_strided_slice %11 {offsets = [0, 64], sizes = [16, 32], strides = [1, 1]} : vector<16x96xf32> to vector<16x32xf32>
    %c0_18 = arith.constant 0 : index
    %c0_19 = arith.constant 0 : index
    %26 = vector.load %arg4[%c0_18, %c0_19] : memref<32x32xf32, #tpu.memory_space<vmem>>, vector<32x32xf32>
    %cst_20 = arith.constant dense<0.000000e+00> : vector<16x32xf32>
    %27 = tpu.matmul %24, %26, %cst_20 {dimension_numbers = #tpu.dot_dimension_numbers<[1], [0], [0], [1], [0, 0, 1, 1], [], []>} : vector<16x32xf32>, vector<32x32xf32>, vector<16x32xf32> -> vector<16x32xf32>
    %28 = arith.addf %25, %27 : vector<16x32xf32>
    %29 = arith.negf %28 : vector<16x32xf32>
    %30 = math.exp %29 : vector<16x32xf32>
    %cst_21 = arith.constant 1.000000e+00 : f32
    %31 = vector.broadcast %cst_21 : f32 to vector<16x32xf32>
    %32 = arith.addf %31, %30 : vector<16x32xf32>
    %33 = arith.divf %31, %32 : vector<16x32xf32>
    %34 = arith.mulf %22, %1 : vector<16x32xf32>
    %cst_22 = arith.constant 1.000000e+00 : f32
    %35 = vector.broadcast %cst_22 : f32 to vector<16x32xf32>
    %36 = arith.subf %35, %22 : vector<16x32xf32>
    %37 = arith.mulf %36, %33 : vector<16x32xf32>
    %38 = arith.addf %34, %37 : vector<16x32xf32>
    %cst_23 = arith.constant dense<0.000000e+00> : vector<16x32xf32>
    %39 = tpu.matmul %0, %38, %cst_23 {dimension_numbers = #tpu.dot_dimension_numbers<[1], [0], [0], [1], [0, 0, 1, 1], [], []>} : vector<16x16xf32>, vector<16x32xf32>, vector<16x32xf32> -> vector<16x32xf32>
    %c0_24 = arith.constant 0 : index
    %c0_25 = arith.constant 0 : index
    %40 = vector.load %arg6[%c0_24, %c0_25] : memref<32x96xf32, #tpu.memory_space<vmem>>, vector<32x96xf32>
    %cst_26 = arith.constant dense<0.000000e+00> : vector<16x96xf32>
    %41 = tpu.matmul %39, %40, %cst_26 {dimension_numbers = #tpu.dot_dimension_numbers<[1], [0], [0], [1], [0, 0, 1, 1], [], []>} : vector<16x32xf32>, vector<32x96xf32>, vector<16x96xf32> -> vector<16x96xf32>
    %c0_27 = arith.constant 0 : index
    %c0_28 = arith.constant 0 : index
    %42 = vector.load %arg9[%c0_27, %c0_28] : memref<16x96xf32, #tpu.memory_space<vmem>>, vector<16x96xf32>
    %43 = arith.addf %41, %42 : vector<16x96xf32>
    %c0_29 = arith.constant 0 : index
    %c0_30 = arith.constant 0 : index
    %44 = vector.load %arg7[%c0_29, %c0_30] : memref<32x64xf32, #tpu.memory_space<vmem>>, vector<32x64xf32>
    %cst_31 = arith.constant dense<0.000000e+00> : vector<16x64xf32>
    %45 = tpu.matmul %4, %44, %cst_31 {dimension_numbers = #tpu.dot_dimension_numbers<[1], [0], [0], [1], [0, 0, 1, 1], [], []>} : vector<16x32xf32>, vector<32x64xf32>, vector<16x64xf32> -> vector<16x64xf32>
    %46 = vector.extract_strided_slice %43 {offsets = [0, 0], sizes = [16, 64], strides = [1, 1]} : vector<16x96xf32> to vector<16x64xf32>
    %47 = arith.addf %46, %45 : vector<16x64xf32>
    %48 = arith.negf %47 : vector<16x64xf32>
    %49 = math.exp %48 : vector<16x64xf32>
    %cst_32 = arith.constant 1.000000e+00 : f32
    %50 = vector.broadcast %cst_32 : f32 to vector<16x64xf32>
    %51 = arith.addf %50, %49 : vector<16x64xf32>
    %52 = arith.divf %50, %51 : vector<16x64xf32>
    %53 = vector.extract_strided_slice %52 {offsets = [0, 0], sizes = [16, 32], strides = [1, 1]} : vector<16x64xf32> to vector<16x32xf32>
    %54 = vector.extract_strided_slice %52 {offsets = [0, 32], sizes = [16, 32], strides = [1, 1]} : vector<16x64xf32> to vector<16x32xf32>
    %55 = arith.mulf %53, %2 : vector<16x32xf32>
    %cst_33 = arith.constant dense<0.000000e+00> : vector<16x32xf32>
    %56 = tpu.matmul %0, %55, %cst_33 {dimension_numbers = #tpu.dot_dimension_numbers<[1], [0], [0], [1], [0, 0, 1, 1], [], []>} : vector<16x16xf32>, vector<16x32xf32>, vector<16x32xf32> -> vector<16x32xf32>
    %57 = vector.extract_strided_slice %43 {offsets = [0, 64], sizes = [16, 32], strides = [1, 1]} : vector<16x96xf32> to vector<16x32xf32>
    %c0_34 = arith.constant 0 : index
    %c0_35 = arith.constant 0 : index
    %58 = vector.load %arg8[%c0_34, %c0_35] : memref<32x32xf32, #tpu.memory_space<vmem>>, vector<32x32xf32>
    %cst_36 = arith.constant dense<0.000000e+00> : vector<16x32xf32>
    %59 = tpu.matmul %56, %58, %cst_36 {dimension_numbers = #tpu.dot_dimension_numbers<[1], [0], [0], [1], [0, 0, 1, 1], [], []>} : vector<16x32xf32>, vector<32x32xf32>, vector<16x32xf32> -> vector<16x32xf32>
    %60 = arith.addf %57, %59 : vector<16x32xf32>
    %61 = arith.negf %60 : vector<16x32xf32>
    %62 = math.exp %61 : vector<16x32xf32>
    %cst_37 = arith.constant 1.000000e+00 : f32
    %63 = vector.broadcast %cst_37 : f32 to vector<16x32xf32>
    %64 = arith.addf %63, %62 : vector<16x32xf32>
    %65 = arith.divf %63, %64 : vector<16x32xf32>
    %66 = arith.mulf %54, %2 : vector<16x32xf32>
    %cst_38 = arith.constant 1.000000e+00 : f32
    %67 = vector.broadcast %cst_38 : f32 to vector<16x32xf32>
    %68 = arith.subf %67, %54 : vector<16x32xf32>
    %69 = arith.mulf %68, %65 : vector<16x32xf32>
    %70 = arith.addf %66, %69 : vector<16x32xf32>
    %cst_39 = arith.constant dense<0.000000e+00> : vector<16x32xf32>
    %71 = tpu.matmul %0, %70, %cst_39 {dimension_numbers = #tpu.dot_dimension_numbers<[1], [0], [0], [1], [0, 0, 1, 1], [], []>} : vector<16x16xf32>, vector<16x32xf32>, vector<16x32xf32> -> vector<16x32xf32>
    %c1 = arith.constant 1 : index
    %c0_40 = arith.constant 0 : index
    %c0_41 = arith.constant 0 : index
    %72 = vector.load %arg1[%c1, %c0_40, %c0_41] : memref<8x16x4xf32, #tpu.memory_space<vmem>>, vector<1x16x4xf32>
    %73 = vector.shape_cast %72 : vector<1x16x4xf32> to vector<16x4xf32>
    %cst_42 = arith.constant dense<0.000000e+00> : vector<16x4xf32>
    %74 = tpu.matmul %0, %73, %cst_42 {dimension_numbers = #tpu.dot_dimension_numbers<[1], [0], [0], [1], [0, 0, 1, 1], [], []>} : vector<16x16xf32>, vector<16x4xf32>, vector<16x4xf32> -> vector<16x4xf32>
    %c0_43 = arith.constant 0 : index
    %c0_44 = arith.constant 0 : index
    %75 = vector.load %arg2[%c0_43, %c0_44] : memref<4x96xf32, #tpu.memory_space<vmem>>, vector<4x96xf32>
    %cst_45 = arith.constant dense<0.000000e+00> : vector<16x96xf32>
    %76 = tpu.matmul %74, %75, %cst_45 {dimension_numbers = #tpu.dot_dimension_numbers<[1], [0], [0], [1], [0, 0, 1, 1], [], []>} : vector<16x4xf32>, vector<4x96xf32>, vector<16x96xf32> -> vector<16x96xf32>
    %c0_46 = arith.constant 0 : index
    %c0_47 = arith.constant 0 : index
    %77 = vector.load %arg5[%c0_46, %c0_47] : memref<16x96xf32, #tpu.memory_space<vmem>>, vector<16x96xf32>
    %78 = arith.addf %76, %77 : vector<16x96xf32>
    %c0_48 = arith.constant 0 : index
    %c0_49 = arith.constant 0 : index
    %79 = vector.load %arg3[%c0_48, %c0_49] : memref<32x64xf32, #tpu.memory_space<vmem>>, vector<32x64xf32>
    %cst_50 = arith.constant dense<0.000000e+00> : vector<16x64xf32>
    %80 = tpu.matmul %39, %79, %cst_50 {dimension_numbers = #tpu.dot_dimension_numbers<[1], [0], [0], [1], [0, 0, 1, 1], [], []>} : vector<16x32xf32>, vector<32x64xf32>, vector<16x64xf32> -> vector<16x64xf32>
    %81 = vector.extract_strided_slice %78 {offsets = [0, 0], sizes = [16, 64], strides = [1, 1]} : vector<16x96xf32> to vector<16x64xf32>
    %82 = arith.addf %81, %80 : vector<16x64xf32>
    %83 = arith.negf %82 : vector<16x64xf32>
    %84 = math.exp %83 : vector<16x64xf32>
    %cst_51 = arith.constant 1.000000e+00 : f32
    %85 = vector.broadcast %cst_51 : f32 to vector<16x64xf32>
    %86 = arith.addf %85, %84 : vector<16x64xf32>
    %87 = arith.divf %85, %86 : vector<16x64xf32>
    %88 = vector.extract_strided_slice %87 {offsets = [0, 0], sizes = [16, 32], strides = [1, 1]} : vector<16x64xf32> to vector<16x32xf32>
    %89 = vector.extract_strided_slice %87 {offsets = [0, 32], sizes = [16, 32], strides = [1, 1]} : vector<16x64xf32> to vector<16x32xf32>
    %90 = arith.mulf %88, %38 : vector<16x32xf32>
    %cst_52 = arith.constant dense<0.000000e+00> : vector<16x32xf32>
    %91 = tpu.matmul %0, %90, %cst_52 {dimension_numbers = #tpu.dot_dimension_numbers<[1], [0], [0], [1], [0, 0, 1, 1], [], []>} : vector<16x16xf32>, vector<16x32xf32>, vector<16x32xf32> -> vector<16x32xf32>
    %92 = vector.extract_strided_slice %78 {offsets = [0, 64], sizes = [16, 32], strides = [1, 1]} : vector<16x96xf32> to vector<16x32xf32>
    %c0_53 = arith.constant 0 : index
    %c0_54 = arith.constant 0 : index
    %93 = vector.load %arg4[%c0_53, %c0_54] : memref<32x32xf32, #tpu.memory_space<vmem>>, vector<32x32xf32>
    %cst_55 = arith.constant dense<0.000000e+00> : vector<16x32xf32>
    %94 = tpu.matmul %91, %93, %cst_55 {dimension_numbers = #tpu.dot_dimension_numbers<[1], [0], [0], [1], [0, 0, 1, 1], [], []>} : vector<16x32xf32>, vector<32x32xf32>, vector<16x32xf32> -> vector<16x32xf32>
    %95 = arith.addf %92, %94 : vector<16x32xf32>
    %96 = arith.negf %95 : vector<16x32xf32>
    %97 = math.exp %96 : vector<16x32xf32>
    %cst_56 = arith.constant 1.000000e+00 : f32
    %98 = vector.broadcast %cst_56 : f32 to vector<16x32xf32>
    %99 = arith.addf %98, %97 : vector<16x32xf32>
    %100 = arith.divf %98, %99 : vector<16x32xf32>
    %101 = arith.mulf %89, %38 : vector<16x32xf32>
    %cst_57 = arith.constant 1.000000e+00 : f32
    %102 = vector.broadcast %cst_57 : f32 to vector<16x32xf32>
    %103 = arith.subf %102, %89 : vector<16x32xf32>
    %104 = arith.mulf %103, %100 : vector<16x32xf32>
    %105 = arith.addf %101, %104 : vector<16x32xf32>
    %cst_58 = arith.constant dense<0.000000e+00> : vector<16x32xf32>
    %106 = tpu.matmul %0, %105, %cst_58 {dimension_numbers = #tpu.dot_dimension_numbers<[1], [0], [0], [1], [0, 0, 1, 1], [], []>} : vector<16x16xf32>, vector<16x32xf32>, vector<16x32xf32> -> vector<16x32xf32>
    %c0_59 = arith.constant 0 : index
    %c0_60 = arith.constant 0 : index
    %107 = vector.load %arg6[%c0_59, %c0_60] : memref<32x96xf32, #tpu.memory_space<vmem>>, vector<32x96xf32>
    %cst_61 = arith.constant dense<0.000000e+00> : vector<16x96xf32>
    %108 = tpu.matmul %106, %107, %cst_61 {dimension_numbers = #tpu.dot_dimension_numbers<[1], [0], [0], [1], [0, 0, 1, 1], [], []>} : vector<16x32xf32>, vector<32x96xf32>, vector<16x96xf32> -> vector<16x96xf32>
    %c0_62 = arith.constant 0 : index
    %c0_63 = arith.constant 0 : index
    %109 = vector.load %arg9[%c0_62, %c0_63] : memref<16x96xf32, #tpu.memory_space<vmem>>, vector<16x96xf32>
    %110 = arith.addf %108, %109 : vector<16x96xf32>
    %c0_64 = arith.constant 0 : index
    %c0_65 = arith.constant 0 : index
    %111 = vector.load %arg7[%c0_64, %c0_65] : memref<32x64xf32, #tpu.memory_space<vmem>>, vector<32x64xf32>
    %cst_66 = arith.constant dense<0.000000e+00> : vector<16x64xf32>
    %112 = tpu.matmul %71, %111, %cst_66 {dimension_numbers = #tpu.dot_dimension_numbers<[1], [0], [0], [1], [0, 0, 1, 1], [], []>} : vector<16x32xf32>, vector<32x64xf32>, vector<16x64xf32> -> vector<16x64xf32>
    %113 = vector.extract_strided_slice %110 {offsets = [0, 0], sizes = [16, 64], strides = [1, 1]} : vector<16x96xf32> to vector<16x64xf32>
    %114 = arith.addf %113, %112 : vector<16x64xf32>
    %115 = arith.negf %114 : vector<16x64xf32>
    %116 = math.exp %115 : vector<16x64xf32>
    %cst_67 = arith.constant 1.000000e+00 : f32
    %117 = vector.broadcast %cst_67 : f32 to vector<16x64xf32>
    %118 = arith.addf %117, %116 : vector<16x64xf32>
    %119 = arith.divf %117, %118 : vector<16x64xf32>
    %120 = vector.extract_strided_slice %119 {offsets = [0, 0], sizes = [16, 32], strides = [1, 1]} : vector<16x64xf32> to vector<16x32xf32>
    %121 = vector.extract_strided_slice %119 {offsets = [0, 32], sizes = [16, 32], strides = [1, 1]} : vector<16x64xf32> to vector<16x32xf32>
    %122 = arith.mulf %120, %70 : vector<16x32xf32>
    %cst_68 = arith.constant dense<0.000000e+00> : vector<16x32xf32>
    %123 = tpu.matmul %0, %122, %cst_68 {dimension_numbers = #tpu.dot_dimension_numbers<[1], [0], [0], [1], [0, 0, 1, 1], [], []>} : vector<16x16xf32>, vector<16x32xf32>, vector<16x32xf32> -> vector<16x32xf32>
    %124 = vector.extract_strided_slice %110 {offsets = [0, 64], sizes = [16, 32], strides = [1, 1]} : vector<16x96xf32> to vector<16x32xf32>
    %c0_69 = arith.constant 0 : index
    %c0_70 = arith.constant 0 : index
    %125 = vector.load %arg8[%c0_69, %c0_70] : memref<32x32xf32, #tpu.memory_space<vmem>>, vector<32x32xf32>
    %cst_71 = arith.constant dense<0.000000e+00> : vector<16x32xf32>
    %126 = tpu.matmul %123, %125, %cst_71 {dimension_numbers = #tpu.dot_dimension_numbers<[1], [0], [0], [1], [0, 0, 1, 1], [], []>} : vector<16x32xf32>, vector<32x32xf32>, vector<16x32xf32> -> vector<16x32xf32>
    %127 = arith.addf %124, %126 : vector<16x32xf32>
    %128 = arith.negf %127 : vector<16x32xf32>
    %129 = math.exp %128 : vector<16x32xf32>
    %cst_72 = arith.constant 1.000000e+00 : f32
    %130 = vector.broadcast %cst_72 : f32 to vector<16x32xf32>
    %131 = arith.addf %130, %129 : vector<16x32xf32>
    %132 = arith.divf %130, %131 : vector<16x32xf32>
    %133 = arith.mulf %121, %70 : vector<16x32xf32>
    %cst_73 = arith.constant 1.000000e+00 : f32
    %134 = vector.broadcast %cst_73 : f32 to vector<16x32xf32>
    %135 = arith.subf %134, %121 : vector<16x32xf32>
    %136 = arith.mulf %135, %132 : vector<16x32xf32>
    %137 = arith.addf %133, %136 : vector<16x32xf32>
    %cst_74 = arith.constant dense<0.000000e+00> : vector<16x32xf32>
    %138 = tpu.matmul %0, %137, %cst_74 {dimension_numbers = #tpu.dot_dimension_numbers<[1], [0], [0], [1], [0, 0, 1, 1], [], []>} : vector<16x16xf32>, vector<16x32xf32>, vector<16x32xf32> -> vector<16x32xf32>
    %c2 = arith.constant 2 : index
    %c0_75 = arith.constant 0 : index
    %c0_76 = arith.constant 0 : index
    %139 = vector.load %arg1[%c2, %c0_75, %c0_76] : memref<8x16x4xf32, #tpu.memory_space<vmem>>, vector<1x16x4xf32>
    %140 = vector.shape_cast %139 : vector<1x16x4xf32> to vector<16x4xf32>
    %cst_77 = arith.constant dense<0.000000e+00> : vector<16x4xf32>
    %141 = tpu.matmul %0, %140, %cst_77 {dimension_numbers = #tpu.dot_dimension_numbers<[1], [0], [0], [1], [0, 0, 1, 1], [], []>} : vector<16x16xf32>, vector<16x4xf32>, vector<16x4xf32> -> vector<16x4xf32>
    %c0_78 = arith.constant 0 : index
    %c0_79 = arith.constant 0 : index
    %142 = vector.load %arg2[%c0_78, %c0_79] : memref<4x96xf32, #tpu.memory_space<vmem>>, vector<4x96xf32>
    %cst_80 = arith.constant dense<0.000000e+00> : vector<16x96xf32>
    %143 = tpu.matmul %141, %142, %cst_80 {dimension_numbers = #tpu.dot_dimension_numbers<[1], [0], [0], [1], [0, 0, 1, 1], [], []>} : vector<16x4xf32>, vector<4x96xf32>, vector<16x96xf32> -> vector<16x96xf32>
    %c0_81 = arith.constant 0 : index
    %c0_82 = arith.constant 0 : index
    %144 = vector.load %arg5[%c0_81, %c0_82] : memref<16x96xf32, #tpu.memory_space<vmem>>, vector<16x96xf32>
    %145 = arith.addf %143, %144 : vector<16x96xf32>
    %c0_83 = arith.constant 0 : index
    %c0_84 = arith.constant 0 : index
    %146 = vector.load %arg3[%c0_83, %c0_84] : memref<32x64xf32, #tpu.memory_space<vmem>>, vector<32x64xf32>
    %cst_85 = arith.constant dense<0.000000e+00> : vector<16x64xf32>
    %147 = tpu.matmul %106, %146, %cst_85 {dimension_numbers = #tpu.dot_dimension_numbers<[1], [0], [0], [1], [0, 0, 1, 1], [], []>} : vector<16x32xf32>, vector<32x64xf32>, vector<16x64xf32> -> vector<16x64xf32>
    %148 = vector.extract_strided_slice %145 {offsets = [0, 0], sizes = [16, 64], strides = [1, 1]} : vector<16x96xf32> to vector<16x64xf32>
    %149 = arith.addf %148, %147 : vector<16x64xf32>
    %150 = arith.negf %149 : vector<16x64xf32>
    %151 = math.exp %150 : vector<16x64xf32>
    %cst_86 = arith.constant 1.000000e+00 : f32
    %152 = vector.broadcast %cst_86 : f32 to vector<16x64xf32>
    %153 = arith.addf %152, %151 : vector<16x64xf32>
    %154 = arith.divf %152, %153 : vector<16x64xf32>
    %155 = vector.extract_strided_slice %154 {offsets = [0, 0], sizes = [16, 32], strides = [1, 1]} : vector<16x64xf32> to vector<16x32xf32>
    %156 = vector.extract_strided_slice %154 {offsets = [0, 32], sizes = [16, 32], strides = [1, 1]} : vector<16x64xf32> to vector<16x32xf32>
    %157 = arith.mulf %155, %105 : vector<16x32xf32>
    %cst_87 = arith.constant dense<0.000000e+00> : vector<16x32xf32>
    %158 = tpu.matmul %0, %157, %cst_87 {dimension_numbers = #tpu.dot_dimension_numbers<[1], [0], [0], [1], [0, 0, 1, 1], [], []>} : vector<16x16xf32>, vector<16x32xf32>, vector<16x32xf32> -> vector<16x32xf32>
    %159 = vector.extract_strided_slice %145 {offsets = [0, 64], sizes = [16, 32], strides = [1, 1]} : vector<16x96xf32> to vector<16x32xf32>
    %c0_88 = arith.constant 0 : index
    %c0_89 = arith.constant 0 : index
    %160 = vector.load %arg4[%c0_88, %c0_89] : memref<32x32xf32, #tpu.memory_space<vmem>>, vector<32x32xf32>
    %cst_90 = arith.constant dense<0.000000e+00> : vector<16x32xf32>
    %161 = tpu.matmul %158, %160, %cst_90 {dimension_numbers = #tpu.dot_dimension_numbers<[1], [0], [0], [1], [0, 0, 1, 1], [], []>} : vector<16x32xf32>, vector<32x32xf32>, vector<16x32xf32> -> vector<16x32xf32>
    %162 = arith.addf %159, %161 : vector<16x32xf32>
    %163 = arith.negf %162 : vector<16x32xf32>
    %164 = math.exp %163 : vector<16x32xf32>
    %cst_91 = arith.constant 1.000000e+00 : f32
    %165 = vector.broadcast %cst_91 : f32 to vector<16x32xf32>
    %166 = arith.addf %165, %164 : vector<16x32xf32>
    %167 = arith.divf %165, %166 : vector<16x32xf32>
    %168 = arith.mulf %156, %105 : vector<16x32xf32>
    %cst_92 = arith.constant 1.000000e+00 : f32
    %169 = vector.broadcast %cst_92 : f32 to vector<16x32xf32>
    %170 = arith.subf %169, %156 : vector<16x32xf32>
    %171 = arith.mulf %170, %167 : vector<16x32xf32>
    %172 = arith.addf %168, %171 : vector<16x32xf32>
    %cst_93 = arith.constant dense<0.000000e+00> : vector<16x32xf32>
    %173 = tpu.matmul %0, %172, %cst_93 {dimension_numbers = #tpu.dot_dimension_numbers<[1], [0], [0], [1], [0, 0, 1, 1], [], []>} : vector<16x16xf32>, vector<16x32xf32>, vector<16x32xf32> -> vector<16x32xf32>
    %c0_94 = arith.constant 0 : index
    %c0_95 = arith.constant 0 : index
    %174 = vector.load %arg6[%c0_94, %c0_95] : memref<32x96xf32, #tpu.memory_space<vmem>>, vector<32x96xf32>
    %cst_96 = arith.constant dense<0.000000e+00> : vector<16x96xf32>
    %175 = tpu.matmul %173, %174, %cst_96 {dimension_numbers = #tpu.dot_dimension_numbers<[1], [0], [0], [1], [0, 0, 1, 1], [], []>} : vector<16x32xf32>, vector<32x96xf32>, vector<16x96xf32> -> vector<16x96xf32>
    %c0_97 = arith.constant 0 : index
    %c0_98 = arith.constant 0 : index
    %176 = vector.load %arg9[%c0_97, %c0_98] : memref<16x96xf32, #tpu.memory_space<vmem>>, vector<16x96xf32>
    %177 = arith.addf %175, %176 : vector<16x96xf32>
    %c0_99 = arith.constant 0 : index
    %c0_100 = arith.constant 0 : index
    %178 = vector.load %arg7[%c0_99, %c0_100] : memref<32x64xf32, #tpu.memory_space<vmem>>, vector<32x64xf32>
    %cst_101 = arith.constant dense<0.000000e+00> : vector<16x64xf32>
    %179 = tpu.matmul %138, %178, %cst_101 {dimension_numbers = #tpu.dot_dimension_numbers<[1], [0], [0], [1], [0, 0, 1, 1], [], []>} : vector<16x32xf32>, vector<32x64xf32>, vector<16x64xf32> -> vector<16x64xf32>
    %180 = vector.extract_strided_slice %177 {offsets = [0, 0], sizes = [16, 64], strides = [1, 1]} : vector<16x96xf32> to vector<16x64xf32>
    %181 = arith.addf %180, %179 : vector<16x64xf32>
    %182 = arith.negf %181 : vector<16x64xf32>
    %183 = math.exp %182 : vector<16x64xf32>
    %cst_102 = arith.constant 1.000000e+00 : f32
    %184 = vector.broadcast %cst_102 : f32 to vector<16x64xf32>
    %185 = arith.addf %184, %183 : vector<16x64xf32>
    %186 = arith.divf %184, %185 : vector<16x64xf32>
    %187 = vector.extract_strided_slice %186 {offsets = [0, 0], sizes = [16, 32], strides = [1, 1]} : vector<16x64xf32> to vector<16x32xf32>
    %188 = vector.extract_strided_slice %186 {offsets = [0, 32], sizes = [16, 32], strides = [1, 1]} : vector<16x64xf32> to vector<16x32xf32>
    %189 = arith.mulf %187, %137 : vector<16x32xf32>
    %cst_103 = arith.constant dense<0.000000e+00> : vector<16x32xf32>
    %190 = tpu.matmul %0, %189, %cst_103 {dimension_numbers = #tpu.dot_dimension_numbers<[1], [0], [0], [1], [0, 0, 1, 1], [], []>} : vector<16x16xf32>, vector<16x32xf32>, vector<16x32xf32> -> vector<16x32xf32>
    %191 = vector.extract_strided_slice %177 {offsets = [0, 64], sizes = [16, 32], strides = [1, 1]} : vector<16x96xf32> to vector<16x32xf32>
    %c0_104 = arith.constant 0 : index
    %c0_105 = arith.constant 0 : index
    %192 = vector.load %arg8[%c0_104, %c0_105] : memref<32x32xf32, #tpu.memory_space<vmem>>, vector<32x32xf32>
    %cst_106 = arith.constant dense<0.000000e+00> : vector<16x32xf32>
    %193 = tpu.matmul %190, %192, %cst_106 {dimension_numbers = #tpu.dot_dimension_numbers<[1], [0], [0], [1], [0, 0, 1, 1], [], []>} : vector<16x32xf32>, vector<32x32xf32>, vector<16x32xf32> -> vector<16x32xf32>
    %194 = arith.addf %191, %193 : vector<16x32xf32>
    %195 = arith.negf %194 : vector<16x32xf32>
    %196 = math.exp %195 : vector<16x32xf32>
    %cst_107 = arith.constant 1.000000e+00 : f32
    %197 = vector.broadcast %cst_107 : f32 to vector<16x32xf32>
    %198 = arith.addf %197, %196 : vector<16x32xf32>
    %199 = arith.divf %197, %198 : vector<16x32xf32>
    %200 = arith.mulf %188, %137 : vector<16x32xf32>
    %cst_108 = arith.constant 1.000000e+00 : f32
    %201 = vector.broadcast %cst_108 : f32 to vector<16x32xf32>
    %202 = arith.subf %201, %188 : vector<16x32xf32>
    %203 = arith.mulf %202, %199 : vector<16x32xf32>
    %204 = arith.addf %200, %203 : vector<16x32xf32>
    %cst_109 = arith.constant dense<0.000000e+00> : vector<16x32xf32>
    %205 = tpu.matmul %0, %204, %cst_109 {dimension_numbers = #tpu.dot_dimension_numbers<[1], [0], [0], [1], [0, 0, 1, 1], [], []>} : vector<16x16xf32>, vector<16x32xf32>, vector<16x32xf32> -> vector<16x32xf32>
    %c3 = arith.constant 3 : index
    %c0_110 = arith.constant 0 : index
    %c0_111 = arith.constant 0 : index
    %206 = vector.load %arg1[%c3, %c0_110, %c0_111] : memref<8x16x4xf32, #tpu.memory_space<vmem>>, vector<1x16x4xf32>
    %207 = vector.shape_cast %206 : vector<1x16x4xf32> to vector<16x4xf32>
    %cst_112 = arith.constant dense<0.000000e+00> : vector<16x4xf32>
    %208 = tpu.matmul %0, %207, %cst_112 {dimension_numbers = #tpu.dot_dimension_numbers<[1], [0], [0], [1], [0, 0, 1, 1], [], []>} : vector<16x16xf32>, vector<16x4xf32>, vector<16x4xf32> -> vector<16x4xf32>
    %c0_113 = arith.constant 0 : index
    %c0_114 = arith.constant 0 : index
    %209 = vector.load %arg2[%c0_113, %c0_114] : memref<4x96xf32, #tpu.memory_space<vmem>>, vector<4x96xf32>
    %cst_115 = arith.constant dense<0.000000e+00> : vector<16x96xf32>
    %210 = tpu.matmul %208, %209, %cst_115 {dimension_numbers = #tpu.dot_dimension_numbers<[1], [0], [0], [1], [0, 0, 1, 1], [], []>} : vector<16x4xf32>, vector<4x96xf32>, vector<16x96xf32> -> vector<16x96xf32>
    %c0_116 = arith.constant 0 : index
    %c0_117 = arith.constant 0 : index
    %211 = vector.load %arg5[%c0_116, %c0_117] : memref<16x96xf32, #tpu.memory_space<vmem>>, vector<16x96xf32>
    %212 = arith.addf %210, %211 : vector<16x96xf32>
    %c0_118 = arith.constant 0 : index
    %c0_119 = arith.constant 0 : index
    %213 = vector.load %arg3[%c0_118, %c0_119] : memref<32x64xf32, #tpu.memory_space<vmem>>, vector<32x64xf32>
    %cst_120 = arith.constant dense<0.000000e+00> : vector<16x64xf32>
    %214 = tpu.matmul %173, %213, %cst_120 {dimension_numbers = #tpu.dot_dimension_numbers<[1], [0], [0], [1], [0, 0, 1, 1], [], []>} : vector<16x32xf32>, vector<32x64xf32>, vector<16x64xf32> -> vector<16x64xf32>
    %215 = vector.extract_strided_slice %212 {offsets = [0, 0], sizes = [16, 64], strides = [1, 1]} : vector<16x96xf32> to vector<16x64xf32>
    %216 = arith.addf %215, %214 : vector<16x64xf32>
    %217 = arith.negf %216 : vector<16x64xf32>
    %218 = math.exp %217 : vector<16x64xf32>
    %cst_121 = arith.constant 1.000000e+00 : f32
    %219 = vector.broadcast %cst_121 : f32 to vector<16x64xf32>
    %220 = arith.addf %219, %218 : vector<16x64xf32>
    %221 = arith.divf %219, %220 : vector<16x64xf32>
    %222 = vector.extract_strided_slice %221 {offsets = [0, 0], sizes = [16, 32], strides = [1, 1]} : vector<16x64xf32> to vector<16x32xf32>
    %223 = vector.extract_strided_slice %221 {offsets = [0, 32], sizes = [16, 32], strides = [1, 1]} : vector<16x64xf32> to vector<16x32xf32>
    %224 = arith.mulf %222, %172 : vector<16x32xf32>
    %cst_122 = arith.constant dense<0.000000e+00> : vector<16x32xf32>
    %225 = tpu.matmul %0, %224, %cst_122 {dimension_numbers = #tpu.dot_dimension_numbers<[1], [0], [0], [1], [0, 0, 1, 1], [], []>} : vector<16x16xf32>, vector<16x32xf32>, vector<16x32xf32> -> vector<16x32xf32>
    %226 = vector.extract_strided_slice %212 {offsets = [0, 64], sizes = [16, 32], strides = [1, 1]} : vector<16x96xf32> to vector<16x32xf32>
    %c0_123 = arith.constant 0 : index
    %c0_124 = arith.constant 0 : index
    %227 = vector.load %arg4[%c0_123, %c0_124] : memref<32x32xf32, #tpu.memory_space<vmem>>, vector<32x32xf32>
    %cst_125 = arith.constant dense<0.000000e+00> : vector<16x32xf32>
    %228 = tpu.matmul %225, %227, %cst_125 {dimension_numbers = #tpu.dot_dimension_numbers<[1], [0], [0], [1], [0, 0, 1, 1], [], []>} : vector<16x32xf32>, vector<32x32xf32>, vector<16x32xf32> -> vector<16x32xf32>
    %229 = arith.addf %226, %228 : vector<16x32xf32>
    %230 = arith.negf %229 : vector<16x32xf32>
    %231 = math.exp %230 : vector<16x32xf32>
    %cst_126 = arith.constant 1.000000e+00 : f32
    %232 = vector.broadcast %cst_126 : f32 to vector<16x32xf32>
    %233 = arith.addf %232, %231 : vector<16x32xf32>
    %234 = arith.divf %232, %233 : vector<16x32xf32>
    %235 = arith.mulf %223, %172 : vector<16x32xf32>
    %cst_127 = arith.constant 1.000000e+00 : f32
    %236 = vector.broadcast %cst_127 : f32 to vector<16x32xf32>
    %237 = arith.subf %236, %223 : vector<16x32xf32>
    %238 = arith.mulf %237, %234 : vector<16x32xf32>
    %239 = arith.addf %235, %238 : vector<16x32xf32>
    %cst_128 = arith.constant dense<0.000000e+00> : vector<16x32xf32>
    %240 = tpu.matmul %0, %239, %cst_128 {dimension_numbers = #tpu.dot_dimension_numbers<[1], [0], [0], [1], [0, 0, 1, 1], [], []>} : vector<16x16xf32>, vector<16x32xf32>, vector<16x32xf32> -> vector<16x32xf32>
    %c0_129 = arith.constant 0 : index
    %c0_130 = arith.constant 0 : index
    %241 = vector.load %arg6[%c0_129, %c0_130] : memref<32x96xf32, #tpu.memory_space<vmem>>, vector<32x96xf32>
    %cst_131 = arith.constant dense<0.000000e+00> : vector<16x96xf32>
    %242 = tpu.matmul %240, %241, %cst_131 {dimension_numbers = #tpu.dot_dimension_numbers<[1], [0], [0], [1], [0, 0, 1, 1], [], []>} : vector<16x32xf32>, vector<32x96xf32>, vector<16x96xf32> -> vector<16x96xf32>
    %c0_132 = arith.constant 0 : index
    %c0_133 = arith.constant 0 : index
    %243 = vector.load %arg9[%c0_132, %c0_133] : memref<16x96xf32, #tpu.memory_space<vmem>>, vector<16x96xf32>
    %244 = arith.addf %242, %243 : vector<16x96xf32>
    %c0_134 = arith.constant 0 : index
    %c0_135 = arith.constant 0 : index
    %245 = vector.load %arg7[%c0_134, %c0_135] : memref<32x64xf32, #tpu.memory_space<vmem>>, vector<32x64xf32>
    %cst_136 = arith.constant dense<0.000000e+00> : vector<16x64xf32>
    %246 = tpu.matmul %205, %245, %cst_136 {dimension_numbers = #tpu.dot_dimension_numbers<[1], [0], [0], [1], [0, 0, 1, 1], [], []>} : vector<16x32xf32>, vector<32x64xf32>, vector<16x64xf32> -> vector<16x64xf32>
    %247 = vector.extract_strided_slice %244 {offsets = [0, 0], sizes = [16, 64], strides = [1, 1]} : vector<16x96xf32> to vector<16x64xf32>
    %248 = arith.addf %247, %246 : vector<16x64xf32>
    %249 = arith.negf %248 : vector<16x64xf32>
    %250 = math.exp %249 : vector<16x64xf32>
    %cst_137 = arith.constant 1.000000e+00 : f32
    %251 = vector.broadcast %cst_137 : f32 to vector<16x64xf32>
    %252 = arith.addf %251, %250 : vector<16x64xf32>
    %253 = arith.divf %251, %252 : vector<16x64xf32>
    %254 = vector.extract_strided_slice %253 {offsets = [0, 0], sizes = [16, 32], strides = [1, 1]} : vector<16x64xf32> to vector<16x32xf32>
    %255 = vector.extract_strided_slice %253 {offsets = [0, 32], sizes = [16, 32], strides = [1, 1]} : vector<16x64xf32> to vector<16x32xf32>
    %256 = arith.mulf %254, %204 : vector<16x32xf32>
    %cst_138 = arith.constant dense<0.000000e+00> : vector<16x32xf32>
    %257 = tpu.matmul %0, %256, %cst_138 {dimension_numbers = #tpu.dot_dimension_numbers<[1], [0], [0], [1], [0, 0, 1, 1], [], []>} : vector<16x16xf32>, vector<16x32xf32>, vector<16x32xf32> -> vector<16x32xf32>
    %258 = vector.extract_strided_slice %244 {offsets = [0, 64], sizes = [16, 32], strides = [1, 1]} : vector<16x96xf32> to vector<16x32xf32>
    %c0_139 = arith.constant 0 : index
    %c0_140 = arith.constant 0 : index
    %259 = vector.load %arg8[%c0_139, %c0_140] : memref<32x32xf32, #tpu.memory_space<vmem>>, vector<32x32xf32>
    %cst_141 = arith.constant dense<0.000000e+00> : vector<16x32xf32>
    %260 = tpu.matmul %257, %259, %cst_141 {dimension_numbers = #tpu.dot_dimension_numbers<[1], [0], [0], [1], [0, 0, 1, 1], [], []>} : vector<16x32xf32>, vector<32x32xf32>, vector<16x32xf32> -> vector<16x32xf32>
    %261 = arith.addf %258, %260 : vector<16x32xf32>
    %262 = arith.negf %261 : vector<16x32xf32>
    %263 = math.exp %262 : vector<16x32xf32>
    %cst_142 = arith.constant 1.000000e+00 : f32
    %264 = vector.broadcast %cst_142 : f32 to vector<16x32xf32>
    %265 = arith.addf %264, %263 : vector<16x32xf32>
    %266 = arith.divf %264, %265 : vector<16x32xf32>
    %267 = arith.mulf %255, %204 : vector<16x32xf32>
    %cst_143 = arith.constant 1.000000e+00 : f32
    %268 = vector.broadcast %cst_143 : f32 to vector<16x32xf32>
    %269 = arith.subf %268, %255 : vector<16x32xf32>
    %270 = arith.mulf %269, %266 : vector<16x32xf32>
    %271 = arith.addf %267, %270 : vector<16x32xf32>
    %cst_144 = arith.constant dense<0.000000e+00> : vector<16x32xf32>
    %272 = tpu.matmul %0, %271, %cst_144 {dimension_numbers = #tpu.dot_dimension_numbers<[1], [0], [0], [1], [0, 0, 1, 1], [], []>} : vector<16x16xf32>, vector<16x32xf32>, vector<16x32xf32> -> vector<16x32xf32>
    %c4 = arith.constant 4 : index
    %c0_145 = arith.constant 0 : index
    %c0_146 = arith.constant 0 : index
    %273 = vector.load %arg1[%c4, %c0_145, %c0_146] : memref<8x16x4xf32, #tpu.memory_space<vmem>>, vector<1x16x4xf32>
    %274 = vector.shape_cast %273 : vector<1x16x4xf32> to vector<16x4xf32>
    %cst_147 = arith.constant dense<0.000000e+00> : vector<16x4xf32>
    %275 = tpu.matmul %0, %274, %cst_147 {dimension_numbers = #tpu.dot_dimension_numbers<[1], [0], [0], [1], [0, 0, 1, 1], [], []>} : vector<16x16xf32>, vector<16x4xf32>, vector<16x4xf32> -> vector<16x4xf32>
    %c0_148 = arith.constant 0 : index
    %c0_149 = arith.constant 0 : index
    %276 = vector.load %arg2[%c0_148, %c0_149] : memref<4x96xf32, #tpu.memory_space<vmem>>, vector<4x96xf32>
    %cst_150 = arith.constant dense<0.000000e+00> : vector<16x96xf32>
    %277 = tpu.matmul %275, %276, %cst_150 {dimension_numbers = #tpu.dot_dimension_numbers<[1], [0], [0], [1], [0, 0, 1, 1], [], []>} : vector<16x4xf32>, vector<4x96xf32>, vector<16x96xf32> -> vector<16x96xf32>
    %c0_151 = arith.constant 0 : index
    %c0_152 = arith.constant 0 : index
    %278 = vector.load %arg5[%c0_151, %c0_152] : memref<16x96xf32, #tpu.memory_space<vmem>>, vector<16x96xf32>
    %279 = arith.addf %277, %278 : vector<16x96xf32>
    %c0_153 = arith.constant 0 : index
    %c0_154 = arith.constant 0 : index
    %280 = vector.load %arg3[%c0_153, %c0_154] : memref<32x64xf32, #tpu.memory_space<vmem>>, vector<32x64xf32>
    %cst_155 = arith.constant dense<0.000000e+00> : vector<16x64xf32>
    %281 = tpu.matmul %240, %280, %cst_155 {dimension_numbers = #tpu.dot_dimension_numbers<[1], [0], [0], [1], [0, 0, 1, 1], [], []>} : vector<16x32xf32>, vector<32x64xf32>, vector<16x64xf32> -> vector<16x64xf32>
    %282 = vector.extract_strided_slice %279 {offsets = [0, 0], sizes = [16, 64], strides = [1, 1]} : vector<16x96xf32> to vector<16x64xf32>
    %283 = arith.addf %282, %281 : vector<16x64xf32>
    %284 = arith.negf %283 : vector<16x64xf32>
    %285 = math.exp %284 : vector<16x64xf32>
    %cst_156 = arith.constant 1.000000e+00 : f32
    %286 = vector.broadcast %cst_156 : f32 to vector<16x64xf32>
    %287 = arith.addf %286, %285 : vector<16x64xf32>
    %288 = arith.divf %286, %287 : vector<16x64xf32>
    %289 = vector.extract_strided_slice %288 {offsets = [0, 0], sizes = [16, 32], strides = [1, 1]} : vector<16x64xf32> to vector<16x32xf32>
    %290 = vector.extract_strided_slice %288 {offsets = [0, 32], sizes = [16, 32], strides = [1, 1]} : vector<16x64xf32> to vector<16x32xf32>
    %291 = arith.mulf %289, %239 : vector<16x32xf32>
    %cst_157 = arith.constant dense<0.000000e+00> : vector<16x32xf32>
    %292 = tpu.matmul %0, %291, %cst_157 {dimension_numbers = #tpu.dot_dimension_numbers<[1], [0], [0], [1], [0, 0, 1, 1], [], []>} : vector<16x16xf32>, vector<16x32xf32>, vector<16x32xf32> -> vector<16x32xf32>
    %293 = vector.extract_strided_slice %279 {offsets = [0, 64], sizes = [16, 32], strides = [1, 1]} : vector<16x96xf32> to vector<16x32xf32>
    %c0_158 = arith.constant 0 : index
    %c0_159 = arith.constant 0 : index
    %294 = vector.load %arg4[%c0_158, %c0_159] : memref<32x32xf32, #tpu.memory_space<vmem>>, vector<32x32xf32>
    %cst_160 = arith.constant dense<0.000000e+00> : vector<16x32xf32>
    %295 = tpu.matmul %292, %294, %cst_160 {dimension_numbers = #tpu.dot_dimension_numbers<[1], [0], [0], [1], [0, 0, 1, 1], [], []>} : vector<16x32xf32>, vector<32x32xf32>, vector<16x32xf32> -> vector<16x32xf32>
    %296 = arith.addf %293, %295 : vector<16x32xf32>
    %297 = arith.negf %296 : vector<16x32xf32>
    %298 = math.exp %297 : vector<16x32xf32>
    %cst_161 = arith.constant 1.000000e+00 : f32
    %299 = vector.broadcast %cst_161 : f32 to vector<16x32xf32>
    %300 = arith.addf %299, %298 : vector<16x32xf32>
    %301 = arith.divf %299, %300 : vector<16x32xf32>
    %302 = arith.mulf %290, %239 : vector<16x32xf32>
    %cst_162 = arith.constant 1.000000e+00 : f32
    %303 = vector.broadcast %cst_162 : f32 to vector<16x32xf32>
    %304 = arith.subf %303, %290 : vector<16x32xf32>
    %305 = arith.mulf %304, %301 : vector<16x32xf32>
    %306 = arith.addf %302, %305 : vector<16x32xf32>
    %cst_163 = arith.constant dense<0.000000e+00> : vector<16x32xf32>
    %307 = tpu.matmul %0, %306, %cst_163 {dimension_numbers = #tpu.dot_dimension_numbers<[1], [0], [0], [1], [0, 0, 1, 1], [], []>} : vector<16x16xf32>, vector<16x32xf32>, vector<16x32xf32> -> vector<16x32xf32>
    %c0_164 = arith.constant 0 : index
    %c0_165 = arith.constant 0 : index
    %308 = vector.load %arg6[%c0_164, %c0_165] : memref<32x96xf32, #tpu.memory_space<vmem>>, vector<32x96xf32>
    %cst_166 = arith.constant dense<0.000000e+00> : vector<16x96xf32>
    %309 = tpu.matmul %307, %308, %cst_166 {dimension_numbers = #tpu.dot_dimension_numbers<[1], [0], [0], [1], [0, 0, 1, 1], [], []>} : vector<16x32xf32>, vector<32x96xf32>, vector<16x96xf32> -> vector<16x96xf32>
    %c0_167 = arith.constant 0 : index
    %c0_168 = arith.constant 0 : index
    %310 = vector.load %arg9[%c0_167, %c0_168] : memref<16x96xf32, #tpu.memory_space<vmem>>, vector<16x96xf32>
    %311 = arith.addf %309, %310 : vector<16x96xf32>
    %c0_169 = arith.constant 0 : index
    %c0_170 = arith.constant 0 : index
    %312 = vector.load %arg7[%c0_169, %c0_170] : memref<32x64xf32, #tpu.memory_space<vmem>>, vector<32x64xf32>
    %cst_171 = arith.constant dense<0.000000e+00> : vector<16x64xf32>
    %313 = tpu.matmul %272, %312, %cst_171 {dimension_numbers = #tpu.dot_dimension_numbers<[1], [0], [0], [1], [0, 0, 1, 1], [], []>} : vector<16x32xf32>, vector<32x64xf32>, vector<16x64xf32> -> vector<16x64xf32>
    %314 = vector.extract_strided_slice %311 {offsets = [0, 0], sizes = [16, 64], strides = [1, 1]} : vector<16x96xf32> to vector<16x64xf32>
    %315 = arith.addf %314, %313 : vector<16x64xf32>
    %316 = arith.negf %315 : vector<16x64xf32>
    %317 = math.exp %316 : vector<16x64xf32>
    %cst_172 = arith.constant 1.000000e+00 : f32
    %318 = vector.broadcast %cst_172 : f32 to vector<16x64xf32>
    %319 = arith.addf %318, %317 : vector<16x64xf32>
    %320 = arith.divf %318, %319 : vector<16x64xf32>
    %321 = vector.extract_strided_slice %320 {offsets = [0, 0], sizes = [16, 32], strides = [1, 1]} : vector<16x64xf32> to vector<16x32xf32>
    %322 = vector.extract_strided_slice %320 {offsets = [0, 32], sizes = [16, 32], strides = [1, 1]} : vector<16x64xf32> to vector<16x32xf32>
    %323 = arith.mulf %321, %271 : vector<16x32xf32>
    %cst_173 = arith.constant dense<0.000000e+00> : vector<16x32xf32>
    %324 = tpu.matmul %0, %323, %cst_173 {dimension_numbers = #tpu.dot_dimension_numbers<[1], [0], [0], [1], [0, 0, 1, 1], [], []>} : vector<16x16xf32>, vector<16x32xf32>, vector<16x32xf32> -> vector<16x32xf32>
    %325 = vector.extract_strided_slice %311 {offsets = [0, 64], sizes = [16, 32], strides = [1, 1]} : vector<16x96xf32> to vector<16x32xf32>
    %c0_174 = arith.constant 0 : index
    %c0_175 = arith.constant 0 : index
    %326 = vector.load %arg8[%c0_174, %c0_175] : memref<32x32xf32, #tpu.memory_space<vmem>>, vector<32x32xf32>
    %cst_176 = arith.constant dense<0.000000e+00> : vector<16x32xf32>
    %327 = tpu.matmul %324, %326, %cst_176 {dimension_numbers = #tpu.dot_dimension_numbers<[1], [0], [0], [1], [0, 0, 1, 1], [], []>} : vector<16x32xf32>, vector<32x32xf32>, vector<16x32xf32> -> vector<16x32xf32>
    %328 = arith.addf %325, %327 : vector<16x32xf32>
    %329 = arith.negf %328 : vector<16x32xf32>
    %330 = math.exp %329 : vector<16x32xf32>
    %cst_177 = arith.constant 1.000000e+00 : f32
    %331 = vector.broadcast %cst_177 : f32 to vector<16x32xf32>
    %332 = arith.addf %331, %330 : vector<16x32xf32>
    %333 = arith.divf %331, %332 : vector<16x32xf32>
    %334 = arith.mulf %322, %271 : vector<16x32xf32>
    %cst_178 = arith.constant 1.000000e+00 : f32
    %335 = vector.broadcast %cst_178 : f32 to vector<16x32xf32>
    %336 = arith.subf %335, %322 : vector<16x32xf32>
    %337 = arith.mulf %336, %333 : vector<16x32xf32>
    %338 = arith.addf %334, %337 : vector<16x32xf32>
    %cst_179 = arith.constant dense<0.000000e+00> : vector<16x32xf32>
    %339 = tpu.matmul %0, %338, %cst_179 {dimension_numbers = #tpu.dot_dimension_numbers<[1], [0], [0], [1], [0, 0, 1, 1], [], []>} : vector<16x16xf32>, vector<16x32xf32>, vector<16x32xf32> -> vector<16x32xf32>
    %c5 = arith.constant 5 : index
    %c0_180 = arith.constant 0 : index
    %c0_181 = arith.constant 0 : index
    %340 = vector.load %arg1[%c5, %c0_180, %c0_181] : memref<8x16x4xf32, #tpu.memory_space<vmem>>, vector<1x16x4xf32>
    %341 = vector.shape_cast %340 : vector<1x16x4xf32> to vector<16x4xf32>
    %cst_182 = arith.constant dense<0.000000e+00> : vector<16x4xf32>
    %342 = tpu.matmul %0, %341, %cst_182 {dimension_numbers = #tpu.dot_dimension_numbers<[1], [0], [0], [1], [0, 0, 1, 1], [], []>} : vector<16x16xf32>, vector<16x4xf32>, vector<16x4xf32> -> vector<16x4xf32>
    %c0_183 = arith.constant 0 : index
    %c0_184 = arith.constant 0 : index
    %343 = vector.load %arg2[%c0_183, %c0_184] : memref<4x96xf32, #tpu.memory_space<vmem>>, vector<4x96xf32>
    %cst_185 = arith.constant dense<0.000000e+00> : vector<16x96xf32>
    %344 = tpu.matmul %342, %343, %cst_185 {dimension_numbers = #tpu.dot_dimension_numbers<[1], [0], [0], [1], [0, 0, 1, 1], [], []>} : vector<16x4xf32>, vector<4x96xf32>, vector<16x96xf32> -> vector<16x96xf32>
    %c0_186 = arith.constant 0 : index
    %c0_187 = arith.constant 0 : index
    %345 = vector.load %arg5[%c0_186, %c0_187] : memref<16x96xf32, #tpu.memory_space<vmem>>, vector<16x96xf32>
    %346 = arith.addf %344, %345 : vector<16x96xf32>
    %c0_188 = arith.constant 0 : index
    %c0_189 = arith.constant 0 : index
    %347 = vector.load %arg3[%c0_188, %c0_189] : memref<32x64xf32, #tpu.memory_space<vmem>>, vector<32x64xf32>
    %cst_190 = arith.constant dense<0.000000e+00> : vector<16x64xf32>
    %348 = tpu.matmul %307, %347, %cst_190 {dimension_numbers = #tpu.dot_dimension_numbers<[1], [0], [0], [1], [0, 0, 1, 1], [], []>} : vector<16x32xf32>, vector<32x64xf32>, vector<16x64xf32> -> vector<16x64xf32>
    %349 = vector.extract_strided_slice %346 {offsets = [0, 0], sizes = [16, 64], strides = [1, 1]} : vector<16x96xf32> to vector<16x64xf32>
    %350 = arith.addf %349, %348 : vector<16x64xf32>
    %351 = arith.negf %350 : vector<16x64xf32>
    %352 = math.exp %351 : vector<16x64xf32>
    %cst_191 = arith.constant 1.000000e+00 : f32
    %353 = vector.broadcast %cst_191 : f32 to vector<16x64xf32>
    %354 = arith.addf %353, %352 : vector<16x64xf32>
    %355 = arith.divf %353, %354 : vector<16x64xf32>
    %356 = vector.extract_strided_slice %355 {offsets = [0, 0], sizes = [16, 32], strides = [1, 1]} : vector<16x64xf32> to vector<16x32xf32>
    %357 = vector.extract_strided_slice %355 {offsets = [0, 32], sizes = [16, 32], strides = [1, 1]} : vector<16x64xf32> to vector<16x32xf32>
    %358 = arith.mulf %356, %306 : vector<16x32xf32>
    %cst_192 = arith.constant dense<0.000000e+00> : vector<16x32xf32>
    %359 = tpu.matmul %0, %358, %cst_192 {dimension_numbers = #tpu.dot_dimension_numbers<[1], [0], [0], [1], [0, 0, 1, 1], [], []>} : vector<16x16xf32>, vector<16x32xf32>, vector<16x32xf32> -> vector<16x32xf32>
    %360 = vector.extract_strided_slice %346 {offsets = [0, 64], sizes = [16, 32], strides = [1, 1]} : vector<16x96xf32> to vector<16x32xf32>
    %c0_193 = arith.constant 0 : index
    %c0_194 = arith.constant 0 : index
    %361 = vector.load %arg4[%c0_193, %c0_194] : memref<32x32xf32, #tpu.memory_space<vmem>>, vector<32x32xf32>
    %cst_195 = arith.constant dense<0.000000e+00> : vector<16x32xf32>
    %362 = tpu.matmul %359, %361, %cst_195 {dimension_numbers = #tpu.dot_dimension_numbers<[1], [0], [0], [1], [0, 0, 1, 1], [], []>} : vector<16x32xf32>, vector<32x32xf32>, vector<16x32xf32> -> vector<16x32xf32>
    %363 = arith.addf %360, %362 : vector<16x32xf32>
    %364 = arith.negf %363 : vector<16x32xf32>
    %365 = math.exp %364 : vector<16x32xf32>
    %cst_196 = arith.constant 1.000000e+00 : f32
    %366 = vector.broadcast %cst_196 : f32 to vector<16x32xf32>
    %367 = arith.addf %366, %365 : vector<16x32xf32>
    %368 = arith.divf %366, %367 : vector<16x32xf32>
    %369 = arith.mulf %357, %306 : vector<16x32xf32>
    %cst_197 = arith.constant 1.000000e+00 : f32
    %370 = vector.broadcast %cst_197 : f32 to vector<16x32xf32>
    %371 = arith.subf %370, %357 : vector<16x32xf32>
    %372 = arith.mulf %371, %368 : vector<16x32xf32>
    %373 = arith.addf %369, %372 : vector<16x32xf32>
    %cst_198 = arith.constant dense<0.000000e+00> : vector<16x32xf32>
    %374 = tpu.matmul %0, %373, %cst_198 {dimension_numbers = #tpu.dot_dimension_numbers<[1], [0], [0], [1], [0, 0, 1, 1], [], []>} : vector<16x16xf32>, vector<16x32xf32>, vector<16x32xf32> -> vector<16x32xf32>
    %c0_199 = arith.constant 0 : index
    %c0_200 = arith.constant 0 : index
    %375 = vector.load %arg6[%c0_199, %c0_200] : memref<32x96xf32, #tpu.memory_space<vmem>>, vector<32x96xf32>
    %cst_201 = arith.constant dense<0.000000e+00> : vector<16x96xf32>
    %376 = tpu.matmul %374, %375, %cst_201 {dimension_numbers = #tpu.dot_dimension_numbers<[1], [0], [0], [1], [0, 0, 1, 1], [], []>} : vector<16x32xf32>, vector<32x96xf32>, vector<16x96xf32> -> vector<16x96xf32>
    %c0_202 = arith.constant 0 : index
    %c0_203 = arith.constant 0 : index
    %377 = vector.load %arg9[%c0_202, %c0_203] : memref<16x96xf32, #tpu.memory_space<vmem>>, vector<16x96xf32>
    %378 = arith.addf %376, %377 : vector<16x96xf32>
    %c0_204 = arith.constant 0 : index
    %c0_205 = arith.constant 0 : index
    %379 = vector.load %arg7[%c0_204, %c0_205] : memref<32x64xf32, #tpu.memory_space<vmem>>, vector<32x64xf32>
    %cst_206 = arith.constant dense<0.000000e+00> : vector<16x64xf32>
    %380 = tpu.matmul %339, %379, %cst_206 {dimension_numbers = #tpu.dot_dimension_numbers<[1], [0], [0], [1], [0, 0, 1, 1], [], []>} : vector<16x32xf32>, vector<32x64xf32>, vector<16x64xf32> -> vector<16x64xf32>
    %381 = vector.extract_strided_slice %378 {offsets = [0, 0], sizes = [16, 64], strides = [1, 1]} : vector<16x96xf32> to vector<16x64xf32>
    %382 = arith.addf %381, %380 : vector<16x64xf32>
    %383 = arith.negf %382 : vector<16x64xf32>
    %384 = math.exp %383 : vector<16x64xf32>
    %cst_207 = arith.constant 1.000000e+00 : f32
    %385 = vector.broadcast %cst_207 : f32 to vector<16x64xf32>
    %386 = arith.addf %385, %384 : vector<16x64xf32>
    %387 = arith.divf %385, %386 : vector<16x64xf32>
    %388 = vector.extract_strided_slice %387 {offsets = [0, 0], sizes = [16, 32], strides = [1, 1]} : vector<16x64xf32> to vector<16x32xf32>
    %389 = vector.extract_strided_slice %387 {offsets = [0, 32], sizes = [16, 32], strides = [1, 1]} : vector<16x64xf32> to vector<16x32xf32>
    %390 = arith.mulf %388, %338 : vector<16x32xf32>
    %cst_208 = arith.constant dense<0.000000e+00> : vector<16x32xf32>
    %391 = tpu.matmul %0, %390, %cst_208 {dimension_numbers = #tpu.dot_dimension_numbers<[1], [0], [0], [1], [0, 0, 1, 1], [], []>} : vector<16x16xf32>, vector<16x32xf32>, vector<16x32xf32> -> vector<16x32xf32>
    %392 = vector.extract_strided_slice %378 {offsets = [0, 64], sizes = [16, 32], strides = [1, 1]} : vector<16x96xf32> to vector<16x32xf32>
    %c0_209 = arith.constant 0 : index
    %c0_210 = arith.constant 0 : index
    %393 = vector.load %arg8[%c0_209, %c0_210] : memref<32x32xf32, #tpu.memory_space<vmem>>, vector<32x32xf32>
    %cst_211 = arith.constant dense<0.000000e+00> : vector<16x32xf32>
    %394 = tpu.matmul %391, %393, %cst_211 {dimension_numbers = #tpu.dot_dimension_numbers<[1], [0], [0], [1], [0, 0, 1, 1], [], []>} : vector<16x32xf32>, vector<32x32xf32>, vector<16x32xf32> -> vector<16x32xf32>
    %395 = arith.addf %392, %394 : vector<16x32xf32>
    %396 = arith.negf %395 : vector<16x32xf32>
    %397 = math.exp %396 : vector<16x32xf32>
    %cst_212 = arith.constant 1.000000e+00 : f32
    %398 = vector.broadcast %cst_212 : f32 to vector<16x32xf32>
    %399 = arith.addf %398, %397 : vector<16x32xf32>
    %400 = arith.divf %398, %399 : vector<16x32xf32>
    %401 = arith.mulf %389, %338 : vector<16x32xf32>
    %cst_213 = arith.constant 1.000000e+00 : f32
    %402 = vector.broadcast %cst_213 : f32 to vector<16x32xf32>
    %403 = arith.subf %402, %389 : vector<16x32xf32>
    %404 = arith.mulf %403, %400 : vector<16x32xf32>
    %405 = arith.addf %401, %404 : vector<16x32xf32>
    %cst_214 = arith.constant dense<0.000000e+00> : vector<16x32xf32>
    %406 = tpu.matmul %0, %405, %cst_214 {dimension_numbers = #tpu.dot_dimension_numbers<[1], [0], [0], [1], [0, 0, 1, 1], [], []>} : vector<16x16xf32>, vector<16x32xf32>, vector<16x32xf32> -> vector<16x32xf32>
    %c6 = arith.constant 6 : index
    %c0_215 = arith.constant 0 : index
    %c0_216 = arith.constant 0 : index
    %407 = vector.load %arg1[%c6, %c0_215, %c0_216] : memref<8x16x4xf32, #tpu.memory_space<vmem>>, vector<1x16x4xf32>
    %408 = vector.shape_cast %407 : vector<1x16x4xf32> to vector<16x4xf32>
    %cst_217 = arith.constant dense<0.000000e+00> : vector<16x4xf32>
    %409 = tpu.matmul %0, %408, %cst_217 {dimension_numbers = #tpu.dot_dimension_numbers<[1], [0], [0], [1], [0, 0, 1, 1], [], []>} : vector<16x16xf32>, vector<16x4xf32>, vector<16x4xf32> -> vector<16x4xf32>
    %c0_218 = arith.constant 0 : index
    %c0_219 = arith.constant 0 : index
    %410 = vector.load %arg2[%c0_218, %c0_219] : memref<4x96xf32, #tpu.memory_space<vmem>>, vector<4x96xf32>
    %cst_220 = arith.constant dense<0.000000e+00> : vector<16x96xf32>
    %411 = tpu.matmul %409, %410, %cst_220 {dimension_numbers = #tpu.dot_dimension_numbers<[1], [0], [0], [1], [0, 0, 1, 1], [], []>} : vector<16x4xf32>, vector<4x96xf32>, vector<16x96xf32> -> vector<16x96xf32>
    %c0_221 = arith.constant 0 : index
    %c0_222 = arith.constant 0 : index
    %412 = vector.load %arg5[%c0_221, %c0_222] : memref<16x96xf32, #tpu.memory_space<vmem>>, vector<16x96xf32>
    %413 = arith.addf %411, %412 : vector<16x96xf32>
    %c0_223 = arith.constant 0 : index
    %c0_224 = arith.constant 0 : index
    %414 = vector.load %arg3[%c0_223, %c0_224] : memref<32x64xf32, #tpu.memory_space<vmem>>, vector<32x64xf32>
    %cst_225 = arith.constant dense<0.000000e+00> : vector<16x64xf32>
    %415 = tpu.matmul %374, %414, %cst_225 {dimension_numbers = #tpu.dot_dimension_numbers<[1], [0], [0], [1], [0, 0, 1, 1], [], []>} : vector<16x32xf32>, vector<32x64xf32>, vector<16x64xf32> -> vector<16x64xf32>
    %416 = vector.extract_strided_slice %413 {offsets = [0, 0], sizes = [16, 64], strides = [1, 1]} : vector<16x96xf32> to vector<16x64xf32>
    %417 = arith.addf %416, %415 : vector<16x64xf32>
    %418 = arith.negf %417 : vector<16x64xf32>
    %419 = math.exp %418 : vector<16x64xf32>
    %cst_226 = arith.constant 1.000000e+00 : f32
    %420 = vector.broadcast %cst_226 : f32 to vector<16x64xf32>
    %421 = arith.addf %420, %419 : vector<16x64xf32>
    %422 = arith.divf %420, %421 : vector<16x64xf32>
    %423 = vector.extract_strided_slice %422 {offsets = [0, 0], sizes = [16, 32], strides = [1, 1]} : vector<16x64xf32> to vector<16x32xf32>
    %424 = vector.extract_strided_slice %422 {offsets = [0, 32], sizes = [16, 32], strides = [1, 1]} : vector<16x64xf32> to vector<16x32xf32>
    %425 = arith.mulf %423, %373 : vector<16x32xf32>
    %cst_227 = arith.constant dense<0.000000e+00> : vector<16x32xf32>
    %426 = tpu.matmul %0, %425, %cst_227 {dimension_numbers = #tpu.dot_dimension_numbers<[1], [0], [0], [1], [0, 0, 1, 1], [], []>} : vector<16x16xf32>, vector<16x32xf32>, vector<16x32xf32> -> vector<16x32xf32>
    %427 = vector.extract_strided_slice %413 {offsets = [0, 64], sizes = [16, 32], strides = [1, 1]} : vector<16x96xf32> to vector<16x32xf32>
    %c0_228 = arith.constant 0 : index
    %c0_229 = arith.constant 0 : index
    %428 = vector.load %arg4[%c0_228, %c0_229] : memref<32x32xf32, #tpu.memory_space<vmem>>, vector<32x32xf32>
    %cst_230 = arith.constant dense<0.000000e+00> : vector<16x32xf32>
    %429 = tpu.matmul %426, %428, %cst_230 {dimension_numbers = #tpu.dot_dimension_numbers<[1], [0], [0], [1], [0, 0, 1, 1], [], []>} : vector<16x32xf32>, vector<32x32xf32>, vector<16x32xf32> -> vector<16x32xf32>
    %430 = arith.addf %427, %429 : vector<16x32xf32>
    %431 = arith.negf %430 : vector<16x32xf32>
    %432 = math.exp %431 : vector<16x32xf32>
    %cst_231 = arith.constant 1.000000e+00 : f32
    %433 = vector.broadcast %cst_231 : f32 to vector<16x32xf32>
    %434 = arith.addf %433, %432 : vector<16x32xf32>
    %435 = arith.divf %433, %434 : vector<16x32xf32>
    %436 = arith.mulf %424, %373 : vector<16x32xf32>
    %cst_232 = arith.constant 1.000000e+00 : f32
    %437 = vector.broadcast %cst_232 : f32 to vector<16x32xf32>
    %438 = arith.subf %437, %424 : vector<16x32xf32>
    %439 = arith.mulf %438, %435 : vector<16x32xf32>
    %440 = arith.addf %436, %439 : vector<16x32xf32>
    %cst_233 = arith.constant dense<0.000000e+00> : vector<16x32xf32>
    %441 = tpu.matmul %0, %440, %cst_233 {dimension_numbers = #tpu.dot_dimension_numbers<[1], [0], [0], [1], [0, 0, 1, 1], [], []>} : vector<16x16xf32>, vector<16x32xf32>, vector<16x32xf32> -> vector<16x32xf32>
    %c0_234 = arith.constant 0 : index
    %c0_235 = arith.constant 0 : index
    %442 = vector.load %arg6[%c0_234, %c0_235] : memref<32x96xf32, #tpu.memory_space<vmem>>, vector<32x96xf32>
    %cst_236 = arith.constant dense<0.000000e+00> : vector<16x96xf32>
    %443 = tpu.matmul %441, %442, %cst_236 {dimension_numbers = #tpu.dot_dimension_numbers<[1], [0], [0], [1], [0, 0, 1, 1], [], []>} : vector<16x32xf32>, vector<32x96xf32>, vector<16x96xf32> -> vector<16x96xf32>
    %c0_237 = arith.constant 0 : index
    %c0_238 = arith.constant 0 : index
    %444 = vector.load %arg9[%c0_237, %c0_238] : memref<16x96xf32, #tpu.memory_space<vmem>>, vector<16x96xf32>
    %445 = arith.addf %443, %444 : vector<16x96xf32>
    %c0_239 = arith.constant 0 : index
    %c0_240 = arith.constant 0 : index
    %446 = vector.load %arg7[%c0_239, %c0_240] : memref<32x64xf32, #tpu.memory_space<vmem>>, vector<32x64xf32>
    %cst_241 = arith.constant dense<0.000000e+00> : vector<16x64xf32>
    %447 = tpu.matmul %406, %446, %cst_241 {dimension_numbers = #tpu.dot_dimension_numbers<[1], [0], [0], [1], [0, 0, 1, 1], [], []>} : vector<16x32xf32>, vector<32x64xf32>, vector<16x64xf32> -> vector<16x64xf32>
    %448 = vector.extract_strided_slice %445 {offsets = [0, 0], sizes = [16, 64], strides = [1, 1]} : vector<16x96xf32> to vector<16x64xf32>
    %449 = arith.addf %448, %447 : vector<16x64xf32>
    %450 = arith.negf %449 : vector<16x64xf32>
    %451 = math.exp %450 : vector<16x64xf32>
    %cst_242 = arith.constant 1.000000e+00 : f32
    %452 = vector.broadcast %cst_242 : f32 to vector<16x64xf32>
    %453 = arith.addf %452, %451 : vector<16x64xf32>
    %454 = arith.divf %452, %453 : vector<16x64xf32>
    %455 = vector.extract_strided_slice %454 {offsets = [0, 0], sizes = [16, 32], strides = [1, 1]} : vector<16x64xf32> to vector<16x32xf32>
    %456 = vector.extract_strided_slice %454 {offsets = [0, 32], sizes = [16, 32], strides = [1, 1]} : vector<16x64xf32> to vector<16x32xf32>
    %457 = arith.mulf %455, %405 : vector<16x32xf32>
    %cst_243 = arith.constant dense<0.000000e+00> : vector<16x32xf32>
    %458 = tpu.matmul %0, %457, %cst_243 {dimension_numbers = #tpu.dot_dimension_numbers<[1], [0], [0], [1], [0, 0, 1, 1], [], []>} : vector<16x16xf32>, vector<16x32xf32>, vector<16x32xf32> -> vector<16x32xf32>
    %459 = vector.extract_strided_slice %445 {offsets = [0, 64], sizes = [16, 32], strides = [1, 1]} : vector<16x96xf32> to vector<16x32xf32>
    %c0_244 = arith.constant 0 : index
    %c0_245 = arith.constant 0 : index
    %460 = vector.load %arg8[%c0_244, %c0_245] : memref<32x32xf32, #tpu.memory_space<vmem>>, vector<32x32xf32>
    %cst_246 = arith.constant dense<0.000000e+00> : vector<16x32xf32>
    %461 = tpu.matmul %458, %460, %cst_246 {dimension_numbers = #tpu.dot_dimension_numbers<[1], [0], [0], [1], [0, 0, 1, 1], [], []>} : vector<16x32xf32>, vector<32x32xf32>, vector<16x32xf32> -> vector<16x32xf32>
    %462 = arith.addf %459, %461 : vector<16x32xf32>
    %463 = arith.negf %462 : vector<16x32xf32>
    %464 = math.exp %463 : vector<16x32xf32>
    %cst_247 = arith.constant 1.000000e+00 : f32
    %465 = vector.broadcast %cst_247 : f32 to vector<16x32xf32>
    %466 = arith.addf %465, %464 : vector<16x32xf32>
    %467 = arith.divf %465, %466 : vector<16x32xf32>
    %468 = arith.mulf %456, %405 : vector<16x32xf32>
    %cst_248 = arith.constant 1.000000e+00 : f32
    %469 = vector.broadcast %cst_248 : f32 to vector<16x32xf32>
    %470 = arith.subf %469, %456 : vector<16x32xf32>
    %471 = arith.mulf %470, %467 : vector<16x32xf32>
    %472 = arith.addf %468, %471 : vector<16x32xf32>
    %cst_249 = arith.constant dense<0.000000e+00> : vector<16x32xf32>
    %473 = tpu.matmul %0, %472, %cst_249 {dimension_numbers = #tpu.dot_dimension_numbers<[1], [0], [0], [1], [0, 0, 1, 1], [], []>} : vector<16x16xf32>, vector<16x32xf32>, vector<16x32xf32> -> vector<16x32xf32>
    %c7 = arith.constant 7 : index
    %c0_250 = arith.constant 0 : index
    %c0_251 = arith.constant 0 : index
    %474 = vector.load %arg1[%c7, %c0_250, %c0_251] : memref<8x16x4xf32, #tpu.memory_space<vmem>>, vector<1x16x4xf32>
    %475 = vector.shape_cast %474 : vector<1x16x4xf32> to vector<16x4xf32>
    %cst_252 = arith.constant dense<0.000000e+00> : vector<16x4xf32>
    %476 = tpu.matmul %0, %475, %cst_252 {dimension_numbers = #tpu.dot_dimension_numbers<[1], [0], [0], [1], [0, 0, 1, 1], [], []>} : vector<16x16xf32>, vector<16x4xf32>, vector<16x4xf32> -> vector<16x4xf32>
    %c0_253 = arith.constant 0 : index
    %c0_254 = arith.constant 0 : index
    %477 = vector.load %arg2[%c0_253, %c0_254] : memref<4x96xf32, #tpu.memory_space<vmem>>, vector<4x96xf32>
    %cst_255 = arith.constant dense<0.000000e+00> : vector<16x96xf32>
    %478 = tpu.matmul %476, %477, %cst_255 {dimension_numbers = #tpu.dot_dimension_numbers<[1], [0], [0], [1], [0, 0, 1, 1], [], []>} : vector<16x4xf32>, vector<4x96xf32>, vector<16x96xf32> -> vector<16x96xf32>
    %c0_256 = arith.constant 0 : index
    %c0_257 = arith.constant 0 : index
    %479 = vector.load %arg5[%c0_256, %c0_257] : memref<16x96xf32, #tpu.memory_space<vmem>>, vector<16x96xf32>
    %480 = arith.addf %478, %479 : vector<16x96xf32>
    %c0_258 = arith.constant 0 : index
    %c0_259 = arith.constant 0 : index
    %481 = vector.load %arg3[%c0_258, %c0_259] : memref<32x64xf32, #tpu.memory_space<vmem>>, vector<32x64xf32>
    %cst_260 = arith.constant dense<0.000000e+00> : vector<16x64xf32>
    %482 = tpu.matmul %441, %481, %cst_260 {dimension_numbers = #tpu.dot_dimension_numbers<[1], [0], [0], [1], [0, 0, 1, 1], [], []>} : vector<16x32xf32>, vector<32x64xf32>, vector<16x64xf32> -> vector<16x64xf32>
    %483 = vector.extract_strided_slice %480 {offsets = [0, 0], sizes = [16, 64], strides = [1, 1]} : vector<16x96xf32> to vector<16x64xf32>
    %484 = arith.addf %483, %482 : vector<16x64xf32>
    %485 = arith.negf %484 : vector<16x64xf32>
    %486 = math.exp %485 : vector<16x64xf32>
    %cst_261 = arith.constant 1.000000e+00 : f32
    %487 = vector.broadcast %cst_261 : f32 to vector<16x64xf32>
    %488 = arith.addf %487, %486 : vector<16x64xf32>
    %489 = arith.divf %487, %488 : vector<16x64xf32>
    %490 = vector.extract_strided_slice %489 {offsets = [0, 0], sizes = [16, 32], strides = [1, 1]} : vector<16x64xf32> to vector<16x32xf32>
    %491 = vector.extract_strided_slice %489 {offsets = [0, 32], sizes = [16, 32], strides = [1, 1]} : vector<16x64xf32> to vector<16x32xf32>
    %492 = arith.mulf %490, %440 : vector<16x32xf32>
    %cst_262 = arith.constant dense<0.000000e+00> : vector<16x32xf32>
    %493 = tpu.matmul %0, %492, %cst_262 {dimension_numbers = #tpu.dot_dimension_numbers<[1], [0], [0], [1], [0, 0, 1, 1], [], []>} : vector<16x16xf32>, vector<16x32xf32>, vector<16x32xf32> -> vector<16x32xf32>
    %494 = vector.extract_strided_slice %480 {offsets = [0, 64], sizes = [16, 32], strides = [1, 1]} : vector<16x96xf32> to vector<16x32xf32>
    %c0_263 = arith.constant 0 : index
    %c0_264 = arith.constant 0 : index
    %495 = vector.load %arg4[%c0_263, %c0_264] : memref<32x32xf32, #tpu.memory_space<vmem>>, vector<32x32xf32>
    %cst_265 = arith.constant dense<0.000000e+00> : vector<16x32xf32>
    %496 = tpu.matmul %493, %495, %cst_265 {dimension_numbers = #tpu.dot_dimension_numbers<[1], [0], [0], [1], [0, 0, 1, 1], [], []>} : vector<16x32xf32>, vector<32x32xf32>, vector<16x32xf32> -> vector<16x32xf32>
    %497 = arith.addf %494, %496 : vector<16x32xf32>
    %498 = arith.negf %497 : vector<16x32xf32>
    %499 = math.exp %498 : vector<16x32xf32>
    %cst_266 = arith.constant 1.000000e+00 : f32
    %500 = vector.broadcast %cst_266 : f32 to vector<16x32xf32>
    %501 = arith.addf %500, %499 : vector<16x32xf32>
    %502 = arith.divf %500, %501 : vector<16x32xf32>
    %503 = arith.mulf %491, %440 : vector<16x32xf32>
    %cst_267 = arith.constant 1.000000e+00 : f32
    %504 = vector.broadcast %cst_267 : f32 to vector<16x32xf32>
    %505 = arith.subf %504, %491 : vector<16x32xf32>
    %506 = arith.mulf %505, %502 : vector<16x32xf32>
    %507 = arith.addf %503, %506 : vector<16x32xf32>
    %cst_268 = arith.constant dense<0.000000e+00> : vector<16x32xf32>
    %508 = tpu.matmul %0, %507, %cst_268 {dimension_numbers = #tpu.dot_dimension_numbers<[1], [0], [0], [1], [0, 0, 1, 1], [], []>} : vector<16x16xf32>, vector<16x32xf32>, vector<16x32xf32> -> vector<16x32xf32>
    %c0_269 = arith.constant 0 : index
    %c0_270 = arith.constant 0 : index
    %509 = vector.load %arg6[%c0_269, %c0_270] : memref<32x96xf32, #tpu.memory_space<vmem>>, vector<32x96xf32>
    %cst_271 = arith.constant dense<0.000000e+00> : vector<16x96xf32>
    %510 = tpu.matmul %508, %509, %cst_271 {dimension_numbers = #tpu.dot_dimension_numbers<[1], [0], [0], [1], [0, 0, 1, 1], [], []>} : vector<16x32xf32>, vector<32x96xf32>, vector<16x96xf32> -> vector<16x96xf32>
    %c0_272 = arith.constant 0 : index
    %c0_273 = arith.constant 0 : index
    %511 = vector.load %arg9[%c0_272, %c0_273] : memref<16x96xf32, #tpu.memory_space<vmem>>, vector<16x96xf32>
    %512 = arith.addf %510, %511 : vector<16x96xf32>
    %c0_274 = arith.constant 0 : index
    %c0_275 = arith.constant 0 : index
    %513 = vector.load %arg7[%c0_274, %c0_275] : memref<32x64xf32, #tpu.memory_space<vmem>>, vector<32x64xf32>
    %cst_276 = arith.constant dense<0.000000e+00> : vector<16x64xf32>
    %514 = tpu.matmul %473, %513, %cst_276 {dimension_numbers = #tpu.dot_dimension_numbers<[1], [0], [0], [1], [0, 0, 1, 1], [], []>} : vector<16x32xf32>, vector<32x64xf32>, vector<16x64xf32> -> vector<16x64xf32>
    %515 = vector.extract_strided_slice %512 {offsets = [0, 0], sizes = [16, 64], strides = [1, 1]} : vector<16x96xf32> to vector<16x64xf32>
    %516 = arith.addf %515, %514 : vector<16x64xf32>
    %517 = arith.negf %516 : vector<16x64xf32>
    %518 = math.exp %517 : vector<16x64xf32>
    %cst_277 = arith.constant 1.000000e+00 : f32
    %519 = vector.broadcast %cst_277 : f32 to vector<16x64xf32>
    %520 = arith.addf %519, %518 : vector<16x64xf32>
    %521 = arith.divf %519, %520 : vector<16x64xf32>
    %522 = vector.extract_strided_slice %521 {offsets = [0, 0], sizes = [16, 32], strides = [1, 1]} : vector<16x64xf32> to vector<16x32xf32>
    %523 = vector.extract_strided_slice %521 {offsets = [0, 32], sizes = [16, 32], strides = [1, 1]} : vector<16x64xf32> to vector<16x32xf32>
    %524 = arith.mulf %522, %472 : vector<16x32xf32>
    %cst_278 = arith.constant dense<0.000000e+00> : vector<16x32xf32>
    %525 = tpu.matmul %0, %524, %cst_278 {dimension_numbers = #tpu.dot_dimension_numbers<[1], [0], [0], [1], [0, 0, 1, 1], [], []>} : vector<16x16xf32>, vector<16x32xf32>, vector<16x32xf32> -> vector<16x32xf32>
    %526 = vector.extract_strided_slice %512 {offsets = [0, 64], sizes = [16, 32], strides = [1, 1]} : vector<16x96xf32> to vector<16x32xf32>
    %c0_279 = arith.constant 0 : index
    %c0_280 = arith.constant 0 : index
    %527 = vector.load %arg8[%c0_279, %c0_280] : memref<32x32xf32, #tpu.memory_space<vmem>>, vector<32x32xf32>
    %cst_281 = arith.constant dense<0.000000e+00> : vector<16x32xf32>
    %528 = tpu.matmul %525, %527, %cst_281 {dimension_numbers = #tpu.dot_dimension_numbers<[1], [0], [0], [1], [0, 0, 1, 1], [], []>} : vector<16x32xf32>, vector<32x32xf32>, vector<16x32xf32> -> vector<16x32xf32>
    %529 = arith.addf %526, %528 : vector<16x32xf32>
    %530 = arith.negf %529 : vector<16x32xf32>
    %531 = math.exp %530 : vector<16x32xf32>
    %cst_282 = arith.constant 1.000000e+00 : f32
    %532 = vector.broadcast %cst_282 : f32 to vector<16x32xf32>
    %533 = arith.addf %532, %531 : vector<16x32xf32>
    %534 = arith.divf %532, %533 : vector<16x32xf32>
    %535 = arith.mulf %523, %472 : vector<16x32xf32>
    %cst_283 = arith.constant 1.000000e+00 : f32
    %536 = vector.broadcast %cst_283 : f32 to vector<16x32xf32>
    %537 = arith.subf %536, %523 : vector<16x32xf32>
    %538 = arith.mulf %537, %534 : vector<16x32xf32>
    %539 = arith.addf %535, %538 : vector<16x32xf32>
    %cst_284 = arith.constant dense<0.000000e+00> : vector<16x32xf32>
    %540 = tpu.matmul %0, %539, %cst_284 {dimension_numbers = #tpu.dot_dimension_numbers<[1], [0], [0], [1], [0, 0, 1, 1], [], []>} : vector<16x16xf32>, vector<16x32xf32>, vector<16x32xf32> -> vector<16x32xf32>
    %c0_285 = arith.constant 0 : index
    %c0_286 = arith.constant 0 : index
    %541 = vector.load %arg18[%c0_285, %c0_286] : memref<32x4xf32, #tpu.memory_space<vmem>>, vector<32x4xf32>
    %c0_287 = arith.constant 0 : index
    %c0_288 = arith.constant 0 : index
    %542 = vector.load %arg19[%c0_287, %c0_288] : memref<16x4xf32, #tpu.memory_space<vmem>>, vector<16x4xf32>
    %cst_289 = arith.constant 0.000000e+00 : f32
    %543 = vector.broadcast %cst_289 : f32 to vector<16x4xf32>
    %c0_290 = arith.constant 0 : index
    %c0_291 = arith.constant 0 : index
    %544 = vector.load %arg10[%c0_290, %c0_291] : memref<4x96xf32, #tpu.memory_space<vmem>>, vector<4x96xf32>
    %cst_292 = arith.constant dense<0.000000e+00> : vector<16x96xf32>
    %545 = tpu.matmul %543, %544, %cst_292 {dimension_numbers = #tpu.dot_dimension_numbers<[1], [0], [0], [1], [0, 0, 1, 1], [], []>} : vector<16x4xf32>, vector<4x96xf32>, vector<16x96xf32> -> vector<16x96xf32>
    %c0_293 = arith.constant 0 : index
    %c0_294 = arith.constant 0 : index
    %546 = vector.load %arg13[%c0_293, %c0_294] : memref<16x96xf32, #tpu.memory_space<vmem>>, vector<16x96xf32>
    %547 = arith.addf %545, %546 : vector<16x96xf32>
    %c0_295 = arith.constant 0 : index
    %c0_296 = arith.constant 0 : index
    %548 = vector.load %arg11[%c0_295, %c0_296] : memref<32x64xf32, #tpu.memory_space<vmem>>, vector<32x64xf32>
    %cst_297 = arith.constant dense<0.000000e+00> : vector<16x64xf32>
    %549 = tpu.matmul %508, %548, %cst_297 {dimension_numbers = #tpu.dot_dimension_numbers<[1], [0], [0], [1], [0, 0, 1, 1], [], []>} : vector<16x32xf32>, vector<32x64xf32>, vector<16x64xf32> -> vector<16x64xf32>
    %550 = vector.extract_strided_slice %547 {offsets = [0, 0], sizes = [16, 64], strides = [1, 1]} : vector<16x96xf32> to vector<16x64xf32>
    %551 = arith.addf %550, %549 : vector<16x64xf32>
    %552 = arith.negf %551 : vector<16x64xf32>
    %553 = math.exp %552 : vector<16x64xf32>
    %cst_298 = arith.constant 1.000000e+00 : f32
    %554 = vector.broadcast %cst_298 : f32 to vector<16x64xf32>
    %555 = arith.addf %554, %553 : vector<16x64xf32>
    %556 = arith.divf %554, %555 : vector<16x64xf32>
    %557 = vector.extract_strided_slice %556 {offsets = [0, 0], sizes = [16, 32], strides = [1, 1]} : vector<16x64xf32> to vector<16x32xf32>
    %558 = vector.extract_strided_slice %556 {offsets = [0, 32], sizes = [16, 32], strides = [1, 1]} : vector<16x64xf32> to vector<16x32xf32>
    %559 = arith.mulf %557, %507 : vector<16x32xf32>
    %cst_299 = arith.constant dense<0.000000e+00> : vector<16x32xf32>
    %560 = tpu.matmul %0, %559, %cst_299 {dimension_numbers = #tpu.dot_dimension_numbers<[1], [0], [0], [1], [0, 0, 1, 1], [], []>} : vector<16x16xf32>, vector<16x32xf32>, vector<16x32xf32> -> vector<16x32xf32>
    %561 = vector.extract_strided_slice %547 {offsets = [0, 64], sizes = [16, 32], strides = [1, 1]} : vector<16x96xf32> to vector<16x32xf32>
    %c0_300 = arith.constant 0 : index
    %c0_301 = arith.constant 0 : index
    %562 = vector.load %arg12[%c0_300, %c0_301] : memref<32x32xf32, #tpu.memory_space<vmem>>, vector<32x32xf32>
    %cst_302 = arith.constant dense<0.000000e+00> : vector<16x32xf32>
    %563 = tpu.matmul %560, %562, %cst_302 {dimension_numbers = #tpu.dot_dimension_numbers<[1], [0], [0], [1], [0, 0, 1, 1], [], []>} : vector<16x32xf32>, vector<32x32xf32>, vector<16x32xf32> -> vector<16x32xf32>
    %564 = arith.addf %561, %563 : vector<16x32xf32>
    %565 = arith.negf %564 : vector<16x32xf32>
    %566 = math.exp %565 : vector<16x32xf32>
    %cst_303 = arith.constant 1.000000e+00 : f32
    %567 = vector.broadcast %cst_303 : f32 to vector<16x32xf32>
    %568 = arith.addf %567, %566 : vector<16x32xf32>
    %569 = arith.divf %567, %568 : vector<16x32xf32>
    %570 = arith.mulf %558, %507 : vector<16x32xf32>
    %cst_304 = arith.constant 1.000000e+00 : f32
    %571 = vector.broadcast %cst_304 : f32 to vector<16x32xf32>
    %572 = arith.subf %571, %558 : vector<16x32xf32>
    %573 = arith.mulf %572, %569 : vector<16x32xf32>
    %574 = arith.addf %570, %573 : vector<16x32xf32>
    %cst_305 = arith.constant dense<0.000000e+00> : vector<16x32xf32>
    %575 = tpu.matmul %0, %574, %cst_305 {dimension_numbers = #tpu.dot_dimension_numbers<[1], [0], [0], [1], [0, 0, 1, 1], [], []>} : vector<16x16xf32>, vector<16x32xf32>, vector<16x32xf32> -> vector<16x32xf32>
    %c0_306 = arith.constant 0 : index
    %c0_307 = arith.constant 0 : index
    %576 = vector.load %arg14[%c0_306, %c0_307] : memref<32x96xf32, #tpu.memory_space<vmem>>, vector<32x96xf32>
    %cst_308 = arith.constant dense<0.000000e+00> : vector<16x96xf32>
    %577 = tpu.matmul %575, %576, %cst_308 {dimension_numbers = #tpu.dot_dimension_numbers<[1], [0], [0], [1], [0, 0, 1, 1], [], []>} : vector<16x32xf32>, vector<32x96xf32>, vector<16x96xf32> -> vector<16x96xf32>
    %c0_309 = arith.constant 0 : index
    %c0_310 = arith.constant 0 : index
    %578 = vector.load %arg17[%c0_309, %c0_310] : memref<16x96xf32, #tpu.memory_space<vmem>>, vector<16x96xf32>
    %579 = arith.addf %577, %578 : vector<16x96xf32>
    %c0_311 = arith.constant 0 : index
    %c0_312 = arith.constant 0 : index
    %580 = vector.load %arg15[%c0_311, %c0_312] : memref<32x64xf32, #tpu.memory_space<vmem>>, vector<32x64xf32>
    %cst_313 = arith.constant dense<0.000000e+00> : vector<16x64xf32>
    %581 = tpu.matmul %540, %580, %cst_313 {dimension_numbers = #tpu.dot_dimension_numbers<[1], [0], [0], [1], [0, 0, 1, 1], [], []>} : vector<16x32xf32>, vector<32x64xf32>, vector<16x64xf32> -> vector<16x64xf32>
    %582 = vector.extract_strided_slice %579 {offsets = [0, 0], sizes = [16, 64], strides = [1, 1]} : vector<16x96xf32> to vector<16x64xf32>
    %583 = arith.addf %582, %581 : vector<16x64xf32>
    %584 = arith.negf %583 : vector<16x64xf32>
    %585 = math.exp %584 : vector<16x64xf32>
    %cst_314 = arith.constant 1.000000e+00 : f32
    %586 = vector.broadcast %cst_314 : f32 to vector<16x64xf32>
    %587 = arith.addf %586, %585 : vector<16x64xf32>
    %588 = arith.divf %586, %587 : vector<16x64xf32>
    %589 = vector.extract_strided_slice %588 {offsets = [0, 0], sizes = [16, 32], strides = [1, 1]} : vector<16x64xf32> to vector<16x32xf32>
    %590 = vector.extract_strided_slice %588 {offsets = [0, 32], sizes = [16, 32], strides = [1, 1]} : vector<16x64xf32> to vector<16x32xf32>
    %591 = arith.mulf %589, %539 : vector<16x32xf32>
    %cst_315 = arith.constant dense<0.000000e+00> : vector<16x32xf32>
    %592 = tpu.matmul %0, %591, %cst_315 {dimension_numbers = #tpu.dot_dimension_numbers<[1], [0], [0], [1], [0, 0, 1, 1], [], []>} : vector<16x16xf32>, vector<16x32xf32>, vector<16x32xf32> -> vector<16x32xf32>
    %593 = vector.extract_strided_slice %579 {offsets = [0, 64], sizes = [16, 32], strides = [1, 1]} : vector<16x96xf32> to vector<16x32xf32>
    %c0_316 = arith.constant 0 : index
    %c0_317 = arith.constant 0 : index
    %594 = vector.load %arg16[%c0_316, %c0_317] : memref<32x32xf32, #tpu.memory_space<vmem>>, vector<32x32xf32>
    %cst_318 = arith.constant dense<0.000000e+00> : vector<16x32xf32>
    %595 = tpu.matmul %592, %594, %cst_318 {dimension_numbers = #tpu.dot_dimension_numbers<[1], [0], [0], [1], [0, 0, 1, 1], [], []>} : vector<16x32xf32>, vector<32x32xf32>, vector<16x32xf32> -> vector<16x32xf32>
    %596 = arith.addf %593, %595 : vector<16x32xf32>
    %597 = arith.negf %596 : vector<16x32xf32>
    %598 = math.exp %597 : vector<16x32xf32>
    %cst_319 = arith.constant 1.000000e+00 : f32
    %599 = vector.broadcast %cst_319 : f32 to vector<16x32xf32>
    %600 = arith.addf %599, %598 : vector<16x32xf32>
    %601 = arith.divf %599, %600 : vector<16x32xf32>
    %602 = arith.mulf %590, %539 : vector<16x32xf32>
    %cst_320 = arith.constant 1.000000e+00 : f32
    %603 = vector.broadcast %cst_320 : f32 to vector<16x32xf32>
    %604 = arith.subf %603, %590 : vector<16x32xf32>
    %605 = arith.mulf %604, %601 : vector<16x32xf32>
    %606 = arith.addf %602, %605 : vector<16x32xf32>
    %cst_321 = arith.constant dense<0.000000e+00> : vector<16x32xf32>
    %607 = tpu.matmul %0, %606, %cst_321 {dimension_numbers = #tpu.dot_dimension_numbers<[1], [0], [0], [1], [0, 0, 1, 1], [], []>} : vector<16x16xf32>, vector<16x32xf32>, vector<16x32xf32> -> vector<16x32xf32>
    %cst_322 = arith.constant dense<0.000000e+00> : vector<16x4xf32>
    %608 = tpu.matmul %606, %541, %cst_322 {dimension_numbers = #tpu.dot_dimension_numbers<[1], [0], [0], [1], [0, 0, 1, 1], [], []>} : vector<16x32xf32>, vector<32x4xf32>, vector<16x4xf32> -> vector<16x4xf32>
    %609 = arith.addf %608, %542 : vector<16x4xf32>
    %c0_323 = arith.constant 0 : index
    %c0_324 = arith.constant 0 : index
    %c0_325 = arith.constant 0 : index
    %610 = vector.load %arg20[%c0_323, %c0_324, %c0_325] : memref<8x16x4xf32, #tpu.memory_space<vmem>>, vector<1x16x4xf32>
    %611 = vector.shape_cast %610 : vector<1x16x4xf32> to vector<16x4xf32>
    %612 = vector.shape_cast %609 : vector<16x4xf32> to vector<1x16x4xf32>
    tpu.vector_store %arg20[%c0_323, %c0_324, %c0_325], %612 {strides = array<i32>} : memref<8x16x4xf32, #tpu.memory_space<vmem>>, vector<1x16x4xf32>,
    %cst_326 = arith.constant dense<0.000000e+00> : vector<16x4xf32>
    %613 = tpu.matmul %0, %609, %cst_326 {dimension_numbers = #tpu.dot_dimension_numbers<[1], [0], [0], [1], [0, 0, 1, 1], [], []>} : vector<16x16xf32>, vector<16x4xf32>, vector<16x4xf32> -> vector<16x4xf32>
    %c0_327 = arith.constant 0 : index
    %c0_328 = arith.constant 0 : index
    %614 = vector.load %arg10[%c0_327, %c0_328] : memref<4x96xf32, #tpu.memory_space<vmem>>, vector<4x96xf32>
    %cst_329 = arith.constant dense<0.000000e+00> : vector<16x96xf32>
    %615 = tpu.matmul %613, %614, %cst_329 {dimension_numbers = #tpu.dot_dimension_numbers<[1], [0], [0], [1], [0, 0, 1, 1], [], []>} : vector<16x4xf32>, vector<4x96xf32>, vector<16x96xf32> -> vector<16x96xf32>
    %c0_330 = arith.constant 0 : index
    %c0_331 = arith.constant 0 : index
    %616 = vector.load %arg13[%c0_330, %c0_331] : memref<16x96xf32, #tpu.memory_space<vmem>>, vector<16x96xf32>
    %617 = arith.addf %615, %616 : vector<16x96xf32>
    %c0_332 = arith.constant 0 : index
    %c0_333 = arith.constant 0 : index
    %618 = vector.load %arg11[%c0_332, %c0_333] : memref<32x64xf32, #tpu.memory_space<vmem>>, vector<32x64xf32>
    %cst_334 = arith.constant dense<0.000000e+00> : vector<16x64xf32>
    %619 = tpu.matmul %575, %618, %cst_334 {dimension_numbers = #tpu.dot_dimension_numbers<[1], [0], [0], [1], [0, 0, 1, 1], [], []>} : vector<16x32xf32>, vector<32x64xf32>, vector<16x64xf32> -> vector<16x64xf32>
    %620 = vector.extract_strided_slice %617 {offsets = [0, 0], sizes = [16, 64], strides = [1, 1]} : vector<16x96xf32> to vector<16x64xf32>
    %621 = arith.addf %620, %619 : vector<16x64xf32>
    %622 = arith.negf %621 : vector<16x64xf32>
    %623 = math.exp %622 : vector<16x64xf32>
    %cst_335 = arith.constant 1.000000e+00 : f32
    %624 = vector.broadcast %cst_335 : f32 to vector<16x64xf32>
    %625 = arith.addf %624, %623 : vector<16x64xf32>
    %626 = arith.divf %624, %625 : vector<16x64xf32>
    %627 = vector.extract_strided_slice %626 {offsets = [0, 0], sizes = [16, 32], strides = [1, 1]} : vector<16x64xf32> to vector<16x32xf32>
    %628 = vector.extract_strided_slice %626 {offsets = [0, 32], sizes = [16, 32], strides = [1, 1]} : vector<16x64xf32> to vector<16x32xf32>
    %629 = arith.mulf %627, %574 : vector<16x32xf32>
    %cst_336 = arith.constant dense<0.000000e+00> : vector<16x32xf32>
    %630 = tpu.matmul %0, %629, %cst_336 {dimension_numbers = #tpu.dot_dimension_numbers<[1], [0], [0], [1], [0, 0, 1, 1], [], []>} : vector<16x16xf32>, vector<16x32xf32>, vector<16x32xf32> -> vector<16x32xf32>
    %631 = vector.extract_strided_slice %617 {offsets = [0, 64], sizes = [16, 32], strides = [1, 1]} : vector<16x96xf32> to vector<16x32xf32>
    %c0_337 = arith.constant 0 : index
    %c0_338 = arith.constant 0 : index
    %632 = vector.load %arg12[%c0_337, %c0_338] : memref<32x32xf32, #tpu.memory_space<vmem>>, vector<32x32xf32>
    %cst_339 = arith.constant dense<0.000000e+00> : vector<16x32xf32>
    %633 = tpu.matmul %630, %632, %cst_339 {dimension_numbers = #tpu.dot_dimension_numbers<[1], [0], [0], [1], [0, 0, 1, 1], [], []>} : vector<16x32xf32>, vector<32x32xf32>, vector<16x32xf32> -> vector<16x32xf32>
    %634 = arith.addf %631, %633 : vector<16x32xf32>
    %635 = arith.negf %634 : vector<16x32xf32>
    %636 = math.exp %635 : vector<16x32xf32>
    %cst_340 = arith.constant 1.000000e+00 : f32
    %637 = vector.broadcast %cst_340 : f32 to vector<16x32xf32>
    %638 = arith.addf %637, %636 : vector<16x32xf32>
    %639 = arith.divf %637, %638 : vector<16x32xf32>
    %640 = arith.mulf %628, %574 : vector<16x32xf32>
    %cst_341 = arith.constant 1.000000e+00 : f32
    %641 = vector.broadcast %cst_341 : f32 to vector<16x32xf32>
    %642 = arith.subf %641, %628 : vector<16x32xf32>
    %643 = arith.mulf %642, %639 : vector<16x32xf32>
    %644 = arith.addf %640, %643 : vector<16x32xf32>
    %cst_342 = arith.constant dense<0.000000e+00> : vector<16x32xf32>
    %645 = tpu.matmul %0, %644, %cst_342 {dimension_numbers = #tpu.dot_dimension_numbers<[1], [0], [0], [1], [0, 0, 1, 1], [], []>} : vector<16x16xf32>, vector<16x32xf32>, vector<16x32xf32> -> vector<16x32xf32>
    %c0_343 = arith.constant 0 : index
    %c0_344 = arith.constant 0 : index
    %646 = vector.load %arg14[%c0_343, %c0_344] : memref<32x96xf32, #tpu.memory_space<vmem>>, vector<32x96xf32>
    %cst_345 = arith.constant dense<0.000000e+00> : vector<16x96xf32>
    %647 = tpu.matmul %645, %646, %cst_345 {dimension_numbers = #tpu.dot_dimension_numbers<[1], [0], [0], [1], [0, 0, 1, 1], [], []>} : vector<16x32xf32>, vector<32x96xf32>, vector<16x96xf32> -> vector<16x96xf32>
    %c0_346 = arith.constant 0 : index
    %c0_347 = arith.constant 0 : index
    %648 = vector.load %arg17[%c0_346, %c0_347] : memref<16x96xf32, #tpu.memory_space<vmem>>, vector<16x96xf32>
    %649 = arith.addf %647, %648 : vector<16x96xf32>
    %c0_348 = arith.constant 0 : index
    %c0_349 = arith.constant 0 : index
    %650 = vector.load %arg15[%c0_348, %c0_349] : memref<32x64xf32, #tpu.memory_space<vmem>>, vector<32x64xf32>
    %cst_350 = arith.constant dense<0.000000e+00> : vector<16x64xf32>
    %651 = tpu.matmul %607, %650, %cst_350 {dimension_numbers = #tpu.dot_dimension_numbers<[1], [0], [0], [1], [0, 0, 1, 1], [], []>} : vector<16x32xf32>, vector<32x64xf32>, vector<16x64xf32> -> vector<16x64xf32>
    %652 = vector.extract_strided_slice %649 {offsets = [0, 0], sizes = [16, 64], strides = [1, 1]} : vector<16x96xf32> to vector<16x64xf32>
    %653 = arith.addf %652, %651 : vector<16x64xf32>
    %654 = arith.negf %653 : vector<16x64xf32>
    %655 = math.exp %654 : vector<16x64xf32>
    %cst_351 = arith.constant 1.000000e+00 : f32
    %656 = vector.broadcast %cst_351 : f32 to vector<16x64xf32>
    %657 = arith.addf %656, %655 : vector<16x64xf32>
    %658 = arith.divf %656, %657 : vector<16x64xf32>
    %659 = vector.extract_strided_slice %658 {offsets = [0, 0], sizes = [16, 32], strides = [1, 1]} : vector<16x64xf32> to vector<16x32xf32>
    %660 = vector.extract_strided_slice %658 {offsets = [0, 32], sizes = [16, 32], strides = [1, 1]} : vector<16x64xf32> to vector<16x32xf32>
    %661 = arith.mulf %659, %606 : vector<16x32xf32>
    %cst_352 = arith.constant dense<0.000000e+00> : vector<16x32xf32>
    %662 = tpu.matmul %0, %661, %cst_352 {dimension_numbers = #tpu.dot_dimension_numbers<[1], [0], [0], [1], [0, 0, 1, 1], [], []>} : vector<16x16xf32>, vector<16x32xf32>, vector<16x32xf32> -> vector<16x32xf32>
    %663 = vector.extract_strided_slice %649 {offsets = [0, 64], sizes = [16, 32], strides = [1, 1]} : vector<16x96xf32> to vector<16x32xf32>
    %c0_353 = arith.constant 0 : index
    %c0_354 = arith.constant 0 : index
    %664 = vector.load %arg16[%c0_353, %c0_354] : memref<32x32xf32, #tpu.memory_space<vmem>>, vector<32x32xf32>
    %cst_355 = arith.constant dense<0.000000e+00> : vector<16x32xf32>
    %665 = tpu.matmul %662, %664, %cst_355 {dimension_numbers = #tpu.dot_dimension_numbers<[1], [0], [0], [1], [0, 0, 1, 1], [], []>} : vector<16x32xf32>, vector<32x32xf32>, vector<16x32xf32> -> vector<16x32xf32>
    %666 = arith.addf %663, %665 : vector<16x32xf32>
    %667 = arith.negf %666 : vector<16x32xf32>
    %668 = math.exp %667 : vector<16x32xf32>
    %cst_356 = arith.constant 1.000000e+00 : f32
    %669 = vector.broadcast %cst_356 : f32 to vector<16x32xf32>
    %670 = arith.addf %669, %668 : vector<16x32xf32>
    %671 = arith.divf %669, %670 : vector<16x32xf32>
    %672 = arith.mulf %660, %606 : vector<16x32xf32>
    %cst_357 = arith.constant 1.000000e+00 : f32
    %673 = vector.broadcast %cst_357 : f32 to vector<16x32xf32>
    %674 = arith.subf %673, %660 : vector<16x32xf32>
    %675 = arith.mulf %674, %671 : vector<16x32xf32>
    %676 = arith.addf %672, %675 : vector<16x32xf32>
    %cst_358 = arith.constant dense<0.000000e+00> : vector<16x32xf32>
    %677 = tpu.matmul %0, %676, %cst_358 {dimension_numbers = #tpu.dot_dimension_numbers<[1], [0], [0], [1], [0, 0, 1, 1], [], []>} : vector<16x16xf32>, vector<16x32xf32>, vector<16x32xf32> -> vector<16x32xf32>
    %cst_359 = arith.constant dense<0.000000e+00> : vector<16x4xf32>
    %678 = tpu.matmul %676, %541, %cst_359 {dimension_numbers = #tpu.dot_dimension_numbers<[1], [0], [0], [1], [0, 0, 1, 1], [], []>} : vector<16x32xf32>, vector<32x4xf32>, vector<16x4xf32> -> vector<16x4xf32>
    %679 = arith.addf %678, %542 : vector<16x4xf32>
    %c1_360 = arith.constant 1 : index
    %c0_361 = arith.constant 0 : index
    %c0_362 = arith.constant 0 : index
    %680 = vector.load %arg20[%c1_360, %c0_361, %c0_362] : memref<8x16x4xf32, #tpu.memory_space<vmem>>, vector<1x16x4xf32>
    %681 = vector.shape_cast %680 : vector<1x16x4xf32> to vector<16x4xf32>
    %682 = vector.shape_cast %679 : vector<16x4xf32> to vector<1x16x4xf32>
    tpu.vector_store %arg20[%c1_360, %c0_361, %c0_362], %682 {strides = array<i32>} : memref<8x16x4xf32, #tpu.memory_space<vmem>>, vector<1x16x4xf32>,
    %cst_363 = arith.constant dense<0.000000e+00> : vector<16x4xf32>
    %683 = tpu.matmul %0, %679, %cst_363 {dimension_numbers = #tpu.dot_dimension_numbers<[1], [0], [0], [1], [0, 0, 1, 1], [], []>} : vector<16x16xf32>, vector<16x4xf32>, vector<16x4xf32> -> vector<16x4xf32>
    %c0_364 = arith.constant 0 : index
    %c0_365 = arith.constant 0 : index
    %684 = vector.load %arg10[%c0_364, %c0_365] : memref<4x96xf32, #tpu.memory_space<vmem>>, vector<4x96xf32>
    %cst_366 = arith.constant dense<0.000000e+00> : vector<16x96xf32>
    %685 = tpu.matmul %683, %684, %cst_366 {dimension_numbers = #tpu.dot_dimension_numbers<[1], [0], [0], [1], [0, 0, 1, 1], [], []>} : vector<16x4xf32>, vector<4x96xf32>, vector<16x96xf32> -> vector<16x96xf32>
    %c0_367 = arith.constant 0 : index
    %c0_368 = arith.constant 0 : index
    %686 = vector.load %arg13[%c0_367, %c0_368] : memref<16x96xf32, #tpu.memory_space<vmem>>, vector<16x96xf32>
    %687 = arith.addf %685, %686 : vector<16x96xf32>
    %c0_369 = arith.constant 0 : index
    %c0_370 = arith.constant 0 : index
    %688 = vector.load %arg11[%c0_369, %c0_370] : memref<32x64xf32, #tpu.memory_space<vmem>>, vector<32x64xf32>
    %cst_371 = arith.constant dense<0.000000e+00> : vector<16x64xf32>
    %689 = tpu.matmul %645, %688, %cst_371 {dimension_numbers = #tpu.dot_dimension_numbers<[1], [0], [0], [1], [0, 0, 1, 1], [], []>} : vector<16x32xf32>, vector<32x64xf32>, vector<16x64xf32> -> vector<16x64xf32>
    %690 = vector.extract_strided_slice %687 {offsets = [0, 0], sizes = [16, 64], strides = [1, 1]} : vector<16x96xf32> to vector<16x64xf32>
    %691 = arith.addf %690, %689 : vector<16x64xf32>
    %692 = arith.negf %691 : vector<16x64xf32>
    %693 = math.exp %692 : vector<16x64xf32>
    %cst_372 = arith.constant 1.000000e+00 : f32
    %694 = vector.broadcast %cst_372 : f32 to vector<16x64xf32>
    %695 = arith.addf %694, %693 : vector<16x64xf32>
    %696 = arith.divf %694, %695 : vector<16x64xf32>
    %697 = vector.extract_strided_slice %696 {offsets = [0, 0], sizes = [16, 32], strides = [1, 1]} : vector<16x64xf32> to vector<16x32xf32>
    %698 = vector.extract_strided_slice %696 {offsets = [0, 32], sizes = [16, 32], strides = [1, 1]} : vector<16x64xf32> to vector<16x32xf32>
    %699 = arith.mulf %697, %644 : vector<16x32xf32>
    %cst_373 = arith.constant dense<0.000000e+00> : vector<16x32xf32>
    %700 = tpu.matmul %0, %699, %cst_373 {dimension_numbers = #tpu.dot_dimension_numbers<[1], [0], [0], [1], [0, 0, 1, 1], [], []>} : vector<16x16xf32>, vector<16x32xf32>, vector<16x32xf32> -> vector<16x32xf32>
    %701 = vector.extract_strided_slice %687 {offsets = [0, 64], sizes = [16, 32], strides = [1, 1]} : vector<16x96xf32> to vector<16x32xf32>
    %c0_374 = arith.constant 0 : index
    %c0_375 = arith.constant 0 : index
    %702 = vector.load %arg12[%c0_374, %c0_375] : memref<32x32xf32, #tpu.memory_space<vmem>>, vector<32x32xf32>
    %cst_376 = arith.constant dense<0.000000e+00> : vector<16x32xf32>
    %703 = tpu.matmul %700, %702, %cst_376 {dimension_numbers = #tpu.dot_dimension_numbers<[1], [0], [0], [1], [0, 0, 1, 1], [], []>} : vector<16x32xf32>, vector<32x32xf32>, vector<16x32xf32> -> vector<16x32xf32>
    %704 = arith.addf %701, %703 : vector<16x32xf32>
    %705 = arith.negf %704 : vector<16x32xf32>
    %706 = math.exp %705 : vector<16x32xf32>
    %cst_377 = arith.constant 1.000000e+00 : f32
    %707 = vector.broadcast %cst_377 : f32 to vector<16x32xf32>
    %708 = arith.addf %707, %706 : vector<16x32xf32>
    %709 = arith.divf %707, %708 : vector<16x32xf32>
    %710 = arith.mulf %698, %644 : vector<16x32xf32>
    %cst_378 = arith.constant 1.000000e+00 : f32
    %711 = vector.broadcast %cst_378 : f32 to vector<16x32xf32>
    %712 = arith.subf %711, %698 : vector<16x32xf32>
    %713 = arith.mulf %712, %709 : vector<16x32xf32>
    %714 = arith.addf %710, %713 : vector<16x32xf32>
    %cst_379 = arith.constant dense<0.000000e+00> : vector<16x32xf32>
    %715 = tpu.matmul %0, %714, %cst_379 {dimension_numbers = #tpu.dot_dimension_numbers<[1], [0], [0], [1], [0, 0, 1, 1], [], []>} : vector<16x16xf32>, vector<16x32xf32>, vector<16x32xf32> -> vector<16x32xf32>
    %c0_380 = arith.constant 0 : index
    %c0_381 = arith.constant 0 : index
    %716 = vector.load %arg14[%c0_380, %c0_381] : memref<32x96xf32, #tpu.memory_space<vmem>>, vector<32x96xf32>
    %cst_382 = arith.constant dense<0.000000e+00> : vector<16x96xf32>
    %717 = tpu.matmul %715, %716, %cst_382 {dimension_numbers = #tpu.dot_dimension_numbers<[1], [0], [0], [1], [0, 0, 1, 1], [], []>} : vector<16x32xf32>, vector<32x96xf32>, vector<16x96xf32> -> vector<16x96xf32>
    %c0_383 = arith.constant 0 : index
    %c0_384 = arith.constant 0 : index
    %718 = vector.load %arg17[%c0_383, %c0_384] : memref<16x96xf32, #tpu.memory_space<vmem>>, vector<16x96xf32>
    %719 = arith.addf %717, %718 : vector<16x96xf32>
    %c0_385 = arith.constant 0 : index
    %c0_386 = arith.constant 0 : index
    %720 = vector.load %arg15[%c0_385, %c0_386] : memref<32x64xf32, #tpu.memory_space<vmem>>, vector<32x64xf32>
    %cst_387 = arith.constant dense<0.000000e+00> : vector<16x64xf32>
    %721 = tpu.matmul %677, %720, %cst_387 {dimension_numbers = #tpu.dot_dimension_numbers<[1], [0], [0], [1], [0, 0, 1, 1], [], []>} : vector<16x32xf32>, vector<32x64xf32>, vector<16x64xf32> -> vector<16x64xf32>
    %722 = vector.extract_strided_slice %719 {offsets = [0, 0], sizes = [16, 64], strides = [1, 1]} : vector<16x96xf32> to vector<16x64xf32>
    %723 = arith.addf %722, %721 : vector<16x64xf32>
    %724 = arith.negf %723 : vector<16x64xf32>
    %725 = math.exp %724 : vector<16x64xf32>
    %cst_388 = arith.constant 1.000000e+00 : f32
    %726 = vector.broadcast %cst_388 : f32 to vector<16x64xf32>
    %727 = arith.addf %726, %725 : vector<16x64xf32>
    %728 = arith.divf %726, %727 : vector<16x64xf32>
    %729 = vector.extract_strided_slice %728 {offsets = [0, 0], sizes = [16, 32], strides = [1, 1]} : vector<16x64xf32> to vector<16x32xf32>
    %730 = vector.extract_strided_slice %728 {offsets = [0, 32], sizes = [16, 32], strides = [1, 1]} : vector<16x64xf32> to vector<16x32xf32>
    %731 = arith.mulf %729, %676 : vector<16x32xf32>
    %cst_389 = arith.constant dense<0.000000e+00> : vector<16x32xf32>
    %732 = tpu.matmul %0, %731, %cst_389 {dimension_numbers = #tpu.dot_dimension_numbers<[1], [0], [0], [1], [0, 0, 1, 1], [], []>} : vector<16x16xf32>, vector<16x32xf32>, vector<16x32xf32> -> vector<16x32xf32>
    %733 = vector.extract_strided_slice %719 {offsets = [0, 64], sizes = [16, 32], strides = [1, 1]} : vector<16x96xf32> to vector<16x32xf32>
    %c0_390 = arith.constant 0 : index
    %c0_391 = arith.constant 0 : index
    %734 = vector.load %arg16[%c0_390, %c0_391] : memref<32x32xf32, #tpu.memory_space<vmem>>, vector<32x32xf32>
    %cst_392 = arith.constant dense<0.000000e+00> : vector<16x32xf32>
    %735 = tpu.matmul %732, %734, %cst_392 {dimension_numbers = #tpu.dot_dimension_numbers<[1], [0], [0], [1], [0, 0, 1, 1], [], []>} : vector<16x32xf32>, vector<32x32xf32>, vector<16x32xf32> -> vector<16x32xf32>
    %736 = arith.addf %733, %735 : vector<16x32xf32>
    %737 = arith.negf %736 : vector<16x32xf32>
    %738 = math.exp %737 : vector<16x32xf32>
    %cst_393 = arith.constant 1.000000e+00 : f32
    %739 = vector.broadcast %cst_393 : f32 to vector<16x32xf32>
    %740 = arith.addf %739, %738 : vector<16x32xf32>
    %741 = arith.divf %739, %740 : vector<16x32xf32>
    %742 = arith.mulf %730, %676 : vector<16x32xf32>
    %cst_394 = arith.constant 1.000000e+00 : f32
    %743 = vector.broadcast %cst_394 : f32 to vector<16x32xf32>
    %744 = arith.subf %743, %730 : vector<16x32xf32>
    %745 = arith.mulf %744, %741 : vector<16x32xf32>
    %746 = arith.addf %742, %745 : vector<16x32xf32>
    %cst_395 = arith.constant dense<0.000000e+00> : vector<16x32xf32>
    %747 = tpu.matmul %0, %746, %cst_395 {dimension_numbers = #tpu.dot_dimension_numbers<[1], [0], [0], [1], [0, 0, 1, 1], [], []>} : vector<16x16xf32>, vector<16x32xf32>, vector<16x32xf32> -> vector<16x32xf32>
    %cst_396 = arith.constant dense<0.000000e+00> : vector<16x4xf32>
    %748 = tpu.matmul %746, %541, %cst_396 {dimension_numbers = #tpu.dot_dimension_numbers<[1], [0], [0], [1], [0, 0, 1, 1], [], []>} : vector<16x32xf32>, vector<32x4xf32>, vector<16x4xf32> -> vector<16x4xf32>
    %749 = arith.addf %748, %542 : vector<16x4xf32>
    %c2_397 = arith.constant 2 : index
    %c0_398 = arith.constant 0 : index
    %c0_399 = arith.constant 0 : index
    %750 = vector.load %arg20[%c2_397, %c0_398, %c0_399] : memref<8x16x4xf32, #tpu.memory_space<vmem>>, vector<1x16x4xf32>
    %751 = vector.shape_cast %750 : vector<1x16x4xf32> to vector<16x4xf32>
    %752 = vector.shape_cast %749 : vector<16x4xf32> to vector<1x16x4xf32>
    tpu.vector_store %arg20[%c2_397, %c0_398, %c0_399], %752 {strides = array<i32>} : memref<8x16x4xf32, #tpu.memory_space<vmem>>, vector<1x16x4xf32>,
    %cst_400 = arith.constant dense<0.000000e+00> : vector<16x4xf32>
    %753 = tpu.matmul %0, %749, %cst_400 {dimension_numbers = #tpu.dot_dimension_numbers<[1], [0], [0], [1], [0, 0, 1, 1], [], []>} : vector<16x16xf32>, vector<16x4xf32>, vector<16x4xf32> -> vector<16x4xf32>
    %c0_401 = arith.constant 0 : index
    %c0_402 = arith.constant 0 : index
    %754 = vector.load %arg10[%c0_401, %c0_402] : memref<4x96xf32, #tpu.memory_space<vmem>>, vector<4x96xf32>
    %cst_403 = arith.constant dense<0.000000e+00> : vector<16x96xf32>
    %755 = tpu.matmul %753, %754, %cst_403 {dimension_numbers = #tpu.dot_dimension_numbers<[1], [0], [0], [1], [0, 0, 1, 1], [], []>} : vector<16x4xf32>, vector<4x96xf32>, vector<16x96xf32> -> vector<16x96xf32>
    %c0_404 = arith.constant 0 : index
    %c0_405 = arith.constant 0 : index
    %756 = vector.load %arg13[%c0_404, %c0_405] : memref<16x96xf32, #tpu.memory_space<vmem>>, vector<16x96xf32>
    %757 = arith.addf %755, %756 : vector<16x96xf32>
    %c0_406 = arith.constant 0 : index
    %c0_407 = arith.constant 0 : index
    %758 = vector.load %arg11[%c0_406, %c0_407] : memref<32x64xf32, #tpu.memory_space<vmem>>, vector<32x64xf32>
    %cst_408 = arith.constant dense<0.000000e+00> : vector<16x64xf32>
    %759 = tpu.matmul %715, %758, %cst_408 {dimension_numbers = #tpu.dot_dimension_numbers<[1], [0], [0], [1], [0, 0, 1, 1], [], []>} : vector<16x32xf32>, vector<32x64xf32>, vector<16x64xf32> -> vector<16x64xf32>
    %760 = vector.extract_strided_slice %757 {offsets = [0, 0], sizes = [16, 64], strides = [1, 1]} : vector<16x96xf32> to vector<16x64xf32>
    %761 = arith.addf %760, %759 : vector<16x64xf32>
    %762 = arith.negf %761 : vector<16x64xf32>
    %763 = math.exp %762 : vector<16x64xf32>
    %cst_409 = arith.constant 1.000000e+00 : f32
    %764 = vector.broadcast %cst_409 : f32 to vector<16x64xf32>
    %765 = arith.addf %764, %763 : vector<16x64xf32>
    %766 = arith.divf %764, %765 : vector<16x64xf32>
    %767 = vector.extract_strided_slice %766 {offsets = [0, 0], sizes = [16, 32], strides = [1, 1]} : vector<16x64xf32> to vector<16x32xf32>
    %768 = vector.extract_strided_slice %766 {offsets = [0, 32], sizes = [16, 32], strides = [1, 1]} : vector<16x64xf32> to vector<16x32xf32>
    %769 = arith.mulf %767, %714 : vector<16x32xf32>
    %cst_410 = arith.constant dense<0.000000e+00> : vector<16x32xf32>
    %770 = tpu.matmul %0, %769, %cst_410 {dimension_numbers = #tpu.dot_dimension_numbers<[1], [0], [0], [1], [0, 0, 1, 1], [], []>} : vector<16x16xf32>, vector<16x32xf32>, vector<16x32xf32> -> vector<16x32xf32>
    %771 = vector.extract_strided_slice %757 {offsets = [0, 64], sizes = [16, 32], strides = [1, 1]} : vector<16x96xf32> to vector<16x32xf32>
    %c0_411 = arith.constant 0 : index
    %c0_412 = arith.constant 0 : index
    %772 = vector.load %arg12[%c0_411, %c0_412] : memref<32x32xf32, #tpu.memory_space<vmem>>, vector<32x32xf32>
    %cst_413 = arith.constant dense<0.000000e+00> : vector<16x32xf32>
    %773 = tpu.matmul %770, %772, %cst_413 {dimension_numbers = #tpu.dot_dimension_numbers<[1], [0], [0], [1], [0, 0, 1, 1], [], []>} : vector<16x32xf32>, vector<32x32xf32>, vector<16x32xf32> -> vector<16x32xf32>
    %774 = arith.addf %771, %773 : vector<16x32xf32>
    %775 = arith.negf %774 : vector<16x32xf32>
    %776 = math.exp %775 : vector<16x32xf32>
    %cst_414 = arith.constant 1.000000e+00 : f32
    %777 = vector.broadcast %cst_414 : f32 to vector<16x32xf32>
    %778 = arith.addf %777, %776 : vector<16x32xf32>
    %779 = arith.divf %777, %778 : vector<16x32xf32>
    %780 = arith.mulf %768, %714 : vector<16x32xf32>
    %cst_415 = arith.constant 1.000000e+00 : f32
    %781 = vector.broadcast %cst_415 : f32 to vector<16x32xf32>
    %782 = arith.subf %781, %768 : vector<16x32xf32>
    %783 = arith.mulf %782, %779 : vector<16x32xf32>
    %784 = arith.addf %780, %783 : vector<16x32xf32>
    %cst_416 = arith.constant dense<0.000000e+00> : vector<16x32xf32>
    %785 = tpu.matmul %0, %784, %cst_416 {dimension_numbers = #tpu.dot_dimension_numbers<[1], [0], [0], [1], [0, 0, 1, 1], [], []>} : vector<16x16xf32>, vector<16x32xf32>, vector<16x32xf32> -> vector<16x32xf32>
    %c0_417 = arith.constant 0 : index
    %c0_418 = arith.constant 0 : index
    %786 = vector.load %arg14[%c0_417, %c0_418] : memref<32x96xf32, #tpu.memory_space<vmem>>, vector<32x96xf32>
    %cst_419 = arith.constant dense<0.000000e+00> : vector<16x96xf32>
    %787 = tpu.matmul %785, %786, %cst_419 {dimension_numbers = #tpu.dot_dimension_numbers<[1], [0], [0], [1], [0, 0, 1, 1], [], []>} : vector<16x32xf32>, vector<32x96xf32>, vector<16x96xf32> -> vector<16x96xf32>
    %c0_420 = arith.constant 0 : index
    %c0_421 = arith.constant 0 : index
    %788 = vector.load %arg17[%c0_420, %c0_421] : memref<16x96xf32, #tpu.memory_space<vmem>>, vector<16x96xf32>
    %789 = arith.addf %787, %788 : vector<16x96xf32>
    %c0_422 = arith.constant 0 : index
    %c0_423 = arith.constant 0 : index
    %790 = vector.load %arg15[%c0_422, %c0_423] : memref<32x64xf32, #tpu.memory_space<vmem>>, vector<32x64xf32>
    %cst_424 = arith.constant dense<0.000000e+00> : vector<16x64xf32>
    %791 = tpu.matmul %747, %790, %cst_424 {dimension_numbers = #tpu.dot_dimension_numbers<[1], [0], [0], [1], [0, 0, 1, 1], [], []>} : vector<16x32xf32>, vector<32x64xf32>, vector<16x64xf32> -> vector<16x64xf32>
    %792 = vector.extract_strided_slice %789 {offsets = [0, 0], sizes = [16, 64], strides = [1, 1]} : vector<16x96xf32> to vector<16x64xf32>
    %793 = arith.addf %792, %791 : vector<16x64xf32>
    %794 = arith.negf %793 : vector<16x64xf32>
    %795 = math.exp %794 : vector<16x64xf32>
    %cst_425 = arith.constant 1.000000e+00 : f32
    %796 = vector.broadcast %cst_425 : f32 to vector<16x64xf32>
    %797 = arith.addf %796, %795 : vector<16x64xf32>
    %798 = arith.divf %796, %797 : vector<16x64xf32>
    %799 = vector.extract_strided_slice %798 {offsets = [0, 0], sizes = [16, 32], strides = [1, 1]} : vector<16x64xf32> to vector<16x32xf32>
    %800 = vector.extract_strided_slice %798 {offsets = [0, 32], sizes = [16, 32], strides = [1, 1]} : vector<16x64xf32> to vector<16x32xf32>
    %801 = arith.mulf %799, %746 : vector<16x32xf32>
    %cst_426 = arith.constant dense<0.000000e+00> : vector<16x32xf32>
    %802 = tpu.matmul %0, %801, %cst_426 {dimension_numbers = #tpu.dot_dimension_numbers<[1], [0], [0], [1], [0, 0, 1, 1], [], []>} : vector<16x16xf32>, vector<16x32xf32>, vector<16x32xf32> -> vector<16x32xf32>
    %803 = vector.extract_strided_slice %789 {offsets = [0, 64], sizes = [16, 32], strides = [1, 1]} : vector<16x96xf32> to vector<16x32xf32>
    %c0_427 = arith.constant 0 : index
    %c0_428 = arith.constant 0 : index
    %804 = vector.load %arg16[%c0_427, %c0_428] : memref<32x32xf32, #tpu.memory_space<vmem>>, vector<32x32xf32>
    %cst_429 = arith.constant dense<0.000000e+00> : vector<16x32xf32>
    %805 = tpu.matmul %802, %804, %cst_429 {dimension_numbers = #tpu.dot_dimension_numbers<[1], [0], [0], [1], [0, 0, 1, 1], [], []>} : vector<16x32xf32>, vector<32x32xf32>, vector<16x32xf32> -> vector<16x32xf32>
    %806 = arith.addf %803, %805 : vector<16x32xf32>
    %807 = arith.negf %806 : vector<16x32xf32>
    %808 = math.exp %807 : vector<16x32xf32>
    %cst_430 = arith.constant 1.000000e+00 : f32
    %809 = vector.broadcast %cst_430 : f32 to vector<16x32xf32>
    %810 = arith.addf %809, %808 : vector<16x32xf32>
    %811 = arith.divf %809, %810 : vector<16x32xf32>
    %812 = arith.mulf %800, %746 : vector<16x32xf32>
    %cst_431 = arith.constant 1.000000e+00 : f32
    %813 = vector.broadcast %cst_431 : f32 to vector<16x32xf32>
    %814 = arith.subf %813, %800 : vector<16x32xf32>
    %815 = arith.mulf %814, %811 : vector<16x32xf32>
    %816 = arith.addf %812, %815 : vector<16x32xf32>
    %cst_432 = arith.constant dense<0.000000e+00> : vector<16x32xf32>
    %817 = tpu.matmul %0, %816, %cst_432 {dimension_numbers = #tpu.dot_dimension_numbers<[1], [0], [0], [1], [0, 0, 1, 1], [], []>} : vector<16x16xf32>, vector<16x32xf32>, vector<16x32xf32> -> vector<16x32xf32>
    %cst_433 = arith.constant dense<0.000000e+00> : vector<16x4xf32>
    %818 = tpu.matmul %816, %541, %cst_433 {dimension_numbers = #tpu.dot_dimension_numbers<[1], [0], [0], [1], [0, 0, 1, 1], [], []>} : vector<16x32xf32>, vector<32x4xf32>, vector<16x4xf32> -> vector<16x4xf32>
    %819 = arith.addf %818, %542 : vector<16x4xf32>
    %c3_434 = arith.constant 3 : index
    %c0_435 = arith.constant 0 : index
    %c0_436 = arith.constant 0 : index
    %820 = vector.load %arg20[%c3_434, %c0_435, %c0_436] : memref<8x16x4xf32, #tpu.memory_space<vmem>>, vector<1x16x4xf32>
    %821 = vector.shape_cast %820 : vector<1x16x4xf32> to vector<16x4xf32>
    %822 = vector.shape_cast %819 : vector<16x4xf32> to vector<1x16x4xf32>
    tpu.vector_store %arg20[%c3_434, %c0_435, %c0_436], %822 {strides = array<i32>} : memref<8x16x4xf32, #tpu.memory_space<vmem>>, vector<1x16x4xf32>,
    %cst_437 = arith.constant dense<0.000000e+00> : vector<16x4xf32>
    %823 = tpu.matmul %0, %819, %cst_437 {dimension_numbers = #tpu.dot_dimension_numbers<[1], [0], [0], [1], [0, 0, 1, 1], [], []>} : vector<16x16xf32>, vector<16x4xf32>, vector<16x4xf32> -> vector<16x4xf32>
    %c0_438 = arith.constant 0 : index
    %c0_439 = arith.constant 0 : index
    %824 = vector.load %arg10[%c0_438, %c0_439] : memref<4x96xf32, #tpu.memory_space<vmem>>, vector<4x96xf32>
    %cst_440 = arith.constant dense<0.000000e+00> : vector<16x96xf32>
    %825 = tpu.matmul %823, %824, %cst_440 {dimension_numbers = #tpu.dot_dimension_numbers<[1], [0], [0], [1], [0, 0, 1, 1], [], []>} : vector<16x4xf32>, vector<4x96xf32>, vector<16x96xf32> -> vector<16x96xf32>
    %c0_441 = arith.constant 0 : index
    %c0_442 = arith.constant 0 : index
    %826 = vector.load %arg13[%c0_441, %c0_442] : memref<16x96xf32, #tpu.memory_space<vmem>>, vector<16x96xf32>
    %827 = arith.addf %825, %826 : vector<16x96xf32>
    %c0_443 = arith.constant 0 : index
    %c0_444 = arith.constant 0 : index
    %828 = vector.load %arg11[%c0_443, %c0_444] : memref<32x64xf32, #tpu.memory_space<vmem>>, vector<32x64xf32>
    %cst_445 = arith.constant dense<0.000000e+00> : vector<16x64xf32>
    %829 = tpu.matmul %785, %828, %cst_445 {dimension_numbers = #tpu.dot_dimension_numbers<[1], [0], [0], [1], [0, 0, 1, 1], [], []>} : vector<16x32xf32>, vector<32x64xf32>, vector<16x64xf32> -> vector<16x64xf32>
    %830 = vector.extract_strided_slice %827 {offsets = [0, 0], sizes = [16, 64], strides = [1, 1]} : vector<16x96xf32> to vector<16x64xf32>
    %831 = arith.addf %830, %829 : vector<16x64xf32>
    %832 = arith.negf %831 : vector<16x64xf32>
    %833 = math.exp %832 : vector<16x64xf32>
    %cst_446 = arith.constant 1.000000e+00 : f32
    %834 = vector.broadcast %cst_446 : f32 to vector<16x64xf32>
    %835 = arith.addf %834, %833 : vector<16x64xf32>
    %836 = arith.divf %834, %835 : vector<16x64xf32>
    %837 = vector.extract_strided_slice %836 {offsets = [0, 0], sizes = [16, 32], strides = [1, 1]} : vector<16x64xf32> to vector<16x32xf32>
    %838 = vector.extract_strided_slice %836 {offsets = [0, 32], sizes = [16, 32], strides = [1, 1]} : vector<16x64xf32> to vector<16x32xf32>
    %839 = arith.mulf %837, %784 : vector<16x32xf32>
    %cst_447 = arith.constant dense<0.000000e+00> : vector<16x32xf32>
    %840 = tpu.matmul %0, %839, %cst_447 {dimension_numbers = #tpu.dot_dimension_numbers<[1], [0], [0], [1], [0, 0, 1, 1], [], []>} : vector<16x16xf32>, vector<16x32xf32>, vector<16x32xf32> -> vector<16x32xf32>
    %841 = vector.extract_strided_slice %827 {offsets = [0, 64], sizes = [16, 32], strides = [1, 1]} : vector<16x96xf32> to vector<16x32xf32>
    %c0_448 = arith.constant 0 : index
    %c0_449 = arith.constant 0 : index
    %842 = vector.load %arg12[%c0_448, %c0_449] : memref<32x32xf32, #tpu.memory_space<vmem>>, vector<32x32xf32>
    %cst_450 = arith.constant dense<0.000000e+00> : vector<16x32xf32>
    %843 = tpu.matmul %840, %842, %cst_450 {dimension_numbers = #tpu.dot_dimension_numbers<[1], [0], [0], [1], [0, 0, 1, 1], [], []>} : vector<16x32xf32>, vector<32x32xf32>, vector<16x32xf32> -> vector<16x32xf32>
    %844 = arith.addf %841, %843 : vector<16x32xf32>
    %845 = arith.negf %844 : vector<16x32xf32>
    %846 = math.exp %845 : vector<16x32xf32>
    %cst_451 = arith.constant 1.000000e+00 : f32
    %847 = vector.broadcast %cst_451 : f32 to vector<16x32xf32>
    %848 = arith.addf %847, %846 : vector<16x32xf32>
    %849 = arith.divf %847, %848 : vector<16x32xf32>
    %850 = arith.mulf %838, %784 : vector<16x32xf32>
    %cst_452 = arith.constant 1.000000e+00 : f32
    %851 = vector.broadcast %cst_452 : f32 to vector<16x32xf32>
    %852 = arith.subf %851, %838 : vector<16x32xf32>
    %853 = arith.mulf %852, %849 : vector<16x32xf32>
    %854 = arith.addf %850, %853 : vector<16x32xf32>
    %cst_453 = arith.constant dense<0.000000e+00> : vector<16x32xf32>
    %855 = tpu.matmul %0, %854, %cst_453 {dimension_numbers = #tpu.dot_dimension_numbers<[1], [0], [0], [1], [0, 0, 1, 1], [], []>} : vector<16x16xf32>, vector<16x32xf32>, vector<16x32xf32> -> vector<16x32xf32>
    %c0_454 = arith.constant 0 : index
    %c0_455 = arith.constant 0 : index
    %856 = vector.load %arg14[%c0_454, %c0_455] : memref<32x96xf32, #tpu.memory_space<vmem>>, vector<32x96xf32>
    %cst_456 = arith.constant dense<0.000000e+00> : vector<16x96xf32>
    %857 = tpu.matmul %855, %856, %cst_456 {dimension_numbers = #tpu.dot_dimension_numbers<[1], [0], [0], [1], [0, 0, 1, 1], [], []>} : vector<16x32xf32>, vector<32x96xf32>, vector<16x96xf32> -> vector<16x96xf32>
    %c0_457 = arith.constant 0 : index
    %c0_458 = arith.constant 0 : index
    %858 = vector.load %arg17[%c0_457, %c0_458] : memref<16x96xf32, #tpu.memory_space<vmem>>, vector<16x96xf32>
    %859 = arith.addf %857, %858 : vector<16x96xf32>
    %c0_459 = arith.constant 0 : index
    %c0_460 = arith.constant 0 : index
    %860 = vector.load %arg15[%c0_459, %c0_460] : memref<32x64xf32, #tpu.memory_space<vmem>>, vector<32x64xf32>
    %cst_461 = arith.constant dense<0.000000e+00> : vector<16x64xf32>
    %861 = tpu.matmul %817, %860, %cst_461 {dimension_numbers = #tpu.dot_dimension_numbers<[1], [0], [0], [1], [0, 0, 1, 1], [], []>} : vector<16x32xf32>, vector<32x64xf32>, vector<16x64xf32> -> vector<16x64xf32>
    %862 = vector.extract_strided_slice %859 {offsets = [0, 0], sizes = [16, 64], strides = [1, 1]} : vector<16x96xf32> to vector<16x64xf32>
    %863 = arith.addf %862, %861 : vector<16x64xf32>
    %864 = arith.negf %863 : vector<16x64xf32>
    %865 = math.exp %864 : vector<16x64xf32>
    %cst_462 = arith.constant 1.000000e+00 : f32
    %866 = vector.broadcast %cst_462 : f32 to vector<16x64xf32>
    %867 = arith.addf %866, %865 : vector<16x64xf32>
    %868 = arith.divf %866, %867 : vector<16x64xf32>
    %869 = vector.extract_strided_slice %868 {offsets = [0, 0], sizes = [16, 32], strides = [1, 1]} : vector<16x64xf32> to vector<16x32xf32>
    %870 = vector.extract_strided_slice %868 {offsets = [0, 32], sizes = [16, 32], strides = [1, 1]} : vector<16x64xf32> to vector<16x32xf32>
    %871 = arith.mulf %869, %816 : vector<16x32xf32>
    %cst_463 = arith.constant dense<0.000000e+00> : vector<16x32xf32>
    %872 = tpu.matmul %0, %871, %cst_463 {dimension_numbers = #tpu.dot_dimension_numbers<[1], [0], [0], [1], [0, 0, 1, 1], [], []>} : vector<16x16xf32>, vector<16x32xf32>, vector<16x32xf32> -> vector<16x32xf32>
    %873 = vector.extract_strided_slice %859 {offsets = [0, 64], sizes = [16, 32], strides = [1, 1]} : vector<16x96xf32> to vector<16x32xf32>
    %c0_464 = arith.constant 0 : index
    %c0_465 = arith.constant 0 : index
    %874 = vector.load %arg16[%c0_464, %c0_465] : memref<32x32xf32, #tpu.memory_space<vmem>>, vector<32x32xf32>
    %cst_466 = arith.constant dense<0.000000e+00> : vector<16x32xf32>
    %875 = tpu.matmul %872, %874, %cst_466 {dimension_numbers = #tpu.dot_dimension_numbers<[1], [0], [0], [1], [0, 0, 1, 1], [], []>} : vector<16x32xf32>, vector<32x32xf32>, vector<16x32xf32> -> vector<16x32xf32>
    %876 = arith.addf %873, %875 : vector<16x32xf32>
    %877 = arith.negf %876 : vector<16x32xf32>
    %878 = math.exp %877 : vector<16x32xf32>
    %cst_467 = arith.constant 1.000000e+00 : f32
    %879 = vector.broadcast %cst_467 : f32 to vector<16x32xf32>
    %880 = arith.addf %879, %878 : vector<16x32xf32>
    %881 = arith.divf %879, %880 : vector<16x32xf32>
    %882 = arith.mulf %870, %816 : vector<16x32xf32>
    %cst_468 = arith.constant 1.000000e+00 : f32
    %883 = vector.broadcast %cst_468 : f32 to vector<16x32xf32>
    %884 = arith.subf %883, %870 : vector<16x32xf32>
    %885 = arith.mulf %884, %881 : vector<16x32xf32>
    %886 = arith.addf %882, %885 : vector<16x32xf32>
    %cst_469 = arith.constant dense<0.000000e+00> : vector<16x32xf32>
    %887 = tpu.matmul %0, %886, %cst_469 {dimension_numbers = #tpu.dot_dimension_numbers<[1], [0], [0], [1], [0, 0, 1, 1], [], []>} : vector<16x16xf32>, vector<16x32xf32>, vector<16x32xf32> -> vector<16x32xf32>
    %cst_470 = arith.constant dense<0.000000e+00> : vector<16x4xf32>
    %888 = tpu.matmul %886, %541, %cst_470 {dimension_numbers = #tpu.dot_dimension_numbers<[1], [0], [0], [1], [0, 0, 1, 1], [], []>} : vector<16x32xf32>, vector<32x4xf32>, vector<16x4xf32> -> vector<16x4xf32>
    %889 = arith.addf %888, %542 : vector<16x4xf32>
    %c4_471 = arith.constant 4 : index
    %c0_472 = arith.constant 0 : index
    %c0_473 = arith.constant 0 : index
    %890 = vector.load %arg20[%c4_471, %c0_472, %c0_473] : memref<8x16x4xf32, #tpu.memory_space<vmem>>, vector<1x16x4xf32>
    %891 = vector.shape_cast %890 : vector<1x16x4xf32> to vector<16x4xf32>
    %892 = vector.shape_cast %889 : vector<16x4xf32> to vector<1x16x4xf32>
    tpu.vector_store %arg20[%c4_471, %c0_472, %c0_473], %892 {strides = array<i32>} : memref<8x16x4xf32, #tpu.memory_space<vmem>>, vector<1x16x4xf32>,
    %cst_474 = arith.constant dense<0.000000e+00> : vector<16x4xf32>
    %893 = tpu.matmul %0, %889, %cst_474 {dimension_numbers = #tpu.dot_dimension_numbers<[1], [0], [0], [1], [0, 0, 1, 1], [], []>} : vector<16x16xf32>, vector<16x4xf32>, vector<16x4xf32> -> vector<16x4xf32>
    %c0_475 = arith.constant 0 : index
    %c0_476 = arith.constant 0 : index
    %894 = vector.load %arg10[%c0_475, %c0_476] : memref<4x96xf32, #tpu.memory_space<vmem>>, vector<4x96xf32>
    %cst_477 = arith.constant dense<0.000000e+00> : vector<16x96xf32>
    %895 = tpu.matmul %893, %894, %cst_477 {dimension_numbers = #tpu.dot_dimension_numbers<[1], [0], [0], [1], [0, 0, 1, 1], [], []>} : vector<16x4xf32>, vector<4x96xf32>, vector<16x96xf32> -> vector<16x96xf32>
    %c0_478 = arith.constant 0 : index
    %c0_479 = arith.constant 0 : index
    %896 = vector.load %arg13[%c0_478, %c0_479] : memref<16x96xf32, #tpu.memory_space<vmem>>, vector<16x96xf32>
    %897 = arith.addf %895, %896 : vector<16x96xf32>
    %c0_480 = arith.constant 0 : index
    %c0_481 = arith.constant 0 : index
    %898 = vector.load %arg11[%c0_480, %c0_481] : memref<32x64xf32, #tpu.memory_space<vmem>>, vector<32x64xf32>
    %cst_482 = arith.constant dense<0.000000e+00> : vector<16x64xf32>
    %899 = tpu.matmul %855, %898, %cst_482 {dimension_numbers = #tpu.dot_dimension_numbers<[1], [0], [0], [1], [0, 0, 1, 1], [], []>} : vector<16x32xf32>, vector<32x64xf32>, vector<16x64xf32> -> vector<16x64xf32>
    %900 = vector.extract_strided_slice %897 {offsets = [0, 0], sizes = [16, 64], strides = [1, 1]} : vector<16x96xf32> to vector<16x64xf32>
    %901 = arith.addf %900, %899 : vector<16x64xf32>
    %902 = arith.negf %901 : vector<16x64xf32>
    %903 = math.exp %902 : vector<16x64xf32>
    %cst_483 = arith.constant 1.000000e+00 : f32
    %904 = vector.broadcast %cst_483 : f32 to vector<16x64xf32>
    %905 = arith.addf %904, %903 : vector<16x64xf32>
    %906 = arith.divf %904, %905 : vector<16x64xf32>
    %907 = vector.extract_strided_slice %906 {offsets = [0, 0], sizes = [16, 32], strides = [1, 1]} : vector<16x64xf32> to vector<16x32xf32>
    %908 = vector.extract_strided_slice %906 {offsets = [0, 32], sizes = [16, 32], strides = [1, 1]} : vector<16x64xf32> to vector<16x32xf32>
    %909 = arith.mulf %907, %854 : vector<16x32xf32>
    %cst_484 = arith.constant dense<0.000000e+00> : vector<16x32xf32>
    %910 = tpu.matmul %0, %909, %cst_484 {dimension_numbers = #tpu.dot_dimension_numbers<[1], [0], [0], [1], [0, 0, 1, 1], [], []>} : vector<16x16xf32>, vector<16x32xf32>, vector<16x32xf32> -> vector<16x32xf32>
    %911 = vector.extract_strided_slice %897 {offsets = [0, 64], sizes = [16, 32], strides = [1, 1]} : vector<16x96xf32> to vector<16x32xf32>
    %c0_485 = arith.constant 0 : index
    %c0_486 = arith.constant 0 : index
    %912 = vector.load %arg12[%c0_485, %c0_486] : memref<32x32xf32, #tpu.memory_space<vmem>>, vector<32x32xf32>
    %cst_487 = arith.constant dense<0.000000e+00> : vector<16x32xf32>
    %913 = tpu.matmul %910, %912, %cst_487 {dimension_numbers = #tpu.dot_dimension_numbers<[1], [0], [0], [1], [0, 0, 1, 1], [], []>} : vector<16x32xf32>, vector<32x32xf32>, vector<16x32xf32> -> vector<16x32xf32>
    %914 = arith.addf %911, %913 : vector<16x32xf32>
    %915 = arith.negf %914 : vector<16x32xf32>
    %916 = math.exp %915 : vector<16x32xf32>
    %cst_488 = arith.constant 1.000000e+00 : f32
    %917 = vector.broadcast %cst_488 : f32 to vector<16x32xf32>
    %918 = arith.addf %917, %916 : vector<16x32xf32>
    %919 = arith.divf %917, %918 : vector<16x32xf32>
    %920 = arith.mulf %908, %854 : vector<16x32xf32>
    %cst_489 = arith.constant 1.000000e+00 : f32
    %921 = vector.broadcast %cst_489 : f32 to vector<16x32xf32>
    %922 = arith.subf %921, %908 : vector<16x32xf32>
    %923 = arith.mulf %922, %919 : vector<16x32xf32>
    %924 = arith.addf %920, %923 : vector<16x32xf32>
    %cst_490 = arith.constant dense<0.000000e+00> : vector<16x32xf32>
    %925 = tpu.matmul %0, %924, %cst_490 {dimension_numbers = #tpu.dot_dimension_numbers<[1], [0], [0], [1], [0, 0, 1, 1], [], []>} : vector<16x16xf32>, vector<16x32xf32>, vector<16x32xf32> -> vector<16x32xf32>
    %c0_491 = arith.constant 0 : index
    %c0_492 = arith.constant 0 : index
    %926 = vector.load %arg14[%c0_491, %c0_492] : memref<32x96xf32, #tpu.memory_space<vmem>>, vector<32x96xf32>
    %cst_493 = arith.constant dense<0.000000e+00> : vector<16x96xf32>
    %927 = tpu.matmul %925, %926, %cst_493 {dimension_numbers = #tpu.dot_dimension_numbers<[1], [0], [0], [1], [0, 0, 1, 1], [], []>} : vector<16x32xf32>, vector<32x96xf32>, vector<16x96xf32> -> vector<16x96xf32>
    %c0_494 = arith.constant 0 : index
    %c0_495 = arith.constant 0 : index
    %928 = vector.load %arg17[%c0_494, %c0_495] : memref<16x96xf32, #tpu.memory_space<vmem>>, vector<16x96xf32>
    %929 = arith.addf %927, %928 : vector<16x96xf32>
    %c0_496 = arith.constant 0 : index
    %c0_497 = arith.constant 0 : index
    %930 = vector.load %arg15[%c0_496, %c0_497] : memref<32x64xf32, #tpu.memory_space<vmem>>, vector<32x64xf32>
    %cst_498 = arith.constant dense<0.000000e+00> : vector<16x64xf32>
    %931 = tpu.matmul %887, %930, %cst_498 {dimension_numbers = #tpu.dot_dimension_numbers<[1], [0], [0], [1], [0, 0, 1, 1], [], []>} : vector<16x32xf32>, vector<32x64xf32>, vector<16x64xf32> -> vector<16x64xf32>
    %932 = vector.extract_strided_slice %929 {offsets = [0, 0], sizes = [16, 64], strides = [1, 1]} : vector<16x96xf32> to vector<16x64xf32>
    %933 = arith.addf %932, %931 : vector<16x64xf32>
    %934 = arith.negf %933 : vector<16x64xf32>
    %935 = math.exp %934 : vector<16x64xf32>
    %cst_499 = arith.constant 1.000000e+00 : f32
    %936 = vector.broadcast %cst_499 : f32 to vector<16x64xf32>
    %937 = arith.addf %936, %935 : vector<16x64xf32>
    %938 = arith.divf %936, %937 : vector<16x64xf32>
    %939 = vector.extract_strided_slice %938 {offsets = [0, 0], sizes = [16, 32], strides = [1, 1]} : vector<16x64xf32> to vector<16x32xf32>
    %940 = vector.extract_strided_slice %938 {offsets = [0, 32], sizes = [16, 32], strides = [1, 1]} : vector<16x64xf32> to vector<16x32xf32>
    %941 = arith.mulf %939, %886 : vector<16x32xf32>
    %cst_500 = arith.constant dense<0.000000e+00> : vector<16x32xf32>
    %942 = tpu.matmul %0, %941, %cst_500 {dimension_numbers = #tpu.dot_dimension_numbers<[1], [0], [0], [1], [0, 0, 1, 1], [], []>} : vector<16x16xf32>, vector<16x32xf32>, vector<16x32xf32> -> vector<16x32xf32>
    %943 = vector.extract_strided_slice %929 {offsets = [0, 64], sizes = [16, 32], strides = [1, 1]} : vector<16x96xf32> to vector<16x32xf32>
    %c0_501 = arith.constant 0 : index
    %c0_502 = arith.constant 0 : index
    %944 = vector.load %arg16[%c0_501, %c0_502] : memref<32x32xf32, #tpu.memory_space<vmem>>, vector<32x32xf32>
    %cst_503 = arith.constant dense<0.000000e+00> : vector<16x32xf32>
    %945 = tpu.matmul %942, %944, %cst_503 {dimension_numbers = #tpu.dot_dimension_numbers<[1], [0], [0], [1], [0, 0, 1, 1], [], []>} : vector<16x32xf32>, vector<32x32xf32>, vector<16x32xf32> -> vector<16x32xf32>
    %946 = arith.addf %943, %945 : vector<16x32xf32>
    %947 = arith.negf %946 : vector<16x32xf32>
    %948 = math.exp %947 : vector<16x32xf32>
    %cst_504 = arith.constant 1.000000e+00 : f32
    %949 = vector.broadcast %cst_504 : f32 to vector<16x32xf32>
    %950 = arith.addf %949, %948 : vector<16x32xf32>
    %951 = arith.divf %949, %950 : vector<16x32xf32>
    %952 = arith.mulf %940, %886 : vector<16x32xf32>
    %cst_505 = arith.constant 1.000000e+00 : f32
    %953 = vector.broadcast %cst_505 : f32 to vector<16x32xf32>
    %954 = arith.subf %953, %940 : vector<16x32xf32>
    %955 = arith.mulf %954, %951 : vector<16x32xf32>
    %956 = arith.addf %952, %955 : vector<16x32xf32>
    %cst_506 = arith.constant dense<0.000000e+00> : vector<16x32xf32>
    %957 = tpu.matmul %0, %956, %cst_506 {dimension_numbers = #tpu.dot_dimension_numbers<[1], [0], [0], [1], [0, 0, 1, 1], [], []>} : vector<16x16xf32>, vector<16x32xf32>, vector<16x32xf32> -> vector<16x32xf32>
    %cst_507 = arith.constant dense<0.000000e+00> : vector<16x4xf32>
    %958 = tpu.matmul %956, %541, %cst_507 {dimension_numbers = #tpu.dot_dimension_numbers<[1], [0], [0], [1], [0, 0, 1, 1], [], []>} : vector<16x32xf32>, vector<32x4xf32>, vector<16x4xf32> -> vector<16x4xf32>
    %959 = arith.addf %958, %542 : vector<16x4xf32>
    %c5_508 = arith.constant 5 : index
    %c0_509 = arith.constant 0 : index
    %c0_510 = arith.constant 0 : index
    %960 = vector.load %arg20[%c5_508, %c0_509, %c0_510] : memref<8x16x4xf32, #tpu.memory_space<vmem>>, vector<1x16x4xf32>
    %961 = vector.shape_cast %960 : vector<1x16x4xf32> to vector<16x4xf32>
    %962 = vector.shape_cast %959 : vector<16x4xf32> to vector<1x16x4xf32>
    tpu.vector_store %arg20[%c5_508, %c0_509, %c0_510], %962 {strides = array<i32>} : memref<8x16x4xf32, #tpu.memory_space<vmem>>, vector<1x16x4xf32>,
    %cst_511 = arith.constant dense<0.000000e+00> : vector<16x4xf32>
    %963 = tpu.matmul %0, %959, %cst_511 {dimension_numbers = #tpu.dot_dimension_numbers<[1], [0], [0], [1], [0, 0, 1, 1], [], []>} : vector<16x16xf32>, vector<16x4xf32>, vector<16x4xf32> -> vector<16x4xf32>
    %c0_512 = arith.constant 0 : index
    %c0_513 = arith.constant 0 : index
    %964 = vector.load %arg10[%c0_512, %c0_513] : memref<4x96xf32, #tpu.memory_space<vmem>>, vector<4x96xf32>
    %cst_514 = arith.constant dense<0.000000e+00> : vector<16x96xf32>
    %965 = tpu.matmul %963, %964, %cst_514 {dimension_numbers = #tpu.dot_dimension_numbers<[1], [0], [0], [1], [0, 0, 1, 1], [], []>} : vector<16x4xf32>, vector<4x96xf32>, vector<16x96xf32> -> vector<16x96xf32>
    %c0_515 = arith.constant 0 : index
    %c0_516 = arith.constant 0 : index
    %966 = vector.load %arg13[%c0_515, %c0_516] : memref<16x96xf32, #tpu.memory_space<vmem>>, vector<16x96xf32>
    %967 = arith.addf %965, %966 : vector<16x96xf32>
    %c0_517 = arith.constant 0 : index
    %c0_518 = arith.constant 0 : index
    %968 = vector.load %arg11[%c0_517, %c0_518] : memref<32x64xf32, #tpu.memory_space<vmem>>, vector<32x64xf32>
    %cst_519 = arith.constant dense<0.000000e+00> : vector<16x64xf32>
    %969 = tpu.matmul %925, %968, %cst_519 {dimension_numbers = #tpu.dot_dimension_numbers<[1], [0], [0], [1], [0, 0, 1, 1], [], []>} : vector<16x32xf32>, vector<32x64xf32>, vector<16x64xf32> -> vector<16x64xf32>
    %970 = vector.extract_strided_slice %967 {offsets = [0, 0], sizes = [16, 64], strides = [1, 1]} : vector<16x96xf32> to vector<16x64xf32>
    %971 = arith.addf %970, %969 : vector<16x64xf32>
    %972 = arith.negf %971 : vector<16x64xf32>
    %973 = math.exp %972 : vector<16x64xf32>
    %cst_520 = arith.constant 1.000000e+00 : f32
    %974 = vector.broadcast %cst_520 : f32 to vector<16x64xf32>
    %975 = arith.addf %974, %973 : vector<16x64xf32>
    %976 = arith.divf %974, %975 : vector<16x64xf32>
    %977 = vector.extract_strided_slice %976 {offsets = [0, 0], sizes = [16, 32], strides = [1, 1]} : vector<16x64xf32> to vector<16x32xf32>
    %978 = vector.extract_strided_slice %976 {offsets = [0, 32], sizes = [16, 32], strides = [1, 1]} : vector<16x64xf32> to vector<16x32xf32>
    %979 = arith.mulf %977, %924 : vector<16x32xf32>
    %cst_521 = arith.constant dense<0.000000e+00> : vector<16x32xf32>
    %980 = tpu.matmul %0, %979, %cst_521 {dimension_numbers = #tpu.dot_dimension_numbers<[1], [0], [0], [1], [0, 0, 1, 1], [], []>} : vector<16x16xf32>, vector<16x32xf32>, vector<16x32xf32> -> vector<16x32xf32>
    %981 = vector.extract_strided_slice %967 {offsets = [0, 64], sizes = [16, 32], strides = [1, 1]} : vector<16x96xf32> to vector<16x32xf32>
    %c0_522 = arith.constant 0 : index
    %c0_523 = arith.constant 0 : index
    %982 = vector.load %arg12[%c0_522, %c0_523] : memref<32x32xf32, #tpu.memory_space<vmem>>, vector<32x32xf32>
    %cst_524 = arith.constant dense<0.000000e+00> : vector<16x32xf32>
    %983 = tpu.matmul %980, %982, %cst_524 {dimension_numbers = #tpu.dot_dimension_numbers<[1], [0], [0], [1], [0, 0, 1, 1], [], []>} : vector<16x32xf32>, vector<32x32xf32>, vector<16x32xf32> -> vector<16x32xf32>
    %984 = arith.addf %981, %983 : vector<16x32xf32>
    %985 = arith.negf %984 : vector<16x32xf32>
    %986 = math.exp %985 : vector<16x32xf32>
    %cst_525 = arith.constant 1.000000e+00 : f32
    %987 = vector.broadcast %cst_525 : f32 to vector<16x32xf32>
    %988 = arith.addf %987, %986 : vector<16x32xf32>
    %989 = arith.divf %987, %988 : vector<16x32xf32>
    %990 = arith.mulf %978, %924 : vector<16x32xf32>
    %cst_526 = arith.constant 1.000000e+00 : f32
    %991 = vector.broadcast %cst_526 : f32 to vector<16x32xf32>
    %992 = arith.subf %991, %978 : vector<16x32xf32>
    %993 = arith.mulf %992, %989 : vector<16x32xf32>
    %994 = arith.addf %990, %993 : vector<16x32xf32>
    %cst_527 = arith.constant dense<0.000000e+00> : vector<16x32xf32>
    %995 = tpu.matmul %0, %994, %cst_527 {dimension_numbers = #tpu.dot_dimension_numbers<[1], [0], [0], [1], [0, 0, 1, 1], [], []>} : vector<16x16xf32>, vector<16x32xf32>, vector<16x32xf32> -> vector<16x32xf32>
    %c0_528 = arith.constant 0 : index
    %c0_529 = arith.constant 0 : index
    %996 = vector.load %arg14[%c0_528, %c0_529] : memref<32x96xf32, #tpu.memory_space<vmem>>, vector<32x96xf32>
    %cst_530 = arith.constant dense<0.000000e+00> : vector<16x96xf32>
    %997 = tpu.matmul %995, %996, %cst_530 {dimension_numbers = #tpu.dot_dimension_numbers<[1], [0], [0], [1], [0, 0, 1, 1], [], []>} : vector<16x32xf32>, vector<32x96xf32>, vector<16x96xf32> -> vector<16x96xf32>
    %c0_531 = arith.constant 0 : index
    %c0_532 = arith.constant 0 : index
    %998 = vector.load %arg17[%c0_531, %c0_532] : memref<16x96xf32, #tpu.memory_space<vmem>>, vector<16x96xf32>
    %999 = arith.addf %997, %998 : vector<16x96xf32>
    %c0_533 = arith.constant 0 : index
    %c0_534 = arith.constant 0 : index
    %1000 = vector.load %arg15[%c0_533, %c0_534] : memref<32x64xf32, #tpu.memory_space<vmem>>, vector<32x64xf32>
    %cst_535 = arith.constant dense<0.000000e+00> : vector<16x64xf32>
    %1001 = tpu.matmul %957, %1000, %cst_535 {dimension_numbers = #tpu.dot_dimension_numbers<[1], [0], [0], [1], [0, 0, 1, 1], [], []>} : vector<16x32xf32>, vector<32x64xf32>, vector<16x64xf32> -> vector<16x64xf32>
    %1002 = vector.extract_strided_slice %999 {offsets = [0, 0], sizes = [16, 64], strides = [1, 1]} : vector<16x96xf32> to vector<16x64xf32>
    %1003 = arith.addf %1002, %1001 : vector<16x64xf32>
    %1004 = arith.negf %1003 : vector<16x64xf32>
    %1005 = math.exp %1004 : vector<16x64xf32>
    %cst_536 = arith.constant 1.000000e+00 : f32
    %1006 = vector.broadcast %cst_536 : f32 to vector<16x64xf32>
    %1007 = arith.addf %1006, %1005 : vector<16x64xf32>
    %1008 = arith.divf %1006, %1007 : vector<16x64xf32>
    %1009 = vector.extract_strided_slice %1008 {offsets = [0, 0], sizes = [16, 32], strides = [1, 1]} : vector<16x64xf32> to vector<16x32xf32>
    %1010 = vector.extract_strided_slice %1008 {offsets = [0, 32], sizes = [16, 32], strides = [1, 1]} : vector<16x64xf32> to vector<16x32xf32>
    %1011 = arith.mulf %1009, %956 : vector<16x32xf32>
    %cst_537 = arith.constant dense<0.000000e+00> : vector<16x32xf32>
    %1012 = tpu.matmul %0, %1011, %cst_537 {dimension_numbers = #tpu.dot_dimension_numbers<[1], [0], [0], [1], [0, 0, 1, 1], [], []>} : vector<16x16xf32>, vector<16x32xf32>, vector<16x32xf32> -> vector<16x32xf32>
    %1013 = vector.extract_strided_slice %999 {offsets = [0, 64], sizes = [16, 32], strides = [1, 1]} : vector<16x96xf32> to vector<16x32xf32>
    %c0_538 = arith.constant 0 : index
    %c0_539 = arith.constant 0 : index
    %1014 = vector.load %arg16[%c0_538, %c0_539] : memref<32x32xf32, #tpu.memory_space<vmem>>, vector<32x32xf32>
    %cst_540 = arith.constant dense<0.000000e+00> : vector<16x32xf32>
    %1015 = tpu.matmul %1012, %1014, %cst_540 {dimension_numbers = #tpu.dot_dimension_numbers<[1], [0], [0], [1], [0, 0, 1, 1], [], []>} : vector<16x32xf32>, vector<32x32xf32>, vector<16x32xf32> -> vector<16x32xf32>
    %1016 = arith.addf %1013, %1015 : vector<16x32xf32>
    %1017 = arith.negf %1016 : vector<16x32xf32>
    %1018 = math.exp %1017 : vector<16x32xf32>
    %cst_541 = arith.constant 1.000000e+00 : f32
    %1019 = vector.broadcast %cst_541 : f32 to vector<16x32xf32>
    %1020 = arith.addf %1019, %1018 : vector<16x32xf32>
    %1021 = arith.divf %1019, %1020 : vector<16x32xf32>
    %1022 = arith.mulf %1010, %956 : vector<16x32xf32>
    %cst_542 = arith.constant 1.000000e+00 : f32
    %1023 = vector.broadcast %cst_542 : f32 to vector<16x32xf32>
    %1024 = arith.subf %1023, %1010 : vector<16x32xf32>
    %1025 = arith.mulf %1024, %1021 : vector<16x32xf32>
    %1026 = arith.addf %1022, %1025 : vector<16x32xf32>
    %cst_543 = arith.constant dense<0.000000e+00> : vector<16x32xf32>
    %1027 = tpu.matmul %0, %1026, %cst_543 {dimension_numbers = #tpu.dot_dimension_numbers<[1], [0], [0], [1], [0, 0, 1, 1], [], []>} : vector<16x16xf32>, vector<16x32xf32>, vector<16x32xf32> -> vector<16x32xf32>
    %cst_544 = arith.constant dense<0.000000e+00> : vector<16x4xf32>
    %1028 = tpu.matmul %1026, %541, %cst_544 {dimension_numbers = #tpu.dot_dimension_numbers<[1], [0], [0], [1], [0, 0, 1, 1], [], []>} : vector<16x32xf32>, vector<32x4xf32>, vector<16x4xf32> -> vector<16x4xf32>
    %1029 = arith.addf %1028, %542 : vector<16x4xf32>
    %c6_545 = arith.constant 6 : index
    %c0_546 = arith.constant 0 : index
    %c0_547 = arith.constant 0 : index
    %1030 = vector.load %arg20[%c6_545, %c0_546, %c0_547] : memref<8x16x4xf32, #tpu.memory_space<vmem>>, vector<1x16x4xf32>
    %1031 = vector.shape_cast %1030 : vector<1x16x4xf32> to vector<16x4xf32>
    %1032 = vector.shape_cast %1029 : vector<16x4xf32> to vector<1x16x4xf32>
    tpu.vector_store %arg20[%c6_545, %c0_546, %c0_547], %1032 {strides = array<i32>} : memref<8x16x4xf32, #tpu.memory_space<vmem>>, vector<1x16x4xf32>,
    %cst_548 = arith.constant dense<0.000000e+00> : vector<16x4xf32>
    %1033 = tpu.matmul %0, %1029, %cst_548 {dimension_numbers = #tpu.dot_dimension_numbers<[1], [0], [0], [1], [0, 0, 1, 1], [], []>} : vector<16x16xf32>, vector<16x4xf32>, vector<16x4xf32> -> vector<16x4xf32>
    %c0_549 = arith.constant 0 : index
    %c0_550 = arith.constant 0 : index
    %1034 = vector.load %arg10[%c0_549, %c0_550] : memref<4x96xf32, #tpu.memory_space<vmem>>, vector<4x96xf32>
    %cst_551 = arith.constant dense<0.000000e+00> : vector<16x96xf32>
    %1035 = tpu.matmul %1033, %1034, %cst_551 {dimension_numbers = #tpu.dot_dimension_numbers<[1], [0], [0], [1], [0, 0, 1, 1], [], []>} : vector<16x4xf32>, vector<4x96xf32>, vector<16x96xf32> -> vector<16x96xf32>
    %c0_552 = arith.constant 0 : index
    %c0_553 = arith.constant 0 : index
    %1036 = vector.load %arg13[%c0_552, %c0_553] : memref<16x96xf32, #tpu.memory_space<vmem>>, vector<16x96xf32>
    %1037 = arith.addf %1035, %1036 : vector<16x96xf32>
    %c0_554 = arith.constant 0 : index
    %c0_555 = arith.constant 0 : index
    %1038 = vector.load %arg11[%c0_554, %c0_555] : memref<32x64xf32, #tpu.memory_space<vmem>>, vector<32x64xf32>
    %cst_556 = arith.constant dense<0.000000e+00> : vector<16x64xf32>
    %1039 = tpu.matmul %995, %1038, %cst_556 {dimension_numbers = #tpu.dot_dimension_numbers<[1], [0], [0], [1], [0, 0, 1, 1], [], []>} : vector<16x32xf32>, vector<32x64xf32>, vector<16x64xf32> -> vector<16x64xf32>
    %1040 = vector.extract_strided_slice %1037 {offsets = [0, 0], sizes = [16, 64], strides = [1, 1]} : vector<16x96xf32> to vector<16x64xf32>
    %1041 = arith.addf %1040, %1039 : vector<16x64xf32>
    %1042 = arith.negf %1041 : vector<16x64xf32>
    %1043 = math.exp %1042 : vector<16x64xf32>
    %cst_557 = arith.constant 1.000000e+00 : f32
    %1044 = vector.broadcast %cst_557 : f32 to vector<16x64xf32>
    %1045 = arith.addf %1044, %1043 : vector<16x64xf32>
    %1046 = arith.divf %1044, %1045 : vector<16x64xf32>
    %1047 = vector.extract_strided_slice %1046 {offsets = [0, 0], sizes = [16, 32], strides = [1, 1]} : vector<16x64xf32> to vector<16x32xf32>
    %1048 = vector.extract_strided_slice %1046 {offsets = [0, 32], sizes = [16, 32], strides = [1, 1]} : vector<16x64xf32> to vector<16x32xf32>
    %1049 = arith.mulf %1047, %994 : vector<16x32xf32>
    %cst_558 = arith.constant dense<0.000000e+00> : vector<16x32xf32>
    %1050 = tpu.matmul %0, %1049, %cst_558 {dimension_numbers = #tpu.dot_dimension_numbers<[1], [0], [0], [1], [0, 0, 1, 1], [], []>} : vector<16x16xf32>, vector<16x32xf32>, vector<16x32xf32> -> vector<16x32xf32>
    %1051 = vector.extract_strided_slice %1037 {offsets = [0, 64], sizes = [16, 32], strides = [1, 1]} : vector<16x96xf32> to vector<16x32xf32>
    %c0_559 = arith.constant 0 : index
    %c0_560 = arith.constant 0 : index
    %1052 = vector.load %arg12[%c0_559, %c0_560] : memref<32x32xf32, #tpu.memory_space<vmem>>, vector<32x32xf32>
    %cst_561 = arith.constant dense<0.000000e+00> : vector<16x32xf32>
    %1053 = tpu.matmul %1050, %1052, %cst_561 {dimension_numbers = #tpu.dot_dimension_numbers<[1], [0], [0], [1], [0, 0, 1, 1], [], []>} : vector<16x32xf32>, vector<32x32xf32>, vector<16x32xf32> -> vector<16x32xf32>
    %1054 = arith.addf %1051, %1053 : vector<16x32xf32>
    %1055 = arith.negf %1054 : vector<16x32xf32>
    %1056 = math.exp %1055 : vector<16x32xf32>
    %cst_562 = arith.constant 1.000000e+00 : f32
    %1057 = vector.broadcast %cst_562 : f32 to vector<16x32xf32>
    %1058 = arith.addf %1057, %1056 : vector<16x32xf32>
    %1059 = arith.divf %1057, %1058 : vector<16x32xf32>
    %1060 = arith.mulf %1048, %994 : vector<16x32xf32>
    %cst_563 = arith.constant 1.000000e+00 : f32
    %1061 = vector.broadcast %cst_563 : f32 to vector<16x32xf32>
    %1062 = arith.subf %1061, %1048 : vector<16x32xf32>
    %1063 = arith.mulf %1062, %1059 : vector<16x32xf32>
    %1064 = arith.addf %1060, %1063 : vector<16x32xf32>
    %cst_564 = arith.constant dense<0.000000e+00> : vector<16x32xf32>
    %1065 = tpu.matmul %0, %1064, %cst_564 {dimension_numbers = #tpu.dot_dimension_numbers<[1], [0], [0], [1], [0, 0, 1, 1], [], []>} : vector<16x16xf32>, vector<16x32xf32>, vector<16x32xf32> -> vector<16x32xf32>
    %c0_565 = arith.constant 0 : index
    %c0_566 = arith.constant 0 : index
    %1066 = vector.load %arg14[%c0_565, %c0_566] : memref<32x96xf32, #tpu.memory_space<vmem>>, vector<32x96xf32>
    %cst_567 = arith.constant dense<0.000000e+00> : vector<16x96xf32>
    %1067 = tpu.matmul %1065, %1066, %cst_567 {dimension_numbers = #tpu.dot_dimension_numbers<[1], [0], [0], [1], [0, 0, 1, 1], [], []>} : vector<16x32xf32>, vector<32x96xf32>, vector<16x96xf32> -> vector<16x96xf32>
    %c0_568 = arith.constant 0 : index
    %c0_569 = arith.constant 0 : index
    %1068 = vector.load %arg17[%c0_568, %c0_569] : memref<16x96xf32, #tpu.memory_space<vmem>>, vector<16x96xf32>
    %1069 = arith.addf %1067, %1068 : vector<16x96xf32>
    %c0_570 = arith.constant 0 : index
    %c0_571 = arith.constant 0 : index
    %1070 = vector.load %arg15[%c0_570, %c0_571] : memref<32x64xf32, #tpu.memory_space<vmem>>, vector<32x64xf32>
    %cst_572 = arith.constant dense<0.000000e+00> : vector<16x64xf32>
    %1071 = tpu.matmul %1027, %1070, %cst_572 {dimension_numbers = #tpu.dot_dimension_numbers<[1], [0], [0], [1], [0, 0, 1, 1], [], []>} : vector<16x32xf32>, vector<32x64xf32>, vector<16x64xf32> -> vector<16x64xf32>
    %1072 = vector.extract_strided_slice %1069 {offsets = [0, 0], sizes = [16, 64], strides = [1, 1]} : vector<16x96xf32> to vector<16x64xf32>
    %1073 = arith.addf %1072, %1071 : vector<16x64xf32>
    %1074 = arith.negf %1073 : vector<16x64xf32>
    %1075 = math.exp %1074 : vector<16x64xf32>
    %cst_573 = arith.constant 1.000000e+00 : f32
    %1076 = vector.broadcast %cst_573 : f32 to vector<16x64xf32>
    %1077 = arith.addf %1076, %1075 : vector<16x64xf32>
    %1078 = arith.divf %1076, %1077 : vector<16x64xf32>
    %1079 = vector.extract_strided_slice %1078 {offsets = [0, 0], sizes = [16, 32], strides = [1, 1]} : vector<16x64xf32> to vector<16x32xf32>
    %1080 = vector.extract_strided_slice %1078 {offsets = [0, 32], sizes = [16, 32], strides = [1, 1]} : vector<16x64xf32> to vector<16x32xf32>
    %1081 = arith.mulf %1079, %1026 : vector<16x32xf32>
    %cst_574 = arith.constant dense<0.000000e+00> : vector<16x32xf32>
    %1082 = tpu.matmul %0, %1081, %cst_574 {dimension_numbers = #tpu.dot_dimension_numbers<[1], [0], [0], [1], [0, 0, 1, 1], [], []>} : vector<16x16xf32>, vector<16x32xf32>, vector<16x32xf32> -> vector<16x32xf32>
    %1083 = vector.extract_strided_slice %1069 {offsets = [0, 64], sizes = [16, 32], strides = [1, 1]} : vector<16x96xf32> to vector<16x32xf32>
    %c0_575 = arith.constant 0 : index
    %c0_576 = arith.constant 0 : index
    %1084 = vector.load %arg16[%c0_575, %c0_576] : memref<32x32xf32, #tpu.memory_space<vmem>>, vector<32x32xf32>
    %cst_577 = arith.constant dense<0.000000e+00> : vector<16x32xf32>
    %1085 = tpu.matmul %1082, %1084, %cst_577 {dimension_numbers = #tpu.dot_dimension_numbers<[1], [0], [0], [1], [0, 0, 1, 1], [], []>} : vector<16x32xf32>, vector<32x32xf32>, vector<16x32xf32> -> vector<16x32xf32>
    %1086 = arith.addf %1083, %1085 : vector<16x32xf32>
    %1087 = arith.negf %1086 : vector<16x32xf32>
    %1088 = math.exp %1087 : vector<16x32xf32>
    %cst_578 = arith.constant 1.000000e+00 : f32
    %1089 = vector.broadcast %cst_578 : f32 to vector<16x32xf32>
    %1090 = arith.addf %1089, %1088 : vector<16x32xf32>
    %1091 = arith.divf %1089, %1090 : vector<16x32xf32>
    %1092 = arith.mulf %1080, %1026 : vector<16x32xf32>
    %cst_579 = arith.constant 1.000000e+00 : f32
    %1093 = vector.broadcast %cst_579 : f32 to vector<16x32xf32>
    %1094 = arith.subf %1093, %1080 : vector<16x32xf32>
    %1095 = arith.mulf %1094, %1091 : vector<16x32xf32>
    %1096 = arith.addf %1092, %1095 : vector<16x32xf32>
    %cst_580 = arith.constant dense<0.000000e+00> : vector<16x4xf32>
    %1097 = tpu.matmul %1096, %541, %cst_580 {dimension_numbers = #tpu.dot_dimension_numbers<[1], [0], [0], [1], [0, 0, 1, 1], [], []>} : vector<16x32xf32>, vector<32x4xf32>, vector<16x4xf32> -> vector<16x4xf32>
    %1098 = arith.addf %1097, %542 : vector<16x4xf32>
    %c7_581 = arith.constant 7 : index
    %c0_582 = arith.constant 0 : index
    %c0_583 = arith.constant 0 : index
    %1099 = vector.load %arg20[%c7_581, %c0_582, %c0_583] : memref<8x16x4xf32, #tpu.memory_space<vmem>>, vector<1x16x4xf32>
    %1100 = vector.shape_cast %1099 : vector<1x16x4xf32> to vector<16x4xf32>
    %1101 = vector.shape_cast %1098 : vector<16x4xf32> to vector<1x16x4xf32>
    tpu.vector_store %arg20[%c7_581, %c0_582, %c0_583], %1101 {strides = array<i32>} : memref<8x16x4xf32, #tpu.memory_space<vmem>>, vector<1x16x4xf32>,
    return
  }
}

</mosaic_0001>

<bundles_post_ra>
// kernel: graphrnn_forward.1
= control target key start
LH: loop header
LB: loop body
LE: loop exit
PB: predicated region body
PF: predicated region fallthrough
CT: control target
= control target key end

     0   :  { %s23713_s0 = inlined_call_operand.hbm [shape: f32[16,16], index: 0, kind: input, shape index: {}]   ;;  %s23714_s1 = inlined_call_operand.vmem [shape: f32[8,16,4], index: 1, kind: input, shape index: {}]   ;;  %s23715_s2 = inlined_call_operand.vmem [shape: f32[4,96], index: 2, kind: input, shape index: {}]   ;;  %s23716_s3 = inlined_call_operand.vmem [shape: f32[32,64], index: 3, kind: input, shape index: {}]   ;;  %s23717_s4 = inlined_call_operand.vmem [shape: f32[32,32], index: 4, kind: input, shape index: {}]   ;;  %s23718_s5 = inlined_call_operand.vmem [shape: f32[16,96], index: 5, kind: input, shape index: {}]   ;;  %s23719_s6 = inlined_call_operand.vmem [shape: f32[32,96], index: 6, kind: input, shape index: {}]   ;;  %s23720_s7 = inlined_call_operand.vmem [shape: f32[32,64], index: 7, kind: input, shape index: {}]   ;;  %s23721_s8 = inlined_call_operand.vmem [shape: f32[32,32], index: 8, kind: input, shape index: {}]   ;;  %s23722_s9 = inlined_call_operand.vmem [shape: f32[16,96], index: 9, kind: input, shape index: {}]   ;;  %s23723_s10 = inlined_call_operand.hbm [shape: f32[4,96], index: 10, kind: input, shape index: {}]   ;;  %s23724_s11 = inlined_call_operand.vmem [shape: f32[32,64], index: 11, kind: input, shape index: {}]   ;;  %s23725_s12 = inlined_call_operand.vmem [shape: f32[32,32], index: 12, kind: input, shape index: {}]   ;;  %s23726_s13 = inlined_call_operand.vmem [shape: f32[16,96], index: 13, kind: input, shape index: {}]   ;;  %s23727_s14 = inlined_call_operand.vmem [shape: f32[32,96], index: 14, kind: input, shape index: {}]   ;;  %s23728_s15 = inlined_call_operand.hbm [shape: f32[32,64], index: 15, kind: input, shape index: {}]   ;;  %s23729_s16 = inlined_call_operand.hbm [shape: f32[32,32], index: 16, kind: input, shape index: {}]   ;;  %s23730_s17 = inlined_call_operand.vmem [shape: f32[16,96], index: 17, kind: input, shape index: {}]   ;;  %s23731_s18 = inlined_call_operand.vmem [shape: f32[32,4], index: 18, kind: input, shape index: {}]   ;;  %s23732_s19 = inlined_call_operand.vmem [shape: f32[16,4], index: 19, kind: input, shape index: {}]   ;;  %s23733_s20 = inlined_call_operand.vmem [shape: f32[8,16,4], index: 20, kind: output, shape index: {}]  }
   0x1   :  { %23738 = sst [smem:[#allocation12_spill]] %s23713_s0 }
   0x2   :  { %23739 = sst [smem:[#allocation13_spill]] %s23714_s1 }
   0x3   :  { %23740 = sst [smem:[#allocation14_spill]] %s23715_s2 }
   0x4   :  { %23741 = sst [smem:[#allocation15_spill]] %s23716_s3 }
   0x5   :  { %23742 = sst [smem:[#allocation16_spill]] %s23717_s4 }
   0x6   :  { %25 = vsyncpa [#allocation3], 0 }
   0x7   :  { %26 = vsyncpa [#allocation5], 0 }
   0x8   :  { %27 = vsyncpa [#allocation8], 0  ;;  %s20271_s1 = smov [#allocation4]   ;;  %s20272_s23 = smov [#allocation2]  }
   0x9   :  { %s64_s22 = sshll.u32 %s20271_s1, 4  ;;  %s33_s24 = sshll.u32 %s20272_s23, 4  ;;  %s65_s22 = int_to_ptr.vmem [resolvable:$true] %s64_s22  ;;  %s34_s24 = int_to_ptr.vmem [resolvable:$true] %s33_s24 }
   0xa   :  { %s20193_s2 = scalar_lea.vmem %s65_s22, 64  ;;  %p20198_p1 = scmp.lt.s32.totalorder %s65_s22, %s65_s22 }
   0xb   :  { %p20194_p0 = scmp.ne.s32.totalorder %s65_s22, %s20193_s2  ;;  %p20199_p2 = scmp.lt.s32.totalorder %s20193_s2, %s20193_s2 }
   0xd   :  { %p20200_p3 = por %p20199_p2, %p20198_p1 }
   0xf   :  { %p20201_p4 = pnand %p20200_p3, %p20194_p0 }
  0x11   :  { %20204 = shalt.err (!%p20201_p4)
}
  0x12   :  { %67 = dma.hbm_to_vmem [thread:$0]  %s23723_s10, 64, %s65_s22, [#allocation5]  }
  0x13   :  { %s20213_s26 = scalar_lea.vmem %s34_s24, 256  ;;  %p20218_p6 = scmp.lt.s32.totalorder %s34_s24, %s34_s24 }
  0x14   :  { %p20214_p5 = scmp.ne.s32.totalorder %s34_s24, %s20213_s26  ;;  %p20219_p7 = scmp.lt.s32.totalorder %s20213_s26, %s20213_s26 }
  0x16   :  { %p20220_p8 = por %p20219_p7, %p20218_p6 }
  0x18   :  { %p20221_p9 = pnand %p20220_p8, %p20214_p5 }
  0x1a   :  { %20224 = shalt.err (!%p20221_p9)
}
  0x1b   :  { %s20273_s27 = smov 128   ;;  %s20274_s28 = smov 8  }
  0x1c   :  { %s23743_s30 = sld [smem:[#allocation12_spill]]  ;;  %s20275_s0 = smov [#allocation6]  }
  0x1d   :  { %s81_s21 = sshll.u32 %s20275_s0, 4  ;;  %s20276_s1 = smov [#allocation7]   ;;  %s82_s21 = int_to_ptr.vmem [resolvable:$true] %s81_s21 }
  0x1e   :  { %s93_s23 = sshll.u32 %s20276_s1, 4  ;;  %s20233_s10 = scalar_lea.vmem %s82_s21, 512  ;;  %s94_s23 = int_to_ptr.vmem [resolvable:$true] %s93_s23 }
  0x1f   :  { %p20234_p10 = scmp.ne.s32.totalorder %s82_s21, %s20233_s10  ;;  %p20238_p11 = scmp.lt.s32.totalorder %s82_s21, %s82_s21 }
  0x20   :  { %p20239_p12 = scmp.lt.s32.totalorder %s20233_s10, %s20233_s10 }
  0x22   :  { %39 = dma.hbm_to_vmem [thread:$0]  %s23743_s30, 256, %s34_s24, [#allocation3], %s20273_s27, %s20273_s27, %s20274_s28  }
  0x23   :  { %p20240_p13 = por %p20239_p12, %p20238_p11 }
  0x25   :  { %p20241_p0 = pnand %p20240_p13, %p20234_p10 }
  0x27   :  { %20244 = shalt.err (!%p20241_p0)
}
  0x28   :  { %87 = dma.hbm_to_vmem [thread:$0]  %s23728_s15, 512, %s82_s21, [#allocation5], %s20273_s27, %s20273_s27, %s20274_s28  }
  0x29   :  { %s20253_s25 = scalar_lea.vmem %s94_s23, 512  ;;  %p20258_p2 = scmp.lt.s32.totalorder %s94_s23, %s94_s23 }
  0x2a   :  { %p20254_p1 = scmp.ne.s32.totalorder %s94_s23, %s20253_s25  ;;  %p20259_p3 = scmp.lt.s32.totalorder %s20253_s25, %s20253_s25 }
  0x2c   :  { %p20260_p4 = por %p20259_p3, %p20258_p2 }
  0x2e   :  { %p20261_p5 = pnand %p20260_p4, %p20254_p1 }
  0x30   :  { %20264 = shalt.err (!%p20261_p5)
}
  0x31   :  { %99 = dma.hbm_to_vmem [thread:$0]  %s23729_s16, 512, %s94_s23, [#allocation8], %s20273_s27, %s20273_s27, %s20274_s28  }
  0x32   :  { %20265 = dma.done.wait [#allocation3], 256  }
  0x33   :  { %20266 = vsyncadd [#allocation3], 4294967040 }
  0x34   :  { %20267 = dma.done.wait [#allocation5], 576  }
  0x35   :  { %20268 = vsyncadd [#allocation5], 4294966720 }
  0x36   :  { %20269 = dma.done.wait [#allocation8], 512  }
  0x37   :  { %20270 = vsyncadd [#allocation8], 4294966784  ;;  %vm122_vm0 = vcmask 130048   ;;  %s23744_s4 = sld [smem:[#allocation13_spill]]  ;;  %v20403_v2 = vld [vmem:[#allocation2] sm:$0xff]  ;;  %v20407_v3 = vld [vmem:[#allocation2 + $0x8] sm:$0xff] }
  0x38   :  { %17996 = vmatprep.mubr.msk.f32.mxu0 %vm122_vm0, %v20403_v2  ;;  %s23745_s28 = sld [smem:[#allocation14_spill]]  ;;  %vm214_vm1 = vcmask 1043456   ;;  %vm207_vm2 = vcmask 31744   ;;  %v20277_v10 = vmov 0.0   ;;  %v20459_v13 = vld [vmem:[%s23718_s5 + $0x8] sm:$0xff]  ;;  %v20464_v15 = vld [vmem:[%s23718_s5] sm:$0xff] }
  0x39   :  { %s23746_s1 = sld [smem:[#allocation15_spill]]  ;;  %vm297_vm3 = vcmask 261120   ;;  %s20278_s25 = smov 64   ;;  %v20508_v52 = vld [vmem:[%s23720_s7 + $0x18] sm:$0xff]  ;;  %v20515_v55 = vld [vmem:[%s23720_s7 + $0x10] sm:$0xff] }
  0x3a   :  { %s23747_s27 = sld [smem:[#allocation16_spill]]  ;;  %s20279_s24 = smov 96  }
  0x3d   :  { %v121_v0 = vld [vmem:[%s23744_s4 + $0x8] sm:$0xff]  ;;  %v120_v1 = vld [vmem:[%s23744_s4] sm:$0xff] }
  0x3e   :  { %17992 = vmatprep.subr.mxu0 %v121_v0  ;;  %v20416_v4 = vld [vmem:[%s23745_s28] sm:$0xf] }
  0x3f   :  { %17993 = vmatpush3.msra.mxu0 %v121_v0  ;;  %17999 = vmatprep.subr.msk.mxu1 %vm214_vm1, %v20416_v4  ;;  %v20425_v5 = vld [vmem:[%s23746_s1 + $0x18] sm:$0xff]  ;;  %v20432_v8 = vld [vmem:[%s23746_s1 + $0x10] sm:$0xff]  ;;  %v20439_v9 = vld [vmem:[%s23746_s1 + $0x8] sm:$0xff] }
  0x40   :  { %17994 = vmatprep.subr.mxu0 %v120_v1  ;;  %18000 = vmatpush3.msk.msra.mxu1 %vm214_vm1, %v20416_v4  ;;  %v20447_v11 = vld [vmem:[%s23746_s1] sm:$0xff]  ;;  %v20471_v32 = vld [vmem:[%s23747_s27 + $0x18] sm:$0xff]  ;;  %v20476_v33 = vld [vmem:[%s23747_s27 + $0x10] sm:$0xff] }
  0x41   :  { %17995 = vmatpush3.msra.mxu0 %v120_v1  ;;  %18004 = vmatprep.subr.mxu1 %v20425_v5  ;;  %v20487_v34 = vld [vmem:[%s23747_s27 + $0x8] sm:$0xff]  ;;  %v20494_v35 = vld [vmem:[%s23747_s27] sm:$0xff]  ;;  %v20536_v0 = vld [vmem:[%s23719_s6 + $0x18] sm:$0xff] }
  0x42   :  { %17997 = vmatmul.mubr.msk.f32.vlgmr.msra.gmra.mxu0 %vm122_vm0, %v20407_v3  ;;  %v20543_v1 = vld [vmem:[%s23719_s6 + $0x10] sm:$0xff] }
  0x43   :  { %18019 = vmatprep.mubr.msk.f32.mxu0 %vm122_vm0, %v20403_v2 }
 0x102   :  { %v17998_v6 = vpop.f32.mrf.mxu0 }
 0x104   :  { %v195_v7 = vpop.f32.mrf.mxu0 }
 0x105   :  { %18001 = vmatprep.mubr.msk.f32.mxu1 %vm207_vm2, %v195_v7  ;;  %v20559_v7 = vld [vmem:[%s23720_s7 + $0x8] sm:$0xff] }
 0x106   :  { %18002 = vmatmul.mubr.msk.f32.vlgmr.msra.gmra.mxu1 %vm207_vm2, %v17998_v6  ;;  %v20554_v6 = vld [vmem:[%s23719_s6 + $0x8] sm:$0xff] }
 0x107   :  { %18005 = vmatpush3.msra.mxu1 %v20425_v5  ;;  %18012 = vmatprep.mubr.f32.mxu1 %v20277_v10 }
 0x108   :  { %18006 = vmatprep.subr.mxu1 %v20432_v8 }
 0x109   :  { %18007 = vmatpush3.msra.mxu1 %v20432_v8 }
 0x10a   :  { %18008 = vmatprep.subr.mxu1 %v20439_v9 }
 0x10b   :  { %18009 = vmatpush3.msra.mxu1 %v20439_v9 }
 0x10c   :  { %18010 = vmatprep.subr.mxu1 %v20447_v11 }
 0x10d   :  { %18011 = vmatpush3.msra.mxu1 %v20447_v11 }
 0x10e   :  { %18013 = vmatmul.mubr.f32.vlgmr.msra.gmra.mxu1 %v20277_v10 }
 0x10f   :  { %18037 = vmatprep.mubr.msk.f32.mxu1 %vm122_vm0, %v20403_v2 }
 0x1c6   :  { %v18003_v12 = vpop.f32.mrf.mxu1 }
 0x1c7   :  { %v290_v16 = vadd.f32 %v18003_v12, %v20459_v13  ;;  %v20568_v12 = vld [vmem:[%s23719_s6] sm:$0xff] }
 0x1c8   :  { %v284_v14 = vpop.f32.mrf.mxu1 }
 0x1c9   :  { %v285_v18 = vadd.f32 %v284_v14, %v20464_v15  ;;  %v20573_v14 = vld [vmem:[%s23720_s7] sm:$0xff] }
 0x1ce   :  { %v18014_v17 = vpop.f32.mrf.mxu1 }
 0x1cf   :  { %v377_v19 = vadd.f32 %v18014_v17, %v290_v16 }
 0x1d0   :  { %v367_v20 = vpop.f32.mrf.mxu1 }
 0x1d1   :  { %v16580_v21 = vmul.f32 -1.442695, %v377_v19  ;;  %v376_v22 = vadd.f32 %v367_v20, %v285_v18  ;;  %v20598_v19 = vld [vmem:[%s23721_s8 + $0x10] sm:$0xff]  ;;  %v20607_v20 = vld [vmem:[%s23722_s9 + $0x8] sm:$0xff] }
 0x1d3   :  { %19595 = vpow2.f32 %v16580_v21  ;;  %v16579_v23 = vmul.f32 -1.442695, %v376_v22 }
 0x1d5   :  { %19597 = vpow2.f32 %v16579_v23  ;;  %v20612_v23 = vld [vmem:[%s23722_s9] sm:$0xff] }
 0x1e0   :  { %v19596_v24 = vpop.eup %19595 }
 0x1e1   :  { %v385_v25 = vadd.f32 1.0, %v19596_v24 }
 0x1e2   :  { %v19598_v26 = vpop.eup %19597 }
 0x1e3   :  { %19599 = vrcp.f32 %v385_v25  ;;  %v384_v27 = vadd.f32 1.0, %v19598_v26 }
 0x1e5   :  { %19601 = vrcp.f32 %v384_v27 }
 0x1f0   :  { %v19600_v28 = vpop.eup %19599 }
 0x1f1   :  { %v391_v29 = vmul.f32 0.0, %v19600_v28  ;;  %v575_v53 = vsub.f32 1.0, %v19600_v28 }
 0x1f2   :  { %v19602_v30 = vpop.eup %19601 }
 0x1f3   :  { %18015 = vmatprep.subr.mxu0 %v391_v29  ;;  %v390_v31 = vmul.f32 0.0, %v19602_v30  ;;  %v574_v58 = vsub.f32 1.0, %v19602_v30 }
 0x1f4   :  { %18016 = vmatpush3.msra.mxu0 %v391_v29 }
 0x1f5   :  { %18017 = vmatprep.subr.mxu0 %v390_v31 }
 0x1f6   :  { %18018 = vmatpush3.msra.mxu0 %v390_v31 }
 0x1f7   :  { %18020 = vmatmul.mubr.msk.f32.vlgmr.msra.gmra.mxu0 %vm122_vm0, %v20407_v3  ;;  %18022 = vmatprep.subr.mxu0 %v20471_v32 }
 0x1f8   :  { %18023 = vmatpush3.msra.mxu0 %v20471_v32 }
 0x1f9   :  { %18024 = vmatprep.subr.mxu0 %v20476_v33 }
 0x1fa   :  { %18025 = vmatpush3.msra.mxu0 %v20476_v33 }
 0x1fb   :  { %18026 = vmatprep.subr.mxu0 %v20487_v34 }
 0x1fc   :  { %18027 = vmatpush3.msra.mxu0 %v20487_v34 }
 0x1fd   :  { %18028 = vmatprep.subr.mxu0 %v20494_v35 }
 0x1fe   :  { %18029 = vmatpush3.msra.mxu0 %v20494_v35 }
 0x1ff   :  { %18051 = vmatprep.subr.mxu0 %v20508_v52 }
 0x2b7   :  { %v18021_v36 = vpop.f32.mrf.mxu0 }
 0x2b9   :  { %v458_v37 = vpop.f32.mrf.mxu0 }
 0x2ba   :  { %18030 = vmatprep.mubr.msk.f32.mxu0 %vm297_vm3, %v458_v37 }
 0x2bb   :  { %18031 = vmatmul.mubr.msk.f32.vlgmr.msra.gmra.mxu0 %vm297_vm3, %v18021_v36 }
 0x2bc   :  { %18059 = vmatprep.mubr.f32.mxu0 %v20277_v10  ;;  %18052 = vmatpush3.msra.mxu0 %v20508_v52 }
 0x2bd   :  { %18053 = vmatprep.subr.mxu0 %v20515_v55 }
 0x2be   :  { %18054 = vmatpush3.msra.mxu0 %v20515_v55 }
 0x2bf   :  { %18055 = vmatprep.subr.mxu0 %v20559_v7 }
 0x2c0   :  { %18056 = vmatpush3.msra.mxu0 %v20559_v7 }
 0x2c1   :  { %18057 = vmatprep.subr.mxu0 %v20573_v14 }
 0x2c2   :  { %18058 = vmatpush3.msra.mxu0 %v20573_v14 }
 0x2c3   :  { %18060 = vmatmul.mubr.f32.vlgmr.msra.gmra.mxu0 %v20277_v10 }
 0x37b   :  { %v18032_v38 = vpop.f32.mrf.mxu0 }
 0x37c   :  { %556 = vrot.lane.b32.xlu0 %v18032_v38, %s20278_s25 }
 0x37d   :  { %v543_v39 = vpop.f32.mrf.mxu0 }
 0x380   :  { %554 = vrot.lane.b32.xlu0 %v543_v39, %s20278_s25 }
 0x383   :  { %v18061_v22 = vpop.f32.mrf.mxu0 }
 0x385   :  { %v828_v28 = vpop.f32.mrf.mxu0 }
 0x3ee   :  { %v557_v40 = vpop.permute.xlu0 %556 }
 0x3ef   :  { %v561_v41 = vadd.f32 %v557_v40, %v290_v16 }
 0x3f1   :  { %v16586_v42 = vmul.f32 -1.442695, %v561_v41 }
 0x3f2   :  { %v555_v43 = vpop.permute.xlu0 %554 }
 0x3f3   :  { %19603 = vpow2.f32 %v16586_v42  ;;  %v560_v44 = vadd.f32 %v555_v43, %v285_v18  ;;  %v20593_v18 = vld [vmem:[%s23721_s8 + $0x18] sm:$0xff] }
 0x3f4   :  { %18069 = vmatprep.subr.mxu0 %v20593_v18 }
 0x3f5   :  { %v16585_v45 = vmul.f32 -1.442695, %v560_v44  ;;  %18070 = vmatpush3.msra.mxu0 %v20593_v18  ;;  %v20623_v44 = vld [vmem:[%s23721_s8 + $0x8] sm:$0xff] }
 0x3f6   :  { %18071 = vmatprep.subr.mxu0 %v20598_v19 }
 0x3f7   :  { %19605 = vpow2.f32 %v16585_v45  ;;  %18072 = vmatpush3.msra.mxu0 %v20598_v19  ;;  %v20630_v45 = vld [vmem:[%s23721_s8] sm:$0xff] }
 0x3f8   :  { %18073 = vmatprep.subr.mxu0 %v20623_v44 }
 0x3f9   :  { %18074 = vmatpush3.msra.mxu0 %v20623_v44 }
 0x3fa   :  { %18075 = vmatprep.subr.mxu0 %v20630_v45 }
 0x3fb   :  { %18076 = vmatpush3.msra.mxu0 %v20630_v45 }
 0x3fc   :  { %18094 = vmatprep.subr.msk.mxu0 %vm214_vm1, %v20416_v4 }
 0x400   :  { %v19604_v46 = vpop.eup %19603 }
 0x401   :  { %v569_v47 = vadd.f32 1.0, %v19604_v46 }
 0x403   :  { %19607 = vrcp.f32 %v569_v47 }
 0x404   :  { %v19606_v48 = vpop.eup %19605 }
 0x405   :  { %v568_v49 = vadd.f32 1.0, %v19606_v48 }
 0x407   :  { %19609 = vrcp.f32 %v568_v49 }
 0x410   :  { %v19608_v50 = vpop.eup %19607 }
 0x411   :  { %580 = vrot.lane.b32.xlu1 %v19608_v50, %s20279_s24 }
 0x414   :  { %v19610_v51 = vpop.eup %19609 }
 0x415   :  { %578 = vrot.lane.b32.xlu1 %v19610_v51, %s20279_s24 }
 0x483   :  { %v581_v54 = vpop.permute.xlu1 %580 }
 0x484   :  { %v585_v56 = vmul.f32 %v581_v54, %v575_v53 }
 0x486   :  { %v20519_v57 = vadd.f32 %v585_v56, %v391_v29 }
 0x487   :  { %v579_v59 = vpop.permute.xlu1 %578 }
 0x488   :  { %v584_v60 = vmul.f32 %v579_v59, %v574_v58  ;;  %592 = vrot.lane.b32.xlu0 %v20519_v57, %s20279_s24 }
 0x48a   :  { %v20523_v61 = vadd.f32 %v584_v60, %v390_v31 }
 0x48c   :  { %590 = vrot.lane.b32.xlu1 %v20523_v61, %s20279_s24 }
 0x4fa   :  { %v20527_v62 = vpop.permute.xlu0 %592 }
 0x4fb   :  { %18033 = vmatprep.subr.mxu1 %v20527_v62 }
 0x4fc   :  { %18034 = vmatpush3.msra.mxu1 %v20527_v62 }
 0x4fe   :  { %v20531_v63 = vpop.permute.xlu1 %590 }
 0x4ff   :  { %18035 = vmatprep.subr.mxu1 %v20531_v63 }
 0x500   :  { %18036 = vmatpush3.msra.mxu1 %v20531_v63 }
 0x501   :  { %18038 = vmatmul.mubr.msk.f32.vlgmr.msra.gmra.mxu1 %vm122_vm0, %v20407_v3  ;;  %18040 = vmatprep.subr.mxu1 %v20536_v0 }
 0x502   :  { %18041 = vmatpush3.msra.mxu1 %v20536_v0 }
 0x503   :  { %18042 = vmatprep.subr.mxu1 %v20543_v1 }
 0x504   :  { %18043 = vmatpush3.msra.mxu1 %v20543_v1 }
 0x505   :  { %18044 = vmatprep.subr.mxu1 %v20554_v6 }
 0x506   :  { %18045 = vmatpush3.msra.mxu1 %v20554_v6 }
 0x507   :  { %18046 = vmatprep.subr.mxu1 %v20568_v12 }
 0x508   :  { %18047 = vmatpush3.msra.mxu1 %v20568_v12 }
 0x5c1   :  { %v20580_v16 = vpop.f32.mrf.mxu1 }
 0x5c3   :  { %v20582_v17 = vpop.f32.mrf.mxu1 }
 0x5c4   :  { %18048 = vmatprep.mubr.msk.f32.mxu1 %vm297_vm3, %v20582_v17 }
 0x5c5   :  { %18049 = vmatmul.mubr.msk.f32.vlgmr.msra.gmra.mxu1 %vm297_vm3, %v20580_v16 }
 0x5c6   :  { %18066 = vmatprep.mubr.msk.f32.mxu1 %vm122_vm0, %v20403_v2 }
 0x685   :  { %v18050_v21 = vpop.f32.mrf.mxu1 }
 0x686   :  { %v755_v24 = vadd.f32 %v18050_v21, %v20607_v20 }
 0x687   :  { %v749_v25 = vpop.f32.mrf.mxu1 }
 0x688   :  { %v838_v26 = vadd.f32 %v18061_v22, %v755_v24  ;;  %v750_v27 = vadd.f32 %v749_v25, %v20612_v23 }
 0x68a   :  { %v16592_v29 = vmul.f32 -1.442695, %v838_v26  ;;  %v837_v30 = vadd.f32 %v828_v28, %v750_v27 }
 0x68c   :  { %19611 = vpow2.f32 %v16592_v29  ;;  %v16591_v31 = vmul.f32 -1.442695, %v837_v30 }
 0x68e   :  { %19613 = vpow2.f32 %v16591_v31 }
 0x699   :  { %v19612_v36 = vpop.eup %19611 }
 0x69a   :  { %v846_v37 = vadd.f32 1.0, %v19612_v36 }
 0x69b   :  { %v19614_v38 = vpop.eup %19613 }
 0x69c   :  { %19615 = vrcp.f32 %v846_v37  ;;  %v845_v39 = vadd.f32 1.0, %v19614_v38 }
 0x69e   :  { %19617 = vrcp.f32 %v845_v39 }
 0x6a9   :  { %v19616_v40 = vpop.eup %19615 }
 0x6aa   :  { %v852_v41 = vmul.f32 0.0, %v19616_v40  ;;  %v1036_v28 = vsub.f32 1.0, %v19616_v40  ;;  %v16602_v40 = vld [vmem:[%s23744_s4 + $0x18] sm:$0xff] }
 0x6ab   :  { %v19618_v42 = vpop.eup %19617 }
 0x6ac   :  { %18062 = vmatprep.subr.mxu1 %v852_v41  ;;  %v851_v43 = vmul.f32 0.0, %v19618_v42  ;;  %v1035_v30 = vsub.f32 1.0, %v19618_v42 }
 0x6ad   :  { %18063 = vmatpush3.msra.mxu1 %v852_v41 }
 0x6ae   :  { %18064 = vmatprep.subr.mxu1 %v851_v43 }
 0x6af   :  { %18065 = vmatpush3.msra.mxu1 %v851_v43 }
 0x6b0   :  { %18067 = vmatmul.mubr.msk.f32.vlgmr.msra.gmra.mxu1 %vm122_vm0, %v20407_v3 }
 0x6b1   :  { %18084 = vmatprep.mubr.msk.f32.mxu1 %vm122_vm0, %v20403_v2 }
 0x770   :  { %v18068_v46 = vpop.f32.mrf.mxu1 }
 0x772   :  { %v919_v47 = vpop.f32.mrf.mxu1 }
 0x773   :  { %18077 = vmatprep.mubr.msk.f32.mxu0 %vm297_vm3, %v919_v47 }
 0x774   :  { %18078 = vmatmul.mubr.msk.f32.vlgmr.msra.gmra.mxu0 %vm297_vm3, %v18068_v46 }
 0x775   :  { %18095 = vmatpush3.msk.msra.mxu0 %vm214_vm1, %v20416_v4 }
 0x834   :  { %v18079_v48 = vpop.f32.mrf.mxu0 }
 0x835   :  { %1017 = vrot.lane.b32.xlu0 %v18079_v48, %s20278_s25 }
 0x836   :  { %v1004_v49 = vpop.f32.mrf.mxu0 }
 0x837   :  { %1015 = vrot.lane.b32.xlu1 %v1004_v49, %s20278_s25 }
 0x8a7   :  { %v1018_v50 = vpop.permute.xlu0 %1017 }
 0x8a8   :  { %v1022_v51 = vadd.f32 %v1018_v50, %v755_v24 }
 0x8a9   :  { %v1016_v53 = vpop.permute.xlu1 %1015 }
 0x8aa   :  { %v16598_v54 = vmul.f32 -1.442695, %v1022_v51  ;;  %v1021_v56 = vadd.f32 %v1016_v53, %v750_v27 }
 0x8ac   :  { %19619 = vpow2.f32 %v16598_v54  ;;  %v16597_v58 = vmul.f32 -1.442695, %v1021_v56 }
 0x8ae   :  { %19621 = vpow2.f32 %v16597_v58 }
 0x8b9   :  { %v19620_v59 = vpop.eup %19619 }
 0x8ba   :  { %v1030_v60 = vadd.f32 1.0, %v19620_v59 }
 0x8bb   :  { %v19622_v21 = vpop.eup %19621 }
 0x8bc   :  { %19623 = vrcp.f32 %v1030_v60  ;;  %v1029_v22 = vadd.f32 1.0, %v19622_v21 }
 0x8be   :  { %19625 = vrcp.f32 %v1029_v22 }
 0x8c9   :  { %v19624_v25 = vpop.eup %19623 }
 0x8ca   :  { %1041 = vrot.lane.b32.xlu0 %v19624_v25, %s20279_s24 }
 0x8cb   :  { %v19626_v26 = vpop.eup %19625 }
 0x8cc   :  { %1039 = vrot.lane.b32.xlu1 %v19626_v26, %s20279_s24 }
 0x93c   :  { %v1042_v24 = vpop.permute.xlu0 %1041 }
 0x93d   :  { %v1046_v29 = vmul.f32 %v1042_v24, %v1036_v28 }
 0x93e   :  { %v1040_v27 = vpop.permute.xlu1 %1039 }
 0x93f   :  { %v20644_v31 = vadd.f32 %v1046_v29, %v852_v41  ;;  %v1045_v36 = vmul.f32 %v1040_v27, %v1035_v30  ;;  %v16601_v41 = vld [vmem:[%s23744_s4 + $0x10] sm:$0xff] }
 0x941   :  { %v20646_v37 = vadd.f32 %v1045_v36, %v851_v43  ;;  %1053 = vrot.lane.b32.xlu0 %v20644_v31, %s20279_s24 }
 0x943   :  { %1051 = vrot.lane.b32.xlu1 %v20646_v37, %s20279_s24 }
 0x9b3   :  { %v20652_v38 = vpop.permute.xlu0 %1053 }
 0x9b4   :  { %18080 = vmatprep.subr.mxu1 %v20652_v38 }
 0x9b5   :  { %18081 = vmatpush3.msra.mxu1 %v20652_v38  ;;  %v20656_v39 = vpop.permute.xlu1 %1051 }
 0x9b6   :  { %18082 = vmatprep.subr.mxu1 %v20656_v39 }
 0x9b7   :  { %18083 = vmatpush3.msra.mxu1 %v20656_v39 }
 0x9b8   :  { %18085 = vmatmul.mubr.msk.f32.vlgmr.msra.gmra.mxu1 %vm122_vm0, %v20407_v3  ;;  %18087 = vmatprep.subr.mxu1 %v16602_v40 }
 0x9b9   :  { %18088 = vmatpush3.msra.mxu1 %v16602_v40  ;;  %18091 = vmatprep.mubr.msk.f32.mxu1 %vm122_vm0, %v20403_v2 }
 0x9ba   :  { %18089 = vmatprep.subr.mxu1 %v16601_v41 }
 0x9bb   :  { %18090 = vmatpush3.msra.mxu1 %v16601_v41 }
 0x9bc   :  { %18092 = vmatmul.mubr.msk.f32.vlgmr.msra.gmra.mxu1 %vm122_vm0, %v20407_v3  ;;  %18099 = vmatprep.subr.mxu1 %v20425_v5 }
 0x9bd   :  { %18100 = vmatpush3.msra.mxu1 %v20425_v5  ;;  %18107 = vmatprep.mubr.msk.f32.mxu1 %vm297_vm3, %v20582_v17 }
 0x9be   :  { %18101 = vmatprep.subr.mxu1 %v20432_v8 }
 0x9bf   :  { %18102 = vmatpush3.msra.mxu1 %v20432_v8 }
 0x9c0   :  { %18103 = vmatprep.subr.mxu1 %v20439_v9 }
 0x9c1   :  { %18104 = vmatpush3.msra.mxu1 %v20439_v9 }
 0x9c2   :  { %18105 = vmatprep.subr.mxu1 %v20447_v11 }
 0x9c3   :  { %18106 = vmatpush3.msra.mxu1 %v20447_v11 }
 0x9c4   :  { %18108 = vmatmul.mubr.msk.f32.vlgmr.msra.gmra.mxu1 %vm297_vm3, %v20580_v16 }
 0x9c5   :  { %18132 = vmatprep.mubr.msk.f32.mxu1 %vm122_vm0, %v20403_v2 }
 0xa78   :  { %v18086_v42 = vpop.f32.mrf.mxu1 }
 0xa7a   :  { %v1123_v17 = vpop.f32.mrf.mxu1 }
 0xa7c   :  { %v18093_v43 = vpop.f32.mrf.mxu1 }
 0xa7e   :  { %v1201_v46 = vpop.f32.mrf.mxu1 }
 0xa7f   :  { %18096 = vmatprep.mubr.msk.f32.mxu0 %vm207_vm2, %v1201_v46 }
 0xa80   :  { %18097 = vmatmul.mubr.msk.f32.vlgmr.msra.gmra.mxu0 %vm207_vm2, %v18093_v43 }
 0xa81   :  { %18114 = vmatprep.mubr.msk.f32.mxu0 %vm122_vm0, %v20403_v2 }
 0xa84   :  { %v18109_v47 = vpop.f32.mrf.mxu1 }
 0xa86   :  { %v1357_v53 = vpop.f32.mrf.mxu1 }
 0xb40   :  { %v18098_v48 = vpop.f32.mrf.mxu0 }
 0xb41   :  { %v1288_v49 = vadd.f32 %v18098_v48, %v20459_v13 }
 0xb42   :  { %v1282_v50 = vpop.f32.mrf.mxu0 }
 0xb43   :  { %v1367_v16 = vadd.f32 %v18109_v47, %v1288_v49  ;;  %v1283_v51 = vadd.f32 %v1282_v50, %v20464_v15 }
 0xb45   :  { %v16611_v54 = vmul.f32 -1.442695, %v1367_v16  ;;  %v1366_v56 = vadd.f32 %v1357_v53, %v1283_v51 }
 0xb47   :  { %19627 = vpow2.f32 %v16611_v54  ;;  %v16610_v58 = vmul.f32 -1.442695, %v1366_v56 }
 0xb49   :  { %19629 = vpow2.f32 %v16610_v58 }
 0xb54   :  { %v19628_v59 = vpop.eup %19627 }
 0xb55   :  { %v1375_v60 = vadd.f32 1.0, %v19628_v59 }
 0xb56   :  { %v19630_v21 = vpop.eup %19629 }
 0xb57   :  { %19631 = vrcp.f32 %v1375_v60  ;;  %v1374_v22 = vadd.f32 1.0, %v19630_v21 }
 0xb59   :  { %19633 = vrcp.f32 %v1374_v22 }
 0xb64   :  { %v20692_v25 = vpop.eup %19631 }
 0xb65   :  { %v1381_v26 = vmul.f32 %v20692_v25, %v20527_v62 }
 0xb66   :  { %v20696_v28 = vpop.eup %19633 }
 0xb67   :  { %18110 = vmatprep.subr.mxu0 %v1381_v26  ;;  %v1380_v24 = vmul.f32 %v20696_v28, %v20531_v63  ;;  %v1562_v56 = vsub.f32 1.0, %v20696_v28  ;;  %v1560_v60 = vmul.f32 %v20696_v28, %v20523_v61 }
 0xb68   :  { %18111 = vmatpush3.msra.mxu0 %v1381_v26 }
 0xb69   :  { %18112 = vmatprep.subr.mxu0 %v1380_v24 }
 0xb6a   :  { %18113 = vmatpush3.msra.mxu0 %v1380_v24 }
 0xb6b   :  { %18115 = vmatmul.mubr.msk.f32.vlgmr.msra.gmra.mxu0 %vm122_vm0, %v20407_v3  ;;  %18117 = vmatprep.subr.mxu0 %v20471_v32 }
 0xb6c   :  { %18118 = vmatpush3.msra.mxu0 %v20471_v32 }
 0xb6d   :  { %18119 = vmatprep.subr.mxu0 %v20476_v33 }
 0xb6e   :  { %18120 = vmatpush3.msra.mxu0 %v20476_v33 }
 0xb6f   :  { %18121 = vmatprep.subr.mxu0 %v20487_v34 }
 0xb70   :  { %18122 = vmatpush3.msra.mxu0 %v20487_v34 }
 0xb71   :  { %18123 = vmatprep.subr.mxu0 %v20494_v35 }
 0xb72   :  { %18124 = vmatpush3.msra.mxu0 %v20494_v35 }
 0xb73   :  { %18146 = vmatprep.subr.mxu0 %v20508_v52 }
 0xc2b   :  { %v18116_v62 = vpop.f32.mrf.mxu0 }
 0xc2d   :  { %v1448_v63 = vpop.f32.mrf.mxu0 }
 0xc2e   :  { %18125 = vmatprep.mubr.msk.f32.mxu0 %vm297_vm3, %v1448_v63 }
 0xc2f   :  { %18126 = vmatmul.mubr.msk.f32.vlgmr.msra.gmra.mxu0 %vm297_vm3, %v18116_v62 }
 0xc30   :  { %18147 = vmatpush3.msra.mxu0 %v20508_v52  ;;  %18154 = vmatprep.mubr.msk.f32.mxu0 %vm297_vm3, %v1123_v17 }
 0xc31   :  { %18148 = vmatprep.subr.mxu0 %v20515_v55 }
 0xc32   :  { %18149 = vmatpush3.msra.mxu0 %v20515_v55 }
 0xc33   :  { %18150 = vmatprep.subr.mxu0 %v20559_v7 }
 0xc34   :  { %18151 = vmatpush3.msra.mxu0 %v20559_v7 }
 0xc35   :  { %18152 = vmatprep.subr.mxu0 %v20573_v14 }
 0xc36   :  { %18153 = vmatpush3.msra.mxu0 %v20573_v14 }
 0xc37   :  { %18155 = vmatmul.mubr.msk.f32.vlgmr.msra.gmra.mxu0 %vm297_vm3, %v18086_v42  ;;  %18164 = vmatprep.subr.mxu0 %v20593_v18 }
 0xc38   :  { %18165 = vmatpush3.msra.mxu0 %v20593_v18 }
 0xc39   :  { %18166 = vmatprep.subr.mxu0 %v20598_v19 }
 0xc3a   :  { %18167 = vmatpush3.msra.mxu0 %v20598_v19 }
 0xc3b   :  { %18168 = vmatprep.subr.mxu0 %v20623_v44 }
 0xc3c   :  { %18169 = vmatpush3.msra.mxu0 %v20623_v44 }
 0xc3d   :  { %18170 = vmatprep.subr.mxu0 %v20630_v45 }
 0xc3e   :  { %18171 = vmatpush3.msra.mxu0 %v20630_v45 }
 0xc3f   :  { %18189 = vmatprep.subr.msk.mxu0 %vm214_vm1, %v20416_v4 }
 0xcef   :  { %v18127_v29 = vpop.f32.mrf.mxu0 }
 0xcf0   :  { %1542 = vrot.lane.b32.xlu0 %v18127_v29, %s20278_s25 }
 0xcf1   :  { %v1529_v30 = vpop.f32.mrf.mxu0 }
 0xcf2   :  { %1540 = vrot.lane.b32.xlu1 %v1529_v30, %s20278_s25 }
 0xcf7   :  { %v18156_v28 = vpop.f32.mrf.mxu0 }
 0xd62   :  { %v1543_v27 = vpop.permute.xlu0 %1542 }
 0xd63   :  { %v1547_v36 = vadd.f32 %v1543_v27, %v1288_v49  ;;  %v1563_v49 = vsub.f32 1.0, %v20692_v25  ;;  %v1812_v27 = vpop.f32.mrf.mxu0 }
 0xd64   :  { %v1541_v40 = vpop.permute.xlu1 %1540 }
 0xd65   :  { %v16617_v41 = vmul.f32 -1.442695, %v1547_v36  ;;  %v1546_v42 = vadd.f32 %v1541_v40, %v1283_v51  ;;  %v1561_v51 = vmul.f32 %v20692_v25, %v20519_v57 }
 0xd67   :  { %19635 = vpow2.f32 %v16617_v41  ;;  %v16616_v17 = vmul.f32 -1.442695, %v1546_v42 }
 0xd69   :  { %19637 = vpow2.f32 %v16616_v17 }
 0xd74   :  { %v19636_v43 = vpop.eup %19635 }
 0xd75   :  { %v1555_v46 = vadd.f32 1.0, %v19636_v43 }
 0xd76   :  { %v19638_v47 = vpop.eup %19637 }
 0xd77   :  { %19639 = vrcp.f32 %v1555_v46  ;;  %v1554_v48 = vadd.f32 1.0, %v19638_v47 }
 0xd79   :  { %19641 = vrcp.f32 %v1554_v48 }
 0xd84   :  { %v19640_v50 = vpop.eup %19639 }
 0xd85   :  { %1568 = vrot.lane.b32.xlu0 %v19640_v50, %s20279_s24 }
 0xd86   :  { %v19642_v16 = vpop.eup %19641 }
 0xd87   :  { %1566 = vrot.lane.b32.xlu1 %v19642_v16, %s20279_s24 }
 0xdf7   :  { %v1569_v53 = vpop.permute.xlu0 %1568 }
 0xdf8   :  { %v1573_v54 = vmul.f32 %v1569_v53, %v1563_v49 }
 0xdf9   :  { %v1567_v58 = vpop.permute.xlu1 %1566 }
 0xdfa   :  { %v20740_v59 = vadd.f32 %v1573_v54, %v1561_v51  ;;  %v1572_v21 = vmul.f32 %v1567_v58, %v1562_v56 }
 0xdfc   :  { %v20744_v22 = vadd.f32 %v1572_v21, %v1560_v60  ;;  %1580 = vrot.lane.b32.xlu0 %v20740_v59, %s20279_s24 }
 0xdfe   :  { %1578 = vrot.lane.b32.xlu1 %v20744_v22, %s20279_s24 }
 0xe6e   :  { %v20750_v26 = vpop.permute.xlu0 %1580 }
 0xe6f   :  { %18128 = vmatprep.subr.mxu1 %v20750_v26 }
 0xe70   :  { %18129 = vmatpush3.msra.mxu1 %v20750_v26  ;;  %v20754_v57 = vpop.permute.xlu1 %1578 }
 0xe71   :  { %18130 = vmatprep.subr.mxu1 %v20754_v57 }
 0xe72   :  { %18131 = vmatpush3.msra.mxu1 %v20754_v57 }
 0xe73   :  { %18133 = vmatmul.mubr.msk.f32.vlgmr.msra.gmra.mxu1 %vm122_vm0, %v20407_v3  ;;  %18135 = vmatprep.subr.mxu1 %v20536_v0 }
 0xe74   :  { %18136 = vmatpush3.msra.mxu1 %v20536_v0 }
 0xe75   :  { %18137 = vmatprep.subr.mxu1 %v20543_v1 }
 0xe76   :  { %18138 = vmatpush3.msra.mxu1 %v20543_v1 }
 0xe77   :  { %18139 = vmatprep.subr.mxu1 %v20554_v6 }
 0xe78   :  { %18140 = vmatpush3.msra.mxu1 %v20554_v6 }
 0xe79   :  { %18141 = vmatprep.subr.mxu1 %v20568_v12 }
 0xe7a   :  { %18142 = vmatpush3.msra.mxu1 %v20568_v12 }
 0xf33   :  { %v20768_v61 = vpop.f32.mrf.mxu1 }
 0xf35   :  { %v20770_v25 = vpop.f32.mrf.mxu1 }
 0xf36   :  { %18143 = vmatprep.mubr.msk.f32.mxu1 %vm297_vm3, %v20770_v25 }
 0xf37   :  { %18144 = vmatmul.mubr.msk.f32.vlgmr.msra.gmra.mxu1 %vm297_vm3, %v20768_v61 }
 0xf38   :  { %18161 = vmatprep.mubr.msk.f32.mxu1 %vm122_vm0, %v20403_v2 }
 0xff7   :  { %v18145_v24 = vpop.f32.mrf.mxu1 }
 0xff8   :  { %v1737_v62 = vadd.f32 %v18145_v24, %v20607_v20 }
 0xff9   :  { %v1731_v63 = vpop.f32.mrf.mxu1 }
 0xffa   :  { %v1822_v29 = vadd.f32 %v18156_v28, %v1737_v62  ;;  %v1732_v30 = vadd.f32 %v1731_v63, %v20612_v23 }
 0xffc   :  { %v16625_v36 = vmul.f32 -1.442695, %v1822_v29  ;;  %v1821_v40 = vadd.f32 %v1812_v27, %v1732_v30 }
 0xffe   :  { %19643 = vpow2.f32 %v16625_v36  ;;  %v16624_v41 = vmul.f32 -1.442695, %v1821_v40 }
0x1000   :  { %19645 = vpow2.f32 %v16624_v41 }
0x100b   :  { %v19644_v42 = vpop.eup %19643 }
0x100c   :  { %v1830_v17 = vadd.f32 1.0, %v19644_v42 }
0x100d   :  { %v19646_v43 = vpop.eup %19645 }
0x100e   :  { %19647 = vrcp.f32 %v1830_v17  ;;  %v1829_v46 = vadd.f32 1.0, %v19646_v43 }
0x1010   :  { %19649 = vrcp.f32 %v1829_v46 }
0x101b   :  { %v19648_v47 = vpop.eup %19647 }
0x101c   :  { %v1836_v48 = vmul.f32 %v19648_v47, %v20652_v38  ;;  %v2018_v36 = vsub.f32 1.0, %v19648_v47  ;;  %v2016_v40 = vmul.f32 %v19648_v47, %v20644_v31  ;;  %v16634_v47 = vld [vmem:[%s23744_s4 + $0x20] sm:$0xff] }
0x101d   :  { %v19650_v50 = vpop.eup %19649 }
0x101e   :  { %18157 = vmatprep.subr.mxu1 %v1836_v48  ;;  %v1835_v16 = vmul.f32 %v19650_v50, %v20656_v39  ;;  %v2017_v41 = vsub.f32 1.0, %v19650_v50  ;;  %v2015_v43 = vmul.f32 %v19650_v50, %v20646_v37  ;;  %v16635_v37 = vld [vmem:[%s23744_s4 + $0x28] sm:$0xff] }
0x101f   :  { %18158 = vmatpush3.msra.mxu1 %v1836_v48 }
0x1020   :  { %18159 = vmatprep.subr.mxu1 %v1835_v16 }
0x1021   :  { %18160 = vmatpush3.msra.mxu1 %v1835_v16 }
0x1022   :  { %18162 = vmatmul.mubr.msk.f32.vlgmr.msra.gmra.mxu1 %vm122_vm0, %v20407_v3 }
0x1023   :  { %18179 = vmatprep.mubr.msk.f32.mxu1 %vm122_vm0, %v20403_v2 }
0x10e2   :  { %v18163_v49 = vpop.f32.mrf.mxu1 }
0x10e4   :  { %v1903_v53 = vpop.f32.mrf.mxu1 }
0x10e5   :  { %18172 = vmatprep.mubr.msk.f32.mxu0 %vm297_vm3, %v1903_v53 }
0x10e6   :  { %18173 = vmatmul.mubr.msk.f32.vlgmr.msra.gmra.mxu0 %vm297_vm3, %v18163_v49 }
0x10e7   :  { %18190 = vmatpush3.msk.msra.mxu0 %vm214_vm1, %v20416_v4 }
0x11a6   :  { %v18174_v38 = vpop.f32.mrf.mxu0 }
0x11a7   :  { %1997 = vrot.lane.b32.xlu0 %v18174_v38, %s20278_s25 }
0x11a8   :  { %v1984_v39 = vpop.f32.mrf.mxu0 }
0x11a9   :  { %1995 = vrot.lane.b32.xlu1 %v1984_v39, %s20278_s25 }
0x1219   :  { %v1998_v51 = vpop.permute.xlu0 %1997 }
0x121a   :  { %v2002_v54 = vadd.f32 %v1998_v51, %v1737_v62 }
0x121b   :  { %v1996_v56 = vpop.permute.xlu1 %1995 }
0x121c   :  { %v16631_v58 = vmul.f32 -1.442695, %v2002_v54  ;;  %v2001_v60 = vadd.f32 %v1996_v56, %v1732_v30 }
0x121e   :  { %19651 = vpow2.f32 %v16631_v58  ;;  %v16630_v21 = vmul.f32 -1.442695, %v2001_v60 }
0x1220   :  { %19653 = vpow2.f32 %v16630_v21 }
0x122b   :  { %v19652_v28 = vpop.eup %19651 }
0x122c   :  { %v2010_v24 = vadd.f32 1.0, %v19652_v28 }
0x122d   :  { %v19654_v63 = vpop.eup %19653 }
0x122e   :  { %19655 = vrcp.f32 %v2010_v24  ;;  %v2009_v29 = vadd.f32 1.0, %v19654_v63 }
0x1230   :  { %19657 = vrcp.f32 %v2009_v29 }
0x123b   :  { %v19656_v4 = vpop.eup %19655 }
0x123c   :  { %2023 = vrot.lane.b32.xlu0 %v19656_v4, %s20279_s24 }
0x123d   :  { %v19658_v27 = vpop.eup %19657 }
0x123e   :  { %2021 = vrot.lane.b32.xlu1 %v19658_v27, %s20279_s24 }
0x12ae   :  { %v2024_v62 = vpop.permute.xlu0 %2023 }
0x12af   :  { %v2028_v30 = vmul.f32 %v2024_v62, %v2018_v36 }
0x12b0   :  { %v2022_v42 = vpop.permute.xlu1 %2021 }
0x12b1   :  { %v20795_v17 = vadd.f32 %v2028_v30, %v2016_v40  ;;  %v2027_v46 = vmul.f32 %v2022_v42, %v2017_v41 }
0x12b3   :  { %v20798_v48 = vadd.f32 %v2027_v46, %v2015_v43  ;;  %2035 = vrot.lane.b32.xlu0 %v20795_v17, %s20279_s24 }
0x12b5   :  { %2033 = vrot.lane.b32.xlu1 %v20798_v48, %s20279_s24 }
0x1325   :  { %v20804_v16 = vpop.permute.xlu0 %2035 }
0x1326   :  { %18175 = vmatprep.subr.mxu1 %v20804_v16 }
0x1327   :  { %18176 = vmatpush3.msra.mxu1 %v20804_v16  ;;  %v20808_v31 = vpop.permute.xlu1 %2033 }
0x1328   :  { %18177 = vmatprep.subr.mxu1 %v20808_v31 }
0x1329   :  { %18178 = vmatpush3.msra.mxu1 %v20808_v31 }
0x132a   :  { %18180 = vmatmul.mubr.msk.f32.vlgmr.msra.gmra.mxu1 %vm122_vm0, %v20407_v3  ;;  %18182 = vmatprep.subr.mxu1 %v16635_v37 }
0x132b   :  { %18183 = vmatpush3.msra.mxu1 %v16635_v37  ;;  %18186 = vmatprep.mubr.msk.f32.mxu1 %vm122_vm0, %v20403_v2 }
0x132c   :  { %18184 = vmatprep.subr.mxu1 %v16634_v47 }
0x132d   :  { %18185 = vmatpush3.msra.mxu1 %v16634_v47 }
0x132e   :  { %18187 = vmatmul.mubr.msk.f32.vlgmr.msra.gmra.mxu1 %vm122_vm0, %v20407_v3  ;;  %18194 = vmatprep.subr.mxu1 %v20425_v5 }
0x132f   :  { %18195 = vmatpush3.msra.mxu1 %v20425_v5  ;;  %18202 = vmatprep.mubr.msk.f32.mxu1 %vm297_vm3, %v20770_v25 }
0x1330   :  { %18196 = vmatprep.subr.mxu1 %v20432_v8 }
0x1331   :  { %18197 = vmatpush3.msra.mxu1 %v20432_v8 }
0x1332   :  { %18198 = vmatprep.subr.mxu1 %v20439_v9 }
0x1333   :  { %18199 = vmatpush3.msra.mxu1 %v20439_v9 }
0x1334   :  { %18200 = vmatprep.subr.mxu1 %v20447_v11 }
0x1335   :  { %18201 = vmatpush3.msra.mxu1 %v20447_v11 }
0x1336   :  { %18203 = vmatmul.mubr.msk.f32.vlgmr.msra.gmra.mxu1 %vm297_vm3, %v20768_v61 }
0x1337   :  { %18227 = vmatprep.mubr.msk.f32.mxu1 %vm122_vm0, %v20403_v2 }
0x13ea   :  { %v18181_v5 = vpop.f32.mrf.mxu1 }
0x13ec   :  { %v2105_v25 = vpop.f32.mrf.mxu1 }
0x13ee   :  { %v18188_v50 = vpop.f32.mrf.mxu1 }
0x13f0   :  { %v2183_v49 = vpop.f32.mrf.mxu1 }
0x13f1   :  { %18191 = vmatprep.mubr.msk.f32.mxu0 %vm207_vm2, %v2183_v49 }
0x13f2   :  { %18192 = vmatmul.mubr.msk.f32.vlgmr.msra.gmra.mxu0 %vm207_vm2, %v18188_v50 }
0x13f3   :  { %18209 = vmatprep.mubr.msk.f32.mxu0 %vm122_vm0, %v20403_v2 }
0x13f6   :  { %v18204_v8 = vpop.f32.mrf.mxu1 }
0x13f8   :  { %v2339_v39 = vpop.f32.mrf.mxu1 }
0x14b2   :  { %v18193_v9 = vpop.f32.mrf.mxu0 }
0x14b3   :  { %v2270_v11 = vadd.f32 %v18193_v9, %v20459_v13 }
0x14b4   :  { %v2264_v53 = vpop.f32.mrf.mxu0 }
0x14b5   :  { %v2349_v61 = vadd.f32 %v18204_v8, %v2270_v11  ;;  %v2265_v38 = vadd.f32 %v2264_v53, %v20464_v15 }
0x14b7   :  { %v16644_v51 = vmul.f32 -1.442695, %v2349_v61  ;;  %v2348_v54 = vadd.f32 %v2339_v39, %v2265_v38 }
0x14b9   :  { %19659 = vpow2.f32 %v16644_v51  ;;  %v16643_v56 = vmul.f32 -1.442695, %v2348_v54 }
0x14bb   :  { %19661 = vpow2.f32 %v16643_v56 }
0x14c6   :  { %v19660_v58 = vpop.eup %19659 }
0x14c7   :  { %v2357_v60 = vadd.f32 1.0, %v19660_v58 }
0x14c8   :  { %v19662_v21 = vpop.eup %19661 }
0x14c9   :  { %19663 = vrcp.f32 %v2357_v60  ;;  %v2356_v28 = vadd.f32 1.0, %v19662_v21 }
0x14cb   :  { %19665 = vrcp.f32 %v2356_v28 }
0x14d6   :  { %v20844_v2 = vpop.eup %19663 }
0x14d7   :  { %v2363_v13 = vmul.f32 %v20844_v2, %v20750_v26  ;;  %v2545_v4 = vsub.f32 1.0, %v20844_v2  ;;  %v2543_v36 = vmul.f32 %v20844_v2, %v20740_v59 }
0x14d8   :  { %v20848_v24 = vpop.eup %19665 }
0x14d9   :  { %18205 = vmatprep.subr.mxu0 %v2363_v13  ;;  %v2362_v15 = vmul.f32 %v20848_v24, %v20754_v57  ;;  %v2544_v40 = vsub.f32 1.0, %v20848_v24  ;;  %v2542_v42 = vmul.f32 %v20848_v24, %v20744_v22  ;;  %v20915_v22 = vld [vmem:[#allocation2 + $0x8] sm:$0xff] }
0x14da   :  { %18206 = vmatpush3.msra.mxu0 %v2363_v13 }
0x14db   :  { %18207 = vmatprep.subr.mxu0 %v2362_v15 }
0x14dc   :  { %18208 = vmatpush3.msra.mxu0 %v2362_v15 }
0x14dd   :  { %18210 = vmatmul.mubr.msk.f32.vlgmr.msra.gmra.mxu0 %vm122_vm0, %v20407_v3  ;;  %18212 = vmatprep.subr.mxu0 %v20471_v32 }
0x14de   :  { %18213 = vmatpush3.msra.mxu0 %v20471_v32  ;;  %v20885_v32 = vld [vmem:[%s23745_s28] sm:$0xf] }
0x14df   :  { %18214 = vmatprep.subr.mxu0 %v20476_v33 }
0x14e0   :  { %18215 = vmatpush3.msra.mxu0 %v20476_v33 }
0x14e1   :  { %18216 = vmatprep.subr.mxu0 %v20487_v34 }
0x14e2   :  { %18217 = vmatpush3.msra.mxu0 %v20487_v34 }
0x14e3   :  { %18218 = vmatprep.subr.mxu0 %v20494_v35 }
0x14e4   :  { %18219 = vmatpush3.msra.mxu0 %v20494_v35 }
0x14e5   :  { %18241 = vmatprep.subr.mxu0 %v20508_v52 }
0x159d   :  { %v18211_v26 = vpop.f32.mrf.mxu0 }
0x159f   :  { %v2430_v3 = vpop.f32.mrf.mxu0 }
0x15a0   :  { %18220 = vmatprep.mubr.msk.f32.mxu0 %vm297_vm3, %v2430_v3 }
0x15a1   :  { %18221 = vmatmul.mubr.msk.f32.vlgmr.msra.gmra.mxu0 %vm297_vm3, %v18211_v26 }
0x15a2   :  { %18242 = vmatpush3.msra.mxu0 %v20508_v52  ;;  %18249 = vmatprep.mubr.msk.f32.mxu0 %vm297_vm3, %v2105_v25 }
0x15a3   :  { %18243 = vmatprep.subr.mxu0 %v20515_v55 }
0x15a4   :  { %18244 = vmatpush3.msra.mxu0 %v20515_v55 }
0x15a5   :  { %18245 = vmatprep.subr.mxu0 %v20559_v7 }
0x15a6   :  { %18246 = vmatpush3.msra.mxu0 %v20559_v7 }
0x15a7   :  { %18247 = vmatprep.subr.mxu0 %v20573_v14 }
0x15a8   :  { %18248 = vmatpush3.msra.mxu0 %v20573_v14 }
0x15a9   :  { %18250 = vmatmul.mubr.msk.f32.vlgmr.msra.gmra.mxu0 %vm297_vm3, %v18181_v5  ;;  %18259 = vmatprep.subr.mxu0 %v20593_v18 }
0x15aa   :  { %18260 = vmatpush3.msra.mxu0 %v20593_v18 }
0x15ab   :  { %18261 = vmatprep.subr.mxu0 %v20598_v19 }
0x15ac   :  { %18262 = vmatpush3.msra.mxu0 %v20598_v19 }
0x15ad   :  { %18263 = vmatprep.subr.mxu0 %v20623_v44 }
0x15ae   :  { %18264 = vmatpush3.msra.mxu0 %v20623_v44 }
0x15af   :  { %18265 = vmatprep.subr.mxu0 %v20630_v45 }
0x15b0   :  { %18266 = vmatpush3.msra.mxu0 %v20630_v45 }
0x15b1   :  { %18284 = vmatprep.subr.msk.mxu0 %vm214_vm1, %v20885_v32 }
0x1661   :  { %v18222_v33 = vpop.f32.mrf.mxu0 }
0x1662   :  { %2524 = vrot.lane.b32.xlu0 %v18222_v33, %s20278_s25 }
0x1663   :  { %v2511_v34 = vpop.f32.mrf.mxu0 }
0x1664   :  { %2522 = vrot.lane.b32.xlu1 %v2511_v34, %s20278_s25 }
0x16d4   :  { %v2525_v35 = vpop.permute.xlu0 %2524 }
0x16d5   :  { %v2529_v52 = vadd.f32 %v2525_v35, %v2270_v11 }
0x16d6   :  { %v2523_v55 = vpop.permute.xlu1 %2522 }
0x16d7   :  { %v16650_v7 = vmul.f32 -1.442695, %v2529_v52  ;;  %v2528_v14 = vadd.f32 %v2523_v55, %v2265_v38 }
0x16d9   :  { %19667 = vpow2.f32 %v16650_v7  ;;  %v16649_v18 = vmul.f32 -1.442695, %v2528_v14 }
0x16db   :  { %19669 = vpow2.f32 %v16649_v18 }
0x16e6   :  { %v19668_v19 = vpop.eup %19667 }
0x16e7   :  { %v2537_v44 = vadd.f32 1.0, %v19668_v19 }
0x16e8   :  { %v19670_v45 = vpop.eup %19669 }
0x16e9   :  { %19671 = vrcp.f32 %v2537_v44  ;;  %v2536_v57 = vadd.f32 1.0, %v19670_v45 }
0x16eb   :  { %19673 = vrcp.f32 %v2536_v57 }
0x16f6   :  { %v19672_v63 = vpop.eup %19671 }
0x16f7   :  { %2550 = vrot.lane.b32.xlu0 %v19672_v63, %s20279_s24 }
0x16f8   :  { %v19674_v29 = vpop.eup %19673 }
0x16f9   :  { %2548 = vrot.lane.b32.xlu1 %v19674_v29, %s20279_s24 }
0x1769   :  { %v2551_v27 = vpop.permute.xlu0 %2550 }
0x176a   :  { %v2555_v62 = vmul.f32 %v2551_v27, %v2545_v4  ;;  %v16667_v27 = vld [vmem:[%s23744_s4 + $0x30] sm:$0xff] }
0x176b   :  { %v2549_v30 = vpop.permute.xlu1 %2548 }
0x176c   :  { %v20897_v41 = vadd.f32 %v2555_v62, %v2543_v36  ;;  %v2554_v43 = vmul.f32 %v2549_v30, %v2544_v40  ;;  %v20988_v36 = vld [vmem:[%s23746_s1 + $0x18] sm:$0xff]  ;;  %v20997_v62 = vld [vmem:[%s23746_s1 + $0x10] sm:$0xff]  ;;  %v21004_v40 = vld [vmem:[%s23746_s1 + $0x8] sm:$0xff] }
0x176d   :  { %v21011_v30 = vld [vmem:[%s23746_s1] sm:$0xff] }
0x176e   :  { %v20901_v46 = vadd.f32 %v2554_v43, %v2542_v42  ;;  %2562 = vrot.lane.b32.xlu0 %v20897_v41, %s20279_s24 }
0x1770   :  { %2560 = vrot.lane.b32.xlu1 %v20901_v46, %s20279_s24 }
0x17e0   :  { %v20907_v37 = vpop.permute.xlu0 %2562 }
0x17e1   :  { %18223 = vmatprep.subr.mxu1 %v20907_v37 }
0x17e2   :  { %18224 = vmatpush3.msra.mxu1 %v20907_v37  ;;  %v20911_v59 = vpop.permute.xlu1 %2560 }
0x17e3   :  { %18225 = vmatprep.subr.mxu1 %v20911_v59 }
0x17e4   :  { %18226 = vmatpush3.msra.mxu1 %v20911_v59 }
0x17e5   :  { %18228 = vmatmul.mubr.msk.f32.vlgmr.msra.gmra.mxu1 %vm122_vm0, %v20915_v22  ;;  %18230 = vmatprep.subr.mxu1 %v20536_v0 }
0x17e6   :  { %18231 = vmatpush3.msra.mxu1 %v20536_v0  ;;  %v20935_v0 = vld [vmem:[#allocation2] sm:$0xff] }
0x17e7   :  { %18232 = vmatprep.subr.mxu1 %v20543_v1 }
0x17e8   :  { %18233 = vmatpush3.msra.mxu1 %v20543_v1  ;;  %v18251_v1 = vpop.f32.mrf.mxu0 }
0x17e9   :  { %18234 = vmatprep.subr.mxu1 %v20554_v6 }
0x17ea   :  { %18235 = vmatpush3.msra.mxu1 %v20554_v6  ;;  %v2794_v8 = vpop.f32.mrf.mxu0 }
0x17eb   :  { %18236 = vmatprep.subr.mxu1 %v20568_v12 }
0x17ec   :  { %18237 = vmatpush3.msra.mxu1 %v20568_v12 }
0x18a5   :  { %v20927_v47 = vpop.f32.mrf.mxu1 }
0x18a7   :  { %v20929_v5 = vpop.f32.mrf.mxu1 }
0x18a8   :  { %18238 = vmatprep.mubr.msk.f32.mxu1 %vm297_vm3, %v20929_v5 }
0x18a9   :  { %18239 = vmatmul.mubr.msk.f32.vlgmr.msra.gmra.mxu1 %vm297_vm3, %v20927_v47 }
0x18aa   :  { %18256 = vmatprep.mubr.msk.f32.mxu1 %vm122_vm0, %v20935_v0 }
0x1969   :  { %v18240_v6 = vpop.f32.mrf.mxu1 }
0x196a   :  { %v2719_v25 = vadd.f32 %v18240_v6, %v20607_v20 }
0x196b   :  { %v2713_v12 = vpop.f32.mrf.mxu1 }
0x196c   :  { %v2804_v50 = vadd.f32 %v18251_v1, %v2719_v25  ;;  %v2714_v49 = vadd.f32 %v2713_v12, %v20612_v23 }
0x196e   :  { %v16658_v9 = vmul.f32 -1.442695, %v2804_v50  ;;  %v2803_v11 = vadd.f32 %v2794_v8, %v2714_v49  ;;  %v21037_v8 = vld [vmem:[%s23718_s5] sm:$0xff] }
0x1970   :  { %19675 = vpow2.f32 %v16658_v9  ;;  %v16657_v53 = vmul.f32 -1.442695, %v2803_v11 }
0x1972   :  { %19677 = vpow2.f32 %v16657_v53 }
0x197d   :  { %v19676_v61 = vpop.eup %19675 }
0x197e   :  { %v2812_v38 = vadd.f32 1.0, %v19676_v61 }
0x197f   :  { %v19678_v39 = vpop.eup %19677 }
0x1980   :  { %19679 = vrcp.f32 %v2812_v38  ;;  %v2811_v51 = vadd.f32 1.0, %v19678_v39 }
0x1982   :  { %19681 = vrcp.f32 %v2811_v51 }
0x198d   :  { %v19680_v54 = vpop.eup %19679 }
0x198e   :  { %v2818_v56 = vmul.f32 %v19680_v54, %v20804_v16  ;;  %v3000_v55 = vsub.f32 1.0, %v19680_v54  ;;  %v2998_v14 = vmul.f32 %v19680_v54, %v20795_v17 }
0x198f   :  { %v19682_v20 = vpop.eup %19681 }
0x1990   :  { %18252 = vmatprep.subr.mxu1 %v2818_v56  ;;  %v2817_v58 = vmul.f32 %v19682_v20, %v20808_v31  ;;  %v2999_v19 = vsub.f32 1.0, %v19682_v20  ;;  %v2997_v57 = vmul.f32 %v19682_v20, %v20798_v48  ;;  %v16668_v48 = vld [vmem:[%s23744_s4 + $0x38] sm:$0xff] }
0x1991   :  { %18253 = vmatpush3.msra.mxu1 %v2818_v56 }
0x1992   :  { %18254 = vmatprep.subr.mxu1 %v2817_v58 }
0x1993   :  { %18255 = vmatpush3.msra.mxu1 %v2817_v58 }
0x1994   :  { %18257 = vmatmul.mubr.msk.f32.vlgmr.msra.gmra.mxu1 %vm122_vm0, %v20915_v22 }
0x1995   :  { %18274 = vmatprep.mubr.msk.f32.mxu1 %vm122_vm0, %v20935_v0 }
0x1a54   :  { %v18258_v23 = vpop.f32.mrf.mxu1 }
0x1a56   :  { %v2885_v60 = vpop.f32.mrf.mxu1 }
0x1a57   :  { %18267 = vmatprep.mubr.msk.f32.mxu0 %vm297_vm3, %v2885_v60 }
0x1a58   :  { %18268 = vmatmul.mubr.msk.f32.vlgmr.msra.gmra.mxu0 %vm297_vm3, %v18258_v23 }
0x1a59   :  { %18285 = vmatpush3.msk.msra.mxu0 %vm214_vm1, %v20885_v32 }
0x1b18   :  { %v18269_v16 = vpop.f32.mrf.mxu0 }
0x1b19   :  { %2979 = vrot.lane.b32.xlu0 %v18269_v16, %s20278_s25  ;;  %v21056_v16 = vld [vmem:[%s23747_s27 + $0x18] sm:$0xff] }
0x1b1a   :  { %v2966_v31 = vpop.f32.mrf.mxu0 }
0x1b1b   :  { %2977 = vrot.lane.b32.xlu1 %v2966_v31, %s20278_s25  ;;  %v21077_v31 = vld [vmem:[%s23747_s27] sm:$0xff] }
0x1b8b   :  { %v2980_v21 = vpop.permute.xlu0 %2979 }
0x1b8c   :  { %v2984_v28 = vadd.f32 %v2980_v21, %v2719_v25  ;;  %v21084_v21 = vld [vmem:[%s23720_s7 + $0x18] sm:$0xff] }
0x1b8d   :  { %v2978_v2 = vpop.permute.xlu1 %2977 }
0x1b8e   :  { %v16664_v13 = vmul.f32 -1.442695, %v2984_v28  ;;  %v2983_v24 = vadd.f32 %v2978_v2, %v2714_v49 }
0x1b90   :  { %19683 = vpow2.f32 %v16664_v13  ;;  %v16663_v15 = vmul.f32 -1.442695, %v2983_v24  ;;  %v21094_v13 = vld [vmem:[%s23720_s7 + $0x10] sm:$0xff]  ;;  %v21101_v24 = vld [vmem:[%s23720_s7 + $0x8] sm:$0xff] }
0x1b92   :  { %19685 = vpow2.f32 %v16663_v15  ;;  %v21108_v15 = vld [vmem:[%s23720_s7] sm:$0xff] }
0x1b9d   :  { %v19684_v26 = vpop.eup %19683 }
0x1b9e   :  { %v2992_v3 = vadd.f32 1.0, %v19684_v26  ;;  %v21117_v26 = vld [vmem:[%s23721_s8 + $0x18] sm:$0xff] }
0x1b9f   :  { %v19686_v33 = vpop.eup %19685 }
0x1ba0   :  { %19687 = vrcp.f32 %v2992_v3  ;;  %v2991_v34 = vadd.f32 1.0, %v19686_v33  ;;  %v21124_v3 = vld [vmem:[%s23721_s8 + $0x10] sm:$0xff]  ;;  %v21131_v33 = vld [vmem:[%s23721_s8 + $0x8] sm:$0xff] }
0x1ba2   :  { %19689 = vrcp.f32 %v2991_v34  ;;  %v21138_v34 = vld [vmem:[%s23721_s8] sm:$0xff] }
0x1bad   :  { %v19688_v35 = vpop.eup %19687 }
0x1bae   :  { %3005 = vrot.lane.b32.xlu0 %v19688_v35, %s20279_s24 }
0x1baf   :  { %v19690_v52 = vpop.eup %19689 }
0x1bb0   :  { %3003 = vrot.lane.b32.xlu1 %v19690_v52, %s20279_s24 }
0x1c20   :  { %v3006_v7 = vpop.permute.xlu0 %3005 }
0x1c21   :  { %v3010_v18 = vmul.f32 %v3006_v7, %v3000_v55 }
0x1c22   :  { %v3004_v44 = vpop.permute.xlu1 %3003 }
0x1c23   :  { %v20956_v45 = vadd.f32 %v3010_v18, %v2998_v14  ;;  %v3009_v63 = vmul.f32 %v3004_v44, %v2999_v19 }
0x1c25   :  { %v20959_v29 = vadd.f32 %v3009_v63, %v2997_v57  ;;  %3017 = vrot.lane.b32.xlu0 %v20956_v45, %s20279_s24 }
0x1c27   :  { %3015 = vrot.lane.b32.xlu1 %v20959_v29, %s20279_s24 }
0x1c97   :  { %v20965_v4 = vpop.permute.xlu0 %3017 }
0x1c98   :  { %18270 = vmatprep.subr.mxu1 %v20965_v4 }
0x1c99   :  { %18271 = vmatpush3.msra.mxu1 %v20965_v4  ;;  %v20969_v17 = vpop.permute.xlu1 %3015 }
0x1c9a   :  { %18272 = vmatprep.subr.mxu1 %v20969_v17 }
0x1c9b   :  { %18273 = vmatpush3.msra.mxu1 %v20969_v17 }
0x1c9c   :  { %18275 = vmatmul.mubr.msk.f32.vlgmr.msra.gmra.mxu1 %vm122_vm0, %v20915_v22  ;;  %18277 = vmatprep.subr.mxu1 %v16668_v48 }
0x1c9d   :  { %18278 = vmatpush3.msra.mxu1 %v16668_v48  ;;  %18281 = vmatprep.mubr.msk.f32.mxu1 %vm122_vm0, %v20935_v0 }
0x1c9e   :  { %18279 = vmatprep.subr.mxu1 %v16667_v27 }
0x1c9f   :  { %18280 = vmatpush3.msra.mxu1 %v16667_v27 }
0x1ca0   :  { %18282 = vmatmul.mubr.msk.f32.vlgmr.msra.gmra.mxu1 %vm122_vm0, %v20915_v22  ;;  %18289 = vmatprep.subr.mxu1 %v20988_v36 }
0x1ca1   :  { %18290 = vmatpush3.msra.mxu1 %v20988_v36  ;;  %18297 = vmatprep.mubr.msk.f32.mxu1 %vm297_vm3, %v20929_v5 }
0x1ca2   :  { %18291 = vmatprep.subr.mxu1 %v20997_v62 }
0x1ca3   :  { %18292 = vmatpush3.msra.mxu1 %v20997_v62 }
0x1ca4   :  { %18293 = vmatprep.subr.mxu1 %v21004_v40 }
0x1ca5   :  { %18294 = vmatpush3.msra.mxu1 %v21004_v40 }
0x1ca6   :  { %18295 = vmatprep.subr.mxu1 %v21011_v30 }
0x1ca7   :  { %18296 = vmatpush3.msra.mxu1 %v21011_v30 }
0x1ca8   :  { %18298 = vmatmul.mubr.msk.f32.vlgmr.msra.gmra.mxu1 %vm297_vm3, %v20927_v47  ;;  %v21028_v47 = vld [vmem:[%s23718_s5 + $0x8] sm:$0xff] }
0x1ca9   :  { %18322 = vmatprep.mubr.msk.f32.mxu1 %vm122_vm0, %v20935_v0 }
0x1d5c   :  { %v21019_v42 = vpop.f32.mrf.mxu1 }
0x1d5e   :  { %v3087_v43 = vpop.f32.mrf.mxu1 }
0x1d60   :  { %v18283_v5 = vpop.f32.mrf.mxu1 }
0x1d62   :  { %v3165_v1 = vpop.f32.mrf.mxu1 }
0x1d63   :  { %18286 = vmatprep.mubr.msk.f32.mxu0 %vm207_vm2, %v3165_v1 }
0x1d64   :  { %18287 = vmatmul.mubr.msk.f32.vlgmr.msra.gmra.mxu0 %vm207_vm2, %v18283_v5 }
0x1d65   :  { %18304 = vmatprep.mubr.msk.f32.mxu0 %vm122_vm0, %v20935_v0 }
0x1d68   :  { %v18299_v6 = vpop.f32.mrf.mxu1 }
0x1d6a   :  { %v3321_v11 = vpop.f32.mrf.mxu1 }
0x1e24   :  { %v18288_v25 = vpop.f32.mrf.mxu0 }
0x1e25   :  { %v21031_v12 = vadd.f32 %v21028_v47, %v18288_v25 }
0x1e26   :  { %v3246_v50 = vpop.f32.mrf.mxu0 }
0x1e27   :  { %v3331_v49 = vadd.f32 %v18299_v6, %v21031_v12  ;;  %v21040_v9 = vadd.f32 %v21037_v8, %v3246_v50 }
0x1e29   :  { %v16677_v53 = vmul.f32 -1.442695, %v3331_v49  ;;  %v3330_v61 = vadd.f32 %v3321_v11, %v21040_v9 }
0x1e2b   :  { %19691 = vpow2.f32 %v16677_v53  ;;  %v16676_v38 = vmul.f32 -1.442695, %v3330_v61 }
0x1e2d   :  { %19693 = vpow2.f32 %v16676_v38  ;;  %v21184_v38 = vld [vmem:[%s23719_s6 + $0x10] sm:$0xff] }
0x1e38   :  { %v19692_v39 = vpop.eup %19691 }
0x1e39   :  { %v3339_v51 = vadd.f32 1.0, %v19692_v39  ;;  %v21191_v39 = vld [vmem:[%s23719_s6 + $0x8] sm:$0xff] }
0x1e3a   :  { %v19694_v54 = vpop.eup %19693 }
0x1e3b   :  { %19695 = vrcp.f32 %v3339_v51  ;;  %v3338_v56 = vadd.f32 1.0, %v19694_v54  ;;  %v21198_v51 = vld [vmem:[%s23719_s6] sm:$0xff] }
0x1e3d   :  { %19697 = vrcp.f32 %v3338_v56 }
0x1e48   :  { %v21043_v20 = vpop.eup %19695 }
0x1e49   :  { %v3345_v58 = vmul.f32 %v21043_v20, %v20907_v37  ;;  %v21063_v37 = vld [vmem:[%s23747_s27 + $0x10] sm:$0xff]  ;;  %v3527_v5 = vsub.f32 1.0, %v21043_v20  ;;  %v3525_v6 = vmul.f32 %v21043_v20, %v20897_v41 }
0x1e4a   :  { %v21047_v23 = vpop.eup %19697 }
0x1e4b   :  { %18300 = vmatprep.subr.mxu0 %v3345_v58  ;;  %v3344_v60 = vmul.f32 %v21047_v23, %v20911_v59  ;;  %v21070_v59 = vld [vmem:[%s23747_s27 + $0x8] sm:$0xff] }
0x1e4c   :  { %18301 = vmatpush3.msra.mxu0 %v3345_v58 }
0x1e4d   :  { %18302 = vmatprep.subr.mxu0 %v3344_v60 }
0x1e4e   :  { %18303 = vmatpush3.msra.mxu0 %v3344_v60 }
0x1e4f   :  { %18305 = vmatmul.mubr.msk.f32.vlgmr.msra.gmra.mxu0 %vm122_vm0, %v20915_v22  ;;  %18307 = vmatprep.subr.mxu0 %v21056_v16 }
0x1e50   :  { %18308 = vmatpush3.msra.mxu0 %v21056_v16 }
0x1e51   :  { %18309 = vmatprep.subr.mxu0 %v21063_v37 }
0x1e52   :  { %18310 = vmatpush3.msra.mxu0 %v21063_v37 }
0x1e53   :  { %18311 = vmatprep.subr.mxu0 %v21070_v59 }
0x1e54   :  { %18312 = vmatpush3.msra.mxu0 %v21070_v59 }
0x1e55   :  { %18313 = vmatprep.subr.mxu0 %v21077_v31 }
0x1e56   :  { %18314 = vmatpush3.msra.mxu0 %v21077_v31 }
0x1e57   :  { %18336 = vmatprep.subr.mxu0 %v21084_v21 }
0x1f0f   :  { %v18306_v28 = vpop.f32.mrf.mxu0 }
0x1f11   :  { %v3412_v2 = vpop.f32.mrf.mxu0 }
0x1f12   :  { %18315 = vmatprep.mubr.msk.f32.mxu0 %vm297_vm3, %v3412_v2 }
0x1f13   :  { %18316 = vmatmul.mubr.msk.f32.vlgmr.msra.gmra.mxu0 %vm297_vm3, %v18306_v28 }
0x1f14   :  { %18337 = vmatpush3.msra.mxu0 %v21084_v21  ;;  %18344 = vmatprep.mubr.msk.f32.mxu0 %vm297_vm3, %v3087_v43 }
0x1f15   :  { %18338 = vmatprep.subr.mxu0 %v21094_v13 }
0x1f16   :  { %18339 = vmatpush3.msra.mxu0 %v21094_v13 }
0x1f17   :  { %18340 = vmatprep.subr.mxu0 %v21101_v24 }
0x1f18   :  { %18341 = vmatpush3.msra.mxu0 %v21101_v24 }
0x1f19   :  { %18342 = vmatprep.subr.mxu0 %v21108_v15 }
0x1f1a   :  { %18343 = vmatpush3.msra.mxu0 %v21108_v15 }
0x1f1b   :  { %18345 = vmatmul.mubr.msk.f32.vlgmr.msra.gmra.mxu0 %vm297_vm3, %v21019_v42  ;;  %18354 = vmatprep.subr.mxu0 %v21117_v26 }
0x1f1c   :  { %18355 = vmatpush3.msra.mxu0 %v21117_v26 }
0x1f1d   :  { %18356 = vmatprep.subr.mxu0 %v21124_v3 }
0x1f1e   :  { %18357 = vmatpush3.msra.mxu0 %v21124_v3 }
0x1f1f   :  { %18358 = vmatprep.subr.mxu0 %v21131_v33 }
0x1f20   :  { %18359 = vmatpush3.msra.mxu0 %v21131_v33 }
0x1f21   :  { %18360 = vmatprep.subr.mxu0 %v21138_v34 }
0x1f22   :  { %18361 = vmatpush3.msra.mxu0 %v21138_v34 }
0x1f23   :  { %18379 = vmatprep.subr.msk.mxu0 %vm214_vm1, %v20885_v32 }
0x1fd3   :  { %v18317_v35 = vpop.f32.mrf.mxu0 }
0x1fd4   :  { %3506 = vrot.lane.b32.xlu0 %v18317_v35, %s20278_s25  ;;  %v21221_v35 = vld [vmem:[%s23722_s9] sm:$0xff] }
0x1fd5   :  { %v3493_v52 = vpop.f32.mrf.mxu0 }
0x1fd6   :  { %3504 = vrot.lane.b32.xlu1 %v3493_v52, %s20278_s25 }
0x1fdb   :  { %v18346_v20 = vpop.f32.mrf.mxu0 }
0x2046   :  { %v3507_v55 = vpop.permute.xlu0 %3506 }
0x2047   :  { %v3511_v7 = vadd.f32 %v3507_v55, %v21031_v12  ;;  %v3526_v12 = vsub.f32 1.0, %v21047_v23  ;;  %v3776_v55 = vpop.f32.mrf.mxu0 }
0x2048   :  { %v3505_v14 = vpop.permute.xlu1 %3504 }
0x2049   :  { %v16683_v18 = vmul.f32 -1.442695, %v3511_v7  ;;  %v3510_v19 = vadd.f32 %v3505_v14, %v21040_v9  ;;  %v3524_v9 = vmul.f32 %v21047_v23, %v20901_v46  ;;  %v21177_v46 = vld [vmem:[%s23719_s6 + $0x18] sm:$0xff]  ;;  %v21215_v23 = vld [vmem:[%s23722_s9 + $0x8] sm:$0xff] }
0x204b   :  { %19699 = vpow2.f32 %v16683_v18  ;;  %v16682_v44 = vmul.f32 -1.442695, %v3510_v19 }
0x204d   :  { %19701 = vpow2.f32 %v16682_v44 }
0x2058   :  { %v19700_v57 = vpop.eup %19699 }
0x2059   :  { %v3519_v63 = vadd.f32 1.0, %v19700_v57 }
0x205a   :  { %v19702_v48 = vpop.eup %19701 }
0x205b   :  { %19703 = vrcp.f32 %v3519_v63  ;;  %v3518_v27 = vadd.f32 1.0, %v19702_v48 }
0x205d   :  { %19705 = vrcp.f32 %v3518_v27 }
0x2068   :  { %v19704_v42 = vpop.eup %19703 }
0x2069   :  { %3532 = vrot.lane.b32.xlu0 %v19704_v42, %s20279_s24 }
0x206a   :  { %v19706_v43 = vpop.eup %19705 }
0x206b   :  { %3530 = vrot.lane.b32.xlu1 %v19706_v43, %s20279_s24 }
0x20db   :  { %v3533_v1 = vpop.permute.xlu0 %3532 }
0x20dc   :  { %v3537_v25 = vmul.f32 %v3533_v1, %v3527_v5 }
0x20dd   :  { %v3531_v50 = vpop.permute.xlu1 %3530 }
0x20de   :  { %v21154_v49 = vadd.f32 %v3537_v25, %v3525_v6  ;;  %v3536_v11 = vmul.f32 %v3531_v50, %v3526_v12 }
0x20e0   :  { %v21158_v53 = vadd.f32 %v3536_v11, %v3524_v9  ;;  %3544 = vrot.lane.b32.xlu0 %v21154_v49, %s20279_s24 }
0x20e2   :  { %3542 = vrot.lane.b32.xlu1 %v21158_v53, %s20279_s24 }
0x2152   :  { %v21164_v61 = vpop.permute.xlu0 %3544 }
0x2153   :  { %18318 = vmatprep.subr.mxu1 %v21164_v61 }
0x2154   :  { %18319 = vmatpush3.msra.mxu1 %v21164_v61  ;;  %v21168_v41 = vpop.permute.xlu1 %3542 }
0x2155   :  { %18320 = vmatprep.subr.mxu1 %v21168_v41 }
0x2156   :  { %18321 = vmatpush3.msra.mxu1 %v21168_v41 }
0x2157   :  { %18323 = vmatmul.mubr.msk.f32.vlgmr.msra.gmra.mxu1 %vm122_vm0, %v20915_v22  ;;  %18325 = vmatprep.subr.mxu1 %v21177_v46 }
0x2158   :  { %18326 = vmatpush3.msra.mxu1 %v21177_v46 }
0x2159   :  { %18327 = vmatprep.subr.mxu1 %v21184_v38 }
0x215a   :  { %18328 = vmatpush3.msra.mxu1 %v21184_v38 }
0x215b   :  { %18329 = vmatprep.subr.mxu1 %v21191_v39 }
0x215c   :  { %18330 = vmatpush3.msra.mxu1 %v21191_v39 }
0x215d   :  { %18331 = vmatprep.subr.mxu1 %v21198_v51 }
0x215e   :  { %18332 = vmatpush3.msra.mxu1 %v21198_v51 }
0x2217   :  { %v21202_v54 = vpop.f32.mrf.mxu1 }
0x2219   :  { %v21204_v56 = vpop.f32.mrf.mxu1 }
0x221a   :  { %18333 = vmatprep.mubr.msk.f32.mxu1 %vm297_vm3, %v21204_v56 }
0x221b   :  { %18334 = vmatmul.mubr.msk.f32.vlgmr.msra.gmra.mxu1 %vm297_vm3, %v21202_v54 }
0x221c   :  { %18351 = vmatprep.mubr.msk.f32.mxu1 %vm122_vm0, %v20935_v0 }
0x22db   :  { %v18335_v58 = vpop.f32.mrf.mxu1 }
0x22dc   :  { %v3701_v60 = vadd.f32 %v21215_v23, %v18335_v58 }
0x22dd   :  { %v3695_v28 = vpop.f32.mrf.mxu1 }
0x22de   :  { %v3786_v2 = vadd.f32 %v18346_v20, %v3701_v60  ;;  %v3696_v52 = vadd.f32 %v21221_v35, %v3695_v28 }
0x22e0   :  { %v16691_v7 = vmul.f32 -1.442695, %v3786_v2  ;;  %v3785_v14 = vadd.f32 %v3776_v55, %v3696_v52 }
0x22e2   :  { %19707 = vpow2.f32 %v16691_v7  ;;  %v16690_v18 = vmul.f32 -1.442695, %v3785_v14 }
0x22e4   :  { %19709 = vpow2.f32 %v16690_v18 }
0x22ef   :  { %v19708_v19 = vpop.eup %19707 }
0x22f0   :  { %v3794_v44 = vadd.f32 1.0, %v19708_v19 }
0x22f1   :  { %v19710_v57 = vpop.eup %19709 }
0x22f2   :  { %19711 = vrcp.f32 %v3794_v44  ;;  %v3793_v63 = vadd.f32 1.0, %v19710_v57 }
0x22f4   :  { %19713 = vrcp.f32 %v3793_v63 }
0x22ff   :  { %v19712_v48 = vpop.eup %19711 }
0x2300   :  { %v3800_v27 = vmul.f32 %v19712_v48, %v20965_v4  ;;  %v3982_v14 = vsub.f32 1.0, %v19712_v48  ;;  %v3980_v18 = vmul.f32 %v19712_v48, %v20956_v45  ;;  %v16700_v48 = vld [vmem:[%s23744_s4 + $0x40] sm:$0xff] }
0x2301   :  { %v19714_v42 = vpop.eup %19713 }
0x2302   :  { %18347 = vmatprep.subr.mxu1 %v3800_v27  ;;  %v3799_v43 = vmul.f32 %v19714_v42, %v20969_v17  ;;  %v3981_v19 = vsub.f32 1.0, %v19714_v42  ;;  %v3979_v63 = vmul.f32 %v19714_v42, %v20959_v29  ;;  %v16701_v29 = vld [vmem:[%s23744_s4 + $0x48] sm:$0xff] }
0x2303   :  { %18348 = vmatpush3.msra.mxu1 %v3800_v27 }
0x2304   :  { %18349 = vmatprep.subr.mxu1 %v3799_v43 }
0x2305   :  { %18350 = vmatpush3.msra.mxu1 %v3799_v43 }
0x2306   :  { %18352 = vmatmul.mubr.msk.f32.vlgmr.msra.gmra.mxu1 %vm122_vm0, %v20915_v22 }
0x2307   :  { %18369 = vmatprep.mubr.msk.f32.mxu1 %vm122_vm0, %v20935_v0 }
0x23c6   :  { %v18353_v5 = vpop.f32.mrf.mxu1 }
0x23c8   :  { %v3867_v1 = vpop.f32.mrf.mxu1 }
0x23c9   :  { %18362 = vmatprep.mubr.msk.f32.mxu0 %vm297_vm3, %v3867_v1 }
0x23ca   :  { %18363 = vmatmul.mubr.msk.f32.vlgmr.msra.gmra.mxu0 %vm297_vm3, %v18353_v5 }
0x23cb   :  { %18380 = vmatpush3.msk.msra.mxu0 %vm214_vm1, %v20885_v32 }
0x248a   :  { %v18364_v4 = vpop.f32.mrf.mxu0 }
0x248b   :  { %3961 = vrot.lane.b32.xlu0 %v18364_v4, %s20278_s25 }
0x248c   :  { %v3948_v17 = vpop.f32.mrf.mxu0 }
0x248d   :  { %3959 = vrot.lane.b32.xlu1 %v3948_v17, %s20278_s25 }
0x24fd   :  { %v3962_v6 = vpop.permute.xlu0 %3961 }
0x24fe   :  { %v3966_v25 = vadd.f32 %v3962_v6, %v3701_v60 }
0x24ff   :  { %v3960_v12 = vpop.permute.xlu1 %3959 }
0x2500   :  { %v16697_v50 = vmul.f32 -1.442695, %v3966_v25  ;;  %v3965_v9 = vadd.f32 %v3960_v12, %v3696_v52 }
0x2502   :  { %19715 = vpow2.f32 %v16697_v50  ;;  %v16696_v11 = vmul.f32 -1.442695, %v3965_v9 }
0x2504   :  { %19717 = vpow2.f32 %v16696_v11 }
0x250f   :  { %v19716_v20 = vpop.eup %19715 }
0x2510   :  { %v3974_v58 = vadd.f32 1.0, %v19716_v20 }
0x2511   :  { %v19718_v28 = vpop.eup %19717 }
0x2512   :  { %19719 = vrcp.f32 %v3974_v58  ;;  %v3973_v2 = vadd.f32 1.0, %v19718_v28 }
0x2514   :  { %19721 = vrcp.f32 %v3973_v2 }
0x251f   :  { %v19720_v55 = vpop.eup %19719 }
0x2520   :  { %3987 = vrot.lane.b32.xlu0 %v19720_v55, %s20279_s24 }
0x2521   :  { %v19722_v7 = vpop.eup %19721 }
0x2522   :  { %3985 = vrot.lane.b32.xlu1 %v19722_v7, %s20279_s24 }
0x2592   :  { %v3988_v60 = vpop.permute.xlu0 %3987 }
0x2593   :  { %v3992_v52 = vmul.f32 %v3988_v60, %v3982_v14 }
0x2594   :  { %v3986_v44 = vpop.permute.xlu1 %3985 }
0x2595   :  { %v21239_v57 = vadd.f32 %v3992_v52, %v3980_v18  ;;  %v3991_v27 = vmul.f32 %v3986_v44, %v3981_v19 }
0x2597   :  { %v21242_v43 = vadd.f32 %v3991_v27, %v3979_v63  ;;  %3999 = vrot.lane.b32.xlu0 %v21239_v57, %s20279_s24 }
0x2599   :  { %3997 = vrot.lane.b32.xlu1 %v21242_v43, %s20279_s24 }
0x2609   :  { %v21248_v5 = vpop.permute.xlu0 %3999 }
0x260a   :  { %18365 = vmatprep.subr.mxu1 %v21248_v5 }
0x260b   :  { %18366 = vmatpush3.msra.mxu1 %v21248_v5  ;;  %v21252_v45 = vpop.permute.xlu1 %3997 }
0x260c   :  { %18367 = vmatprep.subr.mxu1 %v21252_v45 }
0x260d   :  { %18368 = vmatpush3.msra.mxu1 %v21252_v45 }
0x260e   :  { %18370 = vmatmul.mubr.msk.f32.vlgmr.msra.gmra.mxu1 %vm122_vm0, %v20915_v22  ;;  %18372 = vmatprep.subr.mxu1 %v16701_v29 }
0x260f   :  { %18373 = vmatpush3.msra.mxu1 %v16701_v29  ;;  %18376 = vmatprep.mubr.msk.f32.mxu1 %vm122_vm0, %v20935_v0 }
0x2610   :  { %18374 = vmatprep.subr.mxu1 %v16700_v48 }
0x2611   :  { %18375 = vmatpush3.msra.mxu1 %v16700_v48 }
0x2612   :  { %18377 = vmatmul.mubr.msk.f32.vlgmr.msra.gmra.mxu1 %vm122_vm0, %v20915_v22  ;;  %18384 = vmatprep.subr.mxu1 %v20988_v36 }
0x2613   :  { %18385 = vmatpush3.msra.mxu1 %v20988_v36  ;;  %18392 = vmatprep.mubr.msk.f32.mxu1 %vm297_vm3, %v21204_v56 }
0x2614   :  { %18386 = vmatprep.subr.mxu1 %v20997_v62 }
0x2615   :  { %18387 = vmatpush3.msra.mxu1 %v20997_v62 }
0x2616   :  { %18388 = vmatprep.subr.mxu1 %v21004_v40 }
0x2617   :  { %18389 = vmatpush3.msra.mxu1 %v21004_v40 }
0x2618   :  { %18390 = vmatprep.subr.mxu1 %v21011_v30 }
0x2619   :  { %18391 = vmatpush3.msra.mxu1 %v21011_v30 }
0x261a   :  { %18393 = vmatmul.mubr.msk.f32.vlgmr.msra.gmra.mxu1 %vm297_vm3, %v21202_v54 }
0x261b   :  { %18417 = vmatprep.mubr.msk.f32.mxu1 %vm122_vm0, %v20935_v0 }
0x26ce   :  { %v18371_v42 = vpop.f32.mrf.mxu1 }
0x26d0   :  { %v4069_v56 = vpop.f32.mrf.mxu1 }
0x26d2   :  { %v18378_v1 = vpop.f32.mrf.mxu1 }
0x26d4   :  { %v4147_v4 = vpop.f32.mrf.mxu1 }
0x26d5   :  { %18381 = vmatprep.mubr.msk.f32.mxu0 %vm207_vm2, %v4147_v4 }
0x26d6   :  { %18382 = vmatmul.mubr.msk.f32.vlgmr.msra.gmra.mxu0 %vm207_vm2, %v18378_v1 }
0x26d7   :  { %18399 = vmatprep.mubr.msk.f32.mxu0 %vm122_vm0, %v20935_v0 }
0x26da   :  { %v18394_v17 = vpop.f32.mrf.mxu1 }
0x26dc   :  { %v4303_v9 = vpop.f32.mrf.mxu1 }
0x2796   :  { %v18383_v6 = vpop.f32.mrf.mxu0 }
0x2797   :  { %v4234_v25 = vadd.f32 %v21028_v47, %v18383_v6 }
0x2798   :  { %v4228_v12 = vpop.f32.mrf.mxu0 }
0x2799   :  { %v4313_v54 = vadd.f32 %v18394_v17, %v4234_v25  ;;  %v4229_v50 = vadd.f32 %v21037_v8, %v4228_v12 }
0x279b   :  { %v16710_v11 = vmul.f32 -1.442695, %v4313_v54  ;;  %v4312_v20 = vadd.f32 %v4303_v9, %v4229_v50 }
0x279d   :  { %19723 = vpow2.f32 %v16710_v11  ;;  %v16709_v58 = vmul.f32 -1.442695, %v4312_v20 }
0x279f   :  { %19725 = vpow2.f32 %v16709_v58 }
0x27aa   :  { %v19724_v28 = vpop.eup %19723 }
0x27ab   :  { %v4321_v2 = vadd.f32 1.0, %v19724_v28 }
0x27ac   :  { %v19726_v55 = vpop.eup %19725 }
0x27ad   :  { %19727 = vrcp.f32 %v4321_v2  ;;  %v4320_v7 = vadd.f32 1.0, %v19726_v55 }
0x27af   :  { %19729 = vrcp.f32 %v4320_v7 }
0x27ba   :  { %v21288_v14 = vpop.eup %19727 }
0x27bb   :  { %v4327_v60 = vmul.f32 %v21288_v14, %v21164_v61 }
0x27bc   :  { %v21292_v18 = vpop.eup %19729 }
0x27bd   :  { %18395 = vmatprep.subr.mxu0 %v4327_v60  ;;  %v4326_v52 = vmul.f32 %v21292_v18, %v21168_v41  ;;  %v4508_v20 = vsub.f32 1.0, %v21292_v18  ;;  %v4506_v2 = vmul.f32 %v21292_v18, %v21158_v53 }
0x27be   :  { %18396 = vmatpush3.msra.mxu0 %v4327_v60 }
0x27bf   :  { %18397 = vmatprep.subr.mxu0 %v4326_v52 }
0x27c0   :  { %18398 = vmatpush3.msra.mxu0 %v4326_v52 }
0x27c1   :  { %18400 = vmatmul.mubr.msk.f32.vlgmr.msra.gmra.mxu0 %vm122_vm0, %v20915_v22  ;;  %18402 = vmatprep.subr.mxu0 %v21056_v16 }
0x27c2   :  { %18403 = vmatpush3.msra.mxu0 %v21056_v16 }
0x27c3   :  { %18404 = vmatprep.subr.mxu0 %v21063_v37 }
0x27c4   :  { %18405 = vmatpush3.msra.mxu0 %v21063_v37 }
0x27c5   :  { %18406 = vmatprep.subr.mxu0 %v21070_v59 }
0x27c6   :  { %18407 = vmatpush3.msra.mxu0 %v21070_v59 }
0x27c7   :  { %18408 = vmatprep.subr.mxu0 %v21077_v31 }
0x27c8   :  { %18409 = vmatpush3.msra.mxu0 %v21077_v31 }
0x27c9   :  { %18431 = vmatprep.subr.mxu0 %v21084_v21 }
0x2881   :  { %v18401_v61 = vpop.f32.mrf.mxu0 }
0x2883   :  { %v4394_v41 = vpop.f32.mrf.mxu0 }
0x2884   :  { %18410 = vmatprep.mubr.msk.f32.mxu0 %vm297_vm3, %v4394_v41 }
0x2885   :  { %18411 = vmatmul.mubr.msk.f32.vlgmr.msra.gmra.mxu0 %vm297_vm3, %v18401_v61 }
0x2886   :  { %18432 = vmatpush3.msra.mxu0 %v21084_v21  ;;  %18439 = vmatprep.mubr.msk.f32.mxu0 %vm297_vm3, %v4069_v56 }
0x2887   :  { %18433 = vmatprep.subr.mxu0 %v21094_v13 }
0x2888   :  { %18434 = vmatpush3.msra.mxu0 %v21094_v13 }
0x2889   :  { %18435 = vmatprep.subr.mxu0 %v21101_v24 }
0x288a   :  { %18436 = vmatpush3.msra.mxu0 %v21101_v24 }
0x288b   :  { %18437 = vmatprep.subr.mxu0 %v21108_v15 }
0x288c   :  { %18438 = vmatpush3.msra.mxu0 %v21108_v15 }
0x288d   :  { %18440 = vmatmul.mubr.msk.f32.vlgmr.msra.gmra.mxu0 %vm297_vm3, %v18371_v42  ;;  %18449 = vmatprep.subr.mxu0 %v21117_v26 }
0x288e   :  { %18450 = vmatpush3.msra.mxu0 %v21117_v26 }
0x288f   :  { %18451 = vmatprep.subr.mxu0 %v21124_v3 }
0x2890   :  { %18452 = vmatpush3.msra.mxu0 %v21124_v3 }
0x2891   :  { %18453 = vmatprep.subr.mxu0 %v21131_v33 }
0x2892   :  { %18454 = vmatpush3.msra.mxu0 %v21131_v33 }
0x2893   :  { %18455 = vmatprep.subr.mxu0 %v21138_v34 }
0x2894   :  { %18456 = vmatpush3.msra.mxu0 %v21138_v34 }
0x2895   :  { %18474 = vmatprep.subr.msk.mxu0 %vm214_vm1, %v20885_v32 }
0x2945   :  { %v18412_v19 = vpop.f32.mrf.mxu0 }
0x2946   :  { %4488 = vrot.lane.b32.xlu0 %v18412_v19, %s20278_s25 }
0x2947   :  { %v4475_v44 = vpop.f32.mrf.mxu0 }
0x2948   :  { %4486 = vrot.lane.b32.xlu1 %v4475_v44, %s20278_s25 }
0x294d   :  { %v18441_v18 = vpop.f32.mrf.mxu0 }
0x29b8   :  { %v4489_v63 = vpop.permute.xlu0 %4488 }
0x29b9   :  { %v4493_v27 = vadd.f32 %v4489_v63, %v4234_v25  ;;  %v4509_v25 = vsub.f32 1.0, %v21288_v14  ;;  %v4758_v63 = vpop.f32.mrf.mxu0 }
0x29ba   :  { %v4487_v29 = vpop.permute.xlu1 %4486 }
0x29bb   :  { %v16716_v48 = vmul.f32 -1.442695, %v4493_v27  ;;  %v4492_v42 = vadd.f32 %v4487_v29, %v4229_v50  ;;  %v4507_v50 = vmul.f32 %v21288_v14, %v21154_v49 }
0x29bd   :  { %19731 = vpow2.f32 %v16716_v48  ;;  %v16715_v56 = vmul.f32 -1.442695, %v4492_v42 }
0x29bf   :  { %19733 = vpow2.f32 %v16715_v56 }
0x29ca   :  { %v19732_v1 = vpop.eup %19731 }
0x29cb   :  { %v4501_v4 = vadd.f32 1.0, %v19732_v1 }
0x29cc   :  { %v19734_v17 = vpop.eup %19733 }
0x29cd   :  { %19735 = vrcp.f32 %v4501_v4  ;;  %v4500_v6 = vadd.f32 1.0, %v19734_v17 }
0x29cf   :  { %19737 = vrcp.f32 %v4500_v6 }
0x29da   :  { %v19736_v12 = vpop.eup %19735 }
0x29db   :  { %4514 = vrot.lane.b32.xlu0 %v19736_v12, %s20279_s24 }
0x29dc   :  { %v19738_v54 = vpop.eup %19737 }
0x29dd   :  { %4512 = vrot.lane.b32.xlu1 %v19738_v54, %s20279_s24 }
0x2a4d   :  { %v4515_v9 = vpop.permute.xlu0 %4514 }
0x2a4e   :  { %v4519_v11 = vmul.f32 %v4515_v9, %v4509_v25 }
0x2a4f   :  { %v4513_v58 = vpop.permute.xlu1 %4512 }
0x2a50   :  { %v21336_v28 = vadd.f32 %v4519_v11, %v4507_v50  ;;  %v4518_v55 = vmul.f32 %v4513_v58, %v4508_v20 }
0x2a52   :  { %v21340_v7 = vadd.f32 %v4518_v55, %v4506_v2  ;;  %4526 = vrot.lane.b32.xlu0 %v21336_v28, %s20279_s24 }
0x2a54   :  { %4524 = vrot.lane.b32.xlu1 %v21340_v7, %s20279_s24 }
0x2ac4   :  { %v21346_v60 = vpop.permute.xlu0 %4526 }
0x2ac5   :  { %18413 = vmatprep.subr.mxu1 %v21346_v60 }
0x2ac6   :  { %18414 = vmatpush3.msra.mxu1 %v21346_v60  ;;  %v21350_v49 = vpop.permute.xlu1 %4524 }
0x2ac7   :  { %18415 = vmatprep.subr.mxu1 %v21350_v49 }
0x2ac8   :  { %18416 = vmatpush3.msra.mxu1 %v21350_v49 }
0x2ac9   :  { %18418 = vmatmul.mubr.msk.f32.vlgmr.msra.gmra.mxu1 %vm122_vm0, %v20915_v22  ;;  %18420 = vmatprep.subr.mxu1 %v21177_v46 }
0x2aca   :  { %18421 = vmatpush3.msra.mxu1 %v21177_v46 }
0x2acb   :  { %18422 = vmatprep.subr.mxu1 %v21184_v38 }
0x2acc   :  { %18423 = vmatpush3.msra.mxu1 %v21184_v38 }
0x2acd   :  { %18424 = vmatprep.subr.mxu1 %v21191_v39 }
0x2ace   :  { %18425 = vmatpush3.msra.mxu1 %v21191_v39 }
0x2acf   :  { %18426 = vmatprep.subr.mxu1 %v21198_v51 }
0x2ad0   :  { %18427 = vmatpush3.msra.mxu1 %v21198_v51 }
0x2b89   :  { %v21364_v53 = vpop.f32.mrf.mxu1 }
0x2b8b   :  { %v21366_v14 = vpop.f32.mrf.mxu1 }
0x2b8c   :  { %18428 = vmatprep.mubr.msk.f32.mxu1 %vm297_vm3, %v21366_v14 }
0x2b8d   :  { %18429 = vmatmul.mubr.msk.f32.vlgmr.msra.gmra.mxu1 %vm297_vm3, %v21364_v53 }
0x2b8e   :  { %18446 = vmatprep.mubr.msk.f32.mxu1 %vm122_vm0, %v20935_v0 }
0x2c4d   :  { %v18430_v52 = vpop.f32.mrf.mxu1 }
0x2c4e   :  { %v4683_v61 = vadd.f32 %v21215_v23, %v18430_v52 }
0x2c4f   :  { %v4677_v41 = vpop.f32.mrf.mxu1 }
0x2c50   :  { %v4768_v19 = vadd.f32 %v18441_v18, %v4683_v61  ;;  %v4678_v44 = vadd.f32 %v21221_v35, %v4677_v41 }
0x2c52   :  { %v16724_v27 = vmul.f32 -1.442695, %v4768_v19  ;;  %v4767_v29 = vadd.f32 %v4758_v63, %v4678_v44 }
0x2c54   :  { %19739 = vpow2.f32 %v16724_v27  ;;  %v16723_v48 = vmul.f32 -1.442695, %v4767_v29 }
0x2c56   :  { %19741 = vpow2.f32 %v16723_v48 }
0x2c61   :  { %v19740_v42 = vpop.eup %19739 }
0x2c62   :  { %v4776_v56 = vadd.f32 1.0, %v19740_v42 }
0x2c63   :  { %v19742_v1 = vpop.eup %19741 }
0x2c64   :  { %19743 = vrcp.f32 %v4776_v56  ;;  %v4775_v4 = vadd.f32 1.0, %v19742_v1 }
0x2c66   :  { %19745 = vrcp.f32 %v4775_v4 }
0x2c71   :  { %v19744_v17 = vpop.eup %19743 }
0x2c72   :  { %v4782_v6 = vmul.f32 %v19744_v17, %v21248_v5  ;;  %v4964_v63 = vsub.f32 1.0, %v19744_v17  ;;  %v4962_v27 = vmul.f32 %v19744_v17, %v21239_v57  ;;  %v16733_v17 = vld [vmem:[%s23744_s4 + $0x50] sm:$0xff] }
0x2c73   :  { %v19746_v12 = vpop.eup %19745 }
0x2c74   :  { %18442 = vmatprep.subr.mxu1 %v4782_v6  ;;  %v4781_v54 = vmul.f32 %v19746_v12, %v21252_v45  ;;  %v4963_v29 = vsub.f32 1.0, %v19746_v12  ;;  %v4961_v56 = vmul.f32 %v19746_v12, %v21242_v43  ;;  %v16734_v43 = vld [vmem:[%s23744_s4 + $0x58] sm:$0xff]  ;;  %v21414_v12 = vld [vmem:[#allocation2 + $0x8] sm:$0xff] }
0x2c75   :  { %18443 = vmatpush3.msra.mxu1 %v4782_v6 }
0x2c76   :  { %18444 = vmatprep.subr.mxu1 %v4781_v54 }
0x2c77   :  { %18445 = vmatpush3.msra.mxu1 %v4781_v54 }
0x2c78   :  { %18447 = vmatmul.mubr.msk.f32.vlgmr.msra.gmra.mxu1 %vm122_vm0, %v20915_v22 }
0x2c79   :  { %18464 = vmatprep.mubr.msk.f32.mxu1 %vm122_vm0, %v20935_v0 }
0x2d38   :  { %v18448_v25 = vpop.f32.mrf.mxu1 }
0x2d3a   :  { %v4849_v9 = vpop.f32.mrf.mxu1 }
0x2d3b   :  { %18457 = vmatprep.mubr.msk.f32.mxu0 %vm297_vm3, %v4849_v9 }
0x2d3c   :  { %18458 = vmatmul.mubr.msk.f32.vlgmr.msra.gmra.mxu0 %vm297_vm3, %v18448_v25 }
0x2d3d   :  { %18475 = vmatpush3.msk.msra.mxu0 %vm214_vm1, %v20885_v32 }
0x2dfc   :  { %v18459_v5 = vpop.f32.mrf.mxu0 }
0x2dfd   :  { %4943 = vrot.lane.b32.xlu0 %v18459_v5, %s20278_s25 }
0x2dfe   :  { %v4930_v45 = vpop.f32.mrf.mxu0 }
0x2dff   :  { %4941 = vrot.lane.b32.xlu1 %v4930_v45, %s20278_s25 }
0x2e6f   :  { %v4944_v50 = vpop.permute.xlu0 %4943 }
0x2e70   :  { %v4948_v22 = vadd.f32 %v4944_v50, %v4683_v61 }
0x2e71   :  { %v4942_v11 = vpop.permute.xlu1 %4941 }
0x2e72   :  { %v16730_v20 = vmul.f32 -1.442695, %v4948_v22  ;;  %v4947_v58 = vadd.f32 %v4942_v11, %v4678_v44 }
0x2e74   :  { %19747 = vpow2.f32 %v16730_v20  ;;  %v16729_v2 = vmul.f32 -1.442695, %v4947_v58 }
0x2e76   :  { %19749 = vpow2.f32 %v16729_v2 }
0x2e81   :  { %v19748_v55 = vpop.eup %19747 }
0x2e82   :  { %v4956_v18 = vadd.f32 1.0, %v19748_v55 }
0x2e83   :  { %v19750_v52 = vpop.eup %19749 }
0x2e84   :  { %19751 = vrcp.f32 %v4956_v18  ;;  %v4955_v41 = vadd.f32 1.0, %v19750_v52 }
0x2e86   :  { %19753 = vrcp.f32 %v4955_v41 }
0x2e91   :  { %v19752_v32 = vpop.eup %19751 }
0x2e92   :  { %4969 = vrot.lane.b32.xlu0 %v19752_v32, %s20279_s24 }
0x2e93   :  { %v19754_v19 = vpop.eup %19753 }
0x2e94   :  { %4967 = vrot.lane.b32.xlu1 %v19754_v19, %s20279_s24 }
0x2f04   :  { %v4970_v61 = vpop.permute.xlu0 %4969 }
0x2f05   :  { %v4974_v44 = vmul.f32 %v4970_v61, %v4964_v63 }
0x2f06   :  { %v4968_v48 = vpop.permute.xlu1 %4967 }
0x2f07   :  { %v21391_v42 = vadd.f32 %v4974_v44, %v4962_v27  ;;  %v4973_v1 = vmul.f32 %v4968_v48, %v4963_v29 }
0x2f09   :  { %v21394_v4 = vadd.f32 %v4973_v1, %v4961_v56  ;;  %4981 = vrot.lane.b32.xlu0 %v21391_v42, %s20279_s24 }
0x2f0b   :  { %4979 = vrot.lane.b32.xlu1 %v21394_v4, %s20279_s24 }
0x2f7b   :  { %v21400_v6 = vpop.permute.xlu0 %4981 }
0x2f7c   :  { %18460 = vmatprep.subr.mxu1 %v21400_v6 }
0x2f7d   :  { %18461 = vmatpush3.msra.mxu1 %v21400_v6  ;;  %v21404_v57 = vpop.permute.xlu1 %4979 }
0x2f7e   :  { %18462 = vmatprep.subr.mxu1 %v21404_v57 }
0x2f7f   :  { %18463 = vmatpush3.msra.mxu1 %v21404_v57 }
0x2f80   :  { %18465 = vmatmul.mubr.msk.f32.vlgmr.msra.gmra.mxu1 %vm122_vm0, %v21414_v12  ;;  %18467 = vmatprep.subr.mxu1 %v16734_v43 }
0x2f81   :  { %18468 = vmatpush3.msra.mxu1 %v16734_v43  ;;  %18471 = vmatprep.mubr.msk.f32.mxu1 %vm122_vm0, %v20935_v0  ;;  %v21434_v0 = vld [vmem:[#allocation2] sm:$0xff] }
0x2f82   :  { %18469 = vmatprep.subr.mxu1 %v16733_v17 }
0x2f83   :  { %18470 = vmatpush3.msra.mxu1 %v16733_v17 }
0x2f84   :  { %18472 = vmatmul.mubr.msk.f32.vlgmr.msra.gmra.mxu1 %vm122_vm0, %v21414_v12  ;;  %18479 = vmatprep.subr.mxu1 %v20988_v36 }
0x2f85   :  { %18480 = vmatpush3.msra.mxu1 %v20988_v36  ;;  %18487 = vmatprep.mubr.msk.f32.mxu1 %vm297_vm3, %v21366_v14 }
0x2f86   :  { %18481 = vmatprep.subr.mxu1 %v20997_v62 }
0x2f87   :  { %18482 = vmatpush3.msra.mxu1 %v20997_v62 }
0x2f88   :  { %18483 = vmatprep.subr.mxu1 %v21004_v40 }
0x2f89   :  { %18484 = vmatpush3.msra.mxu1 %v21004_v40 }
0x2f8a   :  { %18485 = vmatprep.subr.mxu1 %v21011_v30 }
0x2f8b   :  { %18486 = vmatpush3.msra.mxu1 %v21011_v30 }
0x2f8c   :  { %18488 = vmatmul.mubr.msk.f32.vlgmr.msra.gmra.mxu1 %vm297_vm3, %v21364_v53 }
0x2f8d   :  { %18512 = vmatprep.mubr.msk.f32.mxu1 %vm122_vm0, %v21434_v0 }
0x3040   :  { %v18466_v36 = vpop.f32.mrf.mxu1 }
0x3042   :  { %v5051_v14 = vpop.f32.mrf.mxu1 }
0x3044   :  { %v18473_v54 = vpop.f32.mrf.mxu1 }
0x3046   :  { %v5129_v62 = vpop.f32.mrf.mxu1 }
0x3047   :  { %18476 = vmatprep.mubr.msk.f32.mxu0 %vm207_vm2, %v5129_v62 }
0x3048   :  { %18477 = vmatmul.mubr.msk.f32.vlgmr.msra.gmra.mxu0 %vm207_vm2, %v18473_v54 }
0x3049   :  { %18494 = vmatprep.mubr.msk.f32.mxu0 %vm122_vm0, %v21434_v0 }
0x304c   :  { %v18489_v40 = vpop.f32.mrf.mxu1 }
0x304e   :  { %v5285_v45 = vpop.f32.mrf.mxu1 }
0x3108   :  { %v18478_v30 = vpop.f32.mrf.mxu0 }
0x3109   :  { %v5216_v53 = vadd.f32 %v21028_v47, %v18478_v30 }
0x310a   :  { %v5210_v25 = vpop.f32.mrf.mxu0 }
0x310b   :  { %v5295_v9 = vadd.f32 %v18489_v40, %v5216_v53  ;;  %v5211_v5 = vadd.f32 %v21037_v8, %v5210_v25 }
0x310d   :  { %v16743_v50 = vmul.f32 -1.442695, %v5295_v9  ;;  %v5294_v22 = vadd.f32 %v5285_v45, %v5211_v5 }
0x310f   :  { %19755 = vpow2.f32 %v16743_v50  ;;  %v16742_v11 = vmul.f32 -1.442695, %v5294_v22 }
0x3111   :  { %19757 = vpow2.f32 %v16742_v11 }
0x311c   :  { %v19756_v20 = vpop.eup %19755 }
0x311d   :  { %v5303_v58 = vadd.f32 1.0, %v19756_v20 }
0x311e   :  { %v19758_v2 = vpop.eup %19757 }
0x311f   :  { %19759 = vrcp.f32 %v5303_v58  ;;  %v5302_v55 = vadd.f32 1.0, %v19758_v2 }
0x3121   :  { %19761 = vrcp.f32 %v5302_v55 }
0x312c   :  { %v21444_v18 = vpop.eup %19759 }
0x312d   :  { %v5309_v47 = vmul.f32 %v21444_v18, %v21346_v60  ;;  %v5491_v63 = vsub.f32 1.0, %v21444_v18  ;;  %v5489_v27 = vmul.f32 %v21444_v18, %v21336_v28 }
0x312e   :  { %v21448_v52 = vpop.eup %19761 }
0x312f   :  { %18490 = vmatprep.subr.mxu0 %v5309_v47  ;;  %v5308_v8 = vmul.f32 %v21448_v52, %v21350_v49  ;;  %v5490_v29 = vsub.f32 1.0, %v21448_v52  ;;  %v5488_v1 = vmul.f32 %v21448_v52, %v21340_v7 }
0x3130   :  { %18491 = vmatpush3.msra.mxu0 %v5309_v47 }
0x3131   :  { %18492 = vmatprep.subr.mxu0 %v5308_v8 }
0x3132   :  { %18493 = vmatpush3.msra.mxu0 %v5308_v8 }
0x3133   :  { %18495 = vmatmul.mubr.msk.f32.vlgmr.msra.gmra.mxu0 %vm122_vm0, %v21414_v12  ;;  %18497 = vmatprep.subr.mxu0 %v21056_v16 }
0x3134   :  { %18498 = vmatpush3.msra.mxu0 %v21056_v16  ;;  %v21485_v16 = vld [vmem:[%s23745_s28] sm:$0xf] }
0x3135   :  { %18499 = vmatprep.subr.mxu0 %v21063_v37 }
0x3136   :  { %18500 = vmatpush3.msra.mxu0 %v21063_v37 }
0x3137   :  { %18501 = vmatprep.subr.mxu0 %v21070_v59 }
0x3138   :  { %18502 = vmatpush3.msra.mxu0 %v21070_v59 }
0x3139   :  { %18503 = vmatprep.subr.mxu0 %v21077_v31 }
0x313a   :  { %18504 = vmatpush3.msra.mxu0 %v21077_v31 }
0x313b   :  { %18526 = vmatprep.subr.mxu0 %v21084_v21 }
0x31f3   :  { %v18496_v60 = vpop.f32.mrf.mxu0 }
0x31f5   :  { %v5376_v49 = vpop.f32.mrf.mxu0 }
0x31f6   :  { %18505 = vmatprep.mubr.msk.f32.mxu0 %vm297_vm3, %v5376_v49 }
0x31f7   :  { %18506 = vmatmul.mubr.msk.f32.vlgmr.msra.gmra.mxu0 %vm297_vm3, %v18496_v60 }
0x31f8   :  { %18527 = vmatpush3.msra.mxu0 %v21084_v21  ;;  %18534 = vmatprep.mubr.msk.f32.mxu0 %vm297_vm3, %v5051_v14 }
0x31f9   :  { %18528 = vmatprep.subr.mxu0 %v21094_v13 }
0x31fa   :  { %18529 = vmatpush3.msra.mxu0 %v21094_v13 }
0x31fb   :  { %18530 = vmatprep.subr.mxu0 %v21101_v24 }
0x31fc   :  { %18531 = vmatpush3.msra.mxu0 %v21101_v24 }
0x31fd   :  { %18532 = vmatprep.subr.mxu0 %v21108_v15 }
0x31fe   :  { %18533 = vmatpush3.msra.mxu0 %v21108_v15 }
0x31ff   :  { %18535 = vmatmul.mubr.msk.f32.vlgmr.msra.gmra.mxu0 %vm297_vm3, %v18466_v36  ;;  %18544 = vmatprep.subr.mxu0 %v21117_v26 }
0x3200   :  { %18545 = vmatpush3.msra.mxu0 %v21117_v26 }
0x3201   :  { %18546 = vmatprep.subr.mxu0 %v21124_v3 }
0x3202   :  { %18547 = vmatpush3.msra.mxu0 %v21124_v3 }
0x3203   :  { %18548 = vmatprep.subr.mxu0 %v21131_v33 }
0x3204   :  { %18549 = vmatpush3.msra.mxu0 %v21131_v33 }
0x3205   :  { %18550 = vmatprep.subr.mxu0 %v21138_v34 }
0x3206   :  { %18551 = vmatpush3.msra.mxu0 %v21138_v34 }
0x3207   :  { %18569 = vmatprep.subr.msk.mxu0 %vm214_vm1, %v21485_v16 }
0x32b7   :  { %v18507_v37 = vpop.f32.mrf.mxu0 }
0x32b8   :  { %5470 = vrot.lane.b32.xlu0 %v18507_v37, %s20278_s25 }
0x32b9   :  { %v5457_v59 = vpop.f32.mrf.mxu0 }
0x32ba   :  { %5468 = vrot.lane.b32.xlu1 %v5457_v59, %s20278_s25 }
0x332a   :  { %v5471_v31 = vpop.permute.xlu0 %5470 }
0x332b   :  { %v5475_v21 = vadd.f32 %v5471_v31, %v5216_v53 }
0x332c   :  { %v5469_v13 = vpop.permute.xlu1 %5468 }
0x332d   :  { %v16749_v24 = vmul.f32 -1.442695, %v5475_v21  ;;  %v5474_v15 = vadd.f32 %v5469_v13, %v5211_v5 }
0x332f   :  { %19763 = vpow2.f32 %v16749_v24  ;;  %v16748_v26 = vmul.f32 -1.442695, %v5474_v15 }
0x3331   :  { %19765 = vpow2.f32 %v16748_v26 }
0x333c   :  { %v19764_v3 = vpop.eup %19763 }
0x333d   :  { %v5483_v33 = vadd.f32 1.0, %v19764_v3 }
0x333e   :  { %v19766_v34 = vpop.eup %19765 }
0x333f   :  { %19767 = vrcp.f32 %v5483_v33  ;;  %v5482_v41 = vadd.f32 1.0, %v19766_v34 }
0x3341   :  { %19769 = vrcp.f32 %v5482_v41 }
0x334c   :  { %v19768_v32 = vpop.eup %19767 }
0x334d   :  { %5496 = vrot.lane.b32.xlu0 %v19768_v32, %s20279_s24 }
0x334e   :  { %v19770_v19 = vpop.eup %19769 }
0x334f   :  { %5494 = vrot.lane.b32.xlu1 %v19770_v19, %s20279_s24 }
0x33bf   :  { %v5497_v61 = vpop.permute.xlu0 %5496 }
0x33c0   :  { %v5501_v44 = vmul.f32 %v5497_v61, %v5491_v63  ;;  %v16766_v61 = vld [vmem:[%s23744_s4 + $0x60] sm:$0xff] }
0x33c1   :  { %v5495_v48 = vpop.permute.xlu1 %5494 }
0x33c2   :  { %v21497_v56 = vadd.f32 %v5501_v44, %v5489_v27  ;;  %v5500_v43 = vmul.f32 %v5495_v48, %v5490_v29  ;;  %v21584_v27 = vld [vmem:[%s23746_s1 + $0x18] sm:$0xff]  ;;  %v21593_v44 = vld [vmem:[%s23746_s1 + $0x10] sm:$0xff]  ;;  %v21600_v29 = vld [vmem:[%s23746_s1 + $0x8] sm:$0xff] }
0x33c3   :  { %v21607_v48 = vld [vmem:[%s23746_s1] sm:$0xff] }
0x33c4   :  { %v21501_v17 = vadd.f32 %v5500_v43, %v5488_v1  ;;  %5508 = vrot.lane.b32.xlu0 %v21497_v56, %s20279_s24 }
0x33c6   :  { %5506 = vrot.lane.b32.xlu1 %v21501_v17, %s20279_s24 }
0x3436   :  { %v21507_v36 = vpop.permute.xlu0 %5508 }
0x3437   :  { %18508 = vmatprep.subr.mxu1 %v21507_v36 }
0x3438   :  { %18509 = vmatpush3.msra.mxu1 %v21507_v36  ;;  %v21511_v28 = vpop.permute.xlu1 %5506 }
0x3439   :  { %18510 = vmatprep.subr.mxu1 %v21511_v28 }
0x343a   :  { %18511 = vmatpush3.msra.mxu1 %v21511_v28 }
0x343b   :  { %18513 = vmatmul.mubr.msk.f32.vlgmr.msra.gmra.mxu1 %vm122_vm0, %v21414_v12  ;;  %18515 = vmatprep.subr.mxu1 %v21177_v46 }
0x343c   :  { %18516 = vmatpush3.msra.mxu1 %v21177_v46  ;;  %v18536_v46 = vpop.f32.mrf.mxu0 }
0x343d   :  { %18517 = vmatprep.subr.mxu1 %v21184_v38 }
0x343e   :  { %18518 = vmatpush3.msra.mxu1 %v21184_v38  ;;  %v5740_v40 = vpop.f32.mrf.mxu0 }
0x343f   :  { %18519 = vmatprep.subr.mxu1 %v21191_v39 }
0x3440   :  { %18520 = vmatpush3.msra.mxu1 %v21191_v39 }
0x3441   :  { %18521 = vmatprep.subr.mxu1 %v21198_v51 }
0x3442   :  { %18522 = vmatpush3.msra.mxu1 %v21198_v51 }
0x34fb   :  { %v21525_v7 = vpop.f32.mrf.mxu1 }
0x34fd   :  { %v21527_v14 = vpop.f32.mrf.mxu1 }
0x34fe   :  { %18523 = vmatprep.mubr.msk.f32.mxu1 %vm297_vm3, %v21527_v14 }
0x34ff   :  { %18524 = vmatmul.mubr.msk.f32.vlgmr.msra.gmra.mxu1 %vm297_vm3, %v21525_v7 }
0x3500   :  { %18541 = vmatprep.mubr.msk.f32.mxu1 %vm122_vm0, %v21434_v0 }
0x35bf   :  { %v18525_v38 = vpop.f32.mrf.mxu1 }
0x35c0   :  { %v5665_v39 = vadd.f32 %v21215_v23, %v18525_v38 }
0x35c1   :  { %v5659_v54 = vpop.f32.mrf.mxu1 }
0x35c2   :  { %v5750_v62 = vadd.f32 %v18536_v46, %v5665_v39  ;;  %v5660_v51 = vadd.f32 %v21221_v35, %v5659_v54 }
0x35c4   :  { %v16757_v30 = vmul.f32 -1.442695, %v5750_v62  ;;  %v5749_v53 = vadd.f32 %v5740_v40, %v5660_v51  ;;  %v21633_v40 = vld [vmem:[%s23718_s5] sm:$0xff] }
0x35c6   :  { %19771 = vpow2.f32 %v16757_v30  ;;  %v16756_v25 = vmul.f32 -1.442695, %v5749_v53 }
0x35c8   :  { %19773 = vpow2.f32 %v16756_v25 }
0x35d3   :  { %v19772_v9 = vpop.eup %19771 }
0x35d4   :  { %v5758_v5 = vadd.f32 1.0, %v19772_v9 }
0x35d5   :  { %v19774_v45 = vpop.eup %19773 }
0x35d6   :  { %19775 = vrcp.f32 %v5758_v5  ;;  %v5757_v50 = vadd.f32 1.0, %v19774_v45 }
0x35d8   :  { %19777 = vrcp.f32 %v5757_v50 }
0x35e3   :  { %v19776_v22 = vpop.eup %19775 }
0x35e4   :  { %v5764_v11 = vmul.f32 %v19776_v22, %v21400_v6  ;;  %v5946_v13 = vsub.f32 1.0, %v19776_v22  ;;  %v5944_v15 = vmul.f32 %v19776_v22, %v21391_v42 }
0x35e5   :  { %v19778_v23 = vpop.eup %19777 }
0x35e6   :  { %18537 = vmatprep.subr.mxu1 %v5764_v11  ;;  %v5763_v20 = vmul.f32 %v19778_v23, %v21404_v57  ;;  %v5945_v3 = vsub.f32 1.0, %v19778_v23  ;;  %v5943_v41 = vmul.f32 %v19778_v23, %v21394_v4  ;;  %v16767_v4 = vld [vmem:[%s23744_s4 + $0x68] sm:$0xff] }
0x35e7   :  { %18538 = vmatpush3.msra.mxu1 %v5764_v11 }
0x35e8   :  { %18539 = vmatprep.subr.mxu1 %v5763_v20 }
0x35e9   :  { %18540 = vmatpush3.msra.mxu1 %v5763_v20 }
0x35ea   :  { %18542 = vmatmul.mubr.msk.f32.vlgmr.msra.gmra.mxu1 %vm122_vm0, %v21414_v12 }
0x35eb   :  { %18559 = vmatprep.mubr.msk.f32.mxu1 %vm122_vm0, %v21434_v0 }
0x36aa   :  { %v18543_v35 = vpop.f32.mrf.mxu1 }
0x36ac   :  { %v5831_v58 = vpop.f32.mrf.mxu1 }
0x36ad   :  { %18552 = vmatprep.mubr.msk.f32.mxu0 %vm297_vm3, %v5831_v58 }
0x36ae   :  { %18553 = vmatmul.mubr.msk.f32.vlgmr.msra.gmra.mxu0 %vm297_vm3, %v18543_v35 }
0x36af   :  { %18570 = vmatpush3.msk.msra.mxu0 %vm214_vm1, %v21485_v16 }
0x376e   :  { %v18554_v6 = vpop.f32.mrf.mxu0 }
0x376f   :  { %5925 = vrot.lane.b32.xlu0 %v18554_v6, %s20278_s25  ;;  %v21652_v6 = vld [vmem:[%s23747_s27 + $0x18] sm:$0xff] }
0x3770   :  { %v5912_v57 = vpop.f32.mrf.mxu0 }
0x3771   :  { %5923 = vrot.lane.b32.xlu1 %v5912_v57, %s20278_s25  ;;  %v21673_v57 = vld [vmem:[%s23747_s27] sm:$0xff] }
0x37e1   :  { %v5926_v2 = vpop.permute.xlu0 %5925 }
0x37e2   :  { %v5930_v55 = vadd.f32 %v5926_v2, %v5665_v39  ;;  %v21680_v2 = vld [vmem:[%s23720_s7 + $0x18] sm:$0xff] }
0x37e3   :  { %v5924_v18 = vpop.permute.xlu1 %5923 }
0x37e4   :  { %v16763_v47 = vmul.f32 -1.442695, %v5930_v55  ;;  %v5929_v52 = vadd.f32 %v5924_v18, %v5660_v51 }
0x37e6   :  { %19779 = vpow2.f32 %v16763_v47  ;;  %v16762_v8 = vmul.f32 -1.442695, %v5929_v52  ;;  %v21690_v47 = vld [vmem:[%s23720_s7 + $0x10] sm:$0xff]  ;;  %v21697_v52 = vld [vmem:[%s23720_s7 + $0x8] sm:$0xff] }
0x37e8   :  { %19781 = vpow2.f32 %v16762_v8  ;;  %v21704_v8 = vld [vmem:[%s23720_s7] sm:$0xff] }
0x37f3   :  { %v19780_v60 = vpop.eup %19779 }
0x37f4   :  { %v5938_v49 = vadd.f32 1.0, %v19780_v60  ;;  %v21713_v60 = vld [vmem:[%s23721_s8 + $0x18] sm:$0xff] }
0x37f5   :  { %v19782_v37 = vpop.eup %19781 }
0x37f6   :  { %19783 = vrcp.f32 %v5938_v49  ;;  %v5937_v59 = vadd.f32 1.0, %v19782_v37  ;;  %v21720_v49 = vld [vmem:[%s23721_s8 + $0x10] sm:$0xff]  ;;  %v21727_v37 = vld [vmem:[%s23721_s8 + $0x8] sm:$0xff] }
0x37f8   :  { %19785 = vrcp.f32 %v5937_v59  ;;  %v21734_v59 = vld [vmem:[%s23721_s8] sm:$0xff] }
0x3803   :  { %v19784_v31 = vpop.eup %19783 }
0x3804   :  { %5951 = vrot.lane.b32.xlu0 %v19784_v31, %s20279_s24 }
0x3805   :  { %v19786_v21 = vpop.eup %19785 }
0x3806   :  { %5949 = vrot.lane.b32.xlu1 %v19786_v21, %s20279_s24 }
0x3876   :  { %v5952_v24 = vpop.permute.xlu0 %5951 }
0x3877   :  { %v5956_v26 = vmul.f32 %v5952_v24, %v5946_v13 }
0x3878   :  { %v5950_v33 = vpop.permute.xlu1 %5949 }
0x3879   :  { %v21552_v34 = vadd.f32 %v5956_v26, %v5944_v15  ;;  %v5955_v32 = vmul.f32 %v5950_v33, %v5945_v3 }
0x387b   :  { %v21555_v19 = vadd.f32 %v5955_v32, %v5943_v41  ;;  %5963 = vrot.lane.b32.xlu0 %v21552_v34, %s20279_s24 }
0x387d   :  { %5961 = vrot.lane.b32.xlu1 %v21555_v19, %s20279_s24 }
0x38ed   :  { %v21561_v63 = vpop.permute.xlu0 %5963 }
0x38ee   :  { %18555 = vmatprep.subr.mxu1 %v21561_v63 }
0x38ef   :  { %18556 = vmatpush3.msra.mxu1 %v21561_v63  ;;  %v21565_v42 = vpop.permute.xlu1 %5961 }
0x38f0   :  { %18557 = vmatprep.subr.mxu1 %v21565_v42 }
0x38f1   :  { %18558 = vmatpush3.msra.mxu1 %v21565_v42 }
0x38f2   :  { %18560 = vmatmul.mubr.msk.f32.vlgmr.msra.gmra.mxu1 %vm122_vm0, %v21414_v12  ;;  %18562 = vmatprep.subr.mxu1 %v16767_v4 }
0x38f3   :  { %18563 = vmatpush3.msra.mxu1 %v16767_v4  ;;  %18566 = vmatprep.mubr.msk.f32.mxu1 %vm122_vm0, %v21434_v0 }
0x38f4   :  { %18564 = vmatprep.subr.mxu1 %v16766_v61 }
0x38f5   :  { %18565 = vmatpush3.msra.mxu1 %v16766_v61 }
0x38f6   :  { %18567 = vmatmul.mubr.msk.f32.vlgmr.msra.gmra.mxu1 %vm122_vm0, %v21414_v12  ;;  %18574 = vmatprep.subr.mxu1 %v21584_v27 }
0x38f7   :  { %18575 = vmatpush3.msra.mxu1 %v21584_v27  ;;  %18582 = vmatprep.mubr.msk.f32.mxu1 %vm297_vm3, %v21527_v14 }
0x38f8   :  { %18576 = vmatprep.subr.mxu1 %v21593_v44 }
0x38f9   :  { %18577 = vmatpush3.msra.mxu1 %v21593_v44 }
0x38fa   :  { %18578 = vmatprep.subr.mxu1 %v21600_v29 }
0x38fb   :  { %18579 = vmatpush3.msra.mxu1 %v21600_v29 }
0x38fc   :  { %18580 = vmatprep.subr.mxu1 %v21607_v48 }
0x38fd   :  { %18581 = vmatpush3.msra.mxu1 %v21607_v48 }
0x38fe   :  { %18583 = vmatmul.mubr.msk.f32.vlgmr.msra.gmra.mxu1 %vm297_vm3, %v21525_v7  ;;  %v21624_v7 = vld [vmem:[%s23718_s5 + $0x8] sm:$0xff] }
0x38ff   :  { %18607 = vmatprep.mubr.msk.f32.mxu1 %vm122_vm0, %v21434_v0 }
0x39b2   :  { %v21615_v1 = vpop.f32.mrf.mxu1 }
0x39b4   :  { %v6033_v43 = vpop.f32.mrf.mxu1 }
0x39b6   :  { %v18568_v14 = vpop.f32.mrf.mxu1 }
0x39b8   :  { %v6111_v46 = vpop.f32.mrf.mxu1 }
0x39b9   :  { %18571 = vmatprep.mubr.msk.f32.mxu0 %vm207_vm2, %v6111_v46 }
0x39ba   :  { %18572 = vmatmul.mubr.msk.f32.vlgmr.msra.gmra.mxu0 %vm207_vm2, %v18568_v14 }
0x39bb   :  { %18589 = vmatprep.mubr.msk.f32.mxu0 %vm122_vm0, %v21434_v0 }
0x39be   :  { %v18584_v38 = vpop.f32.mrf.mxu1 }
0x39c0   :  { %v6267_v53 = vpop.f32.mrf.mxu1 }
0x3a7a   :  { %v18573_v39 = vpop.f32.mrf.mxu0 }
0x3a7b   :  { %v21627_v54 = vadd.f32 %v21624_v7, %v18573_v39 }
0x3a7c   :  { %v6192_v62 = vpop.f32.mrf.mxu0 }
0x3a7d   :  { %v6277_v51 = vadd.f32 %v18584_v38, %v21627_v54  ;;  %v21636_v30 = vadd.f32 %v21633_v40, %v6192_v62 }
0x3a7f   :  { %v16776_v25 = vmul.f32 -1.442695, %v6277_v51  ;;  %v6276_v9 = vadd.f32 %v6267_v53, %v21636_v30 }
0x3a81   :  { %19787 = vpow2.f32 %v16776_v25  ;;  %v16775_v5 = vmul.f32 -1.442695, %v6276_v9 }
0x3a83   :  { %19789 = vpow2.f32 %v16775_v5  ;;  %v21780_v5 = vld [vmem:[%s23719_s6 + $0x10] sm:$0xff] }
0x3a8e   :  { %v19788_v45 = vpop.eup %19787 }
0x3a8f   :  { %v6285_v50 = vadd.f32 1.0, %v19788_v45  ;;  %v21787_v45 = vld [vmem:[%s23719_s6 + $0x8] sm:$0xff] }
0x3a90   :  { %v19790_v22 = vpop.eup %19789 }
0x3a91   :  { %19791 = vrcp.f32 %v6285_v50  ;;  %v6284_v11 = vadd.f32 1.0, %v19790_v22  ;;  %v21794_v50 = vld [vmem:[%s23719_s6] sm:$0xff] }
0x3a93   :  { %19793 = vrcp.f32 %v6284_v11 }
0x3a9e   :  { %v21639_v23 = vpop.eup %19791 }
0x3a9f   :  { %v6291_v20 = vmul.f32 %v21639_v23, %v21507_v36  ;;  %v21659_v36 = vld [vmem:[%s23747_s27 + $0x10] sm:$0xff]  ;;  %v6473_v14 = vsub.f32 1.0, %v21639_v23  ;;  %v6471_v38 = vmul.f32 %v21639_v23, %v21497_v56 }
0x3aa0   :  { %v21643_v35 = vpop.eup %19793 }
0x3aa1   :  { %18585 = vmatprep.subr.mxu0 %v6291_v20  ;;  %v6290_v58 = vmul.f32 %v21643_v35, %v21511_v28  ;;  %v21666_v28 = vld [vmem:[%s23747_s27 + $0x8] sm:$0xff] }
0x3aa2   :  { %18586 = vmatpush3.msra.mxu0 %v6291_v20 }
0x3aa3   :  { %18587 = vmatprep.subr.mxu0 %v6290_v58 }
0x3aa4   :  { %18588 = vmatpush3.msra.mxu0 %v6290_v58 }
0x3aa5   :  { %18590 = vmatmul.mubr.msk.f32.vlgmr.msra.gmra.mxu0 %vm122_vm0, %v21414_v12  ;;  %18592 = vmatprep.subr.mxu0 %v21652_v6 }
0x3aa6   :  { %18593 = vmatpush3.msra.mxu0 %v21652_v6 }
0x3aa7   :  { %18594 = vmatprep.subr.mxu0 %v21659_v36 }
0x3aa8   :  { %18595 = vmatpush3.msra.mxu0 %v21659_v36 }
0x3aa9   :  { %18596 = vmatprep.subr.mxu0 %v21666_v28 }
0x3aaa   :  { %18597 = vmatpush3.msra.mxu0 %v21666_v28 }
0x3aab   :  { %18598 = vmatprep.subr.mxu0 %v21673_v57 }
0x3aac   :  { %18599 = vmatpush3.msra.mxu0 %v21673_v57 }
0x3aad   :  { %18621 = vmatprep.subr.mxu0 %v21680_v2 }
0x3b65   :  { %v18591_v55 = vpop.f32.mrf.mxu0 }
0x3b67   :  { %v6358_v18 = vpop.f32.mrf.mxu0 }
0x3b68   :  { %18600 = vmatprep.mubr.msk.f32.mxu0 %vm297_vm3, %v6358_v18 }
0x3b69   :  { %18601 = vmatmul.mubr.msk.f32.vlgmr.msra.gmra.mxu0 %vm297_vm3, %v18591_v55 }
0x3b6a   :  { %18622 = vmatpush3.msra.mxu0 %v21680_v2  ;;  %18629 = vmatprep.mubr.msk.f32.mxu0 %vm297_vm3, %v6033_v43 }
0x3b6b   :  { %18623 = vmatprep.subr.mxu0 %v21690_v47 }
0x3b6c   :  { %18624 = vmatpush3.msra.mxu0 %v21690_v47 }
0x3b6d   :  { %18625 = vmatprep.subr.mxu0 %v21697_v52 }
0x3b6e   :  { %18626 = vmatpush3.msra.mxu0 %v21697_v52 }
0x3b6f   :  { %18627 = vmatprep.subr.mxu0 %v21704_v8 }
0x3b70   :  { %18628 = vmatpush3.msra.mxu0 %v21704_v8 }
0x3b71   :  { %18630 = vmatmul.mubr.msk.f32.vlgmr.msra.gmra.mxu0 %vm297_vm3, %v21615_v1  ;;  %18639 = vmatprep.subr.mxu0 %v21713_v60 }
0x3b72   :  { %18640 = vmatpush3.msra.mxu0 %v21713_v60 }
0x3b73   :  { %18641 = vmatprep.subr.mxu0 %v21720_v49 }
0x3b74   :  { %18642 = vmatpush3.msra.mxu0 %v21720_v49 }
0x3b75   :  { %18643 = vmatprep.subr.mxu0 %v21727_v37 }
0x3b76   :  { %18644 = vmatpush3.msra.mxu0 %v21727_v37 }
0x3b77   :  { %18645 = vmatprep.subr.mxu0 %v21734_v59 }
0x3b78   :  { %18646 = vmatpush3.msra.mxu0 %v21734_v59 }
0x3b79   :  { %18664 = vmatprep.subr.msk.mxu0 %vm214_vm1, %v21485_v16 }
0x3c29   :  { %v18602_v31 = vpop.f32.mrf.mxu0 }
0x3c2a   :  { %6452 = vrot.lane.b32.xlu0 %v18602_v31, %s20278_s25  ;;  %v21817_v31 = vld [vmem:[%s23722_s9] sm:$0xff] }
0x3c2b   :  { %v6439_v21 = vpop.f32.mrf.mxu0 }
0x3c2c   :  { %6450 = vrot.lane.b32.xlu1 %v6439_v21, %s20278_s25 }
0x3c31   :  { %v18631_v23 = vpop.f32.mrf.mxu0 }
0x3c9c   :  { %v6453_v13 = vpop.permute.xlu0 %6452 }
0x3c9d   :  { %v6457_v24 = vadd.f32 %v6453_v13, %v21627_v54  ;;  %v6472_v54 = vsub.f32 1.0, %v21643_v35  ;;  %v6722_v13 = vpop.f32.mrf.mxu0 }
0x3c9e   :  { %v6451_v15 = vpop.permute.xlu1 %6450 }
0x3c9f   :  { %v16782_v26 = vmul.f32 -1.442695, %v6457_v24  ;;  %v6456_v3 = vadd.f32 %v6451_v15, %v21636_v30  ;;  %v6470_v30 = vmul.f32 %v21643_v35, %v21501_v17  ;;  %v21773_v17 = vld [vmem:[%s23719_s6 + $0x18] sm:$0xff]  ;;  %v21811_v35 = vld [vmem:[%s23722_s9 + $0x8] sm:$0xff] }
0x3ca1   :  { %19795 = vpow2.f32 %v16782_v26  ;;  %v16781_v33 = vmul.f32 -1.442695, %v6456_v3 }
0x3ca3   :  { %19797 = vpow2.f32 %v16781_v33 }
0x3cae   :  { %v19796_v41 = vpop.eup %19795 }
0x3caf   :  { %v6465_v32 = vadd.f32 1.0, %v19796_v41 }
0x3cb0   :  { %v19798_v4 = vpop.eup %19797 }
0x3cb1   :  { %19799 = vrcp.f32 %v6465_v32  ;;  %v6464_v61 = vadd.f32 1.0, %v19798_v4 }
0x3cb3   :  { %19801 = vrcp.f32 %v6464_v61 }
0x3cbe   :  { %v19800_v1 = vpop.eup %19799 }
0x3cbf   :  { %6478 = vrot.lane.b32.xlu0 %v19800_v1, %s20279_s24 }
0x3cc0   :  { %v19802_v43 = vpop.eup %19801 }
0x3cc1   :  { %6476 = vrot.lane.b32.xlu1 %v19802_v43, %s20279_s24 }
0x3d31   :  { %v6479_v46 = vpop.permute.xlu0 %6478 }
0x3d32   :  { %v6483_v39 = vmul.f32 %v6479_v46, %v6473_v14 }
0x3d33   :  { %v6477_v62 = vpop.permute.xlu1 %6476 }
0x3d34   :  { %v21750_v51 = vadd.f32 %v6483_v39, %v6471_v38  ;;  %v6482_v53 = vmul.f32 %v6477_v62, %v6472_v54 }
0x3d36   :  { %v21754_v25 = vadd.f32 %v6482_v53, %v6470_v30  ;;  %6490 = vrot.lane.b32.xlu0 %v21750_v51, %s20279_s24 }
0x3d38   :  { %6488 = vrot.lane.b32.xlu1 %v21754_v25, %s20279_s24 }
0x3da8   :  { %v21760_v9 = vpop.permute.xlu0 %6490 }
0x3da9   :  { %18603 = vmatprep.subr.mxu1 %v21760_v9 }
0x3daa   :  { %18604 = vmatpush3.msra.mxu1 %v21760_v9  ;;  %v21764_v56 = vpop.permute.xlu1 %6488 }
0x3dab   :  { %18605 = vmatprep.subr.mxu1 %v21764_v56 }
0x3dac   :  { %18606 = vmatpush3.msra.mxu1 %v21764_v56 }
0x3dad   :  { %18608 = vmatmul.mubr.msk.f32.vlgmr.msra.gmra.mxu1 %vm122_vm0, %v21414_v12  ;;  %18610 = vmatprep.subr.mxu1 %v21773_v17 }
0x3dae   :  { %18611 = vmatpush3.msra.mxu1 %v21773_v17 }
0x3daf   :  { %18612 = vmatprep.subr.mxu1 %v21780_v5 }
0x3db0   :  { %18613 = vmatpush3.msra.mxu1 %v21780_v5 }
0x3db1   :  { %18614 = vmatprep.subr.mxu1 %v21787_v45 }
0x3db2   :  { %18615 = vmatpush3.msra.mxu1 %v21787_v45 }
0x3db3   :  { %18616 = vmatprep.subr.mxu1 %v21794_v50 }
0x3db4   :  { %18617 = vmatpush3.msra.mxu1 %v21794_v50 }
0x3e6d   :  { %v21798_v22 = vpop.f32.mrf.mxu1 }
0x3e6f   :  { %v21800_v11 = vpop.f32.mrf.mxu1 }
0x3e70   :  { %18618 = vmatprep.mubr.msk.f32.mxu1 %vm297_vm3, %v21800_v11 }
0x3e71   :  { %18619 = vmatmul.mubr.msk.f32.vlgmr.msra.gmra.mxu1 %vm297_vm3, %v21798_v22 }
0x3e72   :  { %18636 = vmatprep.mubr.msk.f32.mxu1 %vm122_vm0, %v21434_v0 }
0x3f31   :  { %v18620_v20 = vpop.f32.mrf.mxu1 }
0x3f32   :  { %v6647_v58 = vadd.f32 %v21811_v35, %v18620_v20 }
0x3f33   :  { %v6641_v55 = vpop.f32.mrf.mxu1 }
0x3f34   :  { %v6732_v18 = vadd.f32 %v18631_v23, %v6647_v58  ;;  %v6642_v21 = vadd.f32 %v21817_v31, %v6641_v55 }
0x3f36   :  { %v16790_v24 = vmul.f32 -1.442695, %v6732_v18  ;;  %v6731_v15 = vadd.f32 %v6722_v13, %v6642_v21 }
0x3f38   :  { %19803 = vpow2.f32 %v16790_v24  ;;  %v16789_v26 = vmul.f32 -1.442695, %v6731_v15 }
0x3f3a   :  { %19805 = vpow2.f32 %v16789_v26 }
0x3f45   :  { %v19804_v3 = vpop.eup %19803 }
0x3f46   :  { %v6740_v33 = vadd.f32 1.0, %v19804_v3 }
0x3f47   :  { %v19806_v41 = vpop.eup %19805 }
0x3f48   :  { %19807 = vrcp.f32 %v6740_v33  ;;  %v6739_v32 = vadd.f32 1.0, %v19806_v41 }
0x3f4a   :  { %19809 = vrcp.f32 %v6739_v32 }
0x3f55   :  { %v19808_v4 = vpop.eup %19807 }
0x3f56   :  { %v6746_v61 = vmul.f32 %v19808_v4, %v21561_v63  ;;  %v6928_v24 = vsub.f32 1.0, %v19808_v4  ;;  %v6926_v15 = vmul.f32 %v19808_v4, %v21552_v34  ;;  %v16799_v4 = vld [vmem:[%s23744_s4 + $0x70] sm:$0xff] }
0x3f57   :  { %v19810_v1 = vpop.eup %19809 }
0x3f58   :  { %18632 = vmatprep.subr.mxu1 %v6746_v61  ;;  %v6745_v43 = vmul.f32 %v19810_v1, %v21565_v42  ;;  %v6927_v26 = vsub.f32 1.0, %v19810_v1  ;;  %v6925_v41 = vmul.f32 %v19810_v1, %v21555_v19  ;;  %v16800_v19 = vld [vmem:[%s23744_s4 + $0x78] sm:$0xff] }
0x3f59   :  { %18633 = vmatpush3.msra.mxu1 %v6746_v61 }
0x3f5a   :  { %18634 = vmatprep.subr.mxu1 %v6745_v43 }
0x3f5b   :  { %18635 = vmatpush3.msra.mxu1 %v6745_v43 }
0x3f5c   :  { %18637 = vmatmul.mubr.msk.f32.vlgmr.msra.gmra.mxu1 %vm122_vm0, %v21414_v12 }
0x3f5d   :  { %18654 = vmatprep.mubr.msk.f32.mxu1 %vm122_vm0, %v21434_v0 }
0x401c   :  { %v18638_v14 = vpop.f32.mrf.mxu1 }
0x401e   :  { %v6813_v46 = vpop.f32.mrf.mxu1 }
0x401f   :  { %18647 = vmatprep.mubr.msk.f32.mxu0 %vm297_vm3, %v6813_v46 }
0x4020   :  { %18648 = vmatmul.mubr.msk.f32.vlgmr.msra.gmra.mxu0 %vm297_vm3, %v18638_v14 }
0x4021   :  { %18665 = vmatpush3.msk.msra.mxu0 %vm214_vm1, %v21485_v16 }
0x40e0   :  { %v18649_v63 = vpop.f32.mrf.mxu0 }
0x40e1   :  { %6907 = vrot.lane.b32.xlu0 %v18649_v63, %s20278_s25 }
0x40e2   :  { %v6894_v42 = vpop.f32.mrf.mxu0 }
0x40e3   :  { %6905 = vrot.lane.b32.xlu1 %v6894_v42, %s20278_s25 }
0x4153   :  { %v6908_v38 = vpop.permute.xlu0 %6907 }
0x4154   :  { %v6912_v39 = vadd.f32 %v6908_v38, %v6647_v58 }
0x4155   :  { %v6906_v54 = vpop.permute.xlu1 %6905 }
0x4156   :  { %v16796_v62 = vmul.f32 -1.442695, %v6912_v39  ;;  %v6911_v30 = vadd.f32 %v6906_v54, %v6642_v21 }
0x4158   :  { %19811 = vpow2.f32 %v16796_v62  ;;  %v16795_v53 = vmul.f32 -1.442695, %v6911_v30 }
0x415a   :  { %19813 = vpow2.f32 %v16795_v53 }
0x4165   :  { %v19812_v23 = vpop.eup %19811 }
0x4166   :  { %v6920_v20 = vadd.f32 1.0, %v19812_v23 }
0x4167   :  { %v19814_v55 = vpop.eup %19813 }
0x4168   :  { %19815 = vrcp.f32 %v6920_v20  ;;  %v6919_v18 = vadd.f32 1.0, %v19814_v55 }
0x416a   :  { %19817 = vrcp.f32 %v6919_v18 }
0x4175   :  { %v19816_v16 = vpop.eup %19815 }
0x4176   :  { %6933 = vrot.lane.b32.xlu0 %v19816_v16, %s20279_s24 }
0x4177   :  { %v19818_v13 = vpop.eup %19817 }
0x4178   :  { %6931 = vrot.lane.b32.xlu1 %v19818_v13, %s20279_s24 }
0x41e8   :  { %v6934_v58 = vpop.permute.xlu0 %6933 }
0x41e9   :  { %v6938_v21 = vmul.f32 %v6934_v58, %v6928_v24 }
0x41ea   :  { %v6932_v3 = vpop.permute.xlu1 %6931 }
0x41eb   :  { %v21835_v33 = vadd.f32 %v6938_v21, %v6926_v15  ;;  %v6937_v32 = vmul.f32 %v6932_v3, %v6927_v26 }
0x41ed   :  { %v21838_v61 = vadd.f32 %v6937_v32, %v6925_v41  ;;  %6945 = vrot.lane.b32.xlu0 %v21835_v33, %s20279_s24 }
0x41ef   :  { %6943 = vrot.lane.b32.xlu1 %v21838_v61, %s20279_s24 }
0x425f   :  { %v21844_v43 = vpop.permute.xlu0 %6945 }
0x4260   :  { %18650 = vmatprep.subr.mxu1 %v21844_v43 }
0x4261   :  { %18651 = vmatpush3.msra.mxu1 %v21844_v43  ;;  %v21848_v34 = vpop.permute.xlu1 %6943 }
0x4262   :  { %18652 = vmatprep.subr.mxu1 %v21848_v34 }
0x4263   :  { %18653 = vmatpush3.msra.mxu1 %v21848_v34 }
0x4264   :  { %18655 = vmatmul.mubr.msk.f32.vlgmr.msra.gmra.mxu1 %vm122_vm0, %v21414_v12  ;;  %18657 = vmatprep.subr.mxu1 %v16800_v19 }
0x4265   :  { %18658 = vmatpush3.msra.mxu1 %v16800_v19  ;;  %18661 = vmatprep.mubr.msk.f32.mxu1 %vm122_vm0, %v21434_v0 }
0x4266   :  { %18659 = vmatprep.subr.mxu1 %v16799_v4 }
0x4267   :  { %18660 = vmatpush3.msra.mxu1 %v16799_v4 }
0x4268   :  { %18662 = vmatmul.mubr.msk.f32.vlgmr.msra.gmra.mxu1 %vm122_vm0, %v21414_v12  ;;  %18669 = vmatprep.subr.mxu1 %v21584_v27 }
0x4269   :  { %18670 = vmatpush3.msra.mxu1 %v21584_v27  ;;  %18677 = vmatprep.mubr.msk.f32.mxu1 %vm297_vm3, %v21800_v11 }
0x426a   :  { %18671 = vmatprep.subr.mxu1 %v21593_v44 }
0x426b   :  { %18672 = vmatpush3.msra.mxu1 %v21593_v44 }
0x426c   :  { %18673 = vmatprep.subr.mxu1 %v21600_v29 }
0x426d   :  { %18674 = vmatpush3.msra.mxu1 %v21600_v29 }
0x426e   :  { %18675 = vmatprep.subr.mxu1 %v21607_v48 }
0x426f   :  { %18676 = vmatpush3.msra.mxu1 %v21607_v48 }
0x4270   :  { %18678 = vmatmul.mubr.msk.f32.vlgmr.msra.gmra.mxu1 %vm297_vm3, %v21798_v22 }
0x4271   :  { %18702 = vmatprep.mubr.msk.f32.mxu1 %vm122_vm0, %v21434_v0 }
0x4324   :  { %v18656_v27 = vpop.f32.mrf.mxu1 }
0x4326   :  { %v7015_v11 = vpop.f32.mrf.mxu1 }
0x4328   :  { %v18663_v1 = vpop.f32.mrf.mxu1 }
0x432a   :  { %v7093_v14 = vpop.f32.mrf.mxu1 }
0x432b   :  { %18666 = vmatprep.mubr.msk.f32.mxu0 %vm207_vm2, %v7093_v14 }
0x432c   :  { %18667 = vmatmul.mubr.msk.f32.vlgmr.msra.gmra.mxu0 %vm207_vm2, %v18663_v1 }
0x432d   :  { %18684 = vmatprep.mubr.msk.f32.mxu0 %vm122_vm0, %v21434_v0 }
0x4330   :  { %v18679_v44 = vpop.f32.mrf.mxu1 }
0x4332   :  { %v7249_v42 = vpop.f32.mrf.mxu1 }
0x43ec   :  { %v18668_v29 = vpop.f32.mrf.mxu0 }
0x43ed   :  { %v7180_v48 = vadd.f32 %v21624_v7, %v18668_v29 }
0x43ee   :  { %v7174_v46 = vpop.f32.mrf.mxu0 }
0x43ef   :  { %v7259_v22 = vadd.f32 %v18679_v44, %v7180_v48  ;;  %v7175_v63 = vadd.f32 %v21633_v40, %v7174_v46 }
0x43f1   :  { %v16809_v38 = vmul.f32 -1.442695, %v7259_v22  ;;  %v7258_v39 = vadd.f32 %v7249_v42, %v7175_v63 }
0x43f3   :  { %19819 = vpow2.f32 %v16809_v38  ;;  %v16808_v54 = vmul.f32 -1.442695, %v7258_v39 }
0x43f5   :  { %19821 = vpow2.f32 %v16808_v54 }
0x4400   :  { %v19820_v62 = vpop.eup %19819 }
0x4401   :  { %v7267_v30 = vadd.f32 1.0, %v19820_v62 }
0x4402   :  { %v19822_v53 = vpop.eup %19821 }
0x4403   :  { %19823 = vrcp.f32 %v7267_v30  ;;  %v7266_v23 = vadd.f32 1.0, %v19822_v53  ;;  %v21992_v30 = vld [vmem:[%s23724_s11 + $0x8] sm:$0xff]  ;;  %v21999_v53 = vld [vmem:[%s23724_s11] sm:$0xff] }
0x4405   :  { %19825 = vrcp.f32 %v7266_v23 }
0x4410   :  { %v21884_v0 = vpop.eup %19823 }
0x4411   :  { %v7273_v7 = vmul.f32 %v21884_v0, %v21760_v9  ;;  %v7455_v18 = vsub.f32 1.0, %v21884_v0  ;;  %v7453_v13 = vmul.f32 %v21884_v0, %v21750_v51 }
0x4412   :  { %v21888_v20 = vpop.eup %19825 }
0x4413   :  { %18680 = vmatprep.subr.mxu0 %v7273_v7  ;;  %v7272_v40 = vmul.f32 %v21888_v20, %v21764_v56  ;;  %v7454_v58 = vsub.f32 1.0, %v21888_v20  ;;  %v7452_v26 = vmul.f32 %v21888_v20, %v21754_v25  ;;  %v21948_v25 = vld [vmem:[#allocation2 + $0x8] sm:$0xff] }
0x4414   :  { %18681 = vmatpush3.msra.mxu0 %v7273_v7 }
0x4415   :  { %18682 = vmatprep.subr.mxu0 %v7272_v40 }
0x4416   :  { %18683 = vmatpush3.msra.mxu0 %v7272_v40 }
0x4417   :  { %18685 = vmatmul.mubr.msk.f32.vlgmr.msra.gmra.mxu0 %vm122_vm0, %v21414_v12  ;;  %18687 = vmatprep.subr.mxu0 %v21652_v6 }
0x4418   :  { %18688 = vmatpush3.msra.mxu0 %v21652_v6 }
0x4419   :  { %18689 = vmatprep.subr.mxu0 %v21659_v36 }
0x441a   :  { %18690 = vmatpush3.msra.mxu0 %v21659_v36 }
0x441b   :  { %18691 = vmatprep.subr.mxu0 %v21666_v28 }
0x441c   :  { %18692 = vmatpush3.msra.mxu0 %v21666_v28 }
0x441d   :  { %18693 = vmatprep.subr.mxu0 %v21673_v57 }
0x441e   :  { %18694 = vmatpush3.msra.mxu0 %v21673_v57 }
0x441f   :  { %18716 = vmatprep.subr.mxu0 %v21680_v2 }
0x44d7   :  { %v18686_v9 = vpop.f32.mrf.mxu0 }
0x44d9   :  { %v7340_v12 = vpop.f32.mrf.mxu0 }
0x44da   :  { %18695 = vmatprep.mubr.msk.f32.mxu0 %vm297_vm3, %v7340_v12 }
0x44db   :  { %18696 = vmatmul.mubr.msk.f32.vlgmr.msra.gmra.mxu0 %vm297_vm3, %v18686_v9 }
0x44dc   :  { %18717 = vmatpush3.msra.mxu0 %v21680_v2  ;;  %18724 = vmatprep.mubr.msk.f32.mxu0 %vm297_vm3, %v7015_v11 }
0x44dd   :  { %18718 = vmatprep.subr.mxu0 %v21690_v47 }
0x44de   :  { %18719 = vmatpush3.msra.mxu0 %v21690_v47 }
0x44df   :  { %18720 = vmatprep.subr.mxu0 %v21697_v52 }
0x44e0   :  { %18721 = vmatpush3.msra.mxu0 %v21697_v52 }
0x44e1   :  { %18722 = vmatprep.subr.mxu0 %v21704_v8 }
0x44e2   :  { %18723 = vmatpush3.msra.mxu0 %v21704_v8 }
0x44e3   :  { %18725 = vmatmul.mubr.msk.f32.vlgmr.msra.gmra.mxu0 %vm297_vm3, %v18656_v27  ;;  %18734 = vmatprep.subr.mxu0 %v21713_v60  ;;  %v21962_v27 = vld [vmem:[#allocation2] sm:$0xff] }
0x44e4   :  { %18735 = vmatpush3.msra.mxu0 %v21713_v60 }
0x44e5   :  { %18736 = vmatprep.subr.mxu0 %v21720_v49 }
0x44e6   :  { %18737 = vmatpush3.msra.mxu0 %v21720_v49 }
0x44e7   :  { %18738 = vmatprep.subr.mxu0 %v21727_v37 }
0x44e8   :  { %18739 = vmatpush3.msra.mxu0 %v21727_v37 }
0x44e9   :  { %18740 = vmatprep.subr.mxu0 %v21734_v59 }
0x44ea   :  { %18741 = vmatpush3.msra.mxu0 %v21734_v59 }
0x459b   :  { %v18697_v6 = vpop.f32.mrf.mxu0 }
0x459c   :  { %7434 = vrot.lane.b32.xlu0 %v18697_v6, %s20278_s25 }
0x459d   :  { %v7421_v36 = vpop.f32.mrf.mxu0 }
0x459e   :  { %7432 = vrot.lane.b32.xlu1 %v7421_v36, %s20278_s25 }
0x460e   :  { %v7435_v28 = vpop.permute.xlu0 %7434 }
0x460f   :  { %v7439_v57 = vadd.f32 %v7435_v28, %v7180_v48 }
0x4610   :  { %v7433_v2 = vpop.permute.xlu1 %7432 }
0x4611   :  { %v16815_v47 = vmul.f32 -1.442695, %v7439_v57  ;;  %v7438_v52 = vadd.f32 %v7433_v2, %v7175_v63 }
0x4613   :  { %19827 = vpow2.f32 %v16815_v47  ;;  %v16814_v8 = vmul.f32 -1.442695, %v7438_v52 }
0x4615   :  { %19829 = vpow2.f32 %v16814_v8 }
0x4620   :  { %v19828_v60 = vpop.eup %19827 }
0x4621   :  { %v7447_v49 = vadd.f32 1.0, %v19828_v60 }
0x4622   :  { %v19830_v37 = vpop.eup %19829 }
0x4623   :  { %19831 = vrcp.f32 %v7447_v49  ;;  %v7446_v56 = vadd.f32 1.0, %v19830_v37 }
0x4625   :  { %19833 = vrcp.f32 %v7446_v56 }
0x4630   :  { %v19832_v59 = vpop.eup %19831 }
0x4631   :  { %7460 = vrot.lane.b32.xlu0 %v19832_v59, %s20279_s24 }
0x4632   :  { %v19834_v55 = vpop.eup %19833 }
0x4633   :  { %7458 = vrot.lane.b32.xlu1 %v19834_v55, %s20279_s24 }
0x46a3   :  { %v7461_v16 = vpop.permute.xlu0 %7460 }
0x46a4   :  { %v7465_v24 = vmul.f32 %v7461_v16, %v7455_v18 }
0x46a5   :  { %v7459_v15 = vpop.permute.xlu1 %7458 }
0x46a6   :  { %v21930_v21 = vadd.f32 %v7465_v24, %v7453_v13  ;;  %v7464_v3 = vmul.f32 %v7459_v15, %v7454_v58  ;;  %v8012_v58 = vld [vmem:[#allocation4] sm:$0xf] }
0x46a8   :  { %v21934_v41 = vadd.f32 %v7464_v3, %v7452_v26  ;;  %7472 = vrot.lane.b32.xlu0 %v21930_v21, %s20279_s24  ;;  %v22041_v26 = vld [vmem:[%s23726_s13 + $0x8] sm:$0xff] }
0x46aa   :  { %7470 = vrot.lane.b32.xlu1 %v21934_v41, %s20279_s24 }
0x471a   :  { %v21940_v32 = vpop.permute.xlu0 %7472 }
0x471b   :  { %18698 = vmatprep.subr.mxu1 %v21940_v32 }
0x471c   :  { %18699 = vmatpush3.msra.mxu1 %v21940_v32  ;;  %v21944_v51 = vpop.permute.xlu1 %7470 }
0x471d   :  { %18700 = vmatprep.subr.mxu1 %v21944_v51 }
0x471e   :  { %18701 = vmatpush3.msra.mxu1 %v21944_v51 }
0x471f   :  { %18703 = vmatmul.mubr.msk.f32.vlgmr.msra.gmra.mxu1 %vm122_vm0, %v21948_v25  ;;  %18705 = vmatprep.subr.mxu1 %v21773_v17 }
0x4720   :  { %18706 = vmatpush3.msra.mxu1 %v21773_v17  ;;  %v18726_v17 = vpop.f32.mrf.mxu0 }
0x4721   :  { %18707 = vmatprep.subr.mxu1 %v21780_v5 }
0x4722   :  { %18708 = vmatpush3.msra.mxu1 %v21780_v5 }
0x4723   :  { %18709 = vmatprep.subr.mxu1 %v21787_v45 }
0x4724   :  { %18710 = vmatpush3.msra.mxu1 %v21787_v45 }
0x4725   :  { %18711 = vmatprep.subr.mxu1 %v21794_v50 }
0x4726   :  { %18712 = vmatpush3.msra.mxu1 %v21794_v50  ;;  %v7704_v50 = vpop.f32.mrf.mxu0 }
0x47df   :  { %v18704_v19 = vpop.f32.mrf.mxu1 }
0x47e1   :  { %v7542_v4 = vpop.f32.mrf.mxu1 }
0x47e2   :  { %18713 = vmatprep.mubr.msk.f32.mxu1 %vm297_vm3, %v7542_v4 }
0x47e3   :  { %18714 = vmatmul.mubr.msk.f32.vlgmr.msra.gmra.mxu1 %vm297_vm3, %v18704_v19 }
0x47e4   :  { %18731 = vmatprep.mubr.msk.f32.mxu1 %vm122_vm0, %v21962_v27 }
0x48a3   :  { %v18715_v5 = vpop.f32.mrf.mxu1 }
0x48a4   :  { %v7629_v11 = vadd.f32 %v21811_v35, %v18715_v5 }
0x48a5   :  { %v7623_v45 = vpop.f32.mrf.mxu1 }
0x48a6   :  { %v7714_v1 = vadd.f32 %v18726_v17, %v7629_v11  ;;  %v7624_v14 = vadd.f32 %v21817_v31, %v7623_v45  ;;  %v21977_v31 = vld [vmem:[%s23724_s11 + $0x18] sm:$0xff] }
0x48a7   :  { %18757 = vmatprep.subr.mxu0 %v21977_v31 }
0x48a8   :  { %v16823_v44 = vmul.f32 -1.442695, %v7714_v1  ;;  %v7713_v29 = vadd.f32 %v7704_v50, %v7624_v14 }
0x48aa   :  { %19835 = vpow2.f32 %v16823_v44  ;;  %v16822_v48 = vmul.f32 -1.442695, %v7713_v29 }
0x48ac   :  { %19837 = vpow2.f32 %v16822_v48 }
0x48b7   :  { %v19836_v46 = vpop.eup %19835 }
0x48b8   :  { %v7722_v22 = vadd.f32 1.0, %v19836_v46 }
0x48b9   :  { %v19838_v63 = vpop.eup %19837 }
0x48ba   :  { %19839 = vrcp.f32 %v7722_v22  ;;  %v7721_v42 = vadd.f32 1.0, %v19838_v63 }
0x48bc   :  { %19841 = vrcp.f32 %v7721_v42 }
0x48c7   :  { %v19840_v38 = vpop.eup %19839 }
0x48c8   :  { %v7728_v39 = vmul.f32 %v19840_v38, %v21844_v43  ;;  %v7910_v8 = vsub.f32 1.0, %v19840_v38  ;;  %v7908_v49 = vmul.f32 %v19840_v38, %v21835_v33 }
0x48c9   :  { %v19842_v35 = vpop.eup %19841 }
0x48ca   :  { %18727 = vmatprep.subr.mxu1 %v7728_v39  ;;  %v7727_v54 = vmul.f32 %v19842_v35, %v21848_v34  ;;  %v21984_v34 = vld [vmem:[%s23724_s11 + $0x10] sm:$0xff]  ;;  %v7909_v56 = vsub.f32 1.0, %v19842_v35  ;;  %v7907_v18 = vmul.f32 %v19842_v35, %v21838_v61 }
0x48cb   :  { %18728 = vmatpush3.msra.mxu1 %v7728_v39  ;;  %v22061_v39 = vld [vmem:[%s23725_s12 + $0x18] sm:$0xff]  ;;  %v22066_v35 = vld [vmem:[%s23725_s12 + $0x10] sm:$0xff] }
0x48cc   :  { %18729 = vmatprep.subr.mxu1 %v7727_v54 }
0x48cd   :  { %18730 = vmatpush3.msra.mxu1 %v7727_v54  ;;  %v22088_v54 = vld [vmem:[#allocation6 + $0x18] sm:$0xff] }
0x48ce   :  { %18732 = vmatmul.mubr.msk.f32.vlgmr.msra.gmra.mxu1 %vm122_vm0, %v21948_v25 }
0x48cf   :  { %18749 = vmatprep.mubr.msk.f32.mxu1 %vm122_vm0, %v21962_v27 }
0x498e   :  { %v18733_v43 = vpop.f32.mrf.mxu1 }
0x4990   :  { %v7795_v62 = vpop.f32.mrf.mxu1 }
0x4991   :  { %18742 = vmatprep.mubr.msk.f32.mxu0 %vm297_vm3, %v7795_v62 }
0x4992   :  { %18743 = vmatmul.mubr.msk.f32.vlgmr.msra.gmra.mxu0 %vm297_vm3, %v18733_v43 }
0x4993   :  { %18758 = vmatpush3.msra.mxu0 %v21977_v31  ;;  %18765 = vmatprep.mubr.msk.f32.mxu0 %vm297_vm3, %v7542_v4  ;;  %v22046_v4 = vld [vmem:[%s23726_s13] sm:$0xff] }
0x4994   :  { %18759 = vmatprep.subr.mxu0 %v21984_v34 }
0x4995   :  { %18760 = vmatpush3.msra.mxu0 %v21984_v34 }
0x4996   :  { %18761 = vmatprep.subr.mxu0 %v21992_v30 }
0x4997   :  { %18762 = vmatpush3.msra.mxu0 %v21992_v30 }
0x4998   :  { %18763 = vmatprep.subr.mxu0 %v21999_v53 }
0x4999   :  { %18764 = vmatpush3.msra.mxu0 %v21999_v53 }
0x499a   :  { %18766 = vmatmul.mubr.msk.f32.vlgmr.msra.gmra.mxu0 %vm297_vm3, %v18704_v19 }
0x499b   :  { %18790 = vmatprep.mubr.msk.f32.mxu0 %vm122_vm0, %v21962_v27 }
0x4a52   :  { %v18744_v23 = vpop.f32.mrf.mxu0 }
0x4a53   :  { %7889 = vrot.lane.b32.xlu0 %v18744_v23, %s20278_s25  ;;  %v22092_v23 = vld [vmem:[#allocation6 + $0x10] sm:$0xff] }
0x4a54   :  { %v7876_v0 = vpop.f32.mrf.mxu0 }
0x4a55   :  { %7887 = vrot.lane.b32.xlu1 %v7876_v0, %s20278_s25  ;;  %v22097_v0 = vld [vmem:[#allocation6 + $0x8] sm:$0xff] }
0x4a5a   :  { %v18767_v3 = vpop.f32.mrf.mxu0 }
0x4a5c   :  { %v8165_v45 = vpop.f32.mrf.mxu0 }
0x4ac5   :  { %v7890_v7 = vpop.permute.xlu0 %7889 }
0x4ac6   :  { %v7894_v20 = vadd.f32 %v7890_v7, %v7629_v11  ;;  %v22101_v7 = vld [vmem:[#allocation6] sm:$0xff] }
0x4ac7   :  { %v7888_v40 = vpop.permute.xlu1 %7887 }
0x4ac8   :  { %v16829_v9 = vmul.f32 -1.442695, %v7894_v20  ;;  %v7893_v12 = vadd.f32 %v7888_v40, %v7624_v14 }
0x4aca   :  { %19843 = vpow2.f32 %v16829_v9  ;;  %v16828_v6 = vmul.f32 -1.442695, %v7893_v12 }
0x4acc   :  { %19845 = vpow2.f32 %v16828_v6 }
0x4ad7   :  { %v19844_v36 = vpop.eup %19843 }
0x4ad8   :  { %v7902_v28 = vadd.f32 1.0, %v19844_v36 }
0x4ad9   :  { %v19846_v57 = vpop.eup %19845 }
0x4ada   :  { %19847 = vrcp.f32 %v7902_v28  ;;  %v7901_v2 = vadd.f32 1.0, %v19846_v57 }
0x4adc   :  { %19849 = vrcp.f32 %v7901_v2 }
0x4ae7   :  { %v19848_v47 = vpop.eup %19847 }
0x4ae8   :  { %7915 = vrot.lane.b32.xlu0 %v19848_v47, %s20279_s24 }
0x4ae9   :  { %v19850_v52 = vpop.eup %19849 }
0x4aea   :  { %7913 = vrot.lane.b32.xlu1 %v19850_v52, %s20279_s24 }
0x4b5a   :  { %v7916_v60 = vpop.permute.xlu0 %7915 }
0x4b5b   :  { %v7920_v37 = vmul.f32 %v7916_v60, %v7910_v8 }
0x4b5c   :  { %v7914_v59 = vpop.permute.xlu1 %7913 }
0x4b5d   :  { %v22013_v55 = vadd.f32 %v7920_v37, %v7908_v49  ;;  %v7919_v16 = vmul.f32 %v7914_v59, %v7909_v56 }
0x4b5f   :  { %v22016_v13 = vadd.f32 %v7919_v16, %v7907_v18  ;;  %7927 = vrot.lane.b32.xlu0 %v22013_v55, %s20279_s24 }
0x4b61   :  { %7925 = vrot.lane.b32.xlu1 %v22016_v13, %s20279_s24 }
0x4bd1   :  { %v22022_v24 = vpop.permute.xlu0 %7927 }
0x4bd2   :  { %18745 = vmatprep.subr.mxu1 %v22022_v24 }
0x4bd3   :  { %18746 = vmatpush3.msra.mxu1 %v22022_v24  ;;  %v22026_v33 = vpop.permute.xlu1 %7925 }
0x4bd4   :  { %18747 = vmatprep.subr.mxu1 %v22026_v33 }
0x4bd5   :  { %18748 = vmatpush3.msra.mxu1 %v22026_v33 }
0x4bd6   :  { %18750 = vmatmul.mubr.msk.f32.vlgmr.msra.gmra.mxu1 %vm122_vm0, %v21948_v25  ;;  %18752 = vmatprep.subr.msk.mxu1 %vm214_vm1, %v8012_v58 }
0x4bd7   :  { %18753 = vmatpush3.msk.msra.mxu1 %vm214_vm1, %v8012_v58  ;;  %18754 = vmatprep.mubr.f32.mxu1 %v20277_v10 }
0x4bda   :  { %18755 = vmatmul.mubr.f32.vlgmr.msra.gmra.mxu1 %v20277_v10 }
0x4bdb   :  { %18772 = vmatprep.mubr.msk.f32.mxu1 %vm122_vm0, %v21962_v27 }
0x4c96   :  { %v18751_v61 = vpop.f32.mrf.mxu1 }
0x4c98   :  { %v7997_v15 = vpop.f32.mrf.mxu1 }
0x4c9a   :  { %v18756_v19 = vpop.f32.mrf.mxu1 }
0x4c9b   :  { %v8092_v17 = vadd.f32 %v18756_v19, %v22041_v26 }
0x4c9c   :  { %v8086_v10 = vpop.f32.mrf.mxu1 }
0x4c9d   :  { %v8175_v5 = vadd.f32 %v18767_v3, %v8092_v17  ;;  %v8087_v11 = vadd.f32 %v8086_v10, %v22046_v4  ;;  %v22142_v10 = vld [vmem:[%s23727_s14 + $0x10] sm:$0xff] }
0x4c9f   :  { %v16836_v1 = vmul.f32 -1.442695, %v8175_v5  ;;  %v8174_v14 = vadd.f32 %v8165_v45, %v8087_v11  ;;  %v22153_v5 = vld [vmem:[%s23727_s14 + $0x8] sm:$0xff] }
0x4ca1   :  { %19851 = vpow2.f32 %v16836_v1  ;;  %v16835_v50 = vmul.f32 -1.442695, %v8174_v14  ;;  %v22174_v14 = vld [vmem:[#allocation7 + $0x18] sm:$0xff] }
0x4ca3   :  { %19853 = vpow2.f32 %v16835_v50  ;;  %v22176_v50 = vld [vmem:[#allocation7 + $0x10] sm:$0xff] }
0x4cae   :  { %v19852_v44 = vpop.eup %19851 }
0x4caf   :  { %v8183_v29 = vadd.f32 1.0, %v19852_v44  ;;  %v22185_v44 = vld [vmem:[%s23730_s17 + $0x8] sm:$0xff] }
0x4cb0   :  { %v19854_v48 = vpop.eup %19853 }
0x4cb1   :  { %19855 = vrcp.f32 %v8183_v29  ;;  %v8182_v46 = vadd.f32 1.0, %v19854_v48 }
0x4cb3   :  { %19857 = vrcp.f32 %v8182_v46  ;;  %v22190_v46 = vld [vmem:[%s23730_s17] sm:$0xff] }
0x4cbe   :  { %v22050_v22 = vpop.eup %19855 }
0x4cbf   :  { %v8189_v63 = vmul.f32 %v22050_v22, %v21940_v32  ;;  %v22075_v32 = vld [vmem:[%s23725_s12 + $0x8] sm:$0xff]  ;;  %v8375_v37 = vsub.f32 1.0, %v22050_v22  ;;  %v8373_v59 = vmul.f32 %v22050_v22, %v21930_v21 }
0x4cc0   :  { %v22054_v42 = vpop.eup %19857 }
0x4cc1   :  { %18768 = vmatprep.subr.mxu1 %v8189_v63  ;;  %v8188_v38 = vmul.f32 %v22054_v42, %v21944_v51  ;;  %v22084_v51 = vld [vmem:[%s23725_s12] sm:$0xff]  ;;  %v8374_v16 = vsub.f32 1.0, %v22054_v42 }
0x4cc2   :  { %18769 = vmatpush3.msra.mxu1 %v8189_v63 }
0x4cc3   :  { %18770 = vmatprep.subr.mxu1 %v8188_v38 }
0x4cc4   :  { %18771 = vmatpush3.msra.mxu1 %v8188_v38 }
0x4cc5   :  { %18773 = vmatmul.mubr.msk.f32.vlgmr.msra.gmra.mxu1 %vm122_vm0, %v21948_v25  ;;  %18775 = vmatprep.subr.mxu1 %v22061_v39 }
0x4cc6   :  { %18776 = vmatpush3.msra.mxu1 %v22061_v39 }
0x4cc7   :  { %18777 = vmatprep.subr.mxu1 %v22066_v35 }
0x4cc8   :  { %18778 = vmatpush3.msra.mxu1 %v22066_v35 }
0x4cc9   :  { %18779 = vmatprep.subr.mxu1 %v22075_v32 }
0x4cca   :  { %18780 = vmatpush3.msra.mxu1 %v22075_v32 }
0x4ccb   :  { %18781 = vmatprep.subr.mxu1 %v22084_v51 }
0x4ccc   :  { %18782 = vmatpush3.msra.mxu1 %v22084_v51 }
0x4ccd   :  { %18804 = vmatprep.subr.mxu1 %v22088_v54 }
0x4d85   :  { %v18774_v43 = vpop.f32.mrf.mxu1 }
0x4d87   :  { %v8256_v62 = vpop.f32.mrf.mxu1 }
0x4d88   :  { %18783 = vmatprep.mubr.msk.f32.mxu1 %vm297_vm3, %v8256_v62 }
0x4d89   :  { %18784 = vmatmul.mubr.msk.f32.vlgmr.msra.gmra.mxu1 %vm297_vm3, %v18774_v43 }
0x4d8a   :  { %18805 = vmatpush3.msra.mxu1 %v22088_v54  ;;  %18812 = vmatprep.mubr.msk.f32.mxu1 %vm297_vm3, %v7997_v15  ;;  %v8372_v15 = vmul.f32 %v22054_v42, %v21934_v41  ;;  %v22135_v41 = vld [vmem:[%s23727_s14 + $0x18] sm:$0xff] }
0x4d8b   :  { %18806 = vmatprep.subr.mxu1 %v22092_v23 }
0x4d8c   :  { %18807 = vmatpush3.msra.mxu1 %v22092_v23 }
0x4d8d   :  { %18808 = vmatprep.subr.mxu1 %v22097_v0 }
0x4d8e   :  { %18809 = vmatpush3.msra.mxu1 %v22097_v0 }
0x4d8f   :  { %18810 = vmatprep.subr.mxu1 %v22101_v7 }
0x4d90   :  { %18811 = vmatpush3.msra.mxu1 %v22101_v7 }
0x4d91   :  { %18813 = vmatmul.mubr.msk.f32.vlgmr.msra.gmra.mxu1 %vm297_vm3, %v18751_v61  ;;  %18822 = vmatprep.subr.mxu1 %v22174_v14 }
0x4d92   :  { %18823 = vmatpush3.msra.mxu1 %v22174_v14 }
0x4d93   :  { %18824 = vmatprep.subr.mxu1 %v22176_v50 }
0x4d94   :  { %18825 = vmatpush3.msra.mxu1 %v22176_v50 }
0x4e49   :  { %v18785_v20 = vpop.f32.mrf.mxu1 }
0x4e4a   :  { %8354 = vrot.lane.b32.xlu0 %v18785_v20, %s20278_s25 }
0x4e4b   :  { %v8341_v40 = vpop.f32.mrf.mxu1 }
0x4e4c   :  { %8352 = vrot.lane.b32.xlu1 %v8341_v40, %s20278_s25 }
0x4e51   :  { %v18814_v29 = vpop.f32.mrf.mxu1 }
0x4e53   :  { %v8634_v43 = vpop.f32.mrf.mxu1 }
0x4ebc   :  { %v8355_v9 = vpop.permute.xlu0 %8354 }
0x4ebd   :  { %v8359_v12 = vadd.f32 %v8355_v9, %v8092_v17 }
0x4ebe   :  { %v8353_v6 = vpop.permute.xlu1 %8352 }
0x4ebf   :  { %v16842_v36 = vmul.f32 -1.442695, %v8359_v12  ;;  %v8358_v28 = vadd.f32 %v8353_v6, %v8087_v11  ;;  %v22160_v11 = vld [vmem:[%s23727_s14] sm:$0xff] }
0x4ec1   :  { %19859 = vpow2.f32 %v16842_v36  ;;  %v16841_v57 = vmul.f32 -1.442695, %v8358_v28 }
0x4ec3   :  { %19861 = vpow2.f32 %v16841_v57 }
0x4ece   :  { %v19860_v2 = vpop.eup %19859 }
0x4ecf   :  { %v8367_v47 = vadd.f32 1.0, %v19860_v2 }
0x4ed0   :  { %v19862_v52 = vpop.eup %19861 }
0x4ed1   :  { %19863 = vrcp.f32 %v8367_v47  ;;  %v8366_v8 = vadd.f32 1.0, %v19862_v52  ;;  %v22200_v52 = vld [vmem:[#allocation7 + $0x8] sm:$0xff] }
0x4ed2   :  { %18826 = vmatprep.subr.mxu1 %v22200_v52 }
0x4ed3   :  { %19865 = vrcp.f32 %v8366_v8  ;;  %18827 = vmatpush3.msra.mxu1 %v22200_v52 }
0x4ede   :  { %v19864_v60 = vpop.eup %19863 }
0x4edf   :  { %8380 = vrot.lane.b32.xlu0 %v19864_v60, %s20279_s24 }
0x4ee0   :  { %v19866_v49 = vpop.eup %19865 }
0x4ee1   :  { %8378 = vrot.lane.b32.xlu1 %v19866_v49, %s20279_s24 }
0x4f51   :  { %v8381_v56 = vpop.permute.xlu0 %8380 }
0x4f52   :  { %v8385_v18 = vmul.f32 %v8381_v56, %v8375_v37 }
0x4f53   :  { %v8379_v58 = vpop.permute.xlu1 %8378 }
0x4f54   :  { %v22116_v61 = vadd.f32 %v8385_v18, %v8373_v59  ;;  %v8384_v3 = vmul.f32 %v8379_v58, %v8374_v16 }
0x4f56   :  { %v22120_v19 = vadd.f32 %v8384_v3, %v8372_v15  ;;  %8392 = vrot.lane.b32.xlu0 %v22116_v61, %s20279_s24 }
0x4f58   :  { %8390 = vrot.lane.b32.xlu1 %v22120_v19, %s20279_s24 }
0x4fc8   :  { %v22126_v17 = vpop.permute.xlu0 %8392 }
0x4fc9   :  { %18786 = vmatprep.subr.mxu0 %v22126_v17 }
0x4fca   :  { %18787 = vmatpush3.msra.mxu0 %v22126_v17  ;;  %v22130_v21 = vpop.permute.xlu1 %8390 }
0x4fcb   :  { %18788 = vmatprep.subr.mxu0 %v22130_v21 }
0x4fcc   :  { %18789 = vmatpush3.msra.mxu0 %v22130_v21 }
0x4fcd   :  { %18791 = vmatmul.mubr.msk.f32.vlgmr.msra.gmra.mxu0 %vm122_vm0, %v21948_v25  ;;  %18793 = vmatprep.subr.mxu0 %v22135_v41 }
0x4fce   :  { %18794 = vmatpush3.msra.mxu0 %v22135_v41 }
0x4fcf   :  { %18795 = vmatprep.subr.mxu0 %v22142_v10 }
0x4fd0   :  { %18796 = vmatpush3.msra.mxu0 %v22142_v10 }
0x4fd1   :  { %18797 = vmatprep.subr.mxu0 %v22153_v5 }
0x4fd2   :  { %18798 = vmatpush3.msra.mxu0 %v22153_v5 }
0x4fd3   :  { %18799 = vmatprep.subr.mxu0 %v22160_v11 }
0x4fd4   :  { %18800 = vmatpush3.msra.mxu0 %v22160_v11 }
0x508d   :  { %v22164_v45 = vpop.f32.mrf.mxu0 }
0x508f   :  { %v22166_v1 = vpop.f32.mrf.mxu0 }
0x5090   :  { %18801 = vmatprep.mubr.msk.f32.mxu0 %vm297_vm3, %v22166_v1 }
0x5091   :  { %18802 = vmatmul.mubr.msk.f32.vlgmr.msra.gmra.mxu0 %vm297_vm3, %v22164_v45 }
0x5092   :  { %18819 = vmatprep.mubr.msk.f32.mxu0 %vm122_vm0, %v21962_v27 }
0x5151   :  { %v18803_v48 = vpop.f32.mrf.mxu0 }
0x5152   :  { %v8555_v22 = vadd.f32 %v18803_v48, %v22185_v44 }
0x5153   :  { %v8549_v63 = vpop.f32.mrf.mxu0 }
0x5154   :  { %v8644_v42 = vadd.f32 %v18814_v29, %v8555_v22  ;;  %v8550_v38 = vadd.f32 %v8549_v63, %v22190_v46 }
0x5156   :  { %v16850_v62 = vmul.f32 -1.442695, %v8644_v42  ;;  %v8643_v20 = vadd.f32 %v8634_v43, %v8550_v38 }
0x5158   :  { %19867 = vpow2.f32 %v16850_v62  ;;  %v16849_v40 = vmul.f32 -1.442695, %v8643_v20 }
0x515a   :  { %19869 = vpow2.f32 %v16849_v40 }
0x5165   :  { %v19868_v9 = vpop.eup %19867 }
0x5166   :  { %v8652_v12 = vadd.f32 1.0, %v19868_v9 }
0x5167   :  { %v19870_v6 = vpop.eup %19869 }
0x5168   :  { %19871 = vrcp.f32 %v8652_v12  ;;  %v8651_v36 = vadd.f32 1.0, %v19870_v6 }
0x516a   :  { %19873 = vrcp.f32 %v8651_v36 }
0x5175   :  { %v19872_v28 = vpop.eup %19871 }
0x5176   :  { %v8658_v57 = vmul.f32 %v19872_v28, %v22022_v24  ;;  %v22204_v24 = vld [vmem:[#allocation7] sm:$0xff]  ;;  %v8844_v43 = vsub.f32 1.0, %v19872_v28  ;;  %v8842_v62 = vmul.f32 %v19872_v28, %v22013_v55 }
0x5177   :  { %v19874_v2 = vpop.eup %19873  ;;  %18828 = vmatprep.subr.mxu1 %v22204_v24  ;;  %v22242_v28 = vld [vmem:[%s23731_s18 + $0x10] sm:$0xff] }
0x5178   :  { %18815 = vmatprep.subr.mxu0 %v8658_v57  ;;  %v8657_v47 = vmul.f32 %v19874_v2, %v22026_v33  ;;  %18829 = vmatpush3.msra.mxu1 %v22204_v24  ;;  %v8843_v20 = vsub.f32 1.0, %v19874_v2  ;;  %v8841_v12 = vmul.f32 %v19874_v2, %v22016_v13  ;;  %v22235_v13 = vld [vmem:[%s23731_s18 + $0x18] sm:$0xff]  ;;  %v22253_v2 = vld [vmem:[%s23731_s18 + $0x8] sm:$0xff] }
0x5179   :  { %18816 = vmatpush3.msra.mxu0 %v8658_v57 }
0x517a   :  { %18817 = vmatprep.subr.mxu0 %v8657_v47 }
0x517b   :  { %18818 = vmatpush3.msra.mxu0 %v8657_v47  ;;  %v22260_v47 = vld [vmem:[%s23731_s18] sm:$0xff] }
0x517c   :  { %18820 = vmatmul.mubr.msk.f32.vlgmr.msra.gmra.mxu0 %vm122_vm0, %v21948_v25 }
0x517d   :  { %18837 = vmatprep.mubr.msk.f32.mxu0 %vm122_vm0, %v21962_v27 }
0x523c   :  { %v18821_v33 = vpop.f32.mrf.mxu0 }
0x523e   :  { %v8725_v8 = vpop.f32.mrf.mxu0 }
0x523f   :  { %18830 = vmatprep.mubr.msk.f32.mxu1 %vm297_vm3, %v8725_v8 }
0x5240   :  { %18831 = vmatmul.mubr.msk.f32.vlgmr.msra.gmra.mxu1 %vm297_vm3, %v18821_v33  ;;  %v22294_v33 = vld [vmem:[%s23732_s19] sm:$0xff] }
0x5241   :  { %18855 = vmatprep.mubr.msk.f32.mxu1 %vm122_vm0, %v21962_v27 }
0x5300   :  { %v18832_v60 = vpop.f32.mrf.mxu1 }
0x5301   :  { %8823 = vrot.lane.b32.xlu0 %v18832_v60, %s20278_s25 }
0x5302   :  { %v8810_v49 = vpop.f32.mrf.mxu1 }
0x5303   :  { %8821 = vrot.lane.b32.xlu1 %v8810_v49, %s20278_s25  ;;  %v9096_v49 = vld [vmem:[#allocation4] sm:$0xf] }
0x5373   :  { %v8824_v37 = vpop.permute.xlu0 %8823 }
0x5374   :  { %v8828_v56 = vadd.f32 %v8824_v37, %v8555_v22 }
0x5375   :  { %v8822_v59 = vpop.permute.xlu1 %8821 }
0x5376   :  { %v16856_v18 = vmul.f32 -1.442695, %v8828_v56  ;;  %v8827_v16 = vadd.f32 %v8822_v59, %v8550_v38 }
0x5378   :  { %19875 = vpow2.f32 %v16856_v18  ;;  %v16855_v58 = vmul.f32 -1.442695, %v8827_v16 }
0x537a   :  { %19877 = vpow2.f32 %v16855_v58 }
0x5385   :  { %v19876_v15 = vpop.eup %19875 }
0x5386   :  { %v8836_v3 = vadd.f32 1.0, %v19876_v15 }
0x5387   :  { %v19878_v29 = vpop.eup %19877 }
0x5388   :  { %19879 = vrcp.f32 %v8836_v3  ;;  %v8835_v48 = vadd.f32 1.0, %v19878_v29 }
0x538a   :  { %19881 = vrcp.f32 %v8835_v48 }
0x5395   :  { %v19880_v63 = vpop.eup %19879 }
0x5396   :  { %8849 = vrot.lane.b32.xlu0 %v19880_v63, %s20279_s24 }
0x5397   :  { %v19882_v42 = vpop.eup %19881 }
0x5398   :  { %8847 = vrot.lane.b32.xlu1 %v19882_v42, %s20279_s24 }
0x5408   :  { %v8850_v22 = vpop.permute.xlu0 %8849 }
0x5409   :  { %v8854_v38 = vmul.f32 %v8850_v22, %v8844_v43 }
0x540a   :  { %v8848_v40 = vpop.permute.xlu1 %8847 }
0x540b   :  { %v22217_v9 = vadd.f32 %v8854_v38, %v8842_v62  ;;  %v8853_v6 = vmul.f32 %v8848_v40, %v8843_v20 }
0x540d   :  { %v22220_v36 = vadd.f32 %v8853_v6, %v8841_v12  ;;  %8861 = vrot.lane.b32.xlu0 %v22217_v9, %s20279_s24 }
0x540f   :  { %8859 = vrot.lane.b32.xlu1 %v22220_v36, %s20279_s24 }
0x547f   :  { %v22226_v57 = vpop.permute.xlu0 %8861 }
0x5480   :  { %18833 = vmatprep.subr.mxu0 %v22226_v57 }
0x5481   :  { %18834 = vmatpush3.msra.mxu0 %v22226_v57  ;;  %v22230_v55 = vpop.permute.xlu1 %8859 }
0x5482   :  { %18835 = vmatprep.subr.mxu0 %v22230_v55 }
0x5483   :  { %18836 = vmatpush3.msra.mxu0 %v22230_v55 }
0x5484   :  { %18838 = vmatmul.mubr.msk.f32.vlgmr.msra.gmra.mxu0 %vm122_vm0, %v21948_v25  ;;  %18840 = vmatprep.subr.mxu0 %v22235_v13 }
0x5485   :  { %18841 = vmatpush3.msra.mxu0 %v22235_v13  ;;  %18848 = vmatprep.mubr.msk.f32.mxu0 %vm297_vm3, %v22230_v55 }
0x5486   :  { %18842 = vmatprep.subr.mxu0 %v22242_v28 }
0x5487   :  { %18843 = vmatpush3.msra.mxu0 %v22242_v28 }
0x5488   :  { %18844 = vmatprep.subr.mxu0 %v22253_v2 }
0x5489   :  { %18845 = vmatpush3.msra.mxu0 %v22253_v2 }
0x548a   :  { %18846 = vmatprep.subr.mxu0 %v22260_v47 }
0x548b   :  { %18847 = vmatpush3.msra.mxu0 %v22260_v47 }
0x548c   :  { %18849 = vmatmul.mubr.msk.f32.vlgmr.msra.gmra.mxu0 %vm297_vm3, %v22226_v57  ;;  %18863 = vmatprep.subr.mxu0 %v21977_v31 }
0x548d   :  { %18864 = vmatpush3.msra.mxu0 %v21977_v31  ;;  %18871 = vmatprep.mubr.msk.f32.mxu0 %vm297_vm3, %v22166_v1 }
0x548e   :  { %18865 = vmatprep.subr.mxu0 %v21984_v34 }
0x548f   :  { %18866 = vmatpush3.msra.mxu0 %v21984_v34  ;;  %v22289_v34 = vld [vmem:[%s23732_s19 + $0x8] sm:$0xff] }
0x5490   :  { %18867 = vmatprep.subr.mxu0 %v21992_v30 }
0x5491   :  { %18868 = vmatpush3.msra.mxu0 %v21992_v30 }
0x5492   :  { %18869 = vmatprep.subr.mxu0 %v21999_v53 }
0x5493   :  { %18870 = vmatpush3.msra.mxu0 %v21999_v53 }
0x5494   :  { %18872 = vmatmul.mubr.msk.f32.vlgmr.msra.gmra.mxu0 %vm297_vm3, %v22164_v45 }
0x5495   :  { %18896 = vmatprep.mubr.msk.f32.mxu0 %vm122_vm0, %v21962_v27 }
0x5544   :  { %v22282_v31 = vpop.f32.mrf.mxu0 }
0x5546   :  { %v22284_v1 = vpop.f32.mrf.mxu0 }
0x554c   :  { %v18850_v30 = vpop.f32.mrf.mxu0 }
0x554d   :  { %v9016_v45 = vadd.f32 %v18850_v30, %v22289_v34 }
0x554e   :  { %v9010_v8 = vpop.f32.mrf.mxu0 }
0x554f   :  { %9020 = vst.msk [vmem:[%s23733_s20 + $0x8] sm:$0xff] %vm207_vm2, %v9016_v45  ;;  %v9011_v60 = vadd.f32 %v9010_v8, %v22294_v33  ;;  %18851 = vmatprep.subr.mxu1 %v9016_v45 }
0x5550   :  { %18852 = vmatpush3.msra.mxu1 %v9016_v45 }
0x5551   :  { %9019 = vst.msk [vmem:[%s23733_s20] sm:$0xff] %vm207_vm2, %v9011_v60  ;;  %18853 = vmatprep.subr.mxu1 %v9011_v60 }
0x5552   :  { %18854 = vmatpush3.msra.mxu1 %v9011_v60 }
0x5553   :  { %18856 = vmatmul.mubr.msk.f32.vlgmr.msra.gmra.mxu1 %vm122_vm0, %v21948_v25  ;;  %18858 = vmatprep.subr.msk.mxu1 %vm214_vm1, %v9096_v49 }
0x5554   :  { %18859 = vmatpush3.msk.msra.mxu1 %vm214_vm1, %v9096_v49  ;;  %v18873_v59 = vpop.f32.mrf.mxu0 }
0x5556   :  { %v9253_v29 = vpop.f32.mrf.mxu0 }
0x5613   :  { %v18857_v37 = vpop.f32.mrf.mxu1 }
0x5615   :  { %v9087_v56 = vpop.f32.mrf.mxu1 }
0x5616   :  { %18860 = vmatprep.mubr.msk.f32.mxu1 %vm207_vm2, %v9087_v56 }
0x5617   :  { %18861 = vmatmul.mubr.msk.f32.vlgmr.msra.gmra.mxu1 %vm207_vm2, %v18857_v37 }
0x5618   :  { %18878 = vmatprep.mubr.msk.f32.mxu1 %vm122_vm0, %v21962_v27 }
0x56d7   :  { %v18862_v18 = vpop.f32.mrf.mxu1 }
0x56d8   :  { %v9180_v16 = vadd.f32 %v18862_v18, %v22041_v26 }
0x56d9   :  { %v9174_v58 = vpop.f32.mrf.mxu1 }
0x56da   :  { %v9263_v15 = vadd.f32 %v18873_v59, %v9180_v16  ;;  %v9175_v3 = vadd.f32 %v9174_v58, %v22046_v4 }
0x56dc   :  { %v16869_v48 = vmul.f32 -1.442695, %v9263_v15  ;;  %v9262_v63 = vadd.f32 %v9253_v29, %v9175_v3 }
0x56de   :  { %19883 = vpow2.f32 %v16869_v48  ;;  %v16868_v42 = vmul.f32 -1.442695, %v9262_v63 }
0x56e0   :  { %19885 = vpow2.f32 %v16868_v42 }
0x56eb   :  { %v19884_v43 = vpop.eup %19883 }
0x56ec   :  { %v9271_v22 = vadd.f32 1.0, %v19884_v43 }
0x56ed   :  { %v19886_v62 = vpop.eup %19885 }
0x56ee   :  { %19887 = vrcp.f32 %v9271_v22  ;;  %v9270_v38 = vadd.f32 1.0, %v19886_v62 }
0x56f0   :  { %19889 = vrcp.f32 %v9270_v38 }
0x56fb   :  { %v22316_v20 = vpop.eup %19887 }
0x56fc   :  { %v9277_v40 = vmul.f32 %v22316_v20, %v22126_v17 }
0x56fd   :  { %v22320_v12 = vpop.eup %19889 }
0x56fe   :  { %18874 = vmatprep.subr.mxu1 %v9277_v40  ;;  %v9276_v6 = vmul.f32 %v22320_v12, %v22130_v21  ;;  %v9462_v42 = vsub.f32 1.0, %v22320_v12  ;;  %v9460_v62 = vmul.f32 %v22320_v12, %v22120_v19 }
0x56ff   :  { %18875 = vmatpush3.msra.mxu1 %v9277_v40 }
0x5700   :  { %18876 = vmatprep.subr.mxu1 %v9276_v6 }
0x5701   :  { %18877 = vmatpush3.msra.mxu1 %v9276_v6 }
0x5702   :  { %18879 = vmatmul.mubr.msk.f32.vlgmr.msra.gmra.mxu1 %vm122_vm0, %v21948_v25  ;;  %18881 = vmatprep.subr.mxu1 %v22061_v39 }
0x5703   :  { %18882 = vmatpush3.msra.mxu1 %v22061_v39 }
0x5704   :  { %18883 = vmatprep.subr.mxu1 %v22066_v35 }
0x5705   :  { %18884 = vmatpush3.msra.mxu1 %v22066_v35 }
0x5706   :  { %18885 = vmatprep.subr.mxu1 %v22075_v32 }
0x5707   :  { %18886 = vmatpush3.msra.mxu1 %v22075_v32 }
0x5708   :  { %18887 = vmatprep.subr.mxu1 %v22084_v51 }
0x5709   :  { %18888 = vmatpush3.msra.mxu1 %v22084_v51 }
0x570a   :  { %18910 = vmatprep.subr.mxu1 %v22088_v54 }
0x57c2   :  { %v18880_v17 = vpop.f32.mrf.mxu1 }
0x57c4   :  { %v9344_v21 = vpop.f32.mrf.mxu1 }
0x57c5   :  { %18889 = vmatprep.mubr.msk.f32.mxu1 %vm297_vm3, %v9344_v21 }
0x57c6   :  { %18890 = vmatmul.mubr.msk.f32.vlgmr.msra.gmra.mxu1 %vm297_vm3, %v18880_v17 }
0x57c7   :  { %18911 = vmatpush3.msra.mxu1 %v22088_v54  ;;  %18918 = vmatprep.mubr.msk.f32.mxu1 %vm297_vm3, %v22284_v1 }
0x57c8   :  { %18912 = vmatprep.subr.mxu1 %v22092_v23 }
0x57c9   :  { %18913 = vmatpush3.msra.mxu1 %v22092_v23 }
0x57ca   :  { %18914 = vmatprep.subr.mxu1 %v22097_v0 }
0x57cb   :  { %18915 = vmatpush3.msra.mxu1 %v22097_v0 }
0x57cc   :  { %18916 = vmatprep.subr.mxu1 %v22101_v7 }
0x57cd   :  { %18917 = vmatpush3.msra.mxu1 %v22101_v7 }
0x57ce   :  { %18919 = vmatmul.mubr.msk.f32.vlgmr.msra.gmra.mxu1 %vm297_vm3, %v22282_v31  ;;  %18928 = vmatprep.subr.mxu1 %v22174_v14 }
0x57cf   :  { %18929 = vmatpush3.msra.mxu1 %v22174_v14 }
0x57d0   :  { %18930 = vmatprep.subr.mxu1 %v22176_v50 }
0x57d1   :  { %18931 = vmatpush3.msra.mxu1 %v22176_v50 }
0x57d2   :  { %18932 = vmatprep.subr.mxu1 %v22200_v52 }
0x57d3   :  { %18933 = vmatpush3.msra.mxu1 %v22200_v52 }
0x57d4   :  { %18934 = vmatprep.subr.mxu1 %v22204_v24 }
0x57d5   :  { %18935 = vmatpush3.msra.mxu1 %v22204_v24 }
0x5886   :  { %v18891_v1 = vpop.f32.mrf.mxu1 }
0x5887   :  { %9442 = vrot.lane.b32.xlu0 %v18891_v1, %s20278_s25 }
0x5888   :  { %v9429_v31 = vpop.f32.mrf.mxu1 }
0x5889   :  { %9440 = vrot.lane.b32.xlu1 %v9429_v31, %s20278_s25 }
0x588e   :  { %v18920_v12 = vpop.f32.mrf.mxu1 }
0x58f9   :  { %v9443_v30 = vpop.permute.xlu0 %9442 }
0x58fa   :  { %v9447_v45 = vadd.f32 %v9443_v30, %v9180_v16  ;;  %v9463_v16 = vsub.f32 1.0, %v22316_v20 }
0x58fb   :  { %v9441_v8 = vpop.permute.xlu1 %9440 }
0x58fc   :  { %v16875_v60 = vmul.f32 -1.442695, %v9447_v45  ;;  %v9446_v49 = vadd.f32 %v9441_v8, %v9175_v3  ;;  %v9461_v3 = vmul.f32 %v22316_v20, %v22116_v61  ;;  %v9722_v45 = vpop.f32.mrf.mxu1 }
0x58fe   :  { %19891 = vpow2.f32 %v16875_v60  ;;  %v16874_v37 = vmul.f32 -1.442695, %v9446_v49 }
0x5900   :  { %19893 = vpow2.f32 %v16874_v37 }
0x590b   :  { %v19892_v56 = vpop.eup %19891 }
0x590c   :  { %v9455_v59 = vadd.f32 1.0, %v19892_v56 }
0x590d   :  { %v19894_v18 = vpop.eup %19893 }
0x590e   :  { %19895 = vrcp.f32 %v9455_v59  ;;  %v9454_v58 = vadd.f32 1.0, %v19894_v18 }
0x5910   :  { %19897 = vrcp.f32 %v9454_v58 }
0x591b   :  { %v19896_v15 = vpop.eup %19895 }
0x591c   :  { %9468 = vrot.lane.b32.xlu0 %v19896_v15, %s20279_s24 }
0x591d   :  { %v19898_v29 = vpop.eup %19897 }
0x591e   :  { %9466 = vrot.lane.b32.xlu1 %v19898_v29, %s20279_s24 }
0x598e   :  { %v9469_v48 = vpop.permute.xlu0 %9468 }
0x598f   :  { %v9473_v63 = vmul.f32 %v9469_v48, %v9463_v16 }
0x5990   :  { %v9467_v43 = vpop.permute.xlu1 %9466 }
0x5991   :  { %v22364_v22 = vadd.f32 %v9473_v63, %v9461_v3  ;;  %v9472_v38 = vmul.f32 %v9467_v43, %v9462_v42 }
0x5993   :  { %v22368_v40 = vadd.f32 %v9472_v38, %v9460_v62  ;;  %9480 = vrot.lane.b32.xlu0 %v22364_v22, %s20279_s24 }
0x5995   :  { %9478 = vrot.lane.b32.xlu1 %v22368_v40, %s20279_s24 }
0x5a05   :  { %v22374_v6 = vpop.permute.xlu0 %9480 }
0x5a06   :  { %18892 = vmatprep.subr.mxu0 %v22374_v6 }
0x5a07   :  { %18893 = vmatpush3.msra.mxu0 %v22374_v6  ;;  %v22378_v61 = vpop.permute.xlu1 %9478 }
0x5a08   :  { %18894 = vmatprep.subr.mxu0 %v22378_v61 }
0x5a09   :  { %18895 = vmatpush3.msra.mxu0 %v22378_v61 }
0x5a0a   :  { %18897 = vmatmul.mubr.msk.f32.vlgmr.msra.gmra.mxu0 %vm122_vm0, %v21948_v25  ;;  %18899 = vmatprep.subr.mxu0 %v22135_v41 }
0x5a0b   :  { %18900 = vmatpush3.msra.mxu0 %v22135_v41 }
0x5a0c   :  { %18901 = vmatprep.subr.mxu0 %v22142_v10 }
0x5a0d   :  { %18902 = vmatpush3.msra.mxu0 %v22142_v10 }
0x5a0e   :  { %18903 = vmatprep.subr.mxu0 %v22153_v5 }
0x5a0f   :  { %18904 = vmatpush3.msra.mxu0 %v22153_v5 }
0x5a10   :  { %18905 = vmatprep.subr.mxu0 %v22160_v11 }
0x5a11   :  { %18906 = vmatpush3.msra.mxu0 %v22160_v11 }
0x5aca   :  { %v22392_v19 = vpop.f32.mrf.mxu0 }
0x5acc   :  { %v22394_v20 = vpop.f32.mrf.mxu0 }
0x5acd   :  { %18907 = vmatprep.mubr.msk.f32.mxu0 %vm297_vm3, %v22394_v20 }
0x5ace   :  { %18908 = vmatmul.mubr.msk.f32.vlgmr.msra.gmra.mxu0 %vm297_vm3, %v22392_v19 }
0x5acf   :  { %18925 = vmatprep.mubr.msk.f32.mxu0 %vm122_vm0, %v21962_v27 }
0x5b8e   :  { %v18909_v17 = vpop.f32.mrf.mxu0 }
0x5b8f   :  { %v9643_v21 = vadd.f32 %v18909_v17, %v22185_v44 }
0x5b90   :  { %v9637_v1 = vpop.f32.mrf.mxu0 }
0x5b91   :  { %v9732_v31 = vadd.f32 %v18920_v12, %v9643_v21  ;;  %v9638_v30 = vadd.f32 %v9637_v1, %v22190_v46 }
0x5b93   :  { %v16883_v8 = vmul.f32 -1.442695, %v9732_v31  ;;  %v9731_v60 = vadd.f32 %v9722_v45, %v9638_v30 }
0x5b95   :  { %19899 = vpow2.f32 %v16883_v8  ;;  %v16882_v49 = vmul.f32 -1.442695, %v9731_v60 }
0x5b97   :  { %19901 = vpow2.f32 %v16882_v49 }
0x5ba2   :  { %v19900_v37 = vpop.eup %19899 }
0x5ba3   :  { %v9740_v56 = vadd.f32 1.0, %v19900_v37 }
0x5ba4   :  { %v19902_v59 = vpop.eup %19901 }
0x5ba5   :  { %19903 = vrcp.f32 %v9740_v56  ;;  %v9739_v18 = vadd.f32 1.0, %v19902_v59 }
0x5ba7   :  { %19905 = vrcp.f32 %v9739_v18 }
0x5bb2   :  { %v19904_v58 = vpop.eup %19903 }
0x5bb3   :  { %v9746_v15 = vmul.f32 %v19904_v58, %v22226_v57  ;;  %v9932_v8 = vsub.f32 1.0, %v19904_v58  ;;  %v9930_v60 = vmul.f32 %v19904_v58, %v22217_v9  ;;  %v20164_v58 = vld [vmem:[%s23724_s11 + $0x18] sm:$0xff] }
0x5bb4   :  { %v19906_v29 = vpop.eup %19905 }
0x5bb5   :  { %18921 = vmatprep.subr.mxu0 %v9746_v15  ;;  %v9745_v16 = vmul.f32 %v19906_v29, %v22230_v55  ;;  %v9931_v49 = vsub.f32 1.0, %v19906_v29  ;;  %v9929_v59 = vmul.f32 %v19906_v29, %v22220_v36  ;;  %v22436_v36 = vld [vmem:[#allocation2 + $0x8] sm:$0xff]  ;;  %v20165_v29 = vld [vmem:[%s23724_s11 + $0x10] sm:$0xff] }
0x5bb6   :  { %18922 = vmatpush3.msra.mxu0 %v9746_v15 }
0x5bb7   :  { %18923 = vmatprep.subr.mxu0 %v9745_v16 }
0x5bb8   :  { %18924 = vmatpush3.msra.mxu0 %v9745_v16 }
0x5bb9   :  { %18926 = vmatmul.mubr.msk.f32.vlgmr.msra.gmra.mxu0 %vm122_vm0, %v21948_v25 }
0x5bba   :  { %18943 = vmatprep.mubr.msk.f32.mxu0 %vm122_vm0, %v21962_v27 }
0x5c79   :  { %v18927_v48 = vpop.f32.mrf.mxu0 }
0x5c7b   :  { %v9813_v3 = vpop.f32.mrf.mxu0 }
0x5c7c   :  { %18936 = vmatprep.mubr.msk.f32.mxu1 %vm297_vm3, %v9813_v3  ;;  %v20167_v3 = vld [vmem:[%s23724_s11] sm:$0xff] }
0x5c7d   :  { %18937 = vmatmul.mubr.msk.f32.vlgmr.msra.gmra.mxu1 %vm297_vm3, %v18927_v48  ;;  %v20166_v48 = vld [vmem:[%s23724_s11 + $0x8] sm:$0xff] }
0x5c7e   :  { %18961 = vmatprep.mubr.msk.f32.mxu1 %vm122_vm0, %v21962_v27 }
0x5d3d   :  { %v18938_v57 = vpop.f32.mrf.mxu1 }
0x5d3e   :  { %9911 = vrot.lane.b32.xlu0 %v18938_v57, %s20278_s25 }
0x5d3f   :  { %v9898_v55 = vpop.f32.mrf.mxu1 }
0x5d40   :  { %9909 = vrot.lane.b32.xlu1 %v9898_v55, %s20278_s25 }
0x5db0   :  { %v9912_v63 = vpop.permute.xlu0 %9911 }
0x5db1   :  { %v9916_v25 = vadd.f32 %v9912_v63, %v9643_v21 }
0x5db2   :  { %v9910_v42 = vpop.permute.xlu1 %9909 }
0x5db3   :  { %v16889_v43 = vmul.f32 -1.442695, %v9916_v25  ;;  %v9915_v62 = vadd.f32 %v9910_v42, %v9638_v30 }
0x5db5   :  { %19907 = vpow2.f32 %v16889_v43  ;;  %v16888_v38 = vmul.f32 -1.442695, %v9915_v62 }
0x5db7   :  { %19909 = vpow2.f32 %v16888_v38 }
0x5dc2   :  { %v19908_v12 = vpop.eup %19907 }
0x5dc3   :  { %v9924_v17 = vadd.f32 1.0, %v19908_v12 }
0x5dc4   :  { %v19910_v1 = vpop.eup %19909 }
0x5dc5   :  { %19911 = vrcp.f32 %v9924_v17  ;;  %v9923_v31 = vadd.f32 1.0, %v19910_v1 }
0x5dc7   :  { %19913 = vrcp.f32 %v9923_v31 }
0x5dd2   :  { %v19912_v27 = vpop.eup %19911 }
0x5dd3   :  { %9937 = vrot.lane.b32.xlu0 %v19912_v27, %s20279_s24 }
0x5dd4   :  { %v19914_v45 = vpop.eup %19913 }
0x5dd5   :  { %9935 = vrot.lane.b32.xlu1 %v19914_v45, %s20279_s24 }
0x5e45   :  { %v9938_v21 = vpop.permute.xlu0 %9937 }
0x5e46   :  { %v9942_v30 = vmul.f32 %v9938_v21, %v9932_v8 }
0x5e47   :  { %v9936_v37 = vpop.permute.xlu1 %9935 }
0x5e48   :  { %v22419_v56 = vadd.f32 %v9942_v30, %v9930_v60  ;;  %v9941_v18 = vmul.f32 %v9936_v37, %v9931_v49 }
0x5e4a   :  { %v22422_v15 = vadd.f32 %v9941_v18, %v9929_v59  ;;  %9949 = vrot.lane.b32.xlu0 %v22419_v56, %s20279_s24 }
0x5e4c   :  { %9947 = vrot.lane.b32.xlu1 %v22422_v15, %s20279_s24 }
0x5ebc   :  { %v22428_v16 = vpop.permute.xlu0 %9949 }
0x5ebd   :  { %18939 = vmatprep.subr.mxu0 %v22428_v16 }
0x5ebe   :  { %18940 = vmatpush3.msra.mxu0 %v22428_v16  ;;  %v22432_v9 = vpop.permute.xlu1 %9947 }
0x5ebf   :  { %18941 = vmatprep.subr.mxu0 %v22432_v9 }
0x5ec0   :  { %18942 = vmatpush3.msra.mxu0 %v22432_v9 }
0x5ec1   :  { %18944 = vmatmul.mubr.msk.f32.vlgmr.msra.gmra.mxu0 %vm122_vm0, %v22436_v36  ;;  %18946 = vmatprep.subr.mxu0 %v22235_v13 }
0x5ec2   :  { %18947 = vmatpush3.msra.mxu0 %v22235_v13  ;;  %18954 = vmatprep.mubr.msk.f32.mxu0 %vm297_vm3, %v22432_v9 }
0x5ec3   :  { %18948 = vmatprep.subr.mxu0 %v22242_v28 }
0x5ec4   :  { %18949 = vmatpush3.msra.mxu0 %v22242_v28 }
0x5ec5   :  { %18950 = vmatprep.subr.mxu0 %v22253_v2 }
0x5ec6   :  { %18951 = vmatpush3.msra.mxu0 %v22253_v2 }
0x5ec7   :  { %18952 = vmatprep.subr.mxu0 %v22260_v47 }
0x5ec8   :  { %18953 = vmatpush3.msra.mxu0 %v22260_v47 }
0x5ec9   :  { %18955 = vmatmul.mubr.msk.f32.vlgmr.msra.gmra.mxu0 %vm297_vm3, %v22428_v16  ;;  %18969 = vmatprep.subr.mxu0 %v20164_v58 }
0x5eca   :  { %18970 = vmatpush3.msra.mxu0 %v20164_v58  ;;  %18977 = vmatprep.mubr.msk.f32.mxu0 %vm297_vm3, %v22394_v20  ;;  %v22469_v20 = vld [vmem:[#allocation2] sm:$0xff] }
0x5ecb   :  { %18971 = vmatprep.subr.mxu0 %v20165_v29 }
0x5ecc   :  { %18972 = vmatpush3.msra.mxu0 %v20165_v29 }
0x5ecd   :  { %18973 = vmatprep.subr.mxu0 %v20166_v48 }
0x5ece   :  { %18974 = vmatpush3.msra.mxu0 %v20166_v48 }
0x5ecf   :  { %18975 = vmatprep.subr.mxu0 %v21999_v53 }
0x5ed0   :  { %18976 = vmatpush3.msra.mxu0 %v20167_v3 }
0x5ed1   :  { %18978 = vmatmul.mubr.msk.f32.vlgmr.msra.gmra.mxu0 %vm297_vm3, %v22392_v19  ;;  %v10185_v19 = vld [vmem:[#allocation4] sm:$0xf] }
0x5ed2   :  { %19002 = vmatprep.mubr.msk.f32.mxu0 %vm122_vm0, %v22469_v20 }
0x5f81   :  { %v22473_v57 = vpop.f32.mrf.mxu0 }
0x5f83   :  { %v10019_v55 = vpop.f32.mrf.mxu0 }
0x5f89   :  { %v18956_v63 = vpop.f32.mrf.mxu0 }
0x5f8a   :  { %v10104_v25 = vadd.f32 %v18956_v63, %v22289_v34 }
0x5f8b   :  { %v10098_v53 = vpop.f32.mrf.mxu0 }
0x5f8c   :  { %16895 = vst.msk [vmem:[%s23733_s20 + $0x18] sm:$0xff] %vm207_vm2, %v10104_v25  ;;  %v10099_v42 = vadd.f32 %v10098_v53, %v22294_v33  ;;  %18957 = vmatprep.subr.mxu1 %v10104_v25 }
0x5f8d   :  { %18958 = vmatpush3.msra.mxu1 %v10104_v25 }
0x5f8e   :  { %16894 = vst.msk [vmem:[%s23733_s20 + $0x10] sm:$0xff] %vm207_vm2, %v10099_v42  ;;  %18959 = vmatprep.subr.mxu1 %v10099_v42 }
0x5f8f   :  { %18960 = vmatpush3.msra.mxu1 %v10099_v42 }
0x5f90   :  { %18962 = vmatmul.mubr.msk.f32.vlgmr.msra.gmra.mxu1 %vm122_vm0, %v22436_v36  ;;  %18964 = vmatprep.subr.msk.mxu1 %vm214_vm1, %v10185_v19 }
0x5f91   :  { %18965 = vmatpush3.msk.msra.mxu1 %vm214_vm1, %v10185_v19  ;;  %v18979_v38 = vpop.f32.mrf.mxu0 }
0x5f93   :  { %v10342_v45 = vpop.f32.mrf.mxu0 }
0x6050   :  { %v18963_v43 = vpop.f32.mrf.mxu1 }
0x6052   :  { %v10176_v62 = vpop.f32.mrf.mxu1 }
0x6053   :  { %18966 = vmatprep.mubr.msk.f32.mxu1 %vm207_vm2, %v10176_v62 }
0x6054   :  { %18967 = vmatmul.mubr.msk.f32.vlgmr.msra.gmra.mxu1 %vm207_vm2, %v18963_v43 }
0x6055   :  { %18984 = vmatprep.mubr.msk.f32.mxu1 %vm122_vm0, %v22469_v20 }
0x6114   :  { %v18968_v12 = vpop.f32.mrf.mxu1 }
0x6115   :  { %v10269_v17 = vadd.f32 %v18968_v12, %v22041_v26 }
0x6116   :  { %v10263_v1 = vpop.f32.mrf.mxu1 }
0x6117   :  { %v10352_v31 = vadd.f32 %v18979_v38, %v10269_v17  ;;  %v10264_v27 = vadd.f32 %v10263_v1, %v22046_v4 }
0x6119   :  { %v16904_v8 = vmul.f32 -1.442695, %v10352_v31  ;;  %v10351_v21 = vadd.f32 %v10342_v45, %v10264_v27 }
0x611b   :  { %19915 = vpow2.f32 %v16904_v8  ;;  %v16903_v60 = vmul.f32 -1.442695, %v10351_v21 }
0x611d   :  { %19917 = vpow2.f32 %v16903_v60 }
0x6128   :  { %v19916_v30 = vpop.eup %19915 }
0x6129   :  { %v10360_v49 = vadd.f32 1.0, %v19916_v30 }
0x612a   :  { %v19918_v37 = vpop.eup %19917 }
0x612b   :  { %19919 = vrcp.f32 %v10360_v49  ;;  %v10359_v59 = vadd.f32 1.0, %v19918_v37 }
0x612d   :  { %19921 = vrcp.f32 %v10359_v59 }
0x6138   :  { %v22495_v18 = vpop.eup %19919 }
0x6139   :  { %v10366_v26 = vmul.f32 %v22495_v18, %v22374_v6  ;;  %v10552_v3 = vsub.f32 1.0, %v22495_v18 }
0x613a   :  { %v22499_v58 = vpop.eup %19921 }
0x613b   :  { %18980 = vmatprep.subr.mxu1 %v10366_v26  ;;  %v10365_v4 = vmul.f32 %v22499_v58, %v22378_v61  ;;  %v10551_v25 = vsub.f32 1.0, %v22499_v58  ;;  %v10549_v19 = vmul.f32 %v22499_v58, %v22368_v40 }
0x613c   :  { %18981 = vmatpush3.msra.mxu1 %v10366_v26 }
0x613d   :  { %18982 = vmatprep.subr.mxu1 %v10365_v4 }
0x613e   :  { %18983 = vmatpush3.msra.mxu1 %v10365_v4 }
0x613f   :  { %18985 = vmatmul.mubr.msk.f32.vlgmr.msra.gmra.mxu1 %vm122_vm0, %v22436_v36  ;;  %18987 = vmatprep.subr.mxu1 %v22061_v39 }
0x6140   :  { %18988 = vmatpush3.msra.mxu1 %v22061_v39 }
0x6141   :  { %18989 = vmatprep.subr.mxu1 %v22066_v35 }
0x6142   :  { %18990 = vmatpush3.msra.mxu1 %v22066_v35 }
0x6143   :  { %18991 = vmatprep.subr.mxu1 %v22075_v32 }
0x6144   :  { %18992 = vmatpush3.msra.mxu1 %v22075_v32 }
0x6145   :  { %18993 = vmatprep.subr.mxu1 %v22084_v51 }
0x6146   :  { %18994 = vmatpush3.msra.mxu1 %v22084_v51 }
0x6147   :  { %19016 = vmatprep.subr.mxu1 %v22088_v54 }
0x61ff   :  { %v18986_v6 = vpop.f32.mrf.mxu1 }
0x6201   :  { %v10433_v61 = vpop.f32.mrf.mxu1 }
0x6202   :  { %18995 = vmatprep.mubr.msk.f32.mxu1 %vm297_vm3, %v10433_v61 }
0x6203   :  { %18996 = vmatmul.mubr.msk.f32.vlgmr.msra.gmra.mxu1 %vm297_vm3, %v18986_v6 }
0x6204   :  { %19017 = vmatpush3.msra.mxu1 %v22088_v54  ;;  %19024 = vmatprep.mubr.msk.f32.mxu1 %vm297_vm3, %v10019_v55  ;;  %v10550_v55 = vmul.f32 %v22495_v18, %v22364_v22 }
0x6205   :  { %19018 = vmatprep.subr.mxu1 %v22092_v23 }
0x6206   :  { %19019 = vmatpush3.msra.mxu1 %v22092_v23 }
0x6207   :  { %19020 = vmatprep.subr.mxu1 %v22097_v0 }
0x6208   :  { %19021 = vmatpush3.msra.mxu1 %v22097_v0 }
0x6209   :  { %19022 = vmatprep.subr.mxu1 %v22101_v7 }
0x620a   :  { %19023 = vmatpush3.msra.mxu1 %v22101_v7 }
0x620b   :  { %19025 = vmatmul.mubr.msk.f32.vlgmr.msra.gmra.mxu1 %vm297_vm3, %v22473_v57  ;;  %19034 = vmatprep.subr.mxu1 %v22174_v14 }
0x620c   :  { %19035 = vmatpush3.msra.mxu1 %v22174_v14 }
0x620d   :  { %19036 = vmatprep.subr.mxu1 %v22176_v50 }
0x620e   :  { %19037 = vmatpush3.msra.mxu1 %v22176_v50 }
0x620f   :  { %19038 = vmatprep.subr.mxu1 %v22200_v52 }
0x6210   :  { %19039 = vmatpush3.msra.mxu1 %v22200_v52 }
0x6211   :  { %19040 = vmatprep.subr.mxu1 %v22204_v24 }
0x6212   :  { %19041 = vmatpush3.msra.mxu1 %v22204_v24 }
0x62c3   :  { %v18997_v39 = vpop.f32.mrf.mxu1 }
0x62c4   :  { %10531 = vrot.lane.b32.xlu0 %v18997_v39, %s20278_s25 }
0x62c5   :  { %v10518_v35 = vpop.f32.mrf.mxu1 }
0x62c6   :  { %10529 = vrot.lane.b32.xlu1 %v10518_v35, %s20278_s25 }
0x6336   :  { %v10532_v32 = vpop.permute.xlu0 %10531 }
0x6337   :  { %v10536_v51 = vadd.f32 %v10532_v32, %v10269_v17 }
0x6338   :  { %v10530_v54 = vpop.permute.xlu1 %10529 }
0x6339   :  { %v16910_v23 = vmul.f32 -1.442695, %v10536_v51  ;;  %v10535_v0 = vadd.f32 %v10530_v54, %v10264_v27 }
0x633b   :  { %19923 = vpow2.f32 %v16910_v23  ;;  %v16909_v7 = vmul.f32 -1.442695, %v10535_v0 }
0x633d   :  { %19925 = vpow2.f32 %v16909_v7 }
0x6348   :  { %v19924_v14 = vpop.eup %19923 }
0x6349   :  { %v10544_v50 = vadd.f32 1.0, %v19924_v14 }
0x634a   :  { %v19926_v52 = vpop.eup %19925 }
0x634b   :  { %19927 = vrcp.f32 %v10544_v50  ;;  %v10543_v29 = vadd.f32 1.0, %v19926_v52 }
0x634d   :  { %19929 = vrcp.f32 %v10543_v29 }
0x6358   :  { %v19928_v24 = vpop.eup %19927 }
0x6359   :  { %10557 = vrot.lane.b32.xlu0 %v19928_v24, %s20279_s24 }
0x635a   :  { %v19930_v48 = vpop.eup %19929 }
0x635b   :  { %10555 = vrot.lane.b32.xlu1 %v19930_v48, %s20279_s24 }
0x63cb   :  { %v10558_v57 = vpop.permute.xlu0 %10557 }
0x63cc   :  { %v10562_v63 = vmul.f32 %v10558_v57, %v10552_v3 }
0x63cd   :  { %v10556_v53 = vpop.permute.xlu1 %10555 }
0x63ce   :  { %v22542_v42 = vadd.f32 %v10562_v63, %v10550_v55  ;;  %v10561_v43 = vmul.f32 %v10556_v53, %v10551_v25 }
0x63d0   :  { %v22546_v62 = vadd.f32 %v10561_v43, %v10549_v19  ;;  %10569 = vrot.lane.b32.xlu0 %v22542_v42, %s20279_s24 }
0x63d2   :  { %10567 = vrot.lane.b32.xlu1 %v22546_v62, %s20279_s24 }
0x6442   :  { %v22552_v38 = vpop.permute.xlu0 %10569 }
0x6443   :  { %18998 = vmatprep.subr.mxu0 %v22552_v38 }
0x6444   :  { %18999 = vmatpush3.msra.mxu0 %v22552_v38  ;;  %v22556_v22 = vpop.permute.xlu1 %10567 }
0x6445   :  { %19000 = vmatprep.subr.mxu0 %v22556_v22 }
0x6446   :  { %19001 = vmatpush3.msra.mxu0 %v22556_v22 }
0x6447   :  { %19003 = vmatmul.mubr.msk.f32.vlgmr.msra.gmra.mxu0 %vm122_vm0, %v22436_v36  ;;  %19005 = vmatprep.subr.mxu0 %v22135_v41 }
0x6448   :  { %19006 = vmatpush3.msra.mxu0 %v22135_v41  ;;  %v19026_v41 = vpop.f32.mrf.mxu1 }
0x6449   :  { %19007 = vmatprep.subr.mxu0 %v22142_v10 }
0x644a   :  { %19008 = vmatpush3.msra.mxu0 %v22142_v10  ;;  %v10811_v31 = vpop.f32.mrf.mxu1 }
0x644b   :  { %19009 = vmatprep.subr.mxu0 %v22153_v5 }
0x644c   :  { %19010 = vmatpush3.msra.mxu0 %v22153_v5 }
0x644d   :  { %19011 = vmatprep.subr.mxu0 %v22160_v11 }
0x644e   :  { %19012 = vmatpush3.msra.mxu0 %v22160_v11 }
0x6507   :  { %v22570_v40 = vpop.f32.mrf.mxu0 }
0x6509   :  { %v22572_v12 = vpop.f32.mrf.mxu0 }
0x650a   :  { %19013 = vmatprep.mubr.msk.f32.mxu0 %vm297_vm3, %v22572_v12 }
0x650b   :  { %19014 = vmatmul.mubr.msk.f32.vlgmr.msra.gmra.mxu0 %vm297_vm3, %v22570_v40 }
0x650c   :  { %19031 = vmatprep.mubr.msk.f32.mxu0 %vm122_vm0, %v22469_v20 }
0x65cb   :  { %v19015_v10 = vpop.f32.mrf.mxu0 }
0x65cc   :  { %v10732_v5 = vadd.f32 %v19015_v10, %v22185_v44 }
0x65cd   :  { %v10726_v17 = vpop.f32.mrf.mxu0 }
0x65ce   :  { %v10821_v1 = vadd.f32 %v19026_v41, %v10732_v5  ;;  %v10727_v11 = vadd.f32 %v10726_v17, %v22190_v46 }
0x65d0   :  { %v16918_v27 = vmul.f32 -1.442695, %v10821_v1  ;;  %v10820_v45 = vadd.f32 %v10811_v31, %v10727_v11  ;;  %v22692_v1 = vld [vmem:[%s23726_s13] sm:$0xff] }
0x65d2   :  { %19931 = vpow2.f32 %v16918_v27  ;;  %v16917_v8 = vmul.f32 -1.442695, %v10820_v45 }
0x65d4   :  { %19933 = vpow2.f32 %v16917_v8 }
0x65df   :  { %v19932_v21 = vpop.eup %19931 }
0x65e0   :  { %v10829_v60 = vadd.f32 1.0, %v19932_v21 }
0x65e1   :  { %v19934_v30 = vpop.eup %19933 }
0x65e2   :  { %19935 = vrcp.f32 %v10829_v60  ;;  %v10828_v49 = vadd.f32 1.0, %v19934_v30 }
0x65e4   :  { %19937 = vrcp.f32 %v10828_v49 }
0x65ef   :  { %v19936_v37 = vpop.eup %19935 }
0x65f0   :  { %v10835_v59 = vmul.f32 %v19936_v37, %v22428_v16  ;;  %v11021_v14 = vsub.f32 1.0, %v19936_v37  ;;  %v11019_v52 = vmul.f32 %v19936_v37, %v22419_v56 }
0x65f1   :  { %v19938_v44 = vpop.eup %19937 }
0x65f2   :  { %19027 = vmatprep.subr.mxu0 %v10835_v59  ;;  %v10834_v18 = vmul.f32 %v19938_v44, %v22432_v9  ;;  %v11020_v24 = vsub.f32 1.0, %v19938_v44  ;;  %v11018_v57 = vmul.f32 %v19938_v44, %v22422_v15  ;;  %v22627_v15 = vld [vmem:[%s23724_s11 + $0x18] sm:$0xff] }
0x65f3   :  { %19028 = vmatpush3.msra.mxu0 %v10835_v59 }
0x65f4   :  { %19029 = vmatprep.subr.mxu0 %v10834_v18 }
0x65f5   :  { %19030 = vmatpush3.msra.mxu0 %v10834_v18 }
0x65f6   :  { %19032 = vmatmul.mubr.msk.f32.vlgmr.msra.gmra.mxu0 %vm122_vm0, %v22436_v36 }
0x65f7   :  { %19049 = vmatprep.mubr.msk.f32.mxu0 %vm122_vm0, %v22469_v20 }
0x66b6   :  { %v19033_v46 = vpop.f32.mrf.mxu0 }
0x66b8   :  { %v10902_v26 = vpop.f32.mrf.mxu0 }
0x66b9   :  { %19042 = vmatprep.mubr.msk.f32.mxu1 %vm297_vm3, %v10902_v26 }
0x66ba   :  { %19043 = vmatmul.mubr.msk.f32.vlgmr.msra.gmra.mxu1 %vm297_vm3, %v19033_v46 }
0x66bb   :  { %19067 = vmatprep.mubr.msk.f32.mxu1 %vm122_vm0, %v22469_v20 }
0x677a   :  { %v19044_v16 = vpop.f32.mrf.mxu1 }
0x677b   :  { %11000 = vrot.lane.b32.xlu0 %v19044_v16, %s20278_s25 }
0x677c   :  { %v10987_v9 = vpop.f32.mrf.mxu1 }
0x677d   :  { %10998 = vrot.lane.b32.xlu1 %v10987_v9, %s20278_s25  ;;  %v22707_v9 = vld [vmem:[%s23725_s12 + $0x18] sm:$0xff] }
0x67ed   :  { %v11001_v58 = vpop.permute.xlu0 %11000 }
0x67ee   :  { %v11005_v4 = vadd.f32 %v11001_v58, %v10732_v5  ;;  %v22712_v58 = vld [vmem:[%s23725_s12 + $0x10] sm:$0xff] }
0x67ef   :  { %v10999_v6 = vpop.permute.xlu1 %10998 }
0x67f0   :  { %v16924_v61 = vmul.f32 -1.442695, %v11005_v4  ;;  %v11004_v39 = vadd.f32 %v10999_v6, %v10727_v11  ;;  %v22734_v4 = vld [vmem:[#allocation6 + $0x18] sm:$0xff] }
0x67f2   :  { %19939 = vpow2.f32 %v16924_v61  ;;  %v16923_v35 = vmul.f32 -1.442695, %v11004_v39  ;;  %v22738_v39 = vld [vmem:[#allocation6 + $0x10] sm:$0xff] }
0x67f4   :  { %19941 = vpow2.f32 %v16923_v35  ;;  %v22744_v35 = vld [vmem:[#allocation6 + $0x8] sm:$0xff] }
0x67ff   :  { %v19940_v32 = vpop.eup %19939 }
0x6800   :  { %v11013_v51 = vadd.f32 1.0, %v19940_v32  ;;  %v22748_v32 = vld [vmem:[#allocation6] sm:$0xff] }
0x6801   :  { %v19942_v54 = vpop.eup %19941 }
0x6802   :  { %19943 = vrcp.f32 %v11013_v51  ;;  %v11012_v23 = vadd.f32 1.0, %v19942_v54 }
0x6804   :  { %19945 = vrcp.f32 %v11012_v23 }
0x680f   :  { %v19944_v0 = vpop.eup %19943 }
0x6810   :  { %11026 = vrot.lane.b32.xlu0 %v19944_v0, %s20279_s24 }
0x6811   :  { %v19946_v7 = vpop.eup %19945 }
0x6812   :  { %11024 = vrot.lane.b32.xlu1 %v19946_v7, %s20279_s24 }
0x6882   :  { %v11027_v50 = vpop.permute.xlu0 %11026 }
0x6883   :  { %v11031_v29 = vmul.f32 %v11027_v50, %v11021_v14 }
0x6884   :  { %v11025_v48 = vpop.permute.xlu1 %11024 }
0x6885   :  { %v22597_v3 = vadd.f32 %v11031_v29, %v11019_v52  ;;  %v11030_v55 = vmul.f32 %v11025_v48, %v11020_v24 }
0x6887   :  { %v22600_v63 = vadd.f32 %v11030_v55, %v11018_v57  ;;  %11038 = vrot.lane.b32.xlu0 %v22597_v3, %s20279_s24 }
0x6889   :  { %11036 = vrot.lane.b32.xlu1 %v22600_v63, %s20279_s24 }
0x68f9   :  { %v22606_v25 = vpop.permute.xlu0 %11038 }
0x68fa   :  { %19045 = vmatprep.subr.mxu0 %v22606_v25 }
0x68fb   :  { %19046 = vmatpush3.msra.mxu0 %v22606_v25  ;;  %v22610_v56 = vpop.permute.xlu1 %11036 }
0x68fc   :  { %19047 = vmatprep.subr.mxu0 %v22610_v56 }
0x68fd   :  { %19048 = vmatpush3.msra.mxu0 %v22610_v56 }
0x68fe   :  { %19050 = vmatmul.mubr.msk.f32.vlgmr.msra.gmra.mxu0 %vm122_vm0, %v22436_v36  ;;  %19052 = vmatprep.subr.mxu0 %v22235_v13 }
0x68ff   :  { %19053 = vmatpush3.msra.mxu0 %v22235_v13  ;;  %19060 = vmatprep.mubr.msk.f32.mxu0 %vm297_vm3, %v22610_v56  ;;  %v22634_v13 = vld [vmem:[%s23724_s11 + $0x10] sm:$0xff] }
0x6900   :  { %19054 = vmatprep.subr.mxu0 %v22242_v28 }
0x6901   :  { %19055 = vmatpush3.msra.mxu0 %v22242_v28  ;;  %v22645_v28 = vld [vmem:[%s23724_s11 + $0x8] sm:$0xff] }
0x6902   :  { %19056 = vmatprep.subr.mxu0 %v22253_v2 }
0x6903   :  { %19057 = vmatpush3.msra.mxu0 %v22253_v2  ;;  %v22652_v2 = vld [vmem:[%s23724_s11] sm:$0xff] }
0x6904   :  { %19058 = vmatprep.subr.mxu0 %v22260_v47 }
0x6905   :  { %19059 = vmatpush3.msra.mxu0 %v22260_v47 }
0x6906   :  { %19061 = vmatmul.mubr.msk.f32.vlgmr.msra.gmra.mxu0 %vm297_vm3, %v22606_v25  ;;  %19075 = vmatprep.subr.mxu0 %v22627_v15 }
0x6907   :  { %19076 = vmatpush3.msra.mxu0 %v22627_v15  ;;  %19083 = vmatprep.mubr.msk.f32.mxu0 %vm297_vm3, %v22572_v12 }
0x6908   :  { %19077 = vmatprep.subr.mxu0 %v22634_v13 }
0x6909   :  { %19078 = vmatpush3.msra.mxu0 %v22634_v13 }
0x690a   :  { %19079 = vmatprep.subr.mxu0 %v22645_v28 }
0x690b   :  { %19080 = vmatpush3.msra.mxu0 %v22645_v28 }
0x690c   :  { %19081 = vmatprep.subr.mxu0 %v22652_v2 }
0x690d   :  { %19082 = vmatpush3.msra.mxu0 %v22652_v2 }
0x690e   :  { %19084 = vmatmul.mubr.msk.f32.vlgmr.msra.gmra.mxu0 %vm297_vm3, %v22570_v40 }
0x690f   :  { %19108 = vmatprep.mubr.msk.f32.mxu0 %vm122_vm0, %v22469_v20 }
0x69be   :  { %v22662_v47 = vpop.f32.mrf.mxu0 }
0x69c0   :  { %v22664_v53 = vpop.f32.mrf.mxu0 }
0x69c6   :  { %v19062_v19 = vpop.f32.mrf.mxu0 }
0x69c7   :  { %v11193_v43 = vadd.f32 %v19062_v19, %v22289_v34  ;;  %v11274_v34 = vld [vmem:[#allocation4] sm:$0xf] }
0x69c8   :  { %v11187_v12 = vpop.f32.mrf.mxu0 }
0x69c9   :  { %16930 = vst.msk [vmem:[%s23733_s20 + $0x28] sm:$0xff] %vm207_vm2, %v11193_v43  ;;  %v11188_v41 = vadd.f32 %v11187_v12, %v22294_v33  ;;  %19063 = vmatprep.subr.mxu1 %v11193_v43  ;;  %v22687_v33 = vld [vmem:[%s23726_s13 + $0x8] sm:$0xff] }
0x69ca   :  { %19064 = vmatpush3.msra.mxu1 %v11193_v43 }
0x69cb   :  { %16929 = vst.msk [vmem:[%s23733_s20 + $0x20] sm:$0xff] %vm207_vm2, %v11188_v41  ;;  %19065 = vmatprep.subr.mxu1 %v11188_v41 }
0x69cc   :  { %19066 = vmatpush3.msra.mxu1 %v11188_v41 }
0x69cd   :  { %19068 = vmatmul.mubr.msk.f32.vlgmr.msra.gmra.mxu1 %vm122_vm0, %v22436_v36  ;;  %19070 = vmatprep.subr.msk.mxu1 %vm214_vm1, %v11274_v34 }
0x69ce   :  { %19071 = vmatpush3.msk.msra.mxu1 %vm214_vm1, %v11274_v34  ;;  %v19085_v5 = vpop.f32.mrf.mxu0 }
0x69d0   :  { %v11431_v8 = vpop.f32.mrf.mxu0 }
0x6a8d   :  { %v19069_v40 = vpop.f32.mrf.mxu1 }
0x6a8f   :  { %v11265_v10 = vpop.f32.mrf.mxu1 }
0x6a90   :  { %19072 = vmatprep.mubr.msk.f32.mxu1 %vm207_vm2, %v11265_v10 }
0x6a91   :  { %19073 = vmatmul.mubr.msk.f32.vlgmr.msra.gmra.mxu1 %vm207_vm2, %v19069_v40 }
0x6a92   :  { %19090 = vmatprep.mubr.msk.f32.mxu1 %vm122_vm0, %v22469_v20 }
0x6b51   :  { %v19074_v17 = vpop.f32.mrf.mxu1 }
0x6b52   :  { %v11358_v11 = vadd.f32 %v19074_v17, %v22687_v33 }
0x6b53   :  { %v11352_v31 = vpop.f32.mrf.mxu1 }
0x6b54   :  { %v11441_v27 = vadd.f32 %v19085_v5, %v11358_v11  ;;  %v11353_v45 = vadd.f32 %v11352_v31, %v22692_v1  ;;  %v22790_v31 = vld [vmem:[%s23727_s14 + $0x10] sm:$0xff] }
0x6b56   :  { %v16939_v21 = vmul.f32 -1.442695, %v11441_v27  ;;  %v11440_v60 = vadd.f32 %v11431_v8, %v11353_v45  ;;  %v22801_v27 = vld [vmem:[%s23727_s14 + $0x8] sm:$0xff] }
0x6b58   :  { %19947 = vpow2.f32 %v16939_v21  ;;  %v16938_v30 = vmul.f32 -1.442695, %v11440_v60  ;;  %v22822_v60 = vld [vmem:[#allocation7 + $0x18] sm:$0xff] }
0x6b5a   :  { %19949 = vpow2.f32 %v16938_v30  ;;  %v22824_v30 = vld [vmem:[#allocation7 + $0x10] sm:$0xff] }
0x6b65   :  { %v19948_v49 = vpop.eup %19947 }
0x6b66   :  { %v11449_v37 = vadd.f32 1.0, %v19948_v49  ;;  %v22833_v49 = vld [vmem:[%s23730_s17 + $0x8] sm:$0xff] }
0x6b67   :  { %v19950_v59 = vpop.eup %19949 }
0x6b68   :  { %19951 = vrcp.f32 %v11449_v37  ;;  %v11448_v44 = vadd.f32 1.0, %v19950_v59 }
0x6b6a   :  { %19953 = vrcp.f32 %v11448_v44  ;;  %v22838_v44 = vld [vmem:[%s23730_s17] sm:$0xff] }
0x6b75   :  { %v22696_v18 = vpop.eup %19951 }
0x6b76   :  { %v11455_v46 = vmul.f32 %v22696_v18, %v22552_v38  ;;  %v22721_v38 = vld [vmem:[%s23725_s12 + $0x8] sm:$0xff]  ;;  %v11639_v43 = vmul.f32 %v22696_v18, %v22542_v42 }
0x6b77   :  { %v22700_v26 = vpop.eup %19953 }
0x6b78   :  { %19086 = vmatprep.subr.mxu1 %v11455_v46  ;;  %v11454_v16 = vmul.f32 %v22700_v26, %v22556_v22  ;;  %v22730_v22 = vld [vmem:[%s23725_s12] sm:$0xff]  ;;  %v11640_v41 = vsub.f32 1.0, %v22700_v26  ;;  %v11638_v10 = vmul.f32 %v22700_v26, %v22546_v62  ;;  %v22783_v62 = vld [vmem:[%s23727_s14 + $0x18] sm:$0xff] }
0x6b79   :  { %19087 = vmatpush3.msra.mxu1 %v11455_v46 }
0x6b7a   :  { %19088 = vmatprep.subr.mxu1 %v11454_v16 }
0x6b7b   :  { %19089 = vmatpush3.msra.mxu1 %v11454_v16 }
0x6b7c   :  { %19091 = vmatmul.mubr.msk.f32.vlgmr.msra.gmra.mxu1 %vm122_vm0, %v22436_v36  ;;  %19093 = vmatprep.subr.mxu1 %v22707_v9 }
0x6b7d   :  { %19094 = vmatpush3.msra.mxu1 %v22707_v9 }
0x6b7e   :  { %19095 = vmatprep.subr.mxu1 %v22712_v58 }
0x6b7f   :  { %19096 = vmatpush3.msra.mxu1 %v22712_v58 }
0x6b80   :  { %19097 = vmatprep.subr.mxu1 %v22721_v38 }
0x6b81   :  { %19098 = vmatpush3.msra.mxu1 %v22721_v38 }
0x6b82   :  { %19099 = vmatprep.subr.mxu1 %v22730_v22 }
0x6b83   :  { %19100 = vmatpush3.msra.mxu1 %v22730_v22 }
0x6b84   :  { %19122 = vmatprep.subr.mxu1 %v22734_v4 }
0x6c3c   :  { %v19092_v6 = vpop.f32.mrf.mxu1 }
0x6c3e   :  { %v11522_v61 = vpop.f32.mrf.mxu1 }
0x6c3f   :  { %19101 = vmatprep.mubr.msk.f32.mxu1 %vm297_vm3, %v11522_v61 }
0x6c40   :  { %19102 = vmatmul.mubr.msk.f32.vlgmr.msra.gmra.mxu1 %vm297_vm3, %v19092_v6 }
0x6c41   :  { %19123 = vmatpush3.msra.mxu1 %v22734_v4  ;;  %19130 = vmatprep.mubr.msk.f32.mxu1 %vm297_vm3, %v22664_v53  ;;  %v11641_v53 = vsub.f32 1.0, %v22696_v18 }
0x6c42   :  { %19124 = vmatprep.subr.mxu1 %v22738_v39 }
0x6c43   :  { %19125 = vmatpush3.msra.mxu1 %v22738_v39 }
0x6c44   :  { %19126 = vmatprep.subr.mxu1 %v22744_v35 }
0x6c45   :  { %19127 = vmatpush3.msra.mxu1 %v22744_v35 }
0x6c46   :  { %19128 = vmatprep.subr.mxu1 %v22748_v32 }
0x6c47   :  { %19129 = vmatpush3.msra.mxu1 %v22748_v32 }
0x6c48   :  { %19131 = vmatmul.mubr.msk.f32.vlgmr.msra.gmra.mxu1 %vm297_vm3, %v22662_v47  ;;  %19140 = vmatprep.subr.mxu1 %v22822_v60 }
0x6c49   :  { %19141 = vmatpush3.msra.mxu1 %v22822_v60 }
0x6c4a   :  { %19142 = vmatprep.subr.mxu1 %v22824_v30 }
0x6c4b   :  { %19143 = vmatpush3.msra.mxu1 %v22824_v30 }
0x6d00   :  { %v19103_v51 = vpop.f32.mrf.mxu1 }
0x6d01   :  { %11620 = vrot.lane.b32.xlu0 %v19103_v51, %s20278_s25 }
0x6d02   :  { %v11607_v54 = vpop.f32.mrf.mxu1 }
0x6d03   :  { %11618 = vrot.lane.b32.xlu1 %v11607_v54, %s20278_s25 }
0x6d08   :  { %v19132_v37 = vpop.f32.mrf.mxu1 }
0x6d0a   :  { %v11900_v6 = vpop.f32.mrf.mxu1 }
0x6d73   :  { %v11621_v23 = vpop.permute.xlu0 %11620 }
0x6d74   :  { %v11625_v0 = vadd.f32 %v11621_v23, %v11358_v11 }
0x6d75   :  { %v11619_v7 = vpop.permute.xlu1 %11618 }
0x6d76   :  { %v16945_v14 = vmul.f32 -1.442695, %v11625_v0  ;;  %v11624_v50 = vadd.f32 %v11619_v7, %v11353_v45  ;;  %v22808_v45 = vld [vmem:[%s23727_s14] sm:$0xff] }
0x6d78   :  { %19955 = vpow2.f32 %v16945_v14  ;;  %v16944_v52 = vmul.f32 -1.442695, %v11624_v50 }
0x6d7a   :  { %19957 = vpow2.f32 %v16944_v52 }
0x6d85   :  { %v19956_v29 = vpop.eup %19955 }
0x6d86   :  { %v11633_v24 = vadd.f32 1.0, %v19956_v29 }
0x6d87   :  { %v19958_v48 = vpop.eup %19957 }
0x6d88   :  { %19959 = vrcp.f32 %v11633_v24  ;;  %v11632_v57 = vadd.f32 1.0, %v19958_v48  ;;  %v22848_v48 = vld [vmem:[#allocation7 + $0x8] sm:$0xff] }
0x6d89   :  { %19144 = vmatprep.subr.mxu1 %v22848_v48 }
0x6d8a   :  { %19961 = vrcp.f32 %v11632_v57  ;;  %19145 = vmatpush3.msra.mxu1 %v22848_v48 }
0x6d95   :  { %v19960_v55 = vpop.eup %19959 }
0x6d96   :  { %11646 = vrot.lane.b32.xlu0 %v19960_v55, %s20279_s24 }
0x6d97   :  { %v19962_v47 = vpop.eup %19961 }
0x6d98   :  { %11644 = vrot.lane.b32.xlu1 %v19962_v47, %s20279_s24 }
0x6e08   :  { %v11647_v19 = vpop.permute.xlu0 %11646 }
0x6e09   :  { %v11651_v12 = vmul.f32 %v11647_v19, %v11641_v53 }
0x6e0a   :  { %v11645_v34 = vpop.permute.xlu1 %11644 }
0x6e0b   :  { %v22764_v40 = vadd.f32 %v11651_v12, %v11639_v43  ;;  %v11650_v5 = vmul.f32 %v11645_v34, %v11640_v41 }
0x6e0d   :  { %v22768_v17 = vadd.f32 %v11650_v5, %v11638_v10  ;;  %11658 = vrot.lane.b32.xlu0 %v22764_v40, %s20279_s24 }
0x6e0f   :  { %11656 = vrot.lane.b32.xlu1 %v22768_v17, %s20279_s24 }
0x6e7f   :  { %v22774_v11 = vpop.permute.xlu0 %11658 }
0x6e80   :  { %19104 = vmatprep.subr.mxu0 %v22774_v11 }
0x6e81   :  { %19105 = vmatpush3.msra.mxu0 %v22774_v11  ;;  %v22778_v42 = vpop.permute.xlu1 %11656 }
0x6e82   :  { %19106 = vmatprep.subr.mxu0 %v22778_v42 }
0x6e83   :  { %19107 = vmatpush3.msra.mxu0 %v22778_v42 }
0x6e84   :  { %19109 = vmatmul.mubr.msk.f32.vlgmr.msra.gmra.mxu0 %vm122_vm0, %v22436_v36  ;;  %19111 = vmatprep.subr.mxu0 %v22783_v62 }
0x6e85   :  { %19112 = vmatpush3.msra.mxu0 %v22783_v62 }
0x6e86   :  { %19113 = vmatprep.subr.mxu0 %v22790_v31 }
0x6e87   :  { %19114 = vmatpush3.msra.mxu0 %v22790_v31 }
0x6e88   :  { %19115 = vmatprep.subr.mxu0 %v22801_v27 }
0x6e89   :  { %19116 = vmatpush3.msra.mxu0 %v22801_v27 }
0x6e8a   :  { %19117 = vmatprep.subr.mxu0 %v22808_v45 }
0x6e8b   :  { %19118 = vmatpush3.msra.mxu0 %v22808_v45 }
0x6f44   :  { %v22812_v8 = vpop.f32.mrf.mxu0 }
0x6f46   :  { %v22814_v21 = vpop.f32.mrf.mxu0 }
0x6f47   :  { %19119 = vmatprep.mubr.msk.f32.mxu0 %vm297_vm3, %v22814_v21 }
0x6f48   :  { %19120 = vmatmul.mubr.msk.f32.vlgmr.msra.gmra.mxu0 %vm297_vm3, %v22812_v8 }
0x6f49   :  { %19137 = vmatprep.mubr.msk.f32.mxu0 %vm122_vm0, %v22469_v20 }
0x7008   :  { %v19121_v59 = vpop.f32.mrf.mxu0 }
0x7009   :  { %v11821_v18 = vadd.f32 %v19121_v59, %v22833_v49 }
0x700a   :  { %v11815_v46 = vpop.f32.mrf.mxu0 }
0x700b   :  { %v11910_v26 = vadd.f32 %v19132_v37, %v11821_v18  ;;  %v11816_v16 = vadd.f32 %v11815_v46, %v22838_v44 }
0x700d   :  { %v16953_v61 = vmul.f32 -1.442695, %v11910_v26  ;;  %v11909_v51 = vadd.f32 %v11900_v6, %v11816_v16 }
0x700f   :  { %19963 = vpow2.f32 %v16953_v61  ;;  %v16952_v54 = vmul.f32 -1.442695, %v11909_v51 }
0x7011   :  { %19965 = vpow2.f32 %v16952_v54 }
0x701c   :  { %v19964_v23 = vpop.eup %19963 }
0x701d   :  { %v11918_v0 = vadd.f32 1.0, %v19964_v23 }
0x701e   :  { %v19966_v7 = vpop.eup %19965 }
0x701f   :  { %19967 = vrcp.f32 %v11918_v0  ;;  %v11917_v14 = vadd.f32 1.0, %v19966_v7 }
0x7021   :  { %19969 = vrcp.f32 %v11917_v14 }
0x702c   :  { %v19968_v50 = vpop.eup %19967 }
0x702d   :  { %v11924_v52 = vmul.f32 %v19968_v50, %v22606_v25  ;;  %v22852_v25 = vld [vmem:[#allocation7] sm:$0xff]  ;;  %v12110_v6 = vsub.f32 1.0, %v19968_v50  ;;  %v12108_v61 = vmul.f32 %v19968_v50, %v22597_v3 }
0x702e   :  { %v19970_v29 = vpop.eup %19969  ;;  %19146 = vmatprep.subr.mxu1 %v22852_v25  ;;  %v22896_v50 = vld [vmem:[%s23731_s18 + $0x10] sm:$0xff] }
0x702f   :  { %19133 = vmatprep.subr.mxu0 %v11924_v52  ;;  %v11923_v24 = vmul.f32 %v19970_v29, %v22610_v56  ;;  %19147 = vmatpush3.msra.mxu1 %v22852_v25  ;;  %v12109_v51 = vsub.f32 1.0, %v19970_v29  ;;  %v12107_v0 = vmul.f32 %v19970_v29, %v22600_v63  ;;  %v22887_v63 = vld [vmem:[%s23731_s18 + $0x18] sm:$0xff]  ;;  %v22910_v29 = vld [vmem:[%s23731_s18] sm:$0xff] }
0x7030   :  { %19134 = vmatpush3.msra.mxu0 %v11924_v52 }
0x7031   :  { %19135 = vmatprep.subr.mxu0 %v11923_v24 }
0x7032   :  { %19136 = vmatpush3.msra.mxu0 %v11923_v24 }
0x7033   :  { %19138 = vmatmul.mubr.msk.f32.vlgmr.msra.gmra.mxu0 %vm122_vm0, %v22436_v36 }
0x7034   :  { %19155 = vmatprep.mubr.msk.f32.mxu0 %vm122_vm0, %v22469_v20 }
0x70f3   :  { %v19139_v56 = vpop.f32.mrf.mxu0 }
0x70f5   :  { %v11991_v57 = vpop.f32.mrf.mxu0 }
0x70f6   :  { %19148 = vmatprep.mubr.msk.f32.mxu1 %vm297_vm3, %v11991_v57  ;;  %v22937_v57 = vld [vmem:[%s23732_s19 + $0x8] sm:$0xff] }
0x70f7   :  { %19149 = vmatmul.mubr.msk.f32.vlgmr.msra.gmra.mxu1 %vm297_vm3, %v19139_v56 }
0x70f8   :  { %19173 = vmatprep.mubr.msk.f32.mxu1 %vm122_vm0, %v22469_v20 }
0x71b7   :  { %v19150_v55 = vpop.f32.mrf.mxu1 }
0x71b8   :  { %12089 = vrot.lane.b32.xlu0 %v19150_v55, %s20278_s25 }
0x71b9   :  { %v12076_v47 = vpop.f32.mrf.mxu1 }
0x71ba   :  { %12087 = vrot.lane.b32.xlu1 %v12076_v47, %s20278_s25 }
0x722a   :  { %v12090_v53 = vpop.permute.xlu0 %12089 }
0x722b   :  { %v12094_v19 = vadd.f32 %v12090_v53, %v11821_v18 }
0x722c   :  { %v12088_v43 = vpop.permute.xlu1 %12087 }
0x722d   :  { %v16959_v12 = vmul.f32 -1.442695, %v12094_v19  ;;  %v12093_v41 = vadd.f32 %v12088_v43, %v11816_v16  ;;  %v22954_v19 = vld [vmem:[#allocation2 + $0x8] sm:$0xff]  ;;  %v12363_v43 = vld [vmem:[#allocation4] sm:$0xf] }
0x722f   :  { %19971 = vpow2.f32 %v16959_v12  ;;  %v16958_v34 = vmul.f32 -1.442695, %v12093_v41 }
0x7231   :  { %19973 = vpow2.f32 %v16958_v34 }
0x723c   :  { %v19972_v10 = vpop.eup %19971 }
0x723d   :  { %v12102_v5 = vadd.f32 1.0, %v19972_v10 }
0x723e   :  { %v19974_v37 = vpop.eup %19973 }
0x723f   :  { %19975 = vrcp.f32 %v12102_v5  ;;  %v12101_v59 = vadd.f32 1.0, %v19974_v37 }
0x7241   :  { %19977 = vrcp.f32 %v12101_v59 }
0x724c   :  { %v19976_v46 = vpop.eup %19975 }
0x724d   :  { %12115 = vrot.lane.b32.xlu0 %v19976_v46, %s20279_s24 }
0x724e   :  { %v19978_v26 = vpop.eup %19977 }
0x724f   :  { %12113 = vrot.lane.b32.xlu1 %v19978_v26, %s20279_s24 }
0x72bf   :  { %v12116_v18 = vpop.permute.xlu0 %12115 }
0x72c0   :  { %v12120_v16 = vmul.f32 %v12116_v18, %v12110_v6 }
0x72c1   :  { %v12114_v54 = vpop.permute.xlu1 %12113 }
0x72c2   :  { %v22865_v23 = vadd.f32 %v12120_v16, %v12108_v61  ;;  %v12119_v7 = vmul.f32 %v12114_v54, %v12109_v51 }
0x72c4   :  { %v22868_v14 = vadd.f32 %v12119_v7, %v12107_v0  ;;  %12127 = vrot.lane.b32.xlu0 %v22865_v23, %s20279_s24 }
0x72c6   :  { %12125 = vrot.lane.b32.xlu1 %v22868_v14, %s20279_s24 }
0x7336   :  { %v22874_v52 = vpop.permute.xlu0 %12127 }
0x7337   :  { %19151 = vmatprep.subr.mxu0 %v22874_v52 }
0x7338   :  { %19152 = vmatpush3.msra.mxu0 %v22874_v52  ;;  %v22878_v3 = vpop.permute.xlu1 %12125 }
0x7339   :  { %19153 = vmatprep.subr.mxu0 %v22878_v3 }
0x733a   :  { %19154 = vmatpush3.msra.mxu0 %v22878_v3 }
0x733b   :  { %19156 = vmatmul.mubr.msk.f32.vlgmr.msra.gmra.mxu0 %vm122_vm0, %v22436_v36  ;;  %19158 = vmatprep.subr.mxu0 %v22887_v63  ;;  %v22903_v36 = vld [vmem:[%s23731_s18 + $0x8] sm:$0xff] }
0x733c   :  { %19159 = vmatpush3.msra.mxu0 %v22887_v63  ;;  %19166 = vmatprep.mubr.msk.f32.mxu0 %vm297_vm3, %v22878_v3 }
0x733d   :  { %19160 = vmatprep.subr.mxu0 %v22896_v50 }
0x733e   :  { %19161 = vmatpush3.msra.mxu0 %v22896_v50 }
0x733f   :  { %19162 = vmatprep.subr.mxu0 %v22903_v36 }
0x7340   :  { %19163 = vmatpush3.msra.mxu0 %v22903_v36 }
0x7341   :  { %19164 = vmatprep.subr.mxu0 %v22910_v29 }
0x7342   :  { %19165 = vmatpush3.msra.mxu0 %v22910_v29 }
0x7343   :  { %19167 = vmatmul.mubr.msk.f32.vlgmr.msra.gmra.mxu0 %vm297_vm3, %v22874_v52  ;;  %19181 = vmatprep.subr.mxu0 %v22627_v15 }
0x7344   :  { %19182 = vmatpush3.msra.mxu0 %v22627_v15  ;;  %19189 = vmatprep.mubr.msk.f32.mxu0 %vm297_vm3, %v22814_v21 }
0x7345   :  { %19183 = vmatprep.subr.mxu0 %v22634_v13 }
0x7346   :  { %19184 = vmatpush3.msra.mxu0 %v22634_v13 }
0x7347   :  { %19185 = vmatprep.subr.mxu0 %v22645_v28 }
0x7348   :  { %19186 = vmatpush3.msra.mxu0 %v22645_v28 }
0x7349   :  { %19187 = vmatprep.subr.mxu0 %v22652_v2 }
0x734a   :  { %19188 = vmatpush3.msra.mxu0 %v22652_v2 }
0x734b   :  { %19190 = vmatmul.mubr.msk.f32.vlgmr.msra.gmra.mxu0 %vm297_vm3, %v22812_v8  ;;  %v22947_v8 = vld [vmem:[%s23732_s19] sm:$0xff] }
0x734c   :  { %19214 = vmatprep.mubr.msk.f32.mxu0 %vm122_vm0, %v22469_v20 }
0x73fb   :  { %v22930_v24 = vpop.f32.mrf.mxu0 }
0x73fd   :  { %v22932_v21 = vpop.f32.mrf.mxu0 }
0x7403   :  { %v19168_v56 = vpop.f32.mrf.mxu0 }
0x7404   :  { %v12282_v55 = vadd.f32 %v22937_v57, %v19168_v56 }
0x7405   :  { %v12276_v47 = vpop.f32.mrf.mxu0 }
0x7406   :  { %16965 = vst.msk [vmem:[%s23733_s20 + $0x38] sm:$0xff] %vm207_vm2, %v12282_v55  ;;  %v12277_v53 = vadd.f32 %v22947_v8, %v12276_v47  ;;  %19169 = vmatprep.subr.mxu1 %v12282_v55 }
0x7407   :  { %19170 = vmatpush3.msra.mxu1 %v12282_v55 }
0x7408   :  { %16964 = vst.msk [vmem:[%s23733_s20 + $0x30] sm:$0xff] %vm207_vm2, %v12277_v53  ;;  %19171 = vmatprep.subr.mxu1 %v12277_v53 }
0x7409   :  { %19172 = vmatpush3.msra.mxu1 %v12277_v53 }
0x740a   :  { %19174 = vmatmul.mubr.msk.f32.vlgmr.msra.gmra.mxu1 %vm122_vm0, %v22954_v19  ;;  %19176 = vmatprep.subr.msk.mxu1 %vm214_vm1, %v12363_v43 }
0x740b   :  { %19177 = vmatpush3.msk.msra.mxu1 %vm214_vm1, %v12363_v43  ;;  %v19191_v34 = vpop.f32.mrf.mxu0 }
0x740d   :  { %v12520_v26 = vpop.f32.mrf.mxu0 }
0x74ca   :  { %v19175_v12 = vpop.f32.mrf.mxu1 }
0x74cc   :  { %v12354_v41 = vpop.f32.mrf.mxu1 }
0x74cd   :  { %19178 = vmatprep.mubr.msk.f32.mxu1 %vm207_vm2, %v12354_v41 }
0x74ce   :  { %19179 = vmatmul.mubr.msk.f32.vlgmr.msra.gmra.mxu1 %vm207_vm2, %v19175_v12 }
0x74cf   :  { %19196 = vmatprep.mubr.msk.f32.mxu1 %vm122_vm0, %v22469_v20 }
0x758e   :  { %v19180_v10 = vpop.f32.mrf.mxu1 }
0x758f   :  { %v12447_v5 = vadd.f32 %v19180_v10, %v22687_v33 }
0x7590   :  { %v12441_v37 = vpop.f32.mrf.mxu1 }
0x7591   :  { %v12530_v59 = vadd.f32 %v19191_v34, %v12447_v5  ;;  %v12442_v46 = vadd.f32 %v12441_v37, %v22692_v1 }
0x7593   :  { %v16974_v6 = vmul.f32 -1.442695, %v12530_v59  ;;  %v12529_v18 = vadd.f32 %v12520_v26, %v12442_v46 }
0x7595   :  { %19979 = vpow2.f32 %v16974_v6  ;;  %v16973_v61 = vmul.f32 -1.442695, %v12529_v18 }
0x7597   :  { %19981 = vpow2.f32 %v16973_v61 }
0x75a2   :  { %v19980_v16 = vpop.eup %19979 }
0x75a3   :  { %v12538_v51 = vadd.f32 1.0, %v19980_v16 }
0x75a4   :  { %v19982_v54 = vpop.eup %19981 }
0x75a5   :  { %19983 = vrcp.f32 %v12538_v51  ;;  %v12537_v0 = vadd.f32 1.0, %v19982_v54 }
0x75a7   :  { %19985 = vrcp.f32 %v12537_v0 }
0x75b2   :  { %v22966_v20 = vpop.eup %19983 }
0x75b3   :  { %v12544_v7 = vmul.f32 %v22966_v20, %v22774_v11 }
0x75b4   :  { %v22970_v56 = vpop.eup %19985 }
0x75b5   :  { %19192 = vmatprep.subr.mxu1 %v12544_v7  ;;  %v12543_v55 = vmul.f32 %v22970_v56, %v22778_v42  ;;  %v12729_v51 = vsub.f32 1.0, %v22970_v56 }
0x75b6   :  { %19193 = vmatpush3.msra.mxu1 %v12544_v7  ;;  %v12727_v7 = vmul.f32 %v22970_v56, %v22768_v17  ;;  %v23050_v56 = vld [vmem:[#allocation2] sm:$0xff] }
0x75b7   :  { %19194 = vmatprep.subr.mxu1 %v12543_v55 }
0x75b8   :  { %19195 = vmatpush3.msra.mxu1 %v12543_v55 }
0x75b9   :  { %19197 = vmatmul.mubr.msk.f32.vlgmr.msra.gmra.mxu1 %vm122_vm0, %v22954_v19  ;;  %19199 = vmatprep.subr.mxu1 %v22707_v9 }
0x75ba   :  { %19200 = vmatpush3.msra.mxu1 %v22707_v9 }
0x75bb   :  { %19201 = vmatprep.subr.mxu1 %v22712_v58 }
0x75bc   :  { %19202 = vmatpush3.msra.mxu1 %v22712_v58 }
0x75bd   :  { %19203 = vmatprep.subr.mxu1 %v22721_v38 }
0x75be   :  { %19204 = vmatpush3.msra.mxu1 %v22721_v38 }
0x75bf   :  { %19205 = vmatprep.subr.mxu1 %v22730_v22 }
0x75c0   :  { %19206 = vmatpush3.msra.mxu1 %v22730_v22 }
0x75c1   :  { %19228 = vmatprep.subr.mxu1 %v22734_v4 }
0x7679   :  { %v19198_v11 = vpop.f32.mrf.mxu1 }
0x767b   :  { %v12611_v42 = vpop.f32.mrf.mxu1 }
0x767c   :  { %19207 = vmatprep.mubr.msk.f32.mxu1 %vm297_vm3, %v12611_v42 }
0x767d   :  { %19208 = vmatmul.mubr.msk.f32.vlgmr.msra.gmra.mxu1 %vm297_vm3, %v19198_v11 }
0x767e   :  { %19229 = vmatpush3.msra.mxu1 %v22734_v4  ;;  %19236 = vmatprep.mubr.msk.f32.mxu1 %vm297_vm3, %v22932_v21 }
0x767f   :  { %19230 = vmatprep.subr.mxu1 %v22738_v39 }
0x7680   :  { %19231 = vmatpush3.msra.mxu1 %v22738_v39 }
0x7681   :  { %19232 = vmatprep.subr.mxu1 %v22744_v35 }
0x7682   :  { %19233 = vmatpush3.msra.mxu1 %v22744_v35 }
0x7683   :  { %19234 = vmatprep.subr.mxu1 %v22748_v32 }
0x7684   :  { %19235 = vmatpush3.msra.mxu1 %v22748_v32 }
0x7685   :  { %19237 = vmatmul.mubr.msk.f32.vlgmr.msra.gmra.mxu1 %vm297_vm3, %v22930_v24  ;;  %19246 = vmatprep.subr.mxu1 %v22822_v60 }
0x7686   :  { %19247 = vmatpush3.msra.mxu1 %v22822_v60 }
0x7687   :  { %19248 = vmatprep.subr.mxu1 %v22824_v30 }
0x7688   :  { %19249 = vmatpush3.msra.mxu1 %v22824_v30 }
0x7689   :  { %19250 = vmatprep.subr.mxu1 %v22848_v48 }
0x768a   :  { %19251 = vmatpush3.msra.mxu1 %v22848_v48 }
0x768b   :  { %19252 = vmatprep.subr.mxu1 %v22852_v25 }
0x768c   :  { %19253 = vmatpush3.msra.mxu1 %v22852_v25 }
0x773d   :  { %v19209_v21 = vpop.f32.mrf.mxu1 }
0x773e   :  { %12709 = vrot.lane.b32.xlu0 %v19209_v21, %s20278_s25 }
0x773f   :  { %v12696_v24 = vpop.f32.mrf.mxu1 }
0x7740   :  { %12707 = vrot.lane.b32.xlu1 %v12696_v24, %s20278_s25 }
0x7745   :  { %v19238_v21 = vpop.f32.mrf.mxu1 }
0x77b0   :  { %v12710_v47 = vpop.permute.xlu0 %12709 }
0x77b1   :  { %v12714_v53 = vadd.f32 %v12710_v47, %v12447_v5  ;;  %v12730_v5 = vsub.f32 1.0, %v22966_v20 }
0x77b2   :  { %v12708_v43 = vpop.permute.xlu1 %12707 }
0x77b3   :  { %v16980_v12 = vmul.f32 -1.442695, %v12714_v53  ;;  %v12713_v41 = vadd.f32 %v12708_v43, %v12442_v46  ;;  %v12728_v46 = vmul.f32 %v22966_v20, %v22764_v40 }
0x77b5   :  { %19987 = vpow2.f32 %v16980_v12  ;;  %v16979_v34 = vmul.f32 -1.442695, %v12713_v41  ;;  %v12989_v41 = vpop.f32.mrf.mxu1 }
0x77b7   :  { %19989 = vpow2.f32 %v16979_v34 }
0x77c2   :  { %v19988_v10 = vpop.eup %19987 }
0x77c3   :  { %v12722_v37 = vadd.f32 1.0, %v19988_v10 }
0x77c4   :  { %v19990_v59 = vpop.eup %19989 }
0x77c5   :  { %19991 = vrcp.f32 %v12722_v37  ;;  %v12721_v26 = vadd.f32 1.0, %v19990_v59 }
0x77c7   :  { %19993 = vrcp.f32 %v12721_v26 }
0x77d2   :  { %v19992_v6 = vpop.eup %19991 }
0x77d3   :  { %12735 = vrot.lane.b32.xlu0 %v19992_v6, %s20279_s24 }
0x77d4   :  { %v19994_v18 = vpop.eup %19993 }
0x77d5   :  { %12733 = vrot.lane.b32.xlu1 %v19994_v18, %s20279_s24 }
0x7845   :  { %v12736_v61 = vpop.permute.xlu0 %12735 }
0x7846   :  { %v12740_v16 = vmul.f32 %v12736_v61, %v12730_v5 }
0x7847   :  { %v12734_v54 = vpop.permute.xlu1 %12733 }
0x7848   :  { %v23014_v0 = vadd.f32 %v12740_v16, %v12728_v46  ;;  %v12739_v55 = vmul.f32 %v12734_v54, %v12729_v51 }
0x784a   :  { %v23018_v11 = vadd.f32 %v12739_v55, %v12727_v7  ;;  %12747 = vrot.lane.b32.xlu0 %v23014_v0, %s20279_s24 }
0x784c   :  { %12745 = vrot.lane.b32.xlu1 %v23018_v11, %s20279_s24 }
0x78bc   :  { %v23024_v42 = vpop.permute.xlu0 %12747 }
0x78bd   :  { %19210 = vmatprep.subr.mxu0 %v23024_v42 }
0x78be   :  { %19211 = vmatpush3.msra.mxu0 %v23024_v42  ;;  %v23028_v40 = vpop.permute.xlu1 %12745 }
0x78bf   :  { %19212 = vmatprep.subr.mxu0 %v23028_v40 }
0x78c0   :  { %19213 = vmatpush3.msra.mxu0 %v23028_v40 }
0x78c1   :  { %19215 = vmatmul.mubr.msk.f32.vlgmr.msra.gmra.mxu0 %vm122_vm0, %v22954_v19  ;;  %19217 = vmatprep.subr.mxu0 %v22783_v62 }
0x78c2   :  { %19218 = vmatpush3.msra.mxu0 %v22783_v62 }
0x78c3   :  { %19219 = vmatprep.subr.mxu0 %v22790_v31 }
0x78c4   :  { %19220 = vmatpush3.msra.mxu0 %v22790_v31 }
0x78c5   :  { %19221 = vmatprep.subr.mxu0 %v22801_v27 }
0x78c6   :  { %19222 = vmatpush3.msra.mxu0 %v22801_v27 }
0x78c7   :  { %19223 = vmatprep.subr.mxu0 %v22808_v45 }
0x78c8   :  { %19224 = vmatpush3.msra.mxu0 %v22808_v45 }
0x7981   :  { %v23042_v17 = vpop.f32.mrf.mxu0 }
0x7983   :  { %v23044_v20 = vpop.f32.mrf.mxu0 }
0x7984   :  { %19225 = vmatprep.mubr.msk.f32.mxu0 %vm297_vm3, %v23044_v20 }
0x7985   :  { %19226 = vmatmul.mubr.msk.f32.vlgmr.msra.gmra.mxu0 %vm297_vm3, %v23042_v17 }
0x7986   :  { %19243 = vmatprep.mubr.msk.f32.mxu0 %vm122_vm0, %v23050_v56 }
0x7a45   :  { %v19227_v24 = vpop.f32.mrf.mxu0 }
0x7a46   :  { %v12910_v47 = vadd.f32 %v19227_v24, %v22833_v49 }
0x7a47   :  { %v12904_v53 = vpop.f32.mrf.mxu0 }
0x7a48   :  { %v12999_v43 = vadd.f32 %v19238_v21, %v12910_v47  ;;  %v12905_v12 = vadd.f32 %v12904_v53, %v22838_v44 }
0x7a4a   :  { %v16988_v34 = vmul.f32 -1.442695, %v12999_v43  ;;  %v12998_v10 = vadd.f32 %v12989_v41, %v12905_v12 }
0x7a4c   :  { %19995 = vpow2.f32 %v16988_v34  ;;  %v16987_v37 = vmul.f32 -1.442695, %v12998_v10 }
0x7a4e   :  { %19997 = vpow2.f32 %v16987_v37 }
0x7a59   :  { %v19996_v59 = vpop.eup %19995 }
0x7a5a   :  { %v13007_v26 = vadd.f32 1.0, %v19996_v59 }
0x7a5b   :  { %v19998_v6 = vpop.eup %19997 }
0x7a5c   :  { %19999 = vrcp.f32 %v13007_v26  ;;  %v13006_v18 = vadd.f32 1.0, %v19998_v6 }
0x7a5e   :  { %20001 = vrcp.f32 %v13006_v18 }
0x7a69   :  { %v20000_v5 = vpop.eup %19999 }
0x7a6a   :  { %v13013_v61 = vmul.f32 %v20000_v5, %v22874_v52  ;;  %v13199_v6 = vsub.f32 1.0, %v20000_v5  ;;  %v13197_v18 = vmul.f32 %v20000_v5, %v22865_v23 }
0x7a6b   :  { %v20002_v46 = vpop.eup %20001 }
0x7a6c   :  { %19239 = vmatprep.subr.mxu0 %v13013_v61  ;;  %v13012_v16 = vmul.f32 %v20002_v46, %v22878_v3 }
0x7a6d   :  { %19240 = vmatpush3.msra.mxu0 %v13013_v61  ;;  %v13198_v61 = vsub.f32 1.0, %v20002_v46 }
0x7a6e   :  { %19241 = vmatprep.subr.mxu0 %v13012_v16 }
0x7a6f   :  { %19242 = vmatpush3.msra.mxu0 %v13012_v16 }
0x7a70   :  { %19244 = vmatmul.mubr.msk.f32.vlgmr.msra.gmra.mxu0 %vm122_vm0, %v22954_v19 }
0x7a71   :  { %19261 = vmatprep.mubr.msk.f32.mxu0 %vm122_vm0, %v23050_v56 }
0x7b30   :  { %v19245_v51 = vpop.f32.mrf.mxu0 }
0x7b32   :  { %v13080_v54 = vpop.f32.mrf.mxu0 }
0x7b33   :  { %19254 = vmatprep.mubr.msk.f32.mxu1 %vm297_vm3, %v13080_v54  ;;  %v13196_v54 = vmul.f32 %v20002_v46, %v22868_v14 }
0x7b34   :  { %19255 = vmatmul.mubr.msk.f32.vlgmr.msra.gmra.mxu1 %vm297_vm3, %v19245_v51 }
0x7b35   :  { %19279 = vmatprep.mubr.msk.f32.mxu1 %vm122_vm0, %v23050_v56 }
0x7bf4   :  { %v19256_v52 = vpop.f32.mrf.mxu1 }
0x7bf5   :  { %13178 = vrot.lane.b32.xlu0 %v19256_v52, %s20278_s25 }
0x7bf6   :  { %v13165_v3 = vpop.f32.mrf.mxu1 }
0x7bf7   :  { %13176 = vrot.lane.b32.xlu1 %v13165_v3, %s20278_s25 }
0x7c67   :  { %v13179_v7 = vpop.permute.xlu0 %13178 }
0x7c68   :  { %v13183_v55 = vadd.f32 %v13179_v7, %v12910_v47 }
0x7c69   :  { %v13177_v21 = vpop.permute.xlu1 %13176 }
0x7c6a   :  { %v16994_v24 = vmul.f32 -1.442695, %v13183_v55  ;;  %v13182_v53 = vadd.f32 %v13177_v21, %v12905_v12 }
0x7c6c   :  { %20003 = vpow2.f32 %v16994_v24  ;;  %v16993_v43 = vmul.f32 -1.442695, %v13182_v53 }
0x7c6e   :  { %20005 = vpow2.f32 %v16993_v43 }
0x7c79   :  { %v20004_v41 = vpop.eup %20003 }
0x7c7a   :  { %v13191_v34 = vadd.f32 1.0, %v20004_v41 }
0x7c7b   :  { %v20006_v10 = vpop.eup %20005 }
0x7c7c   :  { %20007 = vrcp.f32 %v13191_v34  ;;  %v13190_v37 = vadd.f32 1.0, %v20006_v10 }
0x7c7e   :  { %20009 = vrcp.f32 %v13190_v37 }
0x7c89   :  { %v20008_v59 = vpop.eup %20007 }
0x7c8a   :  { %13204 = vrot.lane.b32.xlu0 %v20008_v59, %s20279_s24 }
0x7c8b   :  { %v20010_v26 = vpop.eup %20009 }
0x7c8c   :  { %13202 = vrot.lane.b32.xlu1 %v20010_v26, %s20279_s24 }
0x7cfc   :  { %v13205_v47 = vpop.permute.xlu0 %13204 }
0x7cfd   :  { %v13209_v12 = vmul.f32 %v13205_v47, %v13199_v6 }
0x7cfe   :  { %v13203_v16 = vpop.permute.xlu1 %13202 }
0x7cff   :  { %v23071_v51 = vadd.f32 %v13209_v12, %v13197_v18  ;;  %v13208_v52 = vmul.f32 %v13203_v16, %v13198_v61 }
0x7d01   :  { %v23074_v3 = vadd.f32 %v13208_v52, %v13196_v54  ;;  %13216 = vrot.lane.b32.xlu0 %v23071_v51, %s20279_s24 }
0x7d03   :  { %13214 = vrot.lane.b32.xlu1 %v23074_v3, %s20279_s24 }
0x7d73   :  { %v23080_v7 = vpop.permute.xlu0 %13216 }
0x7d74   :  { %19257 = vmatprep.subr.mxu0 %v23080_v7 }
0x7d75   :  { %19258 = vmatpush3.msra.mxu0 %v23080_v7  ;;  %v23084_v23 = vpop.permute.xlu1 %13214 }
0x7d76   :  { %19259 = vmatprep.subr.mxu0 %v23084_v23 }
0x7d77   :  { %19260 = vmatpush3.msra.mxu0 %v23084_v23 }
0x7d78   :  { %19262 = vmatmul.mubr.msk.f32.vlgmr.msra.gmra.mxu0 %vm122_vm0, %v22954_v19  ;;  %19264 = vmatprep.subr.mxu0 %v22887_v63 }
0x7d79   :  { %19265 = vmatpush3.msra.mxu0 %v22887_v63  ;;  %19272 = vmatprep.mubr.msk.f32.mxu0 %vm297_vm3, %v23084_v23 }
0x7d7a   :  { %19266 = vmatprep.subr.mxu0 %v22896_v50 }
0x7d7b   :  { %19267 = vmatpush3.msra.mxu0 %v22896_v50 }
0x7d7c   :  { %19268 = vmatprep.subr.mxu0 %v22903_v36 }
0x7d7d   :  { %19269 = vmatpush3.msra.mxu0 %v22903_v36 }
0x7d7e   :  { %19270 = vmatprep.subr.mxu0 %v22910_v29 }
0x7d7f   :  { %19271 = vmatpush3.msra.mxu0 %v22910_v29 }
0x7d80   :  { %19273 = vmatmul.mubr.msk.f32.vlgmr.msra.gmra.mxu0 %vm297_vm3, %v23080_v7  ;;  %19287 = vmatprep.subr.mxu0 %v22627_v15 }
0x7d81   :  { %19288 = vmatpush3.msra.mxu0 %v22627_v15  ;;  %19295 = vmatprep.mubr.msk.f32.mxu0 %vm297_vm3, %v23044_v20 }
0x7d82   :  { %19289 = vmatprep.subr.mxu0 %v22634_v13 }
0x7d83   :  { %19290 = vmatpush3.msra.mxu0 %v22634_v13 }
0x7d84   :  { %19291 = vmatprep.subr.mxu0 %v22645_v28 }
0x7d85   :  { %19292 = vmatpush3.msra.mxu0 %v22645_v28 }
0x7d86   :  { %19293 = vmatprep.subr.mxu0 %v22652_v2 }
0x7d87   :  { %19294 = vmatpush3.msra.mxu0 %v22652_v2  ;;  %v13452_v2 = vld [vmem:[#allocation4] sm:$0xf] }
0x7d88   :  { %19296 = vmatmul.mubr.msk.f32.vlgmr.msra.gmra.mxu0 %vm297_vm3, %v23042_v17 }
0x7d89   :  { %19320 = vmatprep.mubr.msk.f32.mxu0 %vm122_vm0, %v23050_v56 }
0x7e38   :  { %v23116_v15 = vpop.f32.mrf.mxu0 }
0x7e3a   :  { %v13286_v14 = vpop.f32.mrf.mxu0 }
0x7e40   :  { %v19274_v20 = vpop.f32.mrf.mxu0 }
0x7e41   :  { %v13371_v13 = vadd.f32 %v22937_v57, %v19274_v20 }
0x7e42   :  { %v13365_v5 = vpop.f32.mrf.mxu0 }
0x7e43   :  { %17000 = vst.msk [vmem:[%s23733_s20 + $0x48] sm:$0xff] %vm207_vm2, %v13371_v13  ;;  %v13366_v28 = vadd.f32 %v22947_v8, %v13365_v5  ;;  %19275 = vmatprep.subr.mxu1 %v13371_v13 }
0x7e44   :  { %19276 = vmatpush3.msra.mxu1 %v13371_v13 }
0x7e45   :  { %16999 = vst.msk [vmem:[%s23733_s20 + $0x40] sm:$0xff] %vm207_vm2, %v13366_v28  ;;  %19277 = vmatprep.subr.mxu1 %v13366_v28 }
0x7e46   :  { %19278 = vmatpush3.msra.mxu1 %v13366_v28 }
0x7e47   :  { %19280 = vmatmul.mubr.msk.f32.vlgmr.msra.gmra.mxu1 %vm122_vm0, %v22954_v19  ;;  %19282 = vmatprep.subr.msk.mxu1 %vm214_vm1, %v13452_v2 }
0x7e48   :  { %19283 = vmatpush3.msk.msra.mxu1 %vm214_vm1, %v13452_v2  ;;  %v19297_v55 = vpop.f32.mrf.mxu0 }
0x7e4a   :  { %v13609_v34 = vpop.f32.mrf.mxu0 }
0x7f07   :  { %v19281_v17 = vpop.f32.mrf.mxu1 }
0x7f09   :  { %v13443_v46 = vpop.f32.mrf.mxu1 }
0x7f0a   :  { %19284 = vmatprep.mubr.msk.f32.mxu1 %vm207_vm2, %v13443_v46 }
0x7f0b   :  { %19285 = vmatmul.mubr.msk.f32.vlgmr.msra.gmra.mxu1 %vm207_vm2, %v19281_v17 }
0x7f0c   :  { %19302 = vmatprep.mubr.msk.f32.mxu1 %vm122_vm0, %v23050_v56 }
0x7fcb   :  { %v19286_v21 = vpop.f32.mrf.mxu1 }
0x7fcc   :  { %v13536_v24 = vadd.f32 %v19286_v21, %v22687_v33 }
0x7fcd   :  { %v13530_v53 = vpop.f32.mrf.mxu1 }
0x7fce   :  { %v13619_v43 = vadd.f32 %v19297_v55, %v13536_v24  ;;  %v13531_v41 = vadd.f32 %v13530_v53, %v22692_v1 }
0x7fd0   :  { %v17009_v10 = vmul.f32 -1.442695, %v13619_v43  ;;  %v13618_v37 = vadd.f32 %v13609_v34, %v13531_v41 }
0x7fd2   :  { %20011 = vpow2.f32 %v17009_v10  ;;  %v17008_v59 = vmul.f32 -1.442695, %v13618_v37 }
0x7fd4   :  { %20013 = vpow2.f32 %v17008_v59 }
0x7fdf   :  { %v20012_v26 = vpop.eup %20011 }
0x7fe0   :  { %v13627_v6 = vadd.f32 1.0, %v20012_v26 }
0x7fe1   :  { %v20014_v47 = vpop.eup %20013 }
0x7fe2   :  { %20015 = vrcp.f32 %v13627_v6  ;;  %v13626_v18 = vadd.f32 1.0, %v20014_v47 }
0x7fe4   :  { %20017 = vrcp.f32 %v13626_v18 }
0x7fef   :  { %v23138_v12 = vpop.eup %20015 }
0x7ff0   :  { %v13633_v33 = vmul.f32 %v23138_v12, %v23024_v42  ;;  %v13819_v52 = vsub.f32 1.0, %v23138_v12 }
0x7ff1   :  { %v23142_v61 = vpop.eup %20017 }
0x7ff2   :  { %19298 = vmatprep.subr.mxu1 %v13633_v33  ;;  %v13632_v1 = vmul.f32 %v23142_v61, %v23028_v40  ;;  %v13818_v13 = vsub.f32 1.0, %v23142_v61  ;;  %v13816_v2 = vmul.f32 %v23142_v61, %v23018_v11 }
0x7ff3   :  { %19299 = vmatpush3.msra.mxu1 %v13633_v33 }
0x7ff4   :  { %19300 = vmatprep.subr.mxu1 %v13632_v1 }
0x7ff5   :  { %19301 = vmatpush3.msra.mxu1 %v13632_v1 }
0x7ff6   :  { %19303 = vmatmul.mubr.msk.f32.vlgmr.msra.gmra.mxu1 %vm122_vm0, %v22954_v19  ;;  %19305 = vmatprep.subr.mxu1 %v22707_v9 }
0x7ff7   :  { %19306 = vmatpush3.msra.mxu1 %v22707_v9 }
0x7ff8   :  { %19307 = vmatprep.subr.mxu1 %v22712_v58 }
0x7ff9   :  { %19308 = vmatpush3.msra.mxu1 %v22712_v58 }
0x7ffa   :  { %19309 = vmatprep.subr.mxu1 %v22721_v38 }
0x7ffb   :  { %19310 = vmatpush3.msra.mxu1 %v22721_v38 }
0x7ffc   :  { %19311 = vmatprep.subr.mxu1 %v22730_v22 }
0x7ffd   :  { %19312 = vmatpush3.msra.mxu1 %v22730_v22 }
0x7ffe   :  { %19334 = vmatprep.subr.mxu1 %v22734_v4 }
0x80b6   :  { %v19304_v42 = vpop.f32.mrf.mxu1 }
0x80b8   :  { %v13700_v40 = vpop.f32.mrf.mxu1 }
0x80b9   :  { %19313 = vmatprep.mubr.msk.f32.mxu1 %vm297_vm3, %v13700_v40 }
0x80ba   :  { %19314 = vmatmul.mubr.msk.f32.vlgmr.msra.gmra.mxu1 %vm297_vm3, %v19304_v42 }
0x80bb   :  { %19335 = vmatpush3.msra.mxu1 %v22734_v4  ;;  %19342 = vmatprep.mubr.msk.f32.mxu1 %vm297_vm3, %v13286_v14  ;;  %v13817_v14 = vmul.f32 %v23138_v12, %v23014_v0 }
0x80bc   :  { %19336 = vmatprep.subr.mxu1 %v22738_v39 }
0x80bd   :  { %19337 = vmatpush3.msra.mxu1 %v22738_v39 }
0x80be   :  { %19338 = vmatprep.subr.mxu1 %v22744_v35 }
0x80bf   :  { %19339 = vmatpush3.msra.mxu1 %v22744_v35 }
0x80c0   :  { %19340 = vmatprep.subr.mxu1 %v22748_v32 }
0x80c1   :  { %19341 = vmatpush3.msra.mxu1 %v22748_v32 }
0x80c2   :  { %19343 = vmatmul.mubr.msk.f32.vlgmr.msra.gmra.mxu1 %vm297_vm3, %v23116_v15  ;;  %19352 = vmatprep.subr.mxu1 %v22822_v60 }
0x80c3   :  { %19353 = vmatpush3.msra.mxu1 %v22822_v60 }
0x80c4   :  { %19354 = vmatprep.subr.mxu1 %v22824_v30 }
0x80c5   :  { %19355 = vmatpush3.msra.mxu1 %v22824_v30 }
0x80c6   :  { %19356 = vmatprep.subr.mxu1 %v22848_v48 }
0x80c7   :  { %19357 = vmatpush3.msra.mxu1 %v22848_v48 }
0x80c8   :  { %19358 = vmatprep.subr.mxu1 %v22852_v25 }
0x80c9   :  { %19359 = vmatpush3.msra.mxu1 %v22852_v25 }
0x817a   :  { %v19315_v9 = vpop.f32.mrf.mxu1 }
0x817b   :  { %13798 = vrot.lane.b32.xlu0 %v19315_v9, %s20278_s25 }
0x817c   :  { %v13785_v58 = vpop.f32.mrf.mxu1 }
0x817d   :  { %13796 = vrot.lane.b32.xlu1 %v13785_v58, %s20278_s25 }
0x81ed   :  { %v13799_v38 = vpop.permute.xlu0 %13798 }
0x81ee   :  { %v13803_v22 = vadd.f32 %v13799_v38, %v13536_v24 }
0x81ef   :  { %v13797_v4 = vpop.permute.xlu1 %13796 }
0x81f0   :  { %v17015_v39 = vmul.f32 -1.442695, %v13803_v22  ;;  %v13802_v35 = vadd.f32 %v13797_v4, %v13531_v41 }
0x81f2   :  { %20019 = vpow2.f32 %v17015_v39  ;;  %v17014_v32 = vmul.f32 -1.442695, %v13802_v35 }
0x81f4   :  { %20021 = vpow2.f32 %v17014_v32 }
0x81ff   :  { %v20020_v60 = vpop.eup %20019 }
0x8200   :  { %v13811_v30 = vadd.f32 1.0, %v20020_v60 }
0x8201   :  { %v20022_v48 = vpop.eup %20021 }
0x8202   :  { %20023 = vrcp.f32 %v13811_v30  ;;  %v13810_v16 = vadd.f32 1.0, %v20022_v48 }
0x8204   :  { %20025 = vrcp.f32 %v13810_v16 }
0x820f   :  { %v20024_v25 = vpop.eup %20023 }
0x8210   :  { %13824 = vrot.lane.b32.xlu0 %v20024_v25, %s20279_s24 }
0x8211   :  { %v20026_v54 = vpop.eup %20025 }
0x8212   :  { %13822 = vrot.lane.b32.xlu1 %v20026_v54, %s20279_s24 }
0x8282   :  { %v13825_v15 = vpop.permute.xlu0 %13824 }
0x8283   :  { %v13829_v20 = vmul.f32 %v13825_v15, %v13819_v52 }
0x8284   :  { %v13823_v5 = vpop.permute.xlu1 %13822 }
0x8285   :  { %v23185_v28 = vadd.f32 %v13829_v20, %v13817_v14  ;;  %v13828_v17 = vmul.f32 %v13823_v5, %v13818_v13 }
0x8287   :  { %v23189_v46 = vadd.f32 %v13828_v17, %v13816_v2  ;;  %13836 = vrot.lane.b32.xlu0 %v23185_v28, %s20279_s24 }
0x8289   :  { %13834 = vrot.lane.b32.xlu1 %v23189_v46, %s20279_s24 }
0x82f9   :  { %v23195_v55 = vpop.permute.xlu0 %13836 }
0x82fa   :  { %19316 = vmatprep.subr.mxu0 %v23195_v55 }
0x82fb   :  { %19317 = vmatpush3.msra.mxu0 %v23195_v55  ;;  %v23199_v0 = vpop.permute.xlu1 %13834 }
0x82fc   :  { %19318 = vmatprep.subr.mxu0 %v23199_v0 }
0x82fd   :  { %19319 = vmatpush3.msra.mxu0 %v23199_v0 }
0x82fe   :  { %19321 = vmatmul.mubr.msk.f32.vlgmr.msra.gmra.mxu0 %vm122_vm0, %v22954_v19  ;;  %19323 = vmatprep.subr.mxu0 %v22783_v62 }
0x82ff   :  { %19324 = vmatpush3.msra.mxu0 %v22783_v62  ;;  %v19344_v62 = vpop.f32.mrf.mxu1 }
0x8300   :  { %19325 = vmatprep.subr.mxu0 %v22790_v31 }
0x8301   :  { %19326 = vmatpush3.msra.mxu0 %v22790_v31  ;;  %v14078_v43 = vpop.f32.mrf.mxu1 }
0x8302   :  { %19327 = vmatprep.subr.mxu0 %v22801_v27 }
0x8303   :  { %19328 = vmatpush3.msra.mxu0 %v22801_v27 }
0x8304   :  { %19329 = vmatprep.subr.mxu0 %v22808_v45 }
0x8305   :  { %19330 = vmatpush3.msra.mxu0 %v22808_v45 }
0x83be   :  { %v23213_v11 = vpop.f32.mrf.mxu0 }
0x83c0   :  { %v23215_v21 = vpop.f32.mrf.mxu0 }
0x83c1   :  { %19331 = vmatprep.mubr.msk.f32.mxu0 %vm297_vm3, %v23215_v21 }
0x83c2   :  { %19332 = vmatmul.mubr.msk.f32.vlgmr.msra.gmra.mxu0 %vm297_vm3, %v23213_v11 }
0x83c3   :  { %19349 = vmatprep.mubr.msk.f32.mxu0 %vm122_vm0, %v23050_v56 }
0x8482   :  { %v19333_v31 = vpop.f32.mrf.mxu0 }
0x8483   :  { %v13999_v27 = vadd.f32 %v19333_v31, %v22833_v49 }
0x8484   :  { %v13993_v24 = vpop.f32.mrf.mxu0 }
0x8485   :  { %v14088_v53 = vadd.f32 %v19344_v62, %v13999_v27  ;;  %v13994_v45 = vadd.f32 %v13993_v24, %v22838_v44 }
0x8487   :  { %v17023_v41 = vmul.f32 -1.442695, %v14088_v53  ;;  %v14087_v34 = vadd.f32 %v14078_v43, %v13994_v45  ;;  %v23335_v53 = vld [vmem:[%s23726_s13] sm:$0xff] }
0x8489   :  { %20027 = vpow2.f32 %v17023_v41  ;;  %v17022_v10 = vmul.f32 -1.442695, %v14087_v34 }
0x848b   :  { %20029 = vpow2.f32 %v17022_v10 }
0x8496   :  { %v20028_v37 = vpop.eup %20027 }
0x8497   :  { %v14096_v59 = vadd.f32 1.0, %v20028_v37 }
0x8498   :  { %v20030_v26 = vpop.eup %20029 }
0x8499   :  { %20031 = vrcp.f32 %v14096_v59  ;;  %v14095_v6 = vadd.f32 1.0, %v20030_v26 }
0x849b   :  { %20033 = vrcp.f32 %v14095_v6 }
0x84a6   :  { %v20032_v47 = vpop.eup %20031 }
0x84a7   :  { %v14102_v18 = vmul.f32 %v20032_v47, %v23080_v7  ;;  %v14288_v60 = vsub.f32 1.0, %v20032_v47  ;;  %v14286_v48 = vmul.f32 %v20032_v47, %v23071_v51 }
0x84a8   :  { %v20034_v49 = vpop.eup %20033 }
0x84a9   :  { %19345 = vmatprep.subr.mxu0 %v14102_v18  ;;  %v14101_v12 = vmul.f32 %v20034_v49, %v23084_v23  ;;  %v14287_v25 = vsub.f32 1.0, %v20034_v49  ;;  %v14285_v15 = vmul.f32 %v20034_v49, %v23074_v3  ;;  %v23270_v3 = vld [vmem:[%s23724_s11 + $0x18] sm:$0xff] }
0x84aa   :  { %19346 = vmatpush3.msra.mxu0 %v14102_v18 }
0x84ab   :  { %19347 = vmatprep.subr.mxu0 %v14101_v12 }
0x84ac   :  { %19348 = vmatpush3.msra.mxu0 %v14101_v12 }
0x84ad   :  { %19350 = vmatmul.mubr.msk.f32.vlgmr.msra.gmra.mxu0 %vm122_vm0, %v22954_v19 }
0x84ae   :  { %19367 = vmatprep.mubr.msk.f32.mxu0 %vm122_vm0, %v23050_v56 }
0x856d   :  { %v19351_v44 = vpop.f32.mrf.mxu0 }
0x856f   :  { %v14169_v33 = vpop.f32.mrf.mxu0 }
0x8570   :  { %19360 = vmatprep.mubr.msk.f32.mxu1 %vm297_vm3, %v14169_v33 }
0x8571   :  { %19361 = vmatmul.mubr.msk.f32.vlgmr.msra.gmra.mxu1 %vm297_vm3, %v19351_v44 }
0x8572   :  { %19385 = vmatprep.mubr.msk.f32.mxu1 %vm122_vm0, %v23050_v56 }
0x8631   :  { %v19362_v7 = vpop.f32.mrf.mxu1 }
0x8632   :  { %14267 = vrot.lane.b32.xlu0 %v19362_v7, %s20278_s25 }
0x8633   :  { %v14254_v23 = vpop.f32.mrf.mxu1 }
0x8634   :  { %14265 = vrot.lane.b32.xlu1 %v14254_v23, %s20278_s25  ;;  %v23350_v23 = vld [vmem:[%s23725_s12 + $0x18] sm:$0xff] }
0x86a4   :  { %v14268_v61 = vpop.permute.xlu0 %14267 }
0x86a5   :  { %v14272_v1 = vadd.f32 %v14268_v61, %v13999_v27  ;;  %v23355_v61 = vld [vmem:[%s23725_s12 + $0x10] sm:$0xff] }
0x86a6   :  { %v14266_v42 = vpop.permute.xlu1 %14265 }
0x86a7   :  { %v17029_v40 = vmul.f32 -1.442695, %v14272_v1  ;;  %v14271_v9 = vadd.f32 %v14266_v42, %v13994_v45 }
0x86a9   :  { %20035 = vpow2.f32 %v17029_v40  ;;  %v17028_v58 = vmul.f32 -1.442695, %v14271_v9  ;;  %v23381_v40 = vld [vmem:[#allocation6 + $0x10] sm:$0xff]  ;;  %v23387_v9 = vld [vmem:[#allocation6 + $0x8] sm:$0xff] }
0x86ab   :  { %20037 = vpow2.f32 %v17028_v58  ;;  %v23391_v58 = vld [vmem:[#allocation6] sm:$0xff] }
0x86b6   :  { %v20036_v38 = vpop.eup %20035 }
0x86b7   :  { %v14280_v22 = vadd.f32 1.0, %v20036_v38 }
0x86b8   :  { %v20038_v4 = vpop.eup %20037 }
0x86b9   :  { %20039 = vrcp.f32 %v14280_v22  ;;  %v14279_v39 = vadd.f32 1.0, %v20038_v4 }
0x86bb   :  { %20041 = vrcp.f32 %v14279_v39 }
0x86c6   :  { %v20040_v35 = vpop.eup %20039 }
0x86c7   :  { %14293 = vrot.lane.b32.xlu0 %v20040_v35, %s20279_s24 }
0x86c8   :  { %v20042_v32 = vpop.eup %20041 }
0x86c9   :  { %14291 = vrot.lane.b32.xlu1 %v20042_v32, %s20279_s24 }
0x8739   :  { %v14294_v30 = vpop.permute.xlu0 %14293 }
0x873a   :  { %v14298_v16 = vmul.f32 %v14294_v30, %v14288_v60 }
0x873b   :  { %v14292_v54 = vpop.permute.xlu1 %14291 }
0x873c   :  { %v23240_v52 = vadd.f32 %v14298_v16, %v14286_v48  ;;  %v14297_v14 = vmul.f32 %v14292_v54, %v14287_v25 }
0x873e   :  { %v23243_v20 = vadd.f32 %v14297_v14, %v14285_v15  ;;  %14305 = vrot.lane.b32.xlu0 %v23240_v52, %s20279_s24 }
0x8740   :  { %14303 = vrot.lane.b32.xlu1 %v23243_v20, %s20279_s24 }
0x87b0   :  { %v23249_v13 = vpop.permute.xlu0 %14305 }
0x87b1   :  { %19363 = vmatprep.subr.mxu0 %v23249_v13 }
0x87b2   :  { %19364 = vmatpush3.msra.mxu0 %v23249_v13  ;;  %v23253_v51 = vpop.permute.xlu1 %14303 }
0x87b3   :  { %19365 = vmatprep.subr.mxu0 %v23253_v51 }
0x87b4   :  { %19366 = vmatpush3.msra.mxu0 %v23253_v51 }
0x87b5   :  { %19368 = vmatmul.mubr.msk.f32.vlgmr.msra.gmra.mxu0 %vm122_vm0, %v22954_v19  ;;  %19370 = vmatprep.subr.mxu0 %v22887_v63 }
0x87b6   :  { %19371 = vmatpush3.msra.mxu0 %v22887_v63  ;;  %19378 = vmatprep.mubr.msk.f32.mxu0 %vm297_vm3, %v23253_v51  ;;  %v23277_v63 = vld [vmem:[%s23724_s11 + $0x10] sm:$0xff] }
0x87b7   :  { %19372 = vmatprep.subr.mxu0 %v22896_v50 }
0x87b8   :  { %19373 = vmatpush3.msra.mxu0 %v22896_v50  ;;  %v23288_v50 = vld [vmem:[%s23724_s11 + $0x8] sm:$0xff] }
0x87b9   :  { %19374 = vmatprep.subr.mxu0 %v22903_v36 }
0x87ba   :  { %19375 = vmatpush3.msra.mxu0 %v22903_v36  ;;  %v23295_v36 = vld [vmem:[%s23724_s11] sm:$0xff] }
0x87bb   :  { %19376 = vmatprep.subr.mxu0 %v22910_v29 }
0x87bc   :  { %19377 = vmatpush3.msra.mxu0 %v22910_v29 }
0x87bd   :  { %19379 = vmatmul.mubr.msk.f32.vlgmr.msra.gmra.mxu0 %vm297_vm3, %v23249_v13  ;;  %19393 = vmatprep.subr.mxu0 %v23270_v3 }
0x87be   :  { %19394 = vmatpush3.msra.mxu0 %v23270_v3  ;;  %19401 = vmatprep.mubr.msk.f32.mxu0 %vm297_vm3, %v23215_v21 }
0x87bf   :  { %19395 = vmatprep.subr.mxu0 %v23277_v63 }
0x87c0   :  { %19396 = vmatpush3.msra.mxu0 %v23277_v63 }
0x87c1   :  { %19397 = vmatprep.subr.mxu0 %v23288_v50 }
0x87c2   :  { %19398 = vmatpush3.msra.mxu0 %v23288_v50 }
0x87c3   :  { %19399 = vmatprep.subr.mxu0 %v23295_v36 }
0x87c4   :  { %19400 = vmatpush3.msra.mxu0 %v23295_v36 }
0x87c5   :  { %19402 = vmatmul.mubr.msk.f32.vlgmr.msra.gmra.mxu0 %vm297_vm3, %v23213_v11 }
0x87c6   :  { %19426 = vmatprep.mubr.msk.f32.mxu0 %vm122_vm0, %v23050_v56 }
0x8875   :  { %v23305_v29 = vpop.f32.mrf.mxu0 }
0x8877   :  { %v23307_v5 = vpop.f32.mrf.mxu0 }
0x887d   :  { %v19380_v2 = vpop.f32.mrf.mxu0 }
0x887e   :  { %v14460_v17 = vadd.f32 %v22937_v57, %v19380_v2  ;;  %v14541_v57 = vld [vmem:[#allocation4] sm:$0xf] }
0x887f   :  { %v14454_v21 = vpop.f32.mrf.mxu0 }
0x8880   :  { %17035 = vst.msk [vmem:[%s23733_s20 + $0x58] sm:$0xff] %vm207_vm2, %v14460_v17  ;;  %v14455_v62 = vadd.f32 %v22947_v8, %v14454_v21  ;;  %19381 = vmatprep.subr.mxu1 %v14460_v17  ;;  %v23330_v8 = vld [vmem:[%s23726_s13 + $0x8] sm:$0xff] }
0x8881   :  { %19382 = vmatpush3.msra.mxu1 %v14460_v17 }
0x8882   :  { %17034 = vst.msk [vmem:[%s23733_s20 + $0x50] sm:$0xff] %vm207_vm2, %v14455_v62  ;;  %19383 = vmatprep.subr.mxu1 %v14455_v62 }
0x8883   :  { %19384 = vmatpush3.msra.mxu1 %v14455_v62 }
0x8884   :  { %19386 = vmatmul.mubr.msk.f32.vlgmr.msra.gmra.mxu1 %vm122_vm0, %v22954_v19  ;;  %19388 = vmatprep.subr.msk.mxu1 %vm214_vm1, %v14541_v57 }
0x8885   :  { %19389 = vmatpush3.msk.msra.mxu1 %vm214_vm1, %v14541_v57  ;;  %v19403_v27 = vpop.f32.mrf.mxu0 }
0x8887   :  { %v14698_v10 = vpop.f32.mrf.mxu0 }
0x8944   :  { %v19387_v11 = vpop.f32.mrf.mxu1 }
0x8946   :  { %v14532_v31 = vpop.f32.mrf.mxu1 }
0x8947   :  { %19390 = vmatprep.mubr.msk.f32.mxu1 %vm207_vm2, %v14532_v31 }
0x8948   :  { %19391 = vmatmul.mubr.msk.f32.vlgmr.msra.gmra.mxu1 %vm207_vm2, %v19387_v11 }
0x8949   :  { %19408 = vmatprep.mubr.msk.f32.mxu1 %vm122_vm0, %v23050_v56 }
0x8a08   :  { %v19392_v24 = vpop.f32.mrf.mxu1 }
0x8a09   :  { %v14625_v45 = vadd.f32 %v19392_v24, %v23330_v8 }
0x8a0a   :  { %v14619_v43 = vpop.f32.mrf.mxu1 }
0x8a0b   :  { %v14708_v41 = vadd.f32 %v19403_v27, %v14625_v45  ;;  %v14620_v34 = vadd.f32 %v14619_v43, %v23335_v53  ;;  %v23435_v43 = vld [vmem:[#allocation2 + $0x8] sm:$0xff] }
0x8a0d   :  { %v17044_v37 = vmul.f32 -1.442695, %v14708_v41  ;;  %v14707_v59 = vadd.f32 %v14698_v10, %v14620_v34  ;;  %v23446_v41 = vld [vmem:[%s23727_s14 + $0x8] sm:$0xff] }
0x8a0f   :  { %20043 = vpow2.f32 %v17044_v37  ;;  %v17043_v26 = vmul.f32 -1.442695, %v14707_v59  ;;  %v23467_v59 = vld [vmem:[#allocation7 + $0x18] sm:$0xff] }
0x8a11   :  { %20045 = vpow2.f32 %v17043_v26  ;;  %v23469_v26 = vld [vmem:[#allocation7 + $0x10] sm:$0xff] }
0x8a1c   :  { %v20044_v6 = vpop.eup %20043 }
0x8a1d   :  { %v14716_v47 = vadd.f32 1.0, %v20044_v6  ;;  %v23478_v6 = vld [vmem:[%s23730_s17 + $0x8] sm:$0xff] }
0x8a1e   :  { %v20046_v18 = vpop.eup %20045 }
0x8a1f   :  { %20047 = vrcp.f32 %v14716_v47  ;;  %v14715_v49 = vadd.f32 1.0, %v20046_v18 }
0x8a21   :  { %20049 = vrcp.f32 %v14715_v49  ;;  %v23483_v49 = vld [vmem:[%s23730_s17] sm:$0xff] }
0x8a2c   :  { %v23339_v12 = vpop.eup %20047 }
0x8a2d   :  { %v14722_v44 = vmul.f32 %v23339_v12, %v23195_v55  ;;  %v23364_v55 = vld [vmem:[%s23725_s12 + $0x8] sm:$0xff]  ;;  %v14906_v2 = vmul.f32 %v23339_v12, %v23185_v28 }
0x8a2e   :  { %v23343_v33 = vpop.eup %20049 }
0x8a2f   :  { %19404 = vmatprep.subr.mxu1 %v14722_v44  ;;  %v14721_v7 = vmul.f32 %v23343_v33, %v23199_v0  ;;  %v23377_v0 = vld [vmem:[#allocation6 + $0x18] sm:$0xff]  ;;  %v14907_v21 = vsub.f32 1.0, %v23343_v33  ;;  %v14905_v11 = vmul.f32 %v23343_v33, %v23189_v46  ;;  %v23426_v46 = vld [vmem:[%s23727_s14 + $0x18] sm:$0xff] }
0x8a30   :  { %19405 = vmatpush3.msra.mxu1 %v14722_v44 }
0x8a31   :  { %19406 = vmatprep.subr.mxu1 %v14721_v7 }
0x8a32   :  { %19407 = vmatpush3.msra.mxu1 %v14721_v7 }
0x8a33   :  { %19409 = vmatmul.mubr.msk.f32.vlgmr.msra.gmra.mxu1 %vm122_vm0, %v22954_v19  ;;  %19411 = vmatprep.subr.mxu1 %v23350_v23  ;;  %v23373_v19 = vld [vmem:[%s23725_s12] sm:$0xff] }
0x8a34   :  { %19412 = vmatpush3.msra.mxu1 %v23350_v23 }
0x8a35   :  { %19413 = vmatprep.subr.mxu1 %v23355_v61 }
0x8a36   :  { %19414 = vmatpush3.msra.mxu1 %v23355_v61 }
0x8a37   :  { %19415 = vmatprep.subr.mxu1 %v23364_v55 }
0x8a38   :  { %19416 = vmatpush3.msra.mxu1 %v23364_v55 }
0x8a39   :  { %19417 = vmatprep.subr.mxu1 %v23373_v19 }
0x8a3a   :  { %19418 = vmatpush3.msra.mxu1 %v23373_v19 }
0x8a3b   :  { %19440 = vmatprep.subr.mxu1 %v23377_v0 }
0x8af3   :  { %v19410_v1 = vpop.f32.mrf.mxu1 }
0x8af5   :  { %v14789_v42 = vpop.f32.mrf.mxu1 }
0x8af6   :  { %19419 = vmatprep.mubr.msk.f32.mxu1 %vm297_vm3, %v14789_v42 }
0x8af7   :  { %19420 = vmatmul.mubr.msk.f32.vlgmr.msra.gmra.mxu1 %vm297_vm3, %v19410_v1 }
0x8af8   :  { %19441 = vmatpush3.msra.mxu1 %v23377_v0  ;;  %19448 = vmatprep.mubr.msk.f32.mxu1 %vm297_vm3, %v23307_v5 }
0x8af9   :  { %19442 = vmatprep.subr.mxu1 %v23381_v40 }
0x8afa   :  { %19443 = vmatpush3.msra.mxu1 %v23381_v40 }
0x8afb   :  { %19444 = vmatprep.subr.mxu1 %v23387_v9 }
0x8afc   :  { %19445 = vmatpush3.msra.mxu1 %v23387_v9 }
0x8afd   :  { %19446 = vmatprep.subr.mxu1 %v23391_v58 }
0x8afe   :  { %19447 = vmatpush3.msra.mxu1 %v23391_v58 }
0x8aff   :  { %19449 = vmatmul.mubr.msk.f32.vlgmr.msra.gmra.mxu1 %vm297_vm3, %v23305_v29  ;;  %v14908_v29 = vsub.f32 1.0, %v23339_v12  ;;  %19458 = vmatprep.subr.mxu1 %v23467_v59 }
0x8b00   :  { %19459 = vmatpush3.msra.mxu1 %v23467_v59 }
0x8b01   :  { %19460 = vmatprep.subr.mxu1 %v23469_v26 }
0x8b02   :  { %19461 = vmatpush3.msra.mxu1 %v23469_v26 }
0x8bb7   :  { %v19421_v38 = vpop.f32.mrf.mxu1 }
0x8bb8   :  { %14887 = vrot.lane.b32.xlu0 %v19421_v38, %s20278_s25 }
0x8bb9   :  { %v14874_v22 = vpop.f32.mrf.mxu1 }
0x8bba   :  { %14885 = vrot.lane.b32.xlu1 %v14874_v22, %s20278_s25 }
0x8bbf   :  { %v19450_v47 = vpop.f32.mrf.mxu1 }
0x8bc1   :  { %v15167_v1 = vpop.f32.mrf.mxu1 }
0x8c2a   :  { %v14888_v4 = vpop.permute.xlu0 %14887 }
0x8c2b   :  { %v14892_v39 = vadd.f32 %v14888_v4, %v14625_v45  ;;  %v23433_v45 = vld [vmem:[%s23727_s14 + $0x10] sm:$0xff] }
0x8c2c   :  { %v14886_v35 = vpop.permute.xlu1 %14885 }
0x8c2d   :  { %v17050_v32 = vmul.f32 -1.442695, %v14892_v39  ;;  %v14891_v60 = vadd.f32 %v14886_v35, %v14620_v34  ;;  %v23453_v34 = vld [vmem:[%s23727_s14] sm:$0xff] }
0x8c2f   :  { %20051 = vpow2.f32 %v17050_v32  ;;  %v17049_v30 = vmul.f32 -1.442695, %v14891_v60 }
0x8c31   :  { %20053 = vpow2.f32 %v17049_v30 }
0x8c3c   :  { %v20052_v48 = vpop.eup %20051 }
0x8c3d   :  { %v14900_v16 = vadd.f32 1.0, %v20052_v48 }
0x8c3e   :  { %v20054_v25 = vpop.eup %20053 }
0x8c3f   :  { %20055 = vrcp.f32 %v14900_v16  ;;  %v14899_v54 = vadd.f32 1.0, %v20054_v25  ;;  %v23493_v25 = vld [vmem:[#allocation7 + $0x8] sm:$0xff] }
0x8c40   :  { %19462 = vmatprep.subr.mxu1 %v23493_v25 }
0x8c41   :  { %20057 = vrcp.f32 %v14899_v54  ;;  %19463 = vmatpush3.msra.mxu1 %v23493_v25 }
0x8c4c   :  { %v20056_v15 = vpop.eup %20055 }
0x8c4d   :  { %14913 = vrot.lane.b32.xlu0 %v20056_v15, %s20279_s24 }
0x8c4e   :  { %v20058_v14 = vpop.eup %20057 }
0x8c4f   :  { %14911 = vrot.lane.b32.xlu1 %v20058_v14, %s20279_s24 }
0x8cbf   :  { %v14914_v5 = vpop.permute.xlu0 %14913 }
0x8cc0   :  { %v14918_v17 = vmul.f32 %v14914_v5, %v14908_v29 }
0x8cc1   :  { %v14912_v62 = vpop.permute.xlu1 %14911 }
0x8cc2   :  { %v23407_v57 = vadd.f32 %v14918_v17, %v14906_v2  ;;  %v14917_v31 = vmul.f32 %v14912_v62, %v14907_v21 }
0x8cc4   :  { %v23411_v27 = vadd.f32 %v14917_v31, %v14905_v11  ;;  %14925 = vrot.lane.b32.xlu0 %v23407_v57, %s20279_s24 }
0x8cc6   :  { %14923 = vrot.lane.b32.xlu1 %v23411_v27, %s20279_s24 }
0x8d36   :  { %v23417_v24 = vpop.permute.xlu0 %14925 }
0x8d37   :  { %19422 = vmatprep.subr.mxu0 %v23417_v24 }
0x8d38   :  { %19423 = vmatpush3.msra.mxu0 %v23417_v24  ;;  %v23421_v28 = vpop.permute.xlu1 %14923 }
0x8d39   :  { %19424 = vmatprep.subr.mxu0 %v23421_v28 }
0x8d3a   :  { %19425 = vmatpush3.msra.mxu0 %v23421_v28 }
0x8d3b   :  { %19427 = vmatmul.mubr.msk.f32.vlgmr.msra.gmra.mxu0 %vm122_vm0, %v23435_v43  ;;  %19429 = vmatprep.subr.mxu0 %v23426_v46 }
0x8d3c   :  { %19430 = vmatpush3.msra.mxu0 %v23426_v46 }
0x8d3d   :  { %19431 = vmatprep.subr.mxu0 %v23433_v45 }
0x8d3e   :  { %19432 = vmatpush3.msra.mxu0 %v23433_v45 }
0x8d3f   :  { %19433 = vmatprep.subr.mxu0 %v23446_v41 }
0x8d40   :  { %19434 = vmatpush3.msra.mxu0 %v23446_v41 }
0x8d41   :  { %19435 = vmatprep.subr.mxu0 %v23453_v34 }
0x8d42   :  { %19436 = vmatpush3.msra.mxu0 %v23453_v34 }
0x8dfb   :  { %v23457_v10 = vpop.f32.mrf.mxu0 }
0x8dfd   :  { %v23459_v37 = vpop.f32.mrf.mxu0 }
0x8dfe   :  { %19437 = vmatprep.mubr.msk.f32.mxu0 %vm297_vm3, %v23459_v37 }
0x8dff   :  { %19438 = vmatmul.mubr.msk.f32.vlgmr.msra.gmra.mxu0 %vm297_vm3, %v23457_v10 }
0x8e00   :  { %19455 = vmatprep.mubr.msk.f32.mxu0 %vm122_vm0, %v23050_v56 }
0x8ebf   :  { %v19439_v18 = vpop.f32.mrf.mxu0 }
0x8ec0   :  { %v15088_v12 = vadd.f32 %v19439_v18, %v23478_v6 }
0x8ec1   :  { %v15082_v44 = vpop.f32.mrf.mxu0 }
0x8ec2   :  { %v15177_v33 = vadd.f32 %v19450_v47, %v15088_v12  ;;  %v15083_v7 = vadd.f32 %v15082_v44, %v23483_v49 }
0x8ec4   :  { %v17058_v42 = vmul.f32 -1.442695, %v15177_v33  ;;  %v15176_v38 = vadd.f32 %v15167_v1, %v15083_v7 }
0x8ec6   :  { %20059 = vpow2.f32 %v17058_v42  ;;  %v17057_v22 = vmul.f32 -1.442695, %v15176_v38 }
0x8ec8   :  { %20061 = vpow2.f32 %v17057_v22 }
0x8ed3   :  { %v20060_v4 = vpop.eup %20059 }
0x8ed4   :  { %v15185_v39 = vadd.f32 1.0, %v20060_v4 }
0x8ed5   :  { %v20062_v35 = vpop.eup %20061 }
0x8ed6   :  { %20063 = vrcp.f32 %v15185_v39  ;;  %v15184_v32 = vadd.f32 1.0, %v20062_v35 }
0x8ed8   :  { %20065 = vrcp.f32 %v15184_v32 }
0x8ee3   :  { %v20064_v60 = vpop.eup %20063 }
0x8ee4   :  { %v15191_v30 = vmul.f32 %v20064_v60, %v23249_v13  ;;  %v23497_v13 = vld [vmem:[#allocation7] sm:$0xff]  ;;  %v15377_v33 = vsub.f32 1.0, %v20064_v60  ;;  %v15375_v1 = vmul.f32 %v20064_v60, %v23240_v52 }
0x8ee5   :  { %v20066_v48 = vpop.eup %20065  ;;  %19464 = vmatprep.subr.mxu1 %v23497_v13  ;;  %v23541_v60 = vld [vmem:[%s23731_s18 + $0x10] sm:$0xff] }
0x8ee6   :  { %19451 = vmatprep.subr.mxu0 %v15191_v30  ;;  %v15190_v16 = vmul.f32 %v20066_v48, %v23253_v51  ;;  %19465 = vmatpush3.msra.mxu1 %v23497_v13  ;;  %v15376_v42 = vsub.f32 1.0, %v20066_v48  ;;  %v15374_v4 = vmul.f32 %v20066_v48, %v23243_v20  ;;  %v23532_v20 = vld [vmem:[%s23731_s18 + $0x18] sm:$0xff]  ;;  %v23555_v48 = vld [vmem:[%s23731_s18] sm:$0xff] }
0x8ee7   :  { %19452 = vmatpush3.msra.mxu0 %v15191_v30  ;;  %v23548_v30 = vld [vmem:[%s23731_s18 + $0x8] sm:$0xff] }
0x8ee8   :  { %19453 = vmatprep.subr.mxu0 %v15190_v16 }
0x8ee9   :  { %19454 = vmatpush3.msra.mxu0 %v15190_v16  ;;  %v23573_v16 = vld [vmem:[#allocation2] sm:$0xff] }
0x8eea   :  { %19456 = vmatmul.mubr.msk.f32.vlgmr.msra.gmra.mxu0 %vm122_vm0, %v23435_v43 }
0x8eeb   :  { %19473 = vmatprep.mubr.msk.f32.mxu0 %vm122_vm0, %v23050_v56 }
0x8faa   :  { %v19457_v51 = vpop.f32.mrf.mxu0 }
0x8fac   :  { %v15258_v54 = vpop.f32.mrf.mxu0 }
0x8fad   :  { %19466 = vmatprep.mubr.msk.f32.mxu1 %vm297_vm3, %v15258_v54 }
0x8fae   :  { %19467 = vmatmul.mubr.msk.f32.vlgmr.msra.gmra.mxu1 %vm297_vm3, %v19457_v51 }
0x8faf   :  { %19491 = vmatprep.mubr.msk.f32.mxu1 %vm122_vm0, %v23050_v56 }
0x906e   :  { %v19468_v15 = vpop.f32.mrf.mxu1 }
0x906f   :  { %15356 = vrot.lane.b32.xlu0 %v19468_v15, %s20278_s25  ;;  %v15630_v15 = vld [vmem:[#allocation4] sm:$0xf] }
0x9070   :  { %v15343_v14 = vpop.f32.mrf.mxu1 }
0x9071   :  { %15354 = vrot.lane.b32.xlu1 %v15343_v14, %s20278_s25 }
0x90e1   :  { %v15357_v29 = vpop.permute.xlu0 %15356 }
0x90e2   :  { %v15361_v5 = vadd.f32 %v15357_v29, %v15088_v12 }
0x90e3   :  { %v15355_v2 = vpop.permute.xlu1 %15354 }
0x90e4   :  { %v17064_v17 = vmul.f32 -1.442695, %v15361_v5  ;;  %v15360_v21 = vadd.f32 %v15355_v2, %v15083_v7 }
0x90e6   :  { %20067 = vpow2.f32 %v17064_v17  ;;  %v17063_v62 = vmul.f32 -1.442695, %v15360_v21 }
0x90e8   :  { %20069 = vpow2.f32 %v17063_v62 }
0x90f3   :  { %v20068_v11 = vpop.eup %20067 }
0x90f4   :  { %v15369_v31 = vadd.f32 1.0, %v20068_v11 }
0x90f5   :  { %v20070_v47 = vpop.eup %20069 }
0x90f6   :  { %20071 = vrcp.f32 %v15369_v31  ;;  %v15368_v18 = vadd.f32 1.0, %v20070_v47 }
0x90f8   :  { %20073 = vrcp.f32 %v15368_v18 }
0x9103   :  { %v20072_v56 = vpop.eup %20071 }
0x9104   :  { %15382 = vrot.lane.b32.xlu0 %v20072_v56, %s20279_s24 }
0x9105   :  { %v20074_v44 = vpop.eup %20073 }
0x9106   :  { %15380 = vrot.lane.b32.xlu1 %v20074_v44, %s20279_s24 }
0x9176   :  { %v15383_v12 = vpop.permute.xlu0 %15382 }
0x9177   :  { %v15387_v7 = vmul.f32 %v15383_v12, %v15377_v33 }
0x9178   :  { %v15381_v38 = vpop.permute.xlu1 %15380 }
0x9179   :  { %v23510_v22 = vadd.f32 %v15387_v7, %v15375_v1  ;;  %v15386_v39 = vmul.f32 %v15381_v38, %v15376_v42 }
0x917b   :  { %v23513_v35 = vadd.f32 %v15386_v39, %v15374_v4  ;;  %15394 = vrot.lane.b32.xlu0 %v23510_v22, %s20279_s24 }
0x917d   :  { %15392 = vrot.lane.b32.xlu1 %v23513_v35, %s20279_s24 }
0x91ed   :  { %v23519_v32 = vpop.permute.xlu0 %15394 }
0x91ee   :  { %19469 = vmatprep.subr.mxu0 %v23519_v32 }
0x91ef   :  { %19470 = vmatpush3.msra.mxu0 %v23519_v32  ;;  %v23523_v52 = vpop.permute.xlu1 %15392 }
0x91f0   :  { %19471 = vmatprep.subr.mxu0 %v23523_v52 }
0x91f1   :  { %19472 = vmatpush3.msra.mxu0 %v23523_v52 }
0x91f2   :  { %19474 = vmatmul.mubr.msk.f32.vlgmr.msra.gmra.mxu0 %vm122_vm0, %v23435_v43  ;;  %19476 = vmatprep.subr.mxu0 %v23532_v20 }
0x91f3   :  { %19477 = vmatpush3.msra.mxu0 %v23532_v20  ;;  %19484 = vmatprep.mubr.msk.f32.mxu0 %vm297_vm3, %v23523_v52 }
0x91f4   :  { %19478 = vmatprep.subr.mxu0 %v23541_v60 }
0x91f5   :  { %19479 = vmatpush3.msra.mxu0 %v23541_v60 }
0x91f6   :  { %19480 = vmatprep.subr.mxu0 %v23548_v30 }
0x91f7   :  { %19481 = vmatpush3.msra.mxu0 %v23548_v30 }
0x91f8   :  { %19482 = vmatprep.subr.mxu0 %v23555_v48 }
0x91f9   :  { %19483 = vmatpush3.msra.mxu0 %v23555_v48 }
0x91fa   :  { %19485 = vmatmul.mubr.msk.f32.vlgmr.msra.gmra.mxu0 %vm297_vm3, %v23519_v32  ;;  %19499 = vmatprep.subr.mxu0 %v23270_v3 }
0x91fb   :  { %19500 = vmatpush3.msra.mxu0 %v23270_v3  ;;  %19507 = vmatprep.mubr.msk.f32.mxu0 %vm297_vm3, %v23459_v37 }
0x91fc   :  { %19501 = vmatprep.subr.mxu0 %v23277_v63 }
0x91fd   :  { %19502 = vmatpush3.msra.mxu0 %v23277_v63 }
0x91fe   :  { %19503 = vmatprep.subr.mxu0 %v23288_v50 }
0x91ff   :  { %19504 = vmatpush3.msra.mxu0 %v23288_v50  ;;  %v23584_v50 = vld [vmem:[%s23732_s19 + $0x8] sm:$0xff] }
0x9200   :  { %19505 = vmatprep.subr.mxu0 %v23295_v36 }
0x9201   :  { %19506 = vmatpush3.msra.mxu0 %v23295_v36 }
0x9202   :  { %19508 = vmatmul.mubr.msk.f32.vlgmr.msra.gmra.mxu0 %vm297_vm3, %v23457_v10  ;;  %v23594_v10 = vld [vmem:[%s23732_s19] sm:$0xff] }
0x9203   :  { %19532 = vmatprep.mubr.msk.f32.mxu0 %vm122_vm0, %v23573_v16 }
0x92b2   :  { %v23577_v3 = vpop.f32.mrf.mxu0 }
0x92b4   :  { %v23579_v37 = vpop.f32.mrf.mxu0 }
0x92ba   :  { %v19486_v63 = vpop.f32.mrf.mxu0 }
0x92bb   :  { %v15549_v36 = vadd.f32 %v23584_v50, %v19486_v63 }
0x92bc   :  { %v15543_v51 = vpop.f32.mrf.mxu0 }
0x92bd   :  { %17070 = vst.msk [vmem:[%s23733_s20 + $0x68] sm:$0xff] %vm207_vm2, %v15549_v36  ;;  %v15544_v54 = vadd.f32 %v23594_v10, %v15543_v51  ;;  %19487 = vmatprep.subr.mxu1 %v15549_v36 }
0x92be   :  { %19488 = vmatpush3.msra.mxu1 %v15549_v36 }
0x92bf   :  { %17069 = vst.msk [vmem:[%s23733_s20 + $0x60] sm:$0xff] %vm207_vm2, %v15544_v54  ;;  %19489 = vmatprep.subr.mxu1 %v15544_v54 }
0x92c0   :  { %19490 = vmatpush3.msra.mxu1 %v15544_v54 }
0x92c1   :  { %19492 = vmatmul.mubr.msk.f32.vlgmr.msra.gmra.mxu1 %vm122_vm0, %v23435_v43  ;;  %19494 = vmatprep.subr.msk.mxu1 %vm214_vm1, %v15630_v15 }
0x92c2   :  { %19495 = vmatpush3.msk.msra.mxu1 %vm214_vm1, %v15630_v15  ;;  %v19509_v5 = vpop.f32.mrf.mxu0 }
0x92c4   :  { %v15787_v31 = vpop.f32.mrf.mxu0 }
0x9381   :  { %v19493_v14 = vpop.f32.mrf.mxu1 }
0x9383   :  { %v15621_v29 = vpop.f32.mrf.mxu1 }
0x9384   :  { %19496 = vmatprep.mubr.msk.f32.mxu1 %vm207_vm2, %v15621_v29 }
0x9385   :  { %19497 = vmatmul.mubr.msk.f32.vlgmr.msra.gmra.mxu1 %vm207_vm2, %v19493_v14 }
0x9386   :  { %19514 = vmatprep.mubr.msk.f32.mxu1 %vm122_vm0, %v23573_v16 }
0x9445   :  { %v19498_v2 = vpop.f32.mrf.mxu1 }
0x9446   :  { %v15714_v17 = vadd.f32 %v19498_v2, %v23330_v8 }
0x9447   :  { %v15708_v21 = vpop.f32.mrf.mxu1 }
0x9448   :  { %v15797_v62 = vadd.f32 %v19509_v5, %v15714_v17  ;;  %v15709_v11 = vadd.f32 %v15708_v21, %v23335_v53 }
0x944a   :  { %v17079_v47 = vmul.f32 -1.442695, %v15797_v62  ;;  %v15796_v18 = vadd.f32 %v15787_v31, %v15709_v11 }
0x944c   :  { %20075 = vpow2.f32 %v17079_v47  ;;  %v17078_v56 = vmul.f32 -1.442695, %v15796_v18 }
0x944e   :  { %20077 = vpow2.f32 %v17078_v56 }
0x9459   :  { %v20076_v44 = vpop.eup %20075 }
0x945a   :  { %v15805_v33 = vadd.f32 1.0, %v20076_v44 }
0x945b   :  { %v20078_v12 = vpop.eup %20077 }
0x945c   :  { %20079 = vrcp.f32 %v15805_v33  ;;  %v15804_v1 = vadd.f32 1.0, %v20078_v12 }
0x945e   :  { %20081 = vrcp.f32 %v15804_v1 }
0x9469   :  { %v23611_v7 = vpop.eup %20079 }
0x946a   :  { %v15811_v8 = vmul.f32 %v23611_v7, %v23417_v24  ;;  %v15997_v39 = vsub.f32 1.0, %v23611_v7 }
0x946b   :  { %v23615_v42 = vpop.eup %20081 }
0x946c   :  { %19510 = vmatprep.subr.mxu1 %v15811_v8  ;;  %v15810_v53 = vmul.f32 %v23615_v42, %v23421_v28  ;;  %v15996_v36 = vsub.f32 1.0, %v23615_v42  ;;  %v15994_v15 = vmul.f32 %v23615_v42, %v23411_v27 }
0x946d   :  { %19511 = vmatpush3.msra.mxu1 %v15811_v8 }
0x946e   :  { %19512 = vmatprep.subr.mxu1 %v15810_v53 }
0x946f   :  { %19513 = vmatpush3.msra.mxu1 %v15810_v53 }
0x9470   :  { %19515 = vmatmul.mubr.msk.f32.vlgmr.msra.gmra.mxu1 %vm122_vm0, %v23435_v43  ;;  %19517 = vmatprep.subr.mxu1 %v23350_v23 }
0x9471   :  { %19518 = vmatpush3.msra.mxu1 %v23350_v23 }
0x9472   :  { %19519 = vmatprep.subr.mxu1 %v23355_v61 }
0x9473   :  { %19520 = vmatpush3.msra.mxu1 %v23355_v61 }
0x9474   :  { %19521 = vmatprep.subr.mxu1 %v23364_v55 }
0x9475   :  { %19522 = vmatpush3.msra.mxu1 %v23364_v55 }
0x9476   :  { %19523 = vmatprep.subr.mxu1 %v23373_v19 }
0x9477   :  { %19524 = vmatpush3.msra.mxu1 %v23373_v19 }
0x9478   :  { %19546 = vmatprep.subr.mxu1 %v23377_v0 }
0x9530   :  { %v19516_v24 = vpop.f32.mrf.mxu1 }
0x9532   :  { %v15878_v28 = vpop.f32.mrf.mxu1 }
0x9533   :  { %19525 = vmatprep.mubr.msk.f32.mxu1 %vm297_vm3, %v15878_v28 }
0x9534   :  { %19526 = vmatmul.mubr.msk.f32.vlgmr.msra.gmra.mxu1 %vm297_vm3, %v19516_v24 }
0x9535   :  { %19547 = vmatpush3.msra.mxu1 %v23377_v0  ;;  %19554 = vmatprep.mubr.msk.f32.mxu1 %vm297_vm3, %v23579_v37  ;;  %v15995_v37 = vmul.f32 %v23611_v7, %v23407_v57 }
0x9536   :  { %19548 = vmatprep.subr.mxu1 %v23381_v40 }
0x9537   :  { %19549 = vmatpush3.msra.mxu1 %v23381_v40 }
0x9538   :  { %19550 = vmatprep.subr.mxu1 %v23387_v9 }
0x9539   :  { %19551 = vmatpush3.msra.mxu1 %v23387_v9 }
0x953a   :  { %19552 = vmatprep.subr.mxu1 %v23391_v58 }
0x953b   :  { %19553 = vmatpush3.msra.mxu1 %v23391_v58 }
0x953c   :  { %19555 = vmatmul.mubr.msk.f32.vlgmr.msra.gmra.mxu1 %vm297_vm3, %v23577_v3  ;;  %19564 = vmatprep.subr.mxu1 %v23467_v59 }
0x953d   :  { %19565 = vmatpush3.msra.mxu1 %v23467_v59 }
0x953e   :  { %19566 = vmatprep.subr.mxu1 %v23469_v26 }
0x953f   :  { %19567 = vmatpush3.msra.mxu1 %v23469_v26 }
0x9540   :  { %19568 = vmatprep.subr.mxu1 %v23493_v25 }
0x9541   :  { %19569 = vmatpush3.msra.mxu1 %v23493_v25 }
0x9542   :  { %19570 = vmatprep.subr.mxu1 %v23497_v13 }
0x9543   :  { %19571 = vmatpush3.msra.mxu1 %v23497_v13 }
0x95f4   :  { %v19527_v23 = vpop.f32.mrf.mxu1 }
0x95f5   :  { %15976 = vrot.lane.b32.xlu0 %v19527_v23, %s20278_s25 }
0x95f6   :  { %v15963_v61 = vpop.f32.mrf.mxu1 }
0x95f7   :  { %15974 = vrot.lane.b32.xlu1 %v15963_v61, %s20278_s25 }
0x9667   :  { %v15977_v55 = vpop.permute.xlu0 %15976 }
0x9668   :  { %v15981_v19 = vadd.f32 %v15977_v55, %v15714_v17 }
0x9669   :  { %v15975_v0 = vpop.permute.xlu1 %15974 }
0x966a   :  { %v17085_v40 = vmul.f32 -1.442695, %v15981_v19  ;;  %v15980_v9 = vadd.f32 %v15975_v0, %v15709_v11 }
0x966c   :  { %20083 = vpow2.f32 %v17085_v40  ;;  %v17084_v58 = vmul.f32 -1.442695, %v15980_v9 }
0x966e   :  { %20085 = vpow2.f32 %v17084_v58 }
0x9679   :  { %v20084_v59 = vpop.eup %20083 }
0x967a   :  { %v15989_v26 = vadd.f32 1.0, %v20084_v59 }
0x967b   :  { %v20086_v25 = vpop.eup %20085 }
0x967c   :  { %20087 = vrcp.f32 %v15989_v26  ;;  %v15988_v38 = vadd.f32 1.0, %v20086_v25 }
0x967e   :  { %20089 = vrcp.f32 %v15988_v38 }
0x9689   :  { %v20088_v13 = vpop.eup %20087 }
0x968a   :  { %16002 = vrot.lane.b32.xlu0 %v20088_v13, %s20279_s24 }
0x968b   :  { %v20090_v4 = vpop.eup %20089 }
0x968c   :  { %16000 = vrot.lane.b32.xlu1 %v20090_v4, %s20279_s24 }
0x96fc   :  { %v16003_v3 = vpop.permute.xlu0 %16002 }
0x96fd   :  { %v16007_v63 = vmul.f32 %v16003_v3, %v15997_v39 }
0x96fe   :  { %v16001_v51 = vpop.permute.xlu1 %16000 }
0x96ff   :  { %v16009_v54 = vadd.f32 %v16007_v63, %v15995_v37  ;;  %v16006_v14 = vmul.f32 %v16001_v51, %v15996_v36 }
0x9701   :  { %v16008_v29 = vadd.f32 %v16006_v14, %v15994_v15  ;;  %16014 = vrot.lane.b32.xlu0 %v16009_v54, %s20279_s24 }
0x9703   :  { %16012 = vrot.lane.b32.xlu1 %v16008_v29, %s20279_s24 }
0x9773   :  { %v16015_v5 = vpop.permute.xlu0 %16014 }
0x9774   :  { %19528 = vmatprep.subr.mxu0 %v16015_v5 }
0x9775   :  { %19529 = vmatpush3.msra.mxu0 %v16015_v5  ;;  %v16013_v2 = vpop.permute.xlu1 %16012 }
0x9776   :  { %19530 = vmatprep.subr.mxu0 %v16013_v2 }
0x9777   :  { %19531 = vmatpush3.msra.mxu0 %v16013_v2 }
0x9778   :  { %19533 = vmatmul.mubr.msk.f32.vlgmr.msra.gmra.mxu0 %vm122_vm0, %v23435_v43  ;;  %19535 = vmatprep.subr.mxu0 %v23426_v46 }
0x9779   :  { %19536 = vmatpush3.msra.mxu0 %v23426_v46  ;;  %v19556_v46 = vpop.f32.mrf.mxu1 }
0x977a   :  { %19537 = vmatprep.subr.mxu0 %v23433_v45 }
0x977b   :  { %19538 = vmatpush3.msra.mxu0 %v23433_v45  ;;  %v16256_v11 = vpop.f32.mrf.mxu1 }
0x977c   :  { %19539 = vmatprep.subr.mxu0 %v23446_v41 }
0x977d   :  { %19540 = vmatpush3.msra.mxu0 %v23446_v41 }
0x977e   :  { %19541 = vmatprep.subr.mxu0 %v23453_v34 }
0x977f   :  { %19542 = vmatpush3.msra.mxu0 %v23453_v34 }
0x9838   :  { %v19534_v57 = vpop.f32.mrf.mxu0 }
0x983a   :  { %v16084_v27 = vpop.f32.mrf.mxu0 }
0x983b   :  { %19543 = vmatprep.mubr.msk.f32.mxu0 %vm297_vm3, %v16084_v27 }
0x983c   :  { %19544 = vmatmul.mubr.msk.f32.vlgmr.msra.gmra.mxu0 %vm297_vm3, %v19534_v57 }
0x983d   :  { %19561 = vmatprep.mubr.msk.f32.mxu0 %vm122_vm0, %v23573_v16 }
0x98fc   :  { %v19545_v17 = vpop.f32.mrf.mxu0 }
0x98fd   :  { %v16177_v45 = vadd.f32 %v19545_v17, %v23478_v6 }
0x98fe   :  { %v16171_v21 = vpop.f32.mrf.mxu0 }
0x98ff   :  { %v16266_v62 = vadd.f32 %v19556_v46, %v16177_v45  ;;  %v16172_v41 = vadd.f32 %v16171_v21, %v23483_v49 }
0x9901   :  { %v17093_v31 = vmul.f32 -1.442695, %v16266_v62  ;;  %v16265_v34 = vadd.f32 %v16256_v11, %v16172_v41 }
0x9903   :  { %20091 = vpow2.f32 %v17093_v31  ;;  %v17092_v47 = vmul.f32 -1.442695, %v16265_v34 }
0x9905   :  { %20093 = vpow2.f32 %v17092_v47 }
0x9910   :  { %v20092_v18 = vpop.eup %20091 }
0x9911   :  { %v16274_v56 = vadd.f32 1.0, %v20092_v18 }
0x9912   :  { %v20094_v44 = vpop.eup %20093 }
0x9913   :  { %20095 = vrcp.f32 %v16274_v56  ;;  %v16273_v33 = vadd.f32 1.0, %v20094_v44 }
0x9915   :  { %20097 = vrcp.f32 %v16273_v33 }
0x9920   :  { %v20096_v16 = vpop.eup %20095 }
0x9921   :  { %v16280_v12 = vmul.f32 %v20096_v16, %v23519_v32  ;;  %v16466_v55 = vsub.f32 1.0, %v20096_v16  ;;  %v16464_v0 = vmul.f32 %v20096_v16, %v23510_v22 }
0x9922   :  { %v20098_v6 = vpop.eup %20097 }
0x9923   :  { %19557 = vmatprep.subr.mxu0 %v16280_v12  ;;  %v16279_v1 = vmul.f32 %v20098_v6, %v23523_v52  ;;  %v16465_v9 = vsub.f32 1.0, %v20098_v6  ;;  %v16463_v26 = vmul.f32 %v20098_v6, %v23513_v35 }
0x9924   :  { %19558 = vmatpush3.msra.mxu0 %v16280_v12 }
0x9925   :  { %19559 = vmatprep.subr.mxu0 %v16279_v1 }
0x9926   :  { %19560 = vmatpush3.msra.mxu0 %v16279_v1 }
0x9927   :  { %19562 = vmatmul.mubr.msk.f32.vlgmr.msra.gmra.mxu0 %vm122_vm0, %v23435_v43  ;;  %19575 = vmatprep.subr.mxu0 %v23532_v20 }
0x9928   :  { %19576 = vmatpush3.msra.mxu0 %v23532_v20 }
0x9929   :  { %19577 = vmatprep.subr.mxu0 %v23541_v60 }
0x992a   :  { %19578 = vmatpush3.msra.mxu0 %v23541_v60 }
0x992b   :  { %19579 = vmatprep.subr.mxu0 %v23548_v30 }
0x992c   :  { %19580 = vmatpush3.msra.mxu0 %v23548_v30 }
0x992d   :  { %19581 = vmatprep.subr.mxu0 %v23555_v48 }
0x992e   :  { %19582 = vmatpush3.msra.mxu0 %v23555_v48 }
0x99e7   :  { %v19563_v49 = vpop.f32.mrf.mxu0 }
0x99e9   :  { %v16347_v32 = vpop.f32.mrf.mxu0 }
0x99ea   :  { %19572 = vmatprep.mubr.msk.f32.mxu1 %vm297_vm3, %v16347_v32 }
0x99eb   :  { %19573 = vmatmul.mubr.msk.f32.vlgmr.msra.gmra.mxu1 %vm297_vm3, %v19563_v49 }
0x9aab   :  { %v19574_v43 = vpop.f32.mrf.mxu1 }
0x9aac   :  { %16445 = vrot.lane.b32.xlu1 %v19574_v43, %s20278_s25 }
0x9aad   :  { %v16432_v52 = vpop.f32.mrf.mxu1 }
0x9aae   :  { %16443 = vrot.lane.b32.xlu0 %v16432_v52, %s20278_s25 }
0x9b1e   :  { %v16446_v20 = vpop.permute.xlu1 %16445 }
0x9b1f   :  { %v16450_v60 = vadd.f32 %v16446_v20, %v16177_v45 }
0x9b20   :  { %v16444_v7 = vpop.permute.xlu0 %16443 }
0x9b21   :  { %v17099_v30 = vmul.f32 -1.442695, %v16450_v60  ;;  %v16449_v8 = vadd.f32 %v16444_v7, %v16172_v41 }
0x9b23   :  { %20099 = vpow2.f32 %v17099_v30  ;;  %v17098_v42 = vmul.f32 -1.442695, %v16449_v8 }
0x9b25   :  { %20101 = vpow2.f32 %v17098_v42 }
0x9b30   :  { %v20100_v48 = vpop.eup %20099 }
0x9b31   :  { %v16458_v53 = vadd.f32 1.0, %v20100_v48 }
0x9b32   :  { %v20102_v24 = vpop.eup %20101 }
0x9b33   :  { %20103 = vrcp.f32 %v16458_v53  ;;  %v16457_v28 = vadd.f32 1.0, %v20102_v24 }
0x9b35   :  { %20105 = vrcp.f32 %v16457_v28 }
0x9b40   :  { %v20104_v23 = vpop.eup %20103 }
0x9b41   :  { %16471 = vrot.lane.b32.xlu1 %v20104_v23, %s20279_s24 }
0x9b42   :  { %v20106_v61 = vpop.eup %20105 }
0x9b43   :  { %16469 = vrot.lane.b32.xlu0 %v20106_v61, %s20279_s24 }
0x9bb3   :  { %v16472_v19 = vpop.permute.xlu1 %16471 }
0x9bb4   :  { %v16476_v40 = vmul.f32 %v16472_v19, %v16466_v55 }
0x9bb5   :  { %v16470_v58 = vpop.permute.xlu0 %16469 }
0x9bb6   :  { %v16478_v59 = vadd.f32 %v16476_v40, %v16464_v0  ;;  %v16475_v25 = vmul.f32 %v16470_v58, %v16465_v9 }
0x9bb8   :  { %v16477_v38 = vadd.f32 %v16475_v25, %v16463_v26  ;;  %16483 = vrot.lane.b32.xlu1 %v16478_v59, %s20279_s24 }
0x9bba   :  { %16481 = vrot.lane.b32.xlu0 %v16477_v38, %s20279_s24 }
0x9c2a   :  { %v16484_v4 = vpop.permute.xlu1 %16483 }
0x9c2c   :  { %v16482_v13 = vpop.permute.xlu0 %16481 }
0x9c2d   :  { %19583 = vmatprep.mubr.msk.f32.mxu0 %vm297_vm3, %v16482_v13 }
0x9c2e   :  { %19584 = vmatmul.mubr.msk.f32.vlgmr.msra.gmra.mxu0 %vm297_vm3, %v16484_v4 }
0x9cee   :  { %v19585_v39 = vpop.f32.mrf.mxu0 }
0x9cef   :  { %v16561_v22 = vadd.f32 %v23584_v50, %v19585_v39 }
0x9cf0   :  { %v16555_v3 = vpop.f32.mrf.mxu0 }
0x9cf1   :  { %17103 = vst.msk [vmem:[%s23733_s20 + $0x78] sm:$0xff] %vm207_vm2, %v16561_v22  ;;  %v16556_v35 = vadd.f32 %v23594_v10, %v16555_v3 }
0x9cf3   :  { %17102 = vst.msk [vmem:[%s23733_s20 + $0x70] sm:$0xff] %vm207_vm2, %v16556_v35 }
0x9cf4   :  { %16571 = vsyncpa [#allocation3], 1 }
0x9cf5   :  { %16572 = vsyncpa [#allocation5], 1 }
0x9cf6   :  { %16573 = vsyncpa [#allocation8], 1 }

</bundles_post_ra>
